<compile_context>
chip_gen: v6e
topology: v6e:2x2x1
jax: 0.10.0
libtpu: 0.0.40
codegen_flags: <defaults>
</compile_context>

<pallas_src>
import jax
import jax.numpy as jnp
import numpy as np
from jax import lax
from jax.experimental import pallas as pl
from jax.experimental.pallas import tpu as pltpu


# ---------------------------------------------------------------------------
# Kernel 1: fused conv (matmul over 6x6/stride-2 pool patches) + bias + ReLU
#           + 2x2/2 max-pool epilogue.
#   p_ref : (tm, 36*Cin)       bf16  -- one im2col row per POOLED output pixel
#   w_ref : (4, 36*Cin, Cout)  bf16  -- zero-expanded 5x5 weights per pool pos
#   b_ref : (1, Cout)          f32
#   o_ref : (tm, Cout)         bf16  -- pooled activation rows
# ---------------------------------------------------------------------------
def _conv_relu_pool_kernel(p_ref, w_ref, b_ref, o_ref):
    p = p_ref[...]
    acc = jnp.dot(p, w_ref[0], preferred_element_type=jnp.float32)
    for q in range(1, 4):
        acc = jnp.maximum(
            acc, jnp.dot(p, w_ref[q], preferred_element_type=jnp.float32))
    o_ref[...] = jnp.maximum(acc + b_ref[...], 0.0).astype(o_ref.dtype)


# ---------------------------------------------------------------------------
# Kernel 2: whole FC chain (fc0..fc3).  Weights have constant index_maps so
# they stay VMEM-resident across the batch-tile grid (no re-DMA).
# ---------------------------------------------------------------------------
def _fc_chain_kernel(x_ref, w0, b0, w1, b1, w2, b2, w3, b3, o_ref):
    def layer(h, w_ref, b_ref, relu):
        y = jnp.dot(h, w_ref[...], preferred_element_type=jnp.float32)
        y = y + b_ref[...]
        return jnp.maximum(y, 0.0) if relu else y

    h = x_ref[0]                                        # (tb, 1296) bf16
    h = layer(h, w0, b0, True).astype(jnp.bfloat16)
    h = layer(h, w1, b1, True).astype(jnp.bfloat16)
    h = layer(h, w2, b2, True).astype(jnp.bfloat16)
    o_ref[0] = layer(h, w3, b3, False).astype(o_ref.dtype)


# ---------------------------------------------------------------------------
# Tiling helpers
# ---------------------------------------------------------------------------
def _m_tile(mo, tm):
    """M-tile: big tiles when M is large; split in 2 (x16-aligned) when one
    tile would cover everything, so v7x's second TensorCore gets work."""
    if mo > tm:
        return tm
    half = max(16, (((mo + 1) // 2 + 15) // 16) * 16)
    return min(half, mo)


def _batch_tile(batch, max_tb=256):
    """Largest divisor of batch that is <= max_tb while keeping >=2 grid
    steps when possible (megacore)."""
    best = 1
    for tb in range(1, min(batch, max_tb) + 1):
        if batch % tb == 0 and (batch // tb >= 2 or batch == 1):
            best = tb
    return best


# ---------------------------------------------------------------------------
# Wrappers
# ---------------------------------------------------------------------------
def _pool_patches(x):
    """x: (B,H,W,C) NHWC -> im2col rows for conv(5x5,VALID) + maxpool(2,2).

    Row r = (b,i,j) pooled output pixel; features ordered (u,v,c) over the
    6x6 input window starting at (2i,2j).  The final flatten is metadata-only
    (no HBM transpose pass)."""
    B, H, W, C = x.shape
    Hp, Wp = (H - 6) // 2 + 1, (W - 6) // 2 + 1
    cols = [x[:, u:u + 2 * Hp - 1:2, v:v + 2 * Wp - 1:2, :]
            for u in range(6) for v in range(6)]
    patches = jnp.concatenate(cols, axis=-1)            # (B, Hp, Wp, 36*C)
    return patches.reshape(B * Hp * Wp, 36 * C), Hp, Wp


def conv_relu_pool(x_nhwc, w4, b_row, *, tm=1024):
    """Valid 5x5 conv (stride 1) + bias + ReLU + 2x2/2 max-pool, NHWC->NHWC."""
    B, H, W, C = x_nhwc.shape
    assert H % 2 == 0 and W % 2 == 0 and H >= 6 and W >= 6  # 48x48 / 22x22 ok
    Cout = w4.shape[-1]
    patches, Hp, Wp = _pool_patches(x_nhwc)
    Mo, K6 = patches.shape
    tmo = _m_tile(Mo, tm)
    out = pl.pallas_call(
        _conv_relu_pool_kernel,
        out_shape=jax.ShapeDtypeStruct((Mo, Cout), jnp.bfloat16),
        grid=(pl.cdiv(Mo, tmo),),
        in_specs=[
            pl.BlockSpec((tmo, K6), lambda i: (i, 0)),
            pl.BlockSpec(w4.shape, lambda i: (0, 0, 0)),
            pl.BlockSpec(b_row.shape, lambda i: (0, 0)),
        ],
        out_specs=pl.BlockSpec((tmo, Cout), lambda i: (i, 0)),
        compiler_params=pltpu.CompilerParams(
            dimension_semantics=("parallel",)),
    )(patches, w4, b_row)
    return out.reshape(B, Hp, Wp, Cout)


def fc_chain(x_flat, kp, *, max_tb=256):
    """All four Linear layers in one batch-tiled, weight-resident kernel."""
    B, D = x_flat.shape
    tb = _batch_tile(B, max_tb)
    nb = B // tb
    x3 = x_flat.reshape(nb, tb, D)                      # metadata-only
    ws = [kp["fc0_w"], kp["fc0_b"], kp["fc1_w"], kp["fc1_b"],
          kp["fc2_w"], kp["fc2_b"], kp["fc3_w"], kp["fc3_b"]]
    n_out = kp["fc3_w"].shape[1]
    out = pl.pallas_call(
        _fc_chain_kernel,
        out_shape=jax.ShapeDtypeStruct((nb, tb, n_out), jnp.float32),
        grid=(nb,),
        in_specs=[pl.BlockSpec((1, tb, D), lambda i: (i, 0, 0))]
                 + [pl.BlockSpec(w.shape, lambda i: (0, 0)) for w in ws],
        out_specs=pl.BlockSpec((1, tb, n_out), lambda i: (i, 0, 0)),
        compiler_params=pltpu.CompilerParams(
            dimension_semantics=("parallel",),
            vmem_limit_bytes=32 * 1024 * 1024),
    )(x3, *ws)
    return out.reshape(B, n_out)


# ---------------------------------------------------------------------------
# Parameters: PyTorch-default-style init (f32 master, PyTorch layouts),
# converted ONCE to kernel-ready layouts.
# ---------------------------------------------------------------------------
def init_params(key):
    def uniform(k, shape, fan_in):
        bound = 1.0 / float(fan_in) ** 0.5
        return jax.random.uniform(k, shape, jnp.float32, -bound, bound)

    ks = jax.random.split(key, 12)
    return {
        "conv1_w": uniform(ks[0], (6, 3, 5, 5), 3 * 25),
        "conv1_b": uniform(ks[1], (6,), 3 * 25),
        "conv2_w": uniform(ks[2], (16, 6, 5, 5), 6 * 25),
        "conv2_b": uniform(ks[3], (16,), 6 * 25),
        "fc0_w": uniform(ks[4], (1296, 900), 1296),   # = torch weight.T
        "fc0_b": uniform(ks[5], (900,), 1296),
        "fc1_w": uniform(ks[6], (900, 600), 900),
        "fc1_b": uniform(ks[7], (600,), 900),
        "fc2_w": uniform(ks[8], (600, 300), 600),
        "fc2_b": uniform(ks[9], (300,), 600),
        "fc3_w": uniform(ks[10], (300, 2), 300),
        "fc3_b": uniform(ks[11], (2,), 300),
    }


def prepare_params(p):
    """One-time conversion: no per-forward padding / casting / permuting."""

    def conv_w_pool(w):
        # (Cout,Cin,5,5) torch layout -> (4, 36*Cin, Cout) bf16.
        # Rows ordered (u,v,c) over the 6x6 pool-patch window; matrix q holds
        # the 5x5 kernel placed at offset (di,dj)=divmod(q,2), zeros elsewhere,
        # so patch_row @ W[q] == conv output at pool position q.
        Cout, Cin, K, _ = w.shape
        t = jnp.transpose(w, (2, 3, 1, 0)).astype(jnp.float32)   # (K,K,Cin,Cout)
        mats = []
        for di in range(2):
            for dj in range(2):
                wp = jnp.zeros((6, 6, Cin, Cout), jnp.float32)
                wp = wp.at[di:di + K, dj:dj + K, :, :].set(t)
                mats.append(wp.reshape(36 * Cin, Cout))
        return jnp.stack(mats, 0).astype(jnp.bfloat16)

    # fc0 consumes conv2's output flattened in NHWC (h,w,c) order, while
    # torch's x.view(-1,1296) flattens NCHW (c,h,w): permute fc0 rows once.
    w0 = (p["fc0_w"].reshape(16, 9, 9, 900)
          .transpose(1, 2, 0, 3).reshape(1296, 900))

    kp = {
        "conv1_w": conv_w_pool(p["conv1_w"]),
        "conv1_b": p["conv1_b"].reshape(1, -1).astype(jnp.float32),
        "conv2_w": conv_w_pool(p["conv2_w"]),
        "conv2_b": p["conv2_b"].reshape(1, -1).astype(jnp.float32),
        "fc0_w": w0.astype(jnp.bfloat16),
        "fc0_b": p["fc0_b"].reshape(1, -1).astype(jnp.float32),
    }
    for i in (1, 2, 3):
        kp[f"fc{i}_w"] = p[f"fc{i}_w"].astype(jnp.bfloat16)       # (in, out)
        kp[f"fc{i}_b"] = p[f"fc{i}_b"].reshape(1, -1).astype(jnp.float32)
    return kp


# ---------------------------------------------------------------------------
# Forward pass == Net.forward
# ---------------------------------------------------------------------------
@jax.jit
def net_forward(kp, x):
    x = x.transpose(0, 2, 3, 1).astype(jnp.bfloat16)          # NCHW -> NHWC bf16
    x = conv_relu_pool(x, kp["conv1_w"], kp["conv1_b"])       # (B,22,22,6) bf16
    x = conv_relu_pool(x, kp["conv2_w"], kp["conv2_b"])       # (B,9,9,16)  bf16
    x = x.reshape(x.shape[0], -1)                             # (B,1296), (h,w,c)
    return fc_chain(x, kp)                                    # (B,2) f32


# ---------------------------------------------------------------------------
# Pure-JAX reference with the same precision policy (bf16 inputs to every
# matmul/conv, f32 accumulation) and the original PyTorch weight layouts;
# independently checks the pool-patch / weight-expansion / flatten folding.
# ---------------------------------------------------------------------------
@jax.jit
def reference_forward(p, x):
    h = x.transpose(0, 2, 3, 1).astype(jnp.bfloat16)

    def conv_pool(h, w, b):
        w_hwio = jnp.transpose(w, (2, 3, 1, 0)).astype(jnp.bfloat16)
        y = lax.conv_general_dilated(
            h, w_hwio, (1, 1), "VALID",
            dimension_numbers=("NHWC", "HWIO", "NHWC"),
            preferred_element_type=jnp.float32)
        y = jnp.maximum(y + b.reshape(1, 1, 1, -1), 0.0)
        y = lax.reduce_window(y, -jnp.inf, lax.max,
                              (1, 2, 2, 1), (1, 2, 2, 1), "VALID")
        return y.astype(jnp.bfloat16)

    h = conv_pool(h, p["conv1_w"], p["conv1_b"])
    h = conv_pool(h, p["conv2_w"], p["conv2_b"])
    h = jnp.transpose(h, (0, 3, 1, 2)).reshape(h.shape[0], -1)   # torch view order

    def dense(h, w, b, relu):
        y = jnp.dot(h.astype(jnp.bfloat16), w.astype(jnp.bfloat16),
                    preferred_element_type=jnp.float32) + b
        return jnp.maximum(y, 0.0) if relu else y

    h = dense(h, p["fc0_w"], p["fc0_b"], True)
    h = dense(h, p["fc1_w"], p["fc1_b"], True)
    h = dense(h, p["fc2_w"], p["fc2_b"], True)
    return dense(h, p["fc3_w"], p["fc3_b"], False)


if __name__ == "__main__":
    key = jax.random.PRNGKey(0)
    pkey, xkey = jax.random.split(key)
    params = init_params(pkey)
    kparams = prepare_params(params)
    # Input implied by fc0(1296): (B, 3, 48, 48) in NCHW.
    x = jax.random.normal(xkey, (2, 3, 48, 48), jnp.float32)

    out = jax.block_until_ready(net_forward(kparams, x))
    assert out.shape == (2, 2) and out.dtype == jnp.float32

    ref = jax.block_until_ready(reference_forward(params, x))
    np.testing.assert_allclose(np.asarray(out), np.asarray(ref),
                               rtol=2e-2, atol=2e-2)
    print("KERNEL_OK")
</pallas_src>

<mosaic_0001>
module attributes {stable_mosaic.version = 11 : i64} {
  func.func @_conv_relu_pool_kernel(%arg0: i32, %arg1: memref<496x108xbf16, #tpu.memory_space<vmem>>, %arg2: memref<4x108x6xbf16, #tpu.memory_space<vmem>>, %arg3: memref<1x6xf32, #tpu.memory_space<vmem>>, %arg4: memref<496x6xbf16, #tpu.memory_space<vmem>>) attributes {dimension_semantics = [#tpu.dimension_semantics<parallel>], iteration_bounds = array<i64: 2>, scalar_prefetch = 0 : i64, scratch_operands = 0 : i64, tpu.core_type = #tpu.core_type<tc>, window_params = [{transform_indices = @transform_0, window_bounds = array<i64: 496, 108>}, {pipeline_mode = #tpu.pipeline_mode<synchronous>, transform_indices = @transform_1, window_bounds = array<i64: 4, 108, 6>}, {pipeline_mode = #tpu.pipeline_mode<synchronous>, transform_indices = @transform_2, window_bounds = array<i64: 1, 6>}, {transform_indices = @transform_3, window_bounds = array<i64: 496, 6>}]} {
    %c0 = arith.constant 0 : index
    %c0_0 = arith.constant 0 : index
    %0 = vector.load %arg1[%c0, %c0_0] : memref<496x108xbf16, #tpu.memory_space<vmem>>, vector<496x108xbf16>
    %c0_1 = arith.constant 0 : index
    %c0_2 = arith.constant 0 : index
    %c0_3 = arith.constant 0 : index
    %1 = vector.load %arg2[%c0_1, %c0_2, %c0_3] : memref<4x108x6xbf16, #tpu.memory_space<vmem>>, vector<1x108x6xbf16>
    %2 = vector.shape_cast %1 : vector<1x108x6xbf16> to vector<108x6xbf16>
    %cst = arith.constant dense<0.000000e+00> : vector<496x6xf32>
    %3 = tpu.matmul %0, %2, %cst {dimension_numbers = #tpu.dot_dimension_numbers<[1], [0], [0], [1], [0, 0, 1, 1], [], []>} : vector<496x108xbf16>, vector<108x6xbf16>, vector<496x6xf32> -> vector<496x6xf32>
    %c1 = arith.constant 1 : index
    %c0_4 = arith.constant 0 : index
    %c0_5 = arith.constant 0 : index
    %4 = vector.load %arg2[%c1, %c0_4, %c0_5] : memref<4x108x6xbf16, #tpu.memory_space<vmem>>, vector<1x108x6xbf16>
    %5 = vector.shape_cast %4 : vector<1x108x6xbf16> to vector<108x6xbf16>
    %cst_6 = arith.constant dense<0.000000e+00> : vector<496x6xf32>
    %6 = tpu.matmul %0, %5, %cst_6 {dimension_numbers = #tpu.dot_dimension_numbers<[1], [0], [0], [1], [0, 0, 1, 1], [], []>} : vector<496x108xbf16>, vector<108x6xbf16>, vector<496x6xf32> -> vector<496x6xf32>
    %7 = arith.maximumf %3, %6 : vector<496x6xf32>
    %c2 = arith.constant 2 : index
    %c0_7 = arith.constant 0 : index
    %c0_8 = arith.constant 0 : index
    %8 = vector.load %arg2[%c2, %c0_7, %c0_8] : memref<4x108x6xbf16, #tpu.memory_space<vmem>>, vector<1x108x6xbf16>
    %9 = vector.shape_cast %8 : vector<1x108x6xbf16> to vector<108x6xbf16>
    %cst_9 = arith.constant dense<0.000000e+00> : vector<496x6xf32>
    %10 = tpu.matmul %0, %9, %cst_9 {dimension_numbers = #tpu.dot_dimension_numbers<[1], [0], [0], [1], [0, 0, 1, 1], [], []>} : vector<496x108xbf16>, vector<108x6xbf16>, vector<496x6xf32> -> vector<496x6xf32>
    %11 = arith.maximumf %7, %10 : vector<496x6xf32>
    %c3 = arith.constant 3 : index
    %c0_10 = arith.constant 0 : index
    %c0_11 = arith.constant 0 : index
    %12 = vector.load %arg2[%c3, %c0_10, %c0_11] : memref<4x108x6xbf16, #tpu.memory_space<vmem>>, vector<1x108x6xbf16>
    %13 = vector.shape_cast %12 : vector<1x108x6xbf16> to vector<108x6xbf16>
    %cst_12 = arith.constant dense<0.000000e+00> : vector<496x6xf32>
    %14 = tpu.matmul %0, %13, %cst_12 {dimension_numbers = #tpu.dot_dimension_numbers<[1], [0], [0], [1], [0, 0, 1, 1], [], []>} : vector<496x108xbf16>, vector<108x6xbf16>, vector<496x6xf32> -> vector<496x6xf32>
    %15 = arith.maximumf %11, %14 : vector<496x6xf32>
    %c0_13 = arith.constant 0 : index
    %c0_14 = arith.constant 0 : index
    %16 = vector.load %arg3[%c0_13, %c0_14] : memref<1x6xf32, #tpu.memory_space<vmem>>, vector<1x6xf32>
    %17 = vector.broadcast %16 : vector<1x6xf32> to vector<496x6xf32>
    %18 = arith.addf %15, %17 : vector<496x6xf32>
    %cst_15 = arith.constant 0.000000e+00 : f32
    %19 = vector.broadcast %cst_15 : f32 to vector<496x6xf32>
    %20 = arith.maximumf %18, %19 : vector<496x6xf32>
    %21 = arith.truncf %20 : vector<496x6xf32> to vector<496x6xbf16>
    %c0_16 = arith.constant 0 : index
    %c0_17 = arith.constant 0 : index
    %22 = vector.load %arg4[%c0_16, %c0_17] : memref<496x6xbf16, #tpu.memory_space<vmem>>, vector<496x6xbf16>
    tpu.vector_store %arg4[%c0_16, %c0_17], %21 {strides = array<i32>} : memref<496x6xbf16, #tpu.memory_space<vmem>>, vector<496x6xbf16>,
    return
  }
  func.func @transform_0(%arg0: i32) -> (i32, i32) {
    %c0_i32 = arith.constant 0 : i32
    %c0_i32_0 = arith.constant 0 : i32
    return %arg0, %c0_i32 : i32, i32
  }
  func.func @transform_1(%arg0: i32) -> (i32, i32, i32) {
    %c0_i32 = arith.constant 0 : i32
    %c0_i32_0 = arith.constant 0 : i32
    %c0_i32_1 = arith.constant 0 : i32
    %c0_i32_2 = arith.constant 0 : i32
    return %c0_i32, %c0_i32_0, %c0_i32_1 : i32, i32, i32
  }
  func.func @transform_2(%arg0: i32) -> (i32, i32) {
    %c0_i32 = arith.constant 0 : i32
    %c0_i32_0 = arith.constant 0 : i32
    %c0_i32_1 = arith.constant 0 : i32
    return %c0_i32, %c0_i32_0 : i32, i32
  }
  func.func @transform_3(%arg0: i32) -> (i32, i32) {
    %c0_i32 = arith.constant 0 : i32
    %c0_i32_0 = arith.constant 0 : i32
    return %arg0, %c0_i32 : i32, i32
  }
}

module attributes {stable_mosaic.version = 11 : i64} {
  func.func @_conv_relu_pool_kernel(%arg0: i32, %arg1: memref<96x216xbf16, #tpu.memory_space<vmem>>, %arg2: memref<4x216x16xbf16, #tpu.memory_space<vmem>>, %arg3: memref<1x16xf32, #tpu.memory_space<vmem>>, %arg4: memref<96x16xbf16, #tpu.memory_space<vmem>>) attributes {dimension_semantics = [#tpu.dimension_semantics<parallel>], iteration_bounds = array<i64: 2>, scalar_prefetch = 0 : i64, scratch_operands = 0 : i64, tpu.core_type = #tpu.core_type<tc>, window_params = [{transform_indices = @transform_0, window_bounds = array<i64: 96, 216>}, {pipeline_mode = #tpu.pipeline_mode<synchronous>, transform_indices = @transform_1, window_bounds = array<i64: 4, 216, 16>}, {pipeline_mode = #tpu.pipeline_mode<synchronous>, transform_indices = @transform_2, window_bounds = array<i64: 1, 16>}, {transform_indices = @transform_3, window_bounds = array<i64: 96, 16>}]} {
    %c0 = arith.constant 0 : index
    %c0_0 = arith.constant 0 : index
    %0 = vector.load %arg1[%c0, %c0_0] : memref<96x216xbf16, #tpu.memory_space<vmem>>, vector<96x216xbf16>
    %c0_1 = arith.constant 0 : index
    %c0_2 = arith.constant 0 : index
    %c0_3 = arith.constant 0 : index
    %1 = vector.load %arg2[%c0_1, %c0_2, %c0_3] : memref<4x216x16xbf16, #tpu.memory_space<vmem>>, vector<1x216x16xbf16>
    %2 = vector.shape_cast %1 : vector<1x216x16xbf16> to vector<216x16xbf16>
    %cst = arith.constant dense<0.000000e+00> : vector<96x16xf32>
    %3 = tpu.matmul %0, %2, %cst {dimension_numbers = #tpu.dot_dimension_numbers<[1], [0], [0], [1], [0, 0, 1, 1], [], []>} : vector<96x216xbf16>, vector<216x16xbf16>, vector<96x16xf32> -> vector<96x16xf32>
    %c1 = arith.constant 1 : index
    %c0_4 = arith.constant 0 : index
    %c0_5 = arith.constant 0 : index
    %4 = vector.load %arg2[%c1, %c0_4, %c0_5] : memref<4x216x16xbf16, #tpu.memory_space<vmem>>, vector<1x216x16xbf16>
    %5 = vector.shape_cast %4 : vector<1x216x16xbf16> to vector<216x16xbf16>
    %cst_6 = arith.constant dense<0.000000e+00> : vector<96x16xf32>
    %6 = tpu.matmul %0, %5, %cst_6 {dimension_numbers = #tpu.dot_dimension_numbers<[1], [0], [0], [1], [0, 0, 1, 1], [], []>} : vector<96x216xbf16>, vector<216x16xbf16>, vector<96x16xf32> -> vector<96x16xf32>
    %7 = arith.maximumf %3, %6 : vector<96x16xf32>
    %c2 = arith.constant 2 : index
    %c0_7 = arith.constant 0 : index
    %c0_8 = arith.constant 0 : index
    %8 = vector.load %arg2[%c2, %c0_7, %c0_8] : memref<4x216x16xbf16, #tpu.memory_space<vmem>>, vector<1x216x16xbf16>
    %9 = vector.shape_cast %8 : vector<1x216x16xbf16> to vector<216x16xbf16>
    %cst_9 = arith.constant dense<0.000000e+00> : vector<96x16xf32>
    %10 = tpu.matmul %0, %9, %cst_9 {dimension_numbers = #tpu.dot_dimension_numbers<[1], [0], [0], [1], [0, 0, 1, 1], [], []>} : vector<96x216xbf16>, vector<216x16xbf16>, vector<96x16xf32> -> vector<96x16xf32>
    %11 = arith.maximumf %7, %10 : vector<96x16xf32>
    %c3 = arith.constant 3 : index
    %c0_10 = arith.constant 0 : index
    %c0_11 = arith.constant 0 : index
    %12 = vector.load %arg2[%c3, %c0_10, %c0_11] : memref<4x216x16xbf16, #tpu.memory_space<vmem>>, vector<1x216x16xbf16>
    %13 = vector.shape_cast %12 : vector<1x216x16xbf16> to vector<216x16xbf16>
    %cst_12 = arith.constant dense<0.000000e+00> : vector<96x16xf32>
    %14 = tpu.matmul %0, %13, %cst_12 {dimension_numbers = #tpu.dot_dimension_numbers<[1], [0], [0], [1], [0, 0, 1, 1], [], []>} : vector<96x216xbf16>, vector<216x16xbf16>, vector<96x16xf32> -> vector<96x16xf32>
    %15 = arith.maximumf %11, %14 : vector<96x16xf32>
    %c0_13 = arith.constant 0 : index
    %c0_14 = arith.constant 0 : index
    %16 = vector.load %arg3[%c0_13, %c0_14] : memref<1x16xf32, #tpu.memory_space<vmem>>, vector<1x16xf32>
    %17 = vector.broadcast %16 : vector<1x16xf32> to vector<96x16xf32>
    %18 = arith.addf %15, %17 : vector<96x16xf32>
    %cst_15 = arith.constant 0.000000e+00 : f32
    %19 = vector.broadcast %cst_15 : f32 to vector<96x16xf32>
    %20 = arith.maximumf %18, %19 : vector<96x16xf32>
    %21 = arith.truncf %20 : vector<96x16xf32> to vector<96x16xbf16>
    %c0_16 = arith.constant 0 : index
    %c0_17 = arith.constant 0 : index
    %22 = vector.load %arg4[%c0_16, %c0_17] : memref<96x16xbf16, #tpu.memory_space<vmem>>, vector<96x16xbf16>
    tpu.vector_store %arg4[%c0_16, %c0_17], %21 {strides = array<i32>} : memref<96x16xbf16, #tpu.memory_space<vmem>>, vector<96x16xbf16>,
    return
  }
  func.func @transform_0(%arg0: i32) -> (i32, i32) {
    %c0_i32 = arith.constant 0 : i32
    %c0_i32_0 = arith.constant 0 : i32
    return %arg0, %c0_i32 : i32, i32
  }
  func.func @transform_1(%arg0: i32) -> (i32, i32, i32) {
    %c0_i32 = arith.constant 0 : i32
    %c0_i32_0 = arith.constant 0 : i32
    %c0_i32_1 = arith.constant 0 : i32
    %c0_i32_2 = arith.constant 0 : i32
    return %c0_i32, %c0_i32_0, %c0_i32_1 : i32, i32, i32
  }
  func.func @transform_2(%arg0: i32) -> (i32, i32) {
    %c0_i32 = arith.constant 0 : i32
    %c0_i32_0 = arith.constant 0 : i32
    %c0_i32_1 = arith.constant 0 : i32
    return %c0_i32, %c0_i32_0 : i32, i32
  }
  func.func @transform_3(%arg0: i32) -> (i32, i32) {
    %c0_i32 = arith.constant 0 : i32
    %c0_i32_0 = arith.constant 0 : i32
    return %arg0, %c0_i32 : i32, i32
  }
}

module attributes {stable_mosaic.version = 11 : i64} {
  func.func @_fc_chain_kernel(%arg0: i32, %arg1: memref<1x1x1296xbf16, #tpu.memory_space<vmem>>, %arg2: memref<1296x900xbf16, #tpu.memory_space<vmem>>, %arg3: memref<1x900xf32, #tpu.memory_space<vmem>>, %arg4: memref<900x600xbf16, #tpu.memory_space<vmem>>, %arg5: memref<1x600xf32, #tpu.memory_space<vmem>>, %arg6: memref<600x300xbf16, #tpu.memory_space<vmem>>, %arg7: memref<1x300xf32, #tpu.memory_space<vmem>>, %arg8: memref<300x2xbf16, #tpu.memory_space<vmem>>, %arg9: memref<1x2xf32, #tpu.memory_space<vmem>>, %arg10: memref<1x1x2xf32, #tpu.memory_space<vmem>>) attributes {dimension_semantics = [#tpu.dimension_semantics<parallel>], iteration_bounds = array<i64: 2>, scalar_prefetch = 0 : i64, scratch_operands = 0 : i64, tpu.core_type = #tpu.core_type<tc>, window_params = [{transform_indices = @transform_0, window_bounds = array<i64: 1, 1, 1296>}, {pipeline_mode = #tpu.pipeline_mode<synchronous>, transform_indices = @transform_1, window_bounds = array<i64: 1296, 900>}, {pipeline_mode = #tpu.pipeline_mode<synchronous>, transform_indices = @transform_2, window_bounds = array<i64: 1, 900>}, {pipeline_mode = #tpu.pipeline_mode<synchronous>, transform_indices = @transform_3, window_bounds = array<i64: 900, 600>}, {pipeline_mode = #tpu.pipeline_mode<synchronous>, transform_indices = @transform_4, window_bounds = array<i64: 1, 600>}, {pipeline_mode = #tpu.pipeline_mode<synchronous>, transform_indices = @transform_5, window_bounds = array<i64: 600, 300>}, {pipeline_mode = #tpu.pipeline_mode<synchronous>, transform_indices = @transform_6, window_bounds = array<i64: 1, 300>}, {pipeline_mode = #tpu.pipeline_mode<synchronous>, transform_indices = @transform_7, window_bounds = array<i64: 300, 2>}, {pipeline_mode = #tpu.pipeline_mode<synchronous>, transform_indices = @transform_8, window_bounds = array<i64: 1, 2>}, {transform_indices = @transform_9, window_bounds = array<i64: 1, 1, 2>}]} {
    %c0 = arith.constant 0 : index
    %c0_0 = arith.constant 0 : index
    %c0_1 = arith.constant 0 : index
    %0 = vector.load %arg1[%c0, %c0_0, %c0_1] : memref<1x1x1296xbf16, #tpu.memory_space<vmem>>, vector<1x1x1296xbf16>
    %1 = vector.shape_cast %0 : vector<1x1x1296xbf16> to vector<1x1296xbf16>
    %c0_2 = arith.constant 0 : index
    %c0_3 = arith.constant 0 : index
    %2 = vector.load %arg2[%c0_2, %c0_3] : memref<1296x900xbf16, #tpu.memory_space<vmem>>, vector<1296x900xbf16>
    %cst = arith.constant dense<0.000000e+00> : vector<1x900xf32>
    %3 = tpu.matmul %1, %2, %cst {dimension_numbers = #tpu.dot_dimension_numbers<[1], [0], [0], [1], [0, 0, 1, 1], [], []>} : vector<1x1296xbf16>, vector<1296x900xbf16>, vector<1x900xf32> -> vector<1x900xf32>
    %c0_4 = arith.constant 0 : index
    %c0_5 = arith.constant 0 : index
    %4 = vector.load %arg3[%c0_4, %c0_5] : memref<1x900xf32, #tpu.memory_space<vmem>>, vector<1x900xf32>
    %5 = arith.addf %3, %4 : vector<1x900xf32>
    %cst_6 = arith.constant 0.000000e+00 : f32
    %6 = vector.broadcast %cst_6 : f32 to vector<1x900xf32>
    %7 = arith.maximumf %5, %6 : vector<1x900xf32>
    %8 = arith.truncf %7 : vector<1x900xf32> to vector<1x900xbf16>
    %c0_7 = arith.constant 0 : index
    %c0_8 = arith.constant 0 : index
    %9 = vector.load %arg4[%c0_7, %c0_8] : memref<900x600xbf16, #tpu.memory_space<vmem>>, vector<900x600xbf16>
    %cst_9 = arith.constant dense<0.000000e+00> : vector<1x600xf32>
    %10 = tpu.matmul %8, %9, %cst_9 {dimension_numbers = #tpu.dot_dimension_numbers<[1], [0], [0], [1], [0, 0, 1, 1], [], []>} : vector<1x900xbf16>, vector<900x600xbf16>, vector<1x600xf32> -> vector<1x600xf32>
    %c0_10 = arith.constant 0 : index
    %c0_11 = arith.constant 0 : index
    %11 = vector.load %arg5[%c0_10, %c0_11] : memref<1x600xf32, #tpu.memory_space<vmem>>, vector<1x600xf32>
    %12 = arith.addf %10, %11 : vector<1x600xf32>
    %cst_12 = arith.constant 0.000000e+00 : f32
    %13 = vector.broadcast %cst_12 : f32 to vector<1x600xf32>
    %14 = arith.maximumf %12, %13 : vector<1x600xf32>
    %15 = arith.truncf %14 : vector<1x600xf32> to vector<1x600xbf16>
    %c0_13 = arith.constant 0 : index
    %c0_14 = arith.constant 0 : index
    %16 = vector.load %arg6[%c0_13, %c0_14] : memref<600x300xbf16, #tpu.memory_space<vmem>>, vector<600x300xbf16>
    %cst_15 = arith.constant dense<0.000000e+00> : vector<1x300xf32>
    %17 = tpu.matmul %15, %16, %cst_15 {dimension_numbers = #tpu.dot_dimension_numbers<[1], [0], [0], [1], [0, 0, 1, 1], [], []>} : vector<1x600xbf16>, vector<600x300xbf16>, vector<1x300xf32> -> vector<1x300xf32>
    %c0_16 = arith.constant 0 : index
    %c0_17 = arith.constant 0 : index
    %18 = vector.load %arg7[%c0_16, %c0_17] : memref<1x300xf32, #tpu.memory_space<vmem>>, vector<1x300xf32>
    %19 = arith.addf %17, %18 : vector<1x300xf32>
    %cst_18 = arith.constant 0.000000e+00 : f32
    %20 = vector.broadcast %cst_18 : f32 to vector<1x300xf32>
    %21 = arith.maximumf %19, %20 : vector<1x300xf32>
    %22 = arith.truncf %21 : vector<1x300xf32> to vector<1x300xbf16>
    %c0_19 = arith.constant 0 : index
    %c0_20 = arith.constant 0 : index
    %23 = vector.load %arg8[%c0_19, %c0_20] : memref<300x2xbf16, #tpu.memory_space<vmem>>, vector<300x2xbf16>
    %cst_21 = arith.constant dense<0.000000e+00> : vector<1x2xf32>
    %24 = tpu.matmul %22, %23, %cst_21 {dimension_numbers = #tpu.dot_dimension_numbers<[1], [0], [0], [1], [0, 0, 1, 1], [], []>} : vector<1x300xbf16>, vector<300x2xbf16>, vector<1x2xf32> -> vector<1x2xf32>
    %c0_22 = arith.constant 0 : index
    %c0_23 = arith.constant 0 : index
    %25 = vector.load %arg9[%c0_22, %c0_23] : memref<1x2xf32, #tpu.memory_space<vmem>>, vector<1x2xf32>
    %26 = arith.addf %24, %25 : vector<1x2xf32>
    %c0_24 = arith.constant 0 : index
    %c0_25 = arith.constant 0 : index
    %c0_26 = arith.constant 0 : index
    %27 = vector.load %arg10[%c0_24, %c0_25, %c0_26] : memref<1x1x2xf32, #tpu.memory_space<vmem>>, vector<1x1x2xf32>
    %28 = vector.shape_cast %27 : vector<1x1x2xf32> to vector<1x2xf32>
    %29 = vector.shape_cast %26 : vector<1x2xf32> to vector<1x1x2xf32>
    tpu.vector_store %arg10[%c0_24, %c0_25, %c0_26], %29 {strides = array<i32>} : memref<1x1x2xf32, #tpu.memory_space<vmem>>, vector<1x1x2xf32>,
    return
  }
  func.func @transform_0(%arg0: i32) -> (i32, i32, i32) {
    %c0_i32 = arith.constant 0 : i32
    %c0_i32_0 = arith.constant 0 : i32
    %c0_i32_1 = arith.constant 0 : i32
    return %arg0, %c0_i32, %c0_i32_0 : i32, i32, i32
  }
  func.func @transform_1(%arg0: i32) -> (i32, i32) {
    %c0_i32 = arith.constant 0 : i32
    %c0_i32_0 = arith.constant 0 : i32
    %c0_i32_1 = arith.constant 0 : i32
    return %c0_i32, %c0_i32_0 : i32, i32
  }
  func.func @transform_2(%arg0: i32) -> (i32, i32) {
    %c0_i32 = arith.constant 0 : i32
    %c0_i32_0 = arith.constant 0 : i32
    %c0_i32_1 = arith.constant 0 : i32
    return %c0_i32, %c0_i32_0 : i32, i32
  }
  func.func @transform_3(%arg0: i32) -> (i32, i32) {
    %c0_i32 = arith.constant 0 : i32
    %c0_i32_0 = arith.constant 0 : i32
    %c0_i32_1 = arith.constant 0 : i32
    return %c0_i32, %c0_i32_0 : i32, i32
  }
  func.func @transform_4(%arg0: i32) -> (i32, i32) {
    %c0_i32 = arith.constant 0 : i32
    %c0_i32_0 = arith.constant 0 : i32
    %c0_i32_1 = arith.constant 0 : i32
    return %c0_i32, %c0_i32_0 : i32, i32
  }
  func.func @transform_5(%arg0: i32) -> (i32, i32) {
    %c0_i32 = arith.constant 0 : i32
    %c0_i32_0 = arith.constant 0 : i32
    %c0_i32_1 = arith.constant 0 : i32
    return %c0_i32, %c0_i32_0 : i32, i32
  }
  func.func @transform_6(%arg0: i32) -> (i32, i32) {
    %c0_i32 = arith.constant 0 : i32
    %c0_i32_0 = arith.constant 0 : i32
    %c0_i32_1 = arith.constant 0 : i32
    return %c0_i32, %c0_i32_0 : i32, i32
  }
  func.func @transform_7(%arg0: i32) -> (i32, i32) {
    %c0_i32 = arith.constant 0 : i32
    %c0_i32_0 = arith.constant 0 : i32
    %c0_i32_1 = arith.constant 0 : i32
    return %c0_i32, %c0_i32_0 : i32, i32
  }
  func.func @transform_8(%arg0: i32) -> (i32, i32) {
    %c0_i32 = arith.constant 0 : i32
    %c0_i32_0 = arith.constant 0 : i32
    %c0_i32_1 = arith.constant 0 : i32
    return %c0_i32, %c0_i32_0 : i32, i32
  }
  func.func @transform_9(%arg0: i32) -> (i32, i32, i32) {
    %c0_i32 = arith.constant 0 : i32
    %c0_i32_0 = arith.constant 0 : i32
    %c0_i32_1 = arith.constant 0 : i32
    return %arg0, %c0_i32, %c0_i32_0 : i32, i32, i32
  }
}

</mosaic_0001>

<bundles_post_ra>
// kernel: net_forward.3
= control target key start
LH: loop header
LB: loop body
LE: loop exit
PB: predicated region body
PF: predicated region fallthrough
CT: control target
= control target key end

     0   :  { %s4292_s12 = smov 0   ;;  %s4294_s13 = smov 0   ;;  %s5983_s0 = inlined_call_operand.vmem [shape: bf16[968,108], index: 0, kind: input, shape index: {}]   ;;  %s5984_s1 = inlined_call_operand.vmem [shape: bf16[4,108,6], index: 1, kind: input, shape index: {}]   ;;  %s5985_s2 = inlined_call_operand.vmem [shape: f32[1,6], index: 2, kind: input, shape index: {}]   ;;  %s5986_s3 = inlined_call_operand.vmem [shape: bf16[968,6], index: 3, kind: output, shape index: {}]  }
   0x1   :  { %s4296_s14 = smov 0  }
   0x2 LB: > { %s4305_s15 = sadd.s32 4294967295, %s4236_s14   ;;  %s4307_s16 = sadd.s32 1, %s4236_s14   ;;  %s4236_s14 = sphi %s4296_s14, %s6302_s14   ;;  %s4232_s13 = sphi %s4294_s13, %s6301_s13   ;;  %s4228_s12 = sphi %s4292_s12, %s6300_s12  }
   0x3   : > { %s85_s17 = ssub.s32 %s4236_s14, %s4307_s16  ;;  %s88_s18 = sadd.s32 1, %s4232_s13 }
   0x4   : > { %p86_p0 = scmp.eq.s32.totalorder %s85_s17, 0  ;;  %p98_p1 = scmp.ne.s32.totalorder %s4232_s13, %s4228_s12 }
   0x5   : > { %p99_p2 = scmp.eq.s32.totalorder %s4305_s15, 1  ;;  %p2957_p3 = scmp.ge.s32.totalorder %s4236_s14, 1 }
   0x6   : > { %s4315_s19 = scalar_select %p86_p0, %s4232_s13, %s88_s18  }
   0x7   : > { %p4317_p4 = por %p99_p2, %p98_p1  ;;  %p146_p5 = scmp.lt.s32.totalorder %s4236_s14, 3 }
   0x9   : > { %p147_p6 = pnand %p2957_p3, %p146_p5 }
   0xb   : > { %150 = sbr.rel (%p147_p6) target bundleno = 836 (0x344), region = 32 }
  0x10   : > { %vm559_vm0 = vcmask 1045504   ;;  %v6063_v0 = vmov 0.0   ;;  %v4118_v1 = vld [vmem:[%s5984_s1 + $0x30] sm:$0x3f]   ;;  %v4119_v2 = vld [vmem:[%s5984_s1 + $0x68] sm:$0x3f]  }
  0x11   : > { %3474 = vmatprep.subr.bf16.mxu0 %v6063_v0  ;;  %3612 = vmatprep.subr.bf16.mxu1 %v6063_v0  ;;  %v561_v3 = vsel %vm559_vm0, %v4118_v1, 0  ;;  %v901_v4 = vsel %vm559_vm0, %v4119_v2, 0  ;;  %v4120_v5 = vld [vmem:[%s5984_s1 + $0x28] sm:$0xff]   ;;  %v4121_v6 = vld [vmem:[%s5984_s1 + $0x60] sm:$0xff]   ;;  %vm4271_vm1 = vmmov 0   ;;  %s4342_s29 = smul.u32 62, %s4305_s15 }
  0x12   : > { %3475 = vmatpush3.bf16.msra.mxu0 %v561_v3  ;;  %3613 = vmatpush3.bf16.msra.mxu1 %v901_v4  ;;  %v4122_v7 = vld [vmem:[%s5984_s1 + $0x20] sm:$0xff]   ;;  %v4123_v8 = vld [vmem:[%s5984_s1 + $0x58] sm:$0xff]   ;;  %v4125_v10 = vld [vmem:[%s5984_s1 + $0x50] sm:$0xff]   ;;  %vm465_vm2 = vcmask 883712   ;;  %vm2429_vm3 = vcmask 44032   ;;  %s3321_s4 = smul.u32 (%p4317_p4), 248, %s4305_s15 }
  0x13   : > { %3476 = vmatprep.subr.bf16.mxu0 %v6063_v0  ;;  %3614 = vmatprep.subr.bf16.mxu1 %v6063_v0  ;;  %p178_p7 = scmp.lt.s32.totalorder %s4342_s29, 120  ;;  %v4124_v9 = vld [vmem:[%s5984_s1 + $0x18] sm:$0xff]   ;;  %v4126_v11 = vld [vmem:[%s5984_s1 + $0x10] sm:$0xff]   ;;  %v4127_v12 = vld [vmem:[%s5984_s1 + $0x48] sm:$0xff]   ;;  %s2500_s30 = ssub.s32 (%p4317_p4), 121, %s4342_s29 }
  0x14   : > { %3488 = vmatprep.mubr.msk.bf16.mxu0 %vm4271_vm1, %v6063_v0  ;;  %3626 = vmatprep.mubr.msk.bf16.mxu1 %vm4271_vm1, %v6063_v0  ;;  %v4128_v13 = vld [vmem:[%s5984_s1 + $0x8] sm:$0xff]   ;;  %v4129_v14 = vld [vmem:[%s5984_s1 + $0x40] sm:$0xff]   ;;  %v4131_v16 = vld [vmem:[%s5984_s1 + $0x38] sm:$0xff]   ;;  %p2501_p8 = scmp.lt.s32.totalorder (%p4317_p4), %s2500_s30, 62 }
  0x15   : > { %s179_s7 = scalar_select %p178_p7, %s4342_s29, 120  ;;  %v4130_v15 = vld [vmem:[%s5984_s1] sm:$0xff]   ;;  %v4134_v18 = vld [vmem:[%s5984_s1 + $0xd8] sm:$0x3f]   ;;  %v4140_v23 = vld [vmem:[%s5984_s1 + $0xd0] sm:$0xff]  }
  0x16   : > { %3477 = vmatpush3.bf16.msra.mxu0 %v4120_v5  ;;  %3615 = vmatpush3.bf16.msra.mxu1 %v4121_v6  ;;  %v4133_v17 = vld [vmem:[%s5984_s1 + $0xa0] sm:$0x3f]   ;;  %v1705_v21 = vsel %vm559_vm0, %v4134_v18, 0  ;;  %v4139_v22 = vld [vmem:[%s5984_s1 + $0x98] sm:$0xff]   ;;  %v4146_v25 = vld [vmem:[%s5984_s1 + $0x90] sm:$0xff]  }
  0x17   : > { %3478 = vmatprep.subr.bf16.mxu0 %v6063_v0  ;;  %3616 = vmatprep.subr.bf16.mxu1 %v6063_v0  ;;  %s2958_s10 = sshll.u32 %s179_s7, 2  ;;  %v1303_v20 = vsel %vm559_vm0, %v4133_v17, 0  ;;  %v4147_v26 = vld [vmem:[%s5984_s1 + $0xc8] sm:$0xff]   ;;  %v4153_v29 = vld [vmem:[%s5984_s1 + $0xc0] sm:$0xff]   ;;  %v4160_v31 = vld [vmem:[%s5984_s1 + $0xb8] sm:$0xff]   ;;  %s5800_s7 = scalar_lea.vmem (%p4317_p4), %s5986_s3, %s3321_s4  }
  0x18   : > { %s4366_s21 = scalar_lea.vmem %s5983_s0, %s2958_s10  ;;  %v4152_v28 = vld [vmem:[%s5984_s1 + $0x88] sm:$0xff]   ;;  %v4158_v30 = vld [vmem:[%s5984_s1 + $0x80] sm:$0xff]   ;;  %v4165_v36 = vld [vmem:[%s5984_s1 + $0x78] sm:$0xff]  }
  0x19   : > { %v4400_v19 = vld [vmem:[%s4366_s21] sm:$0xff]   ;;  %v4422_v24 = vld [vmem:[%s4366_s21 + $0x8] sm:$0xff]   ;;  %v4442_v27 = vld [vmem:[%s4366_s21 + $0x10] sm:$0xff]  }
  0x1a   : > { %3479 = vmatpush3.bf16.msra.mxu0 %v4122_v7  ;;  %3617 = vmatpush3.bf16.msra.mxu1 %v4123_v8  ;;  %v4469_v32 = vld [vmem:[%s4366_s21 + $0x18] sm:$0xff]   ;;  %v4482_v33 = vld [vmem:[%s4366_s21 + $0x20] sm:$0xff]   ;;  %v4493_v34 = vld [vmem:[%s4366_s21 + $0x28] sm:$0xff]  }
  0x1b   : > { %3480 = vmatprep.subr.bf16.mxu0 %v6063_v0  ;;  %3618 = vmatprep.subr.bf16.mxu1 %v6063_v0  ;;  %v4504_v35 = vld [vmem:[%s4366_s21 + $0x30] sm:$0xff]   ;;  %v4521_v38 = vld [vmem:[%s4366_s21 + $0x38] sm:$0xff]   ;;  %v4534_v39 = vld [vmem:[%s4366_s21 + $0x40] sm:$0xff]  }
  0x1c   : > { %v4166_v37 = vld [vmem:[%s5984_s1 + $0xb0] sm:$0xff]   ;;  %v4545_v40 = vld [vmem:[%s4366_s21 + $0x48] sm:$0xff]   ;;  %v4567_v42 = vld [vmem:[%s4366_s21 + $0x58] sm:$0xff]  }
  0x1d   : > { %v4556_v41 = vld [vmem:[%s4366_s21 + $0x50] sm:$0xff]   ;;  %v4173_v44 = vld [vmem:[%s5984_s1 + $0xa8] sm:$0xff]   ;;  %v4584_v45 = vld [vmem:[%s4366_s21 + $0x60] sm:$0xff]  }
  0x1e   : > { %3481 = vmatpush3.bf16.msra.mxu0 %v4124_v9  ;;  %3619 = vmatpush3.bf16.msra.mxu1 %v4125_v10  ;;  %v4171_v43 = vld [vmem:[%s5984_s1 + $0x70] sm:$0xff]   ;;  %v4595_v46 = vld [vmem:[%s4366_s21 + $0x68] sm:$0xff]   ;;  %v4617_v48 = vld [vmem:[%s4366_s21 + $0x78] sm:$0xff]  }
  0x1f   : > { %3482 = vmatprep.subr.bf16.mxu0 %v6063_v0  ;;  %3620 = vmatprep.subr.bf16.mxu1 %v6063_v0  ;;  %v4606_v47 = vld [vmem:[%s4366_s21 + $0x70] sm:$0xff]   ;;  %v4628_v49 = vld [vmem:[%s4366_s21 + $0x80] sm:$0xff]   ;;  %v4639_v50 = vld [vmem:[%s4366_s21 + $0x88] sm:$0xff]  }
  0x20   : > { %v4650_v51 = vld [vmem:[%s4366_s21 + $0x90] sm:$0xff]   ;;  %v4661_v52 = vld [vmem:[%s4366_s21 + $0x98] sm:$0xff]   ;;  %v4672_v53 = vld [vmem:[%s4366_s21 + $0xa0] sm:$0xff]  }
  0x21   : > { %v4683_v54 = vld [vmem:[%s4366_s21 + $0xa8] sm:$0xff]   ;;  %v4694_v55 = vld [vmem:[%s4366_s21 + $0xb0] sm:$0xff]   ;;  %v4705_v56 = vld [vmem:[%s4366_s21 + $0xb8] sm:$0xff]  }
  0x22   : > { %3483 = vmatpush3.bf16.msra.mxu0 %v4126_v11  ;;  %3621 = vmatpush3.bf16.msra.mxu1 %v4127_v12  ;;  %v4716_v57 = vld [vmem:[%s4366_s21 + $0xc0] sm:$0xff]   ;;  %v4735_v1 = vld [vmem:[%s4366_s21 + $0xc8] sm:$0xff]   ;;  %v4758_v12 = vld [vmem:[%s4366_s21 + $0xd0] sm:$0xff]  }
  0x23   : > { %3484 = vmatprep.subr.bf16.mxu0 %v6063_v0  ;;  %3622 = vmatprep.subr.bf16.mxu1 %v6063_v0 }
  0x26   : > { %3485 = vmatpush3.bf16.msra.mxu0 %v4128_v13  ;;  %3623 = vmatpush3.bf16.msra.mxu1 %v4129_v14 }
  0x27   : > { %3486 = vmatprep.subr.bf16.mxu0 %v6063_v0  ;;  %3624 = vmatprep.subr.bf16.mxu1 %v6063_v0 }
  0x2a   : > { %3487 = vmatpush3.bf16.msra.mxu0 %v4130_v15  ;;  %3625 = vmatpush3.bf16.msra.mxu1 %v4131_v16 }
  0x2b   : > { %3750 = vmatprep.subr.bf16.mxu0 %v6063_v0  ;;  %3888 = vmatprep.subr.bf16.mxu1 %v6063_v0 }
  0x2d   : > { %3489 = vmatmul.mubr.msk.bf16.vlgmr.msra.gmra.mxu0 %vm465_vm2, %v4400_v19  ;;  %3627 = vmatmul.mubr.msk.bf16.vlgmr.msra.gmra.mxu1 %vm465_vm2, %v4400_v19 }
  0x2e   : > { %3751 = vmatpush3.bf16.msra.mxu0 %v1303_v20  ;;  %3889 = vmatpush3.bf16.msra.mxu1 %v1705_v21 }
  0x2f   : > { %3492 = vmatprep.mubr.msk.bf16.mxu0 %vm4271_vm1, %v6063_v0  ;;  %3630 = vmatprep.mubr.msk.bf16.mxu1 %vm4271_vm1, %v6063_v0 }
  0x30   : > { %3752 = vmatprep.subr.bf16.mxu0 %v6063_v0  ;;  %3890 = vmatprep.subr.bf16.mxu1 %v6063_v0 }
  0x32   : > { %3753 = vmatpush3.bf16.msra.mxu0 %v4139_v22  ;;  %3891 = vmatpush3.bf16.msra.mxu1 %v4140_v23 }
  0x33   : > { %3754 = vmatprep.subr.bf16.mxu0 %v6063_v0  ;;  %3892 = vmatprep.subr.bf16.mxu1 %v6063_v0 }
  0x35   : > { %3493 = vmatmul.mubr.msk.bf16.gmra.mxu0 %vm465_vm2, %v4422_v24  ;;  %3631 = vmatmul.mubr.msk.bf16.gmra.mxu1 %vm465_vm2, %v4422_v24 }
  0x36   : > { %3496 = vmatprep.mubr.msk.bf16.mxu0 %vm4271_vm1, %v6063_v0  ;;  %3634 = vmatprep.mubr.msk.bf16.mxu1 %vm4271_vm1, %v6063_v0 }
  0x37   : > { %3755 = vmatpush3.bf16.msra.mxu0 %v4146_v25  ;;  %3893 = vmatpush3.bf16.msra.mxu1 %v4147_v26  ;;  %v4781_v25 = vld [vmem:[%s4366_s21 + $0xd8] sm:$0xff]  }
  0x38   : > { %3756 = vmatprep.subr.bf16.mxu0 %v6063_v0  ;;  %3894 = vmatprep.subr.bf16.mxu1 %v6063_v0 }
  0x3b   : > { %3757 = vmatpush3.bf16.msra.mxu0 %v4152_v28  ;;  %3895 = vmatpush3.bf16.msra.mxu1 %v4153_v29 }
  0x3c   : > { %3758 = vmatprep.subr.bf16.mxu0 %v6063_v0  ;;  %3896 = vmatprep.subr.bf16.mxu1 %v6063_v0 }
  0x3d   : > { %3497 = vmatmul.mubr.msk.bf16.gmra.mxu0 %vm465_vm2, %v4442_v27  ;;  %3635 = vmatmul.mubr.msk.bf16.gmra.mxu1 %vm465_vm2, %v4442_v27 }
  0x3e   : > { %3500 = vmatprep.mubr.msk.bf16.mxu0 %vm4271_vm1, %v6063_v0  ;;  %3638 = vmatprep.mubr.msk.bf16.mxu1 %vm4271_vm1, %v6063_v0 }
  0x3f   : > { %3759 = vmatpush3.bf16.msra.mxu0 %v4158_v30  ;;  %3897 = vmatpush3.bf16.msra.mxu1 %v4160_v31 }
  0x40   : > { %3760 = vmatprep.subr.bf16.mxu0 %v6063_v0  ;;  %3898 = vmatprep.subr.bf16.mxu1 %v6063_v0 }
  0x43   : > { %3761 = vmatpush3.bf16.msra.mxu0 %v4165_v36  ;;  %3899 = vmatpush3.bf16.msra.mxu1 %v4166_v37 }
  0x44   : > { %3762 = vmatprep.subr.bf16.mxu0 %v6063_v0  ;;  %3900 = vmatprep.subr.bf16.mxu1 %v6063_v0 }
  0x45   : > { %3501 = vmatmul.mubr.msk.bf16.gmra.mxu0 %vm465_vm2, %v4469_v32  ;;  %3639 = vmatmul.mubr.msk.bf16.gmra.mxu1 %vm465_vm2, %v4469_v32 }
  0x46   : > { %3504 = vmatprep.mubr.msk.bf16.mxu0 %vm4271_vm1, %v6063_v0  ;;  %3642 = vmatprep.mubr.msk.bf16.mxu1 %vm4271_vm1, %v6063_v0 }
  0x47   : > { %3763 = vmatpush3.bf16.msra.mxu0 %v4171_v43  ;;  %3901 = vmatpush3.bf16.msra.mxu1 %v4173_v44 }
  0x4d   : > { %3505 = vmatmul.mubr.msk.bf16.gmra.mxu0 %vm465_vm2, %v4482_v33  ;;  %3643 = vmatmul.mubr.msk.bf16.gmra.mxu1 %vm465_vm2, %v4482_v33 }
  0x4e   : > { %3508 = vmatprep.mubr.msk.bf16.mxu0 %vm4271_vm1, %v6063_v0  ;;  %3646 = vmatprep.mubr.msk.bf16.mxu1 %vm4271_vm1, %v6063_v0 }
  0x55   : > { %3509 = vmatmul.mubr.msk.bf16.gmra.mxu0 %vm465_vm2, %v4493_v34  ;;  %3647 = vmatmul.mubr.msk.bf16.gmra.mxu1 %vm465_vm2, %v4493_v34 }
  0x56   : > { %3512 = vmatprep.mubr.msk.bf16.mxu0 %vm4271_vm1, %v6063_v0  ;;  %3650 = vmatprep.mubr.msk.bf16.mxu1 %vm4271_vm1, %v6063_v0 }
  0x5d   : > { %3513 = vmatmul.mubr.msk.bf16.gmra.mxu0 %vm465_vm2, %v4504_v35  ;;  %3651 = vmatmul.mubr.msk.bf16.gmra.mxu1 %vm465_vm2, %v4504_v35 }
  0x5e   : > { %3516 = vmatprep.mubr.msk.bf16.mxu0 %vm4271_vm1, %v6063_v0  ;;  %3654 = vmatprep.mubr.msk.bf16.mxu1 %vm4271_vm1, %v6063_v0 }
  0x65   : > { %3517 = vmatmul.mubr.msk.bf16.gmra.mxu0 %vm465_vm2, %v4521_v38  ;;  %3655 = vmatmul.mubr.msk.bf16.gmra.mxu1 %vm465_vm2, %v4521_v38 }
  0x66   : > { %3520 = vmatprep.mubr.msk.bf16.mxu0 %vm4271_vm1, %v6063_v0  ;;  %3658 = vmatprep.mubr.msk.bf16.mxu1 %vm4271_vm1, %v6063_v0 }
  0x6d   : > { %3521 = vmatmul.mubr.msk.bf16.gmra.mxu0 %vm465_vm2, %v4534_v39  ;;  %3659 = vmatmul.mubr.msk.bf16.gmra.mxu1 %vm465_vm2, %v4534_v39 }
  0x6e   : > { %3524 = vmatprep.mubr.msk.bf16.mxu0 %vm4271_vm1, %v6063_v0  ;;  %3662 = vmatprep.mubr.msk.bf16.mxu1 %vm4271_vm1, %v6063_v0 }
  0x75   : > { %3525 = vmatmul.mubr.msk.bf16.gmra.mxu0 %vm465_vm2, %v4545_v40  ;;  %3663 = vmatmul.mubr.msk.bf16.gmra.mxu1 %vm465_vm2, %v4545_v40 }
  0x76   : > { %3528 = vmatprep.mubr.msk.bf16.mxu0 %vm4271_vm1, %v6063_v0  ;;  %3666 = vmatprep.mubr.msk.bf16.mxu1 %vm4271_vm1, %v6063_v0 }
  0x7d   : > { %3529 = vmatmul.mubr.msk.bf16.gmra.mxu0 %vm465_vm2, %v4556_v41  ;;  %3667 = vmatmul.mubr.msk.bf16.gmra.mxu1 %vm465_vm2, %v4556_v41 }
  0x7e   : > { %3532 = vmatprep.mubr.msk.bf16.mxu0 %vm4271_vm1, %v6063_v0  ;;  %3670 = vmatprep.mubr.msk.bf16.mxu1 %vm4271_vm1, %v6063_v0 }
  0x85   : > { %3533 = vmatmul.mubr.msk.bf16.gmra.mxu0 %vm465_vm2, %v4567_v42  ;;  %3671 = vmatmul.mubr.msk.bf16.gmra.mxu1 %vm465_vm2, %v4567_v42 }
  0x86   : > { %3536 = vmatprep.mubr.msk.bf16.mxu0 %vm4271_vm1, %v6063_v0  ;;  %3674 = vmatprep.mubr.msk.bf16.mxu1 %vm4271_vm1, %v6063_v0 }
  0x8d   : > { %3537 = vmatmul.mubr.msk.bf16.gmra.mxu0 %vm465_vm2, %v4584_v45  ;;  %3675 = vmatmul.mubr.msk.bf16.gmra.mxu1 %vm465_vm2, %v4584_v45 }
  0x8e   : > { %3540 = vmatprep.mubr.msk.bf16.mxu0 %vm4271_vm1, %v6063_v0  ;;  %3678 = vmatprep.mubr.msk.bf16.mxu1 %vm4271_vm1, %v6063_v0 }
  0x95   : > { %3541 = vmatmul.mubr.msk.bf16.gmra.mxu0 %vm465_vm2, %v4595_v46  ;;  %3679 = vmatmul.mubr.msk.bf16.gmra.mxu1 %vm465_vm2, %v4595_v46 }
  0x96   : > { %3544 = vmatprep.mubr.msk.bf16.mxu0 %vm4271_vm1, %v6063_v0  ;;  %3682 = vmatprep.mubr.msk.bf16.mxu1 %vm4271_vm1, %v6063_v0 }
  0x9d   : > { %3545 = vmatmul.mubr.msk.bf16.gmra.mxu0 %vm465_vm2, %v4606_v47  ;;  %3683 = vmatmul.mubr.msk.bf16.gmra.mxu1 %vm465_vm2, %v4606_v47 }
  0x9e   : > { %3548 = vmatprep.mubr.msk.bf16.mxu0 %vm4271_vm1, %v6063_v0  ;;  %3686 = vmatprep.mubr.msk.bf16.mxu1 %vm4271_vm1, %v6063_v0 }
  0xa5   : > { %3549 = vmatmul.mubr.msk.bf16.gmra.mxu0 %vm465_vm2, %v4617_v48  ;;  %3687 = vmatmul.mubr.msk.bf16.gmra.mxu1 %vm465_vm2, %v4617_v48 }
  0xa6   : > { %3552 = vmatprep.mubr.msk.bf16.mxu0 %vm4271_vm1, %v6063_v0  ;;  %3690 = vmatprep.mubr.msk.bf16.mxu1 %vm4271_vm1, %v6063_v0 }
  0xad   : > { %3553 = vmatmul.mubr.msk.bf16.gmra.mxu0 %vm465_vm2, %v4628_v49  ;;  %3691 = vmatmul.mubr.msk.bf16.gmra.mxu1 %vm465_vm2, %v4628_v49 }
  0xae   : > { %3556 = vmatprep.mubr.msk.bf16.mxu0 %vm4271_vm1, %v6063_v0  ;;  %3694 = vmatprep.mubr.msk.bf16.mxu1 %vm4271_vm1, %v6063_v0 }
  0xb5   : > { %3557 = vmatmul.mubr.msk.bf16.gmra.mxu0 %vm465_vm2, %v4639_v50  ;;  %3695 = vmatmul.mubr.msk.bf16.gmra.mxu1 %vm465_vm2, %v4639_v50 }
  0xb6   : > { %3560 = vmatprep.mubr.msk.bf16.mxu0 %vm4271_vm1, %v6063_v0  ;;  %3698 = vmatprep.mubr.msk.bf16.mxu1 %vm4271_vm1, %v6063_v0 }
  0xbd   : > { %3561 = vmatmul.mubr.msk.bf16.gmra.mxu0 %vm465_vm2, %v4650_v51  ;;  %3699 = vmatmul.mubr.msk.bf16.gmra.mxu1 %vm465_vm2, %v4650_v51 }
  0xbe   : > { %3564 = vmatprep.mubr.msk.bf16.mxu0 %vm4271_vm1, %v6063_v0  ;;  %3702 = vmatprep.mubr.msk.bf16.mxu1 %vm4271_vm1, %v6063_v0 }
  0xc5   : > { %3565 = vmatmul.mubr.msk.bf16.gmra.mxu0 %vm465_vm2, %v4661_v52  ;;  %3703 = vmatmul.mubr.msk.bf16.gmra.mxu1 %vm465_vm2, %v4661_v52 }
  0xc6   : > { %3568 = vmatprep.mubr.msk.bf16.mxu0 %vm4271_vm1, %v6063_v0  ;;  %3706 = vmatprep.mubr.msk.bf16.mxu1 %vm4271_vm1, %v6063_v0 }
  0xcd   : > { %3569 = vmatmul.mubr.msk.bf16.gmra.mxu0 %vm465_vm2, %v4672_v53  ;;  %3707 = vmatmul.mubr.msk.bf16.gmra.mxu1 %vm465_vm2, %v4672_v53 }
  0xce   : > { %3572 = vmatprep.mubr.msk.bf16.mxu0 %vm4271_vm1, %v6063_v0  ;;  %3710 = vmatprep.mubr.msk.bf16.mxu1 %vm4271_vm1, %v6063_v0 }
  0xd5   : > { %3573 = vmatmul.mubr.msk.bf16.gmra.mxu0 %vm465_vm2, %v4683_v54  ;;  %3711 = vmatmul.mubr.msk.bf16.gmra.mxu1 %vm465_vm2, %v4683_v54 }
  0xd6   : > { %3576 = vmatprep.mubr.msk.bf16.mxu0 %vm4271_vm1, %v6063_v0  ;;  %3714 = vmatprep.mubr.msk.bf16.mxu1 %vm4271_vm1, %v6063_v0 }
  0xdd   : > { %3577 = vmatmul.mubr.msk.bf16.gmra.mxu0 %vm465_vm2, %v4694_v55  ;;  %3715 = vmatmul.mubr.msk.bf16.gmra.mxu1 %vm465_vm2, %v4694_v55 }
  0xde   : > { %3580 = vmatprep.mubr.msk.bf16.mxu0 %vm4271_vm1, %v6063_v0  ;;  %3718 = vmatprep.mubr.msk.bf16.mxu1 %vm4271_vm1, %v6063_v0 }
  0xe5   : > { %3581 = vmatmul.mubr.msk.bf16.gmra.mxu0 %vm465_vm2, %v4705_v56  ;;  %3719 = vmatmul.mubr.msk.bf16.gmra.mxu1 %vm465_vm2, %v4705_v56 }
  0xe6   : > { %3584 = vmatprep.mubr.msk.bf16.mxu0 %vm4271_vm1, %v6063_v0  ;;  %3722 = vmatprep.mubr.msk.bf16.mxu1 %vm4271_vm1, %v6063_v0 }
  0xed   : > { %v4718_v58 = vpop.f32.mrf.mxu0  ;;  %3585 = vmatmul.mubr.msk.bf16.gmra.mxu0 %vm465_vm2, %v4716_v57  ;;  %v4722_v59 = vpop.f32.mrf.mxu1  ;;  %3723 = vmatmul.mubr.msk.bf16.gmra.mxu1 %vm465_vm2, %v4716_v57 }
  0xee   : > { %3588 = vmatprep.mubr.msk.bf16.mxu0 %vm4271_vm1, %v6063_v0  ;;  %3726 = vmatprep.mubr.msk.bf16.mxu1 %vm4271_vm1, %v6063_v0 }
  0xef   : > { %v3490_v61 = vpop.f32.mrf.mxu0  ;;  %v3628_v62 = vpop.f32.mrf.mxu1 }
  0xf0   : > { %v4804_v62 = vld [vmem:[%s4366_s21 + $0xe0] sm:$0xff]  }
  0xf1   : > { %v4732_v63 = vpop.f32.mrf.mxu0  ;;  %v4737_v2 = vpop.f32.mrf.mxu1 }
  0xf3   : > { %v3491_v4 = vpop.f32.mrf.mxu0  ;;  %v3629_v5 = vpop.f32.mrf.mxu1 }
  0xf5   : > { %v4741_v6 = vpop.f32.mrf.mxu0  ;;  %3589 = vmatmul.mubr.msk.bf16.gmra.mxu0 %vm465_vm2, %v4735_v1  ;;  %v4745_v7 = vpop.f32.mrf.mxu1  ;;  %3727 = vmatmul.mubr.msk.bf16.gmra.mxu1 %vm465_vm2, %v4735_v1 }
  0xf6   : > { %3592 = vmatprep.mubr.msk.bf16.mxu0 %vm4271_vm1, %v6063_v0  ;;  %3730 = vmatprep.mubr.msk.bf16.mxu1 %vm4271_vm1, %v6063_v0 }
  0xf7   : > { %v3494_v9 = vpop.f32.mrf.mxu0  ;;  %v3632_v10 = vpop.f32.mrf.mxu1 }
  0xf9   : > { %v4755_v11 = vpop.f32.mrf.mxu0  ;;  %v4760_v13 = vpop.f32.mrf.mxu1 }
  0xfb   : > { %v3495_v15 = vpop.f32.mrf.mxu0  ;;  %v3633_v16 = vpop.f32.mrf.mxu1 }
  0xfd   : > { %v4764_v17 = vpop.f32.mrf.mxu0  ;;  %3593 = vmatmul.mubr.msk.bf16.gmra.mxu0 %vm465_vm2, %v4758_v12  ;;  %v4768_v18 = vpop.f32.mrf.mxu1  ;;  %3731 = vmatmul.mubr.msk.bf16.gmra.mxu1 %vm465_vm2, %v4758_v12 }
  0xfe   : > { %3596 = vmatprep.mubr.msk.bf16.mxu0 %vm4271_vm1, %v6063_v0  ;;  %3734 = vmatprep.mubr.msk.bf16.mxu1 %vm4271_vm1, %v6063_v0 }
  0xff   : > { %v3498_v21 = vpop.f32.mrf.mxu0  ;;  %v3636_v22 = vpop.f32.mrf.mxu1 }
 0x101   : > { %v4778_v23 = vpop.f32.mrf.mxu0  ;;  %v4783_v26 = vpop.f32.mrf.mxu1 }
 0x103   : > { %v3499_v29 = vpop.f32.mrf.mxu0  ;;  %v3637_v30 = vpop.f32.mrf.mxu1 }
 0x105   : > { %v4787_v31 = vpop.f32.mrf.mxu0  ;;  %3597 = vmatmul.mubr.msk.bf16.gmra.mxu0 %vm465_vm2, %v4781_v25  ;;  %v4791_v36 = vpop.f32.mrf.mxu1  ;;  %3735 = vmatmul.mubr.msk.bf16.gmra.mxu1 %vm465_vm2, %v4781_v25 }
 0x106   : > { %3600 = vmatprep.mubr.msk.bf16.mxu0 %vm4271_vm1, %v6063_v0  ;;  %3738 = vmatprep.mubr.msk.bf16.mxu1 %vm4271_vm1, %v6063_v0 }
 0x107   : > { %v3502_v43 = vpop.f32.mrf.mxu0  ;;  %v3640_v44 = vpop.f32.mrf.mxu1 }
 0x108   : > { %v4827_v43 = vld [vmem:[%s4366_s21 + $0xe8] sm:$0xff]  }
 0x109   : > { %v4801_v61 = vpop.f32.mrf.mxu0  ;;  %v4806_v4 = vpop.f32.mrf.mxu1 }
 0x10b   : > { %v3503_v9 = vpop.f32.mrf.mxu0  ;;  %v3641_v10 = vpop.f32.mrf.mxu1 }
 0x10c   : > { %v4850_v9 = vld [vmem:[%s4366_s21 + $0xf0] sm:$0xff]   ;;  %s170_s21 = sand.u32 1, %s4228_s12  }
 0x10d   : > { %v4810_v15 = vpop.f32.mrf.mxu0  ;;  %3601 = vmatmul.mubr.msk.bf16.gmra.mxu0 %vm465_vm2, %v4804_v62  ;;  %v4814_v16 = vpop.f32.mrf.mxu1  ;;  %3739 = vmatmul.mubr.msk.bf16.gmra.mxu1 %vm465_vm2, %v4804_v62  ;;  %6073 = vst [vmem:[#allocation4_spill] sm:$0xff] %v4850_v9  ;;  %s4026_s26 = smul.u32 248, %s170_s21 }
 0x10e   : > { %3604 = vmatprep.mubr.msk.bf16.mxu0 %vm4271_vm1, %v6063_v0  ;;  %3742 = vmatprep.mubr.msk.bf16.mxu1 %vm4271_vm1, %v6063_v0 }
 0x10f   : > { %v3506_v22 = vpop.f32.mrf.mxu0  ;;  %v3644_v29 = vpop.f32.mrf.mxu1  ;;  %s5389_s12 = scalar_lea.vmem [#allocation2], %s4026_s26  }
 0x111   : > { %v4824_v30 = vpop.f32.mrf.mxu0  ;;  %v4829_v44 = vpop.f32.mrf.mxu1 }
 0x113   : > { %v3507_v10 = vpop.f32.mrf.mxu0  ;;  %v3645_v5 = vpop.f32.mrf.mxu1 }
 0x115   : > { %v4833_v37 = vpop.f32.mrf.mxu0  ;;  %3605 = vmatmul.mubr.msk.bf16.gmra.mxu0 %vm465_vm2, %v4827_v43  ;;  %v4837_v22 = vpop.f32.mrf.mxu1  ;;  %3743 = vmatmul.mubr.msk.bf16.gmra.mxu1 %vm465_vm2, %v4827_v43 }
 0x116   : > { %3608 = vmatprep.mubr.msk.bf16.mxu0 %vm4271_vm1, %v6063_v0  ;;  %3746 = vmatprep.mubr.msk.bf16.mxu1 %vm4271_vm1, %v6063_v0 }
 0x117   : > { %v3510_v21 = vpop.f32.mrf.mxu0  ;;  %v3648_v5 = vpop.f32.mrf.mxu1 }
 0x119   : > { %v4847_v10 = vpop.f32.mrf.mxu0  ;;  %v4852_v28 = vpop.f32.mrf.mxu1 }
 0x11a   : > { %6072 = vst [vmem:[#allocation3_spill] sm:$0xff] %v4847_v10  ;;  %6074 = vst [vmem:[#allocation5_spill] sm:$0xff] %v4852_v28 }
 0x11b   : > { %v3511_v14 = vpop.f32.mrf.mxu0  ;;  %v3649_v8 = vpop.f32.mrf.mxu1 }
 0x11d   : > { %v4856_v3 = vpop.f32.mrf.mxu0  ;;  %3609 = vmatmul.mubr.msk.bf16.gmra.mxu0 %vm465_vm2, %v4850_v9  ;;  %v4860_v21 = vpop.f32.mrf.mxu1  ;;  %3747 = vmatmul.mubr.msk.bf16.gmra.mxu1 %vm465_vm2, %v4850_v9 }
 0x11e   : > { %6075 = vst [vmem:[#allocation6_spill] sm:$0xff] %v4860_v21  ;;  %3764 = vmatprep.mubr.msk.bf16.mxu0 %vm4271_vm1, %v6063_v0  ;;  %3902 = vmatprep.mubr.msk.bf16.mxu1 %vm4271_vm1, %v6063_v0 }
 0x11f   : > { %v3514_v29 = vpop.f32.mrf.mxu0  ;;  %v3652_v8 = vpop.f32.mrf.mxu1 }
 0x121   : > { %v4870_v14 = vpop.f32.mrf.mxu0  ;;  %v4872_v20 = vpop.f32.mrf.mxu1 }
 0x122   : > { %6076 = vst [vmem:[#allocation7_spill] sm:$0xff] %v4870_v14  ;;  %6077 = vst [vmem:[#allocation8_spill] sm:$0xff] %v4872_v20 }
 0x123   : > { %v3515_v28 = vpop.f32.mrf.mxu0  ;;  %v3653_v9 = vpop.f32.mrf.mxu1 }
 0x125   : > { %v4876_v10 = vpop.f32.mrf.mxu0  ;;  %3765 = vmatmul.mubr.msk.bf16.vlgmr.msra.gmra.mxu0 %vm465_vm2, %v4400_v19  ;;  %v4880_v5 = vpop.f32.mrf.mxu1  ;;  %3903 = vmatmul.mubr.msk.bf16.vlgmr.msra.gmra.mxu1 %vm465_vm2, %v4400_v19 }
 0x126   : > { %6078 = vst [vmem:[#allocation9_spill] sm:$0xff] %v4880_v5  ;;  %3768 = vmatprep.mubr.msk.bf16.mxu0 %vm4271_vm1, %v6063_v0  ;;  %3906 = vmatprep.mubr.msk.bf16.mxu1 %vm4271_vm1, %v6063_v0 }
 0x127   : > { %v3518_v8 = vpop.f32.mrf.mxu0  ;;  %v3656_v28 = vpop.f32.mrf.mxu1 }
 0x129   : > { %v4890_v9 = vpop.f32.mrf.mxu0  ;;  %v4892_v60 = vpop.f32.mrf.mxu1 }
 0x12a   : > { %6079 = vst [vmem:[#allocation10_spill] sm:$0xff] %v4890_v9  ;;  %6080 = vst [vmem:[#allocation11_spill] sm:$0xff] %v4892_v60 }
 0x12b   : > { %v3519_v14 = vpop.f32.mrf.mxu0  ;;  %v3657_v19 = vpop.f32.mrf.mxu1 }
 0x12d   : > { %v4896_v21 = vpop.f32.mrf.mxu0  ;;  %3769 = vmatmul.mubr.msk.bf16.gmra.mxu0 %vm465_vm2, %v4422_v24  ;;  %v4900_v29 = vpop.f32.mrf.mxu1  ;;  %3907 = vmatmul.mubr.msk.bf16.gmra.mxu1 %vm465_vm2, %v4422_v24 }
 0x12e   : > { %6081 = vst [vmem:[#allocation12_spill] sm:$0xff] %v4900_v29  ;;  %3772 = vmatprep.mubr.msk.bf16.mxu0 %vm4271_vm1, %v6063_v0  ;;  %3910 = vmatprep.mubr.msk.bf16.mxu1 %vm4271_vm1, %v6063_v0 }
 0x12f   : > { %v3522_v28 = vpop.f32.mrf.mxu0  ;;  %v3660_v14 = vpop.f32.mrf.mxu1 }
 0x131   : > { %v4910_v19 = vpop.f32.mrf.mxu0  ;;  %v4912_v20 = vpop.f32.mrf.mxu1 }
 0x132   : > { %6082 = vst [vmem:[#allocation13_spill] sm:$0xff] %v4910_v19  ;;  %6083 = vst [vmem:[#allocation14_spill] sm:$0xff] %v4912_v20 }
 0x133   : > { %v3523_v9 = vpop.f32.mrf.mxu0  ;;  %v3661_v24 = vpop.f32.mrf.mxu1 }
 0x135   : > { %v4916_v5 = vpop.f32.mrf.mxu0  ;;  %3773 = vmatmul.mubr.msk.bf16.gmra.mxu0 %vm465_vm2, %v4442_v27  ;;  %v4920_v8 = vpop.f32.mrf.mxu1  ;;  %3911 = vmatmul.mubr.msk.bf16.gmra.mxu1 %vm465_vm2, %v4442_v27 }
 0x136   : > { %6084 = vst [vmem:[#allocation15_spill] sm:$0xff] %v4920_v8  ;;  %3776 = vmatprep.mubr.msk.bf16.mxu0 %vm4271_vm1, %v6063_v0  ;;  %3914 = vmatprep.mubr.msk.bf16.mxu1 %vm4271_vm1, %v6063_v0 }
 0x137   : > { %v3526_v14 = vpop.f32.mrf.mxu0  ;;  %v3664_v9 = vpop.f32.mrf.mxu1 }
 0x139   : > { %v4930_v24 = vpop.f32.mrf.mxu0  ;;  %v4932_v60 = vpop.f32.mrf.mxu1 }
 0x13a   : > { %6085 = vst [vmem:[#allocation16_spill] sm:$0xff] %v4930_v24  ;;  %6086 = vst [vmem:[#allocation17_spill] sm:$0xff] %v4932_v60 }
 0x13b   : > { %v3527_v19 = vpop.f32.mrf.mxu0  ;;  %v3665_v27 = vpop.f32.mrf.mxu1 }
 0x13d   : > { %v4936_v29 = vpop.f32.mrf.mxu0  ;;  %3777 = vmatmul.mubr.msk.bf16.gmra.mxu0 %vm465_vm2, %v4469_v32  ;;  %v4940_v28 = vpop.f32.mrf.mxu1  ;;  %3915 = vmatmul.mubr.msk.bf16.gmra.mxu1 %vm465_vm2, %v4469_v32 }
 0x13e   : > { %6087 = vst [vmem:[#allocation18_spill] sm:$0xff] %v4940_v28  ;;  %3780 = vmatprep.mubr.msk.bf16.mxu0 %vm4271_vm1, %v6063_v0  ;;  %3918 = vmatprep.mubr.msk.bf16.mxu1 %vm4271_vm1, %v6063_v0 }
 0x13f   : > { %v3530_v9 = vpop.f32.mrf.mxu0  ;;  %v3668_v19 = vpop.f32.mrf.mxu1 }
 0x141   : > { %v4950_v27 = vpop.f32.mrf.mxu0  ;;  %v4952_v20 = vpop.f32.mrf.mxu1 }
 0x142   : > { %6088 = vst [vmem:[#allocation19_spill] sm:$0xff] %v4950_v27  ;;  %6089 = vst [vmem:[#allocation20_spill] sm:$0xff] %v4952_v20 }
 0x143   : > { %v3531_v24 = vpop.f32.mrf.mxu0  ;;  %v3669_v32 = vpop.f32.mrf.mxu1 }
 0x145   : > { %v4956_v8 = vpop.f32.mrf.mxu0  ;;  %3781 = vmatmul.mubr.msk.bf16.gmra.mxu0 %vm465_vm2, %v4482_v33  ;;  %v4960_v14 = vpop.f32.mrf.mxu1  ;;  %3919 = vmatmul.mubr.msk.bf16.gmra.mxu1 %vm465_vm2, %v4482_v33 }
 0x146   : > { %6090 = vst [vmem:[#allocation21_spill] sm:$0xff] %v4960_v14  ;;  %3784 = vmatprep.mubr.msk.bf16.mxu0 %vm4271_vm1, %v6063_v0  ;;  %3922 = vmatprep.mubr.msk.bf16.mxu1 %vm4271_vm1, %v6063_v0 }
 0x147   : > { %v3534_v19 = vpop.f32.mrf.mxu0  ;;  %v3672_v24 = vpop.f32.mrf.mxu1 }
 0x149   : > { %v4970_v32 = vpop.f32.mrf.mxu0  ;;  %v4972_v60 = vpop.f32.mrf.mxu1 }
 0x14a   : > { %6091 = vst [vmem:[#allocation22_spill] sm:$0xff] %v4970_v32  ;;  %6092 = vst [vmem:[#allocation23_spill] sm:$0xff] %v4972_v60 }
 0x14b   : > { %v3535_v27 = vpop.f32.mrf.mxu0  ;;  %v3673_v33 = vpop.f32.mrf.mxu1 }
 0x14d   : > { %v4976_v28 = vpop.f32.mrf.mxu0  ;;  %3785 = vmatmul.mubr.msk.bf16.gmra.mxu0 %vm465_vm2, %v4493_v34  ;;  %v4980_v9 = vpop.f32.mrf.mxu1  ;;  %3923 = vmatmul.mubr.msk.bf16.gmra.mxu1 %vm465_vm2, %v4493_v34 }
 0x14e   : > { %6093 = vst [vmem:[#allocation24_spill] sm:$0xff] %v4980_v9  ;;  %3788 = vmatprep.mubr.msk.bf16.mxu0 %vm4271_vm1, %v6063_v0  ;;  %3926 = vmatprep.mubr.msk.bf16.mxu1 %vm4271_vm1, %v6063_v0 }
 0x14f   : > { %v3538_v24 = vpop.f32.mrf.mxu0  ;;  %v3676_v27 = vpop.f32.mrf.mxu1 }
 0x151   : > { %v4990_v33 = vpop.f32.mrf.mxu0  ;;  %v4992_v20 = vpop.f32.mrf.mxu1 }
 0x152   : > { %6094 = vst [vmem:[#allocation25_spill] sm:$0xff] %v4990_v33  ;;  %6095 = vst [vmem:[#allocation26_spill] sm:$0xff] %v4992_v20 }
 0x153   : > { %v3539_v32 = vpop.f32.mrf.mxu0  ;;  %v3677_v34 = vpop.f32.mrf.mxu1 }
 0x155   : > { %v4996_v14 = vpop.f32.mrf.mxu0  ;;  %3789 = vmatmul.mubr.msk.bf16.gmra.mxu0 %vm465_vm2, %v4504_v35  ;;  %v5000_v19 = vpop.f32.mrf.mxu1  ;;  %3927 = vmatmul.mubr.msk.bf16.gmra.mxu1 %vm465_vm2, %v4504_v35 }
 0x156   : > { %6096 = vst [vmem:[#allocation27_spill] sm:$0xff] %v5000_v19  ;;  %3792 = vmatprep.mubr.msk.bf16.mxu0 %vm4271_vm1, %v6063_v0  ;;  %3930 = vmatprep.mubr.msk.bf16.mxu1 %vm4271_vm1, %v6063_v0 }
 0x157   : > { %v3542_v27 = vpop.f32.mrf.mxu0  ;;  %v3680_v32 = vpop.f32.mrf.mxu1 }
 0x159   : > { %v5010_v34 = vpop.f32.mrf.mxu0  ;;  %v5012_v60 = vpop.f32.mrf.mxu1 }
 0x15a   : > { %6097 = vst [vmem:[#allocation28_spill] sm:$0xff] %v5010_v34  ;;  %6098 = vst [vmem:[#allocation29_spill] sm:$0xff] %v5012_v60 }
 0x15b   : > { %v3543_v33 = vpop.f32.mrf.mxu0  ;;  %v3681_v35 = vpop.f32.mrf.mxu1 }
 0x15d   : > { %v5016_v9 = vpop.f32.mrf.mxu0  ;;  %3793 = vmatmul.mubr.msk.bf16.gmra.mxu0 %vm465_vm2, %v4521_v38  ;;  %v5020_v24 = vpop.f32.mrf.mxu1  ;;  %3931 = vmatmul.mubr.msk.bf16.gmra.mxu1 %vm465_vm2, %v4521_v38 }
 0x15e   : > { %6099 = vst [vmem:[#allocation30_spill] sm:$0xff] %v5020_v24  ;;  %3796 = vmatprep.mubr.msk.bf16.mxu0 %vm4271_vm1, %v6063_v0  ;;  %3934 = vmatprep.mubr.msk.bf16.mxu1 %vm4271_vm1, %v6063_v0 }
 0x15f   : > { %v3546_v32 = vpop.f32.mrf.mxu0  ;;  %v3684_v33 = vpop.f32.mrf.mxu1 }
 0x161   : > { %v5030_v35 = vpop.f32.mrf.mxu0  ;;  %v5032_v20 = vpop.f32.mrf.mxu1 }
 0x162   : > { %6100 = vst [vmem:[#allocation31_spill] sm:$0xff] %v5030_v35  ;;  %6101 = vst [vmem:[#allocation32_spill] sm:$0xff] %v5032_v20 }
 0x163   : > { %v3547_v34 = vpop.f32.mrf.mxu0  ;;  %v3685_v38 = vpop.f32.mrf.mxu1 }
 0x165   : > { %v5036_v19 = vpop.f32.mrf.mxu0  ;;  %3797 = vmatmul.mubr.msk.bf16.gmra.mxu0 %vm465_vm2, %v4534_v39  ;;  %v5040_v27 = vpop.f32.mrf.mxu1  ;;  %3935 = vmatmul.mubr.msk.bf16.gmra.mxu1 %vm465_vm2, %v4534_v39 }
 0x166   : > { %6102 = vst [vmem:[#allocation33_spill] sm:$0xff] %v5040_v27  ;;  %3800 = vmatprep.mubr.msk.bf16.mxu0 %vm4271_vm1, %v6063_v0  ;;  %3938 = vmatprep.mubr.msk.bf16.mxu1 %vm4271_vm1, %v6063_v0 }
 0x167   : > { %v3550_v33 = vpop.f32.mrf.mxu0  ;;  %v3688_v34 = vpop.f32.mrf.mxu1 }
 0x169   : > { %v5050_v38 = vpop.f32.mrf.mxu0  ;;  %v5052_v60 = vpop.f32.mrf.mxu1 }
 0x16a   : > { %6103 = vst [vmem:[#allocation34_spill] sm:$0xff] %v5050_v38  ;;  %6104 = vst [vmem:[#allocation35_spill] sm:$0xff] %v5052_v60 }
 0x16b   : > { %v3551_v35 = vpop.f32.mrf.mxu0  ;;  %v3689_v39 = vpop.f32.mrf.mxu1 }
 0x16d   : > { %v5056_v24 = vpop.f32.mrf.mxu0  ;;  %3801 = vmatmul.mubr.msk.bf16.gmra.mxu0 %vm465_vm2, %v4545_v40  ;;  %v5060_v32 = vpop.f32.mrf.mxu1  ;;  %3939 = vmatmul.mubr.msk.bf16.gmra.mxu1 %vm465_vm2, %v4545_v40 }
 0x16e   : > { %6105 = vst [vmem:[#allocation36_spill] sm:$0xff] %v5060_v32  ;;  %3804 = vmatprep.mubr.msk.bf16.mxu0 %vm4271_vm1, %v6063_v0  ;;  %3942 = vmatprep.mubr.msk.bf16.mxu1 %vm4271_vm1, %v6063_v0 }
 0x16f   : > { %v3554_v34 = vpop.f32.mrf.mxu0  ;;  %v3692_v35 = vpop.f32.mrf.mxu1 }
 0x171   : > { %v5070_v39 = vpop.f32.mrf.mxu0  ;;  %v5072_v20 = vpop.f32.mrf.mxu1 }
 0x172   : > { %6106 = vst [vmem:[#allocation37_spill] sm:$0xff] %v5070_v39  ;;  %6107 = vst [vmem:[#allocation38_spill] sm:$0xff] %v5072_v20 }
 0x173   : > { %v3555_v38 = vpop.f32.mrf.mxu0  ;;  %v3693_v40 = vpop.f32.mrf.mxu1 }
 0x175   : > { %v5076_v27 = vpop.f32.mrf.mxu0  ;;  %3805 = vmatmul.mubr.msk.bf16.gmra.mxu0 %vm465_vm2, %v4556_v41  ;;  %v5080_v33 = vpop.f32.mrf.mxu1  ;;  %3943 = vmatmul.mubr.msk.bf16.gmra.mxu1 %vm465_vm2, %v4556_v41 }
 0x176   : > { %6108 = vst [vmem:[#allocation39_spill] sm:$0xff] %v5080_v33  ;;  %3808 = vmatprep.mubr.msk.bf16.mxu0 %vm4271_vm1, %v6063_v0  ;;  %3946 = vmatprep.mubr.msk.bf16.mxu1 %vm4271_vm1, %v6063_v0 }
 0x177   : > { %v3558_v35 = vpop.f32.mrf.mxu0  ;;  %v3696_v38 = vpop.f32.mrf.mxu1 }
 0x179   : > { %v5090_v40 = vpop.f32.mrf.mxu0  ;;  %v5092_v60 = vpop.f32.mrf.mxu1 }
 0x17a   : > { %6109 = vst [vmem:[#allocation40_spill] sm:$0xff] %v5090_v40  ;;  %6110 = vst [vmem:[#allocation41_spill] sm:$0xff] %v5092_v60 }
 0x17b   : > { %v3559_v39 = vpop.f32.mrf.mxu0  ;;  %v3697_v41 = vpop.f32.mrf.mxu1 }
 0x17d   : > { %v5096_v32 = vpop.f32.mrf.mxu0  ;;  %3809 = vmatmul.mubr.msk.bf16.gmra.mxu0 %vm465_vm2, %v4567_v42  ;;  %v5100_v34 = vpop.f32.mrf.mxu1  ;;  %3947 = vmatmul.mubr.msk.bf16.gmra.mxu1 %vm465_vm2, %v4567_v42 }
 0x17e   : > { %6111 = vst [vmem:[#allocation42_spill] sm:$0xff] %v5100_v34  ;;  %3812 = vmatprep.mubr.msk.bf16.mxu0 %vm4271_vm1, %v6063_v0  ;;  %3950 = vmatprep.mubr.msk.bf16.mxu1 %vm4271_vm1, %v6063_v0 }
 0x17f   : > { %v3562_v38 = vpop.f32.mrf.mxu0  ;;  %v3700_v39 = vpop.f32.mrf.mxu1 }
 0x181   : > { %v5110_v41 = vpop.f32.mrf.mxu0  ;;  %v5112_v20 = vpop.f32.mrf.mxu1 }
 0x182   : > { %6112 = vst [vmem:[#allocation43_spill] sm:$0xff] %v5110_v41  ;;  %6113 = vst [vmem:[#allocation44_spill] sm:$0xff] %v5112_v20 }
 0x183   : > { %v3563_v40 = vpop.f32.mrf.mxu0  ;;  %v3701_v42 = vpop.f32.mrf.mxu1 }
 0x185   : > { %v5116_v33 = vpop.f32.mrf.mxu0  ;;  %3813 = vmatmul.mubr.msk.bf16.gmra.mxu0 %vm465_vm2, %v4584_v45  ;;  %v5120_v35 = vpop.f32.mrf.mxu1  ;;  %3951 = vmatmul.mubr.msk.bf16.gmra.mxu1 %vm465_vm2, %v4584_v45 }
 0x186   : > { %6114 = vst [vmem:[#allocation45_spill] sm:$0xff] %v5120_v35  ;;  %3816 = vmatprep.mubr.msk.bf16.mxu0 %vm4271_vm1, %v6063_v0  ;;  %3954 = vmatprep.mubr.msk.bf16.mxu1 %vm4271_vm1, %v6063_v0 }
 0x187   : > { %v3566_v39 = vpop.f32.mrf.mxu0  ;;  %v3704_v40 = vpop.f32.mrf.mxu1 }
 0x189   : > { %v5130_v42 = vpop.f32.mrf.mxu0  ;;  %v5132_v60 = vpop.f32.mrf.mxu1 }
 0x18a   : > { %6115 = vst [vmem:[#allocation46_spill] sm:$0xff] %v5130_v42  ;;  %6116 = vst [vmem:[#allocation47_spill] sm:$0xff] %v5132_v60 }
 0x18b   : > { %v3567_v41 = vpop.f32.mrf.mxu0  ;;  %v3705_v45 = vpop.f32.mrf.mxu1 }
 0x18d   : > { %v5136_v34 = vpop.f32.mrf.mxu0  ;;  %3817 = vmatmul.mubr.msk.bf16.gmra.mxu0 %vm465_vm2, %v4595_v46  ;;  %v5140_v38 = vpop.f32.mrf.mxu1  ;;  %3955 = vmatmul.mubr.msk.bf16.gmra.mxu1 %vm465_vm2, %v4595_v46 }
 0x18e   : > { %6117 = vst [vmem:[#allocation48_spill] sm:$0xff] %v5140_v38  ;;  %3820 = vmatprep.mubr.msk.bf16.mxu0 %vm4271_vm1, %v6063_v0  ;;  %3958 = vmatprep.mubr.msk.bf16.mxu1 %vm4271_vm1, %v6063_v0 }
 0x18f   : > { %v3570_v40 = vpop.f32.mrf.mxu0  ;;  %v3708_v41 = vpop.f32.mrf.mxu1 }
 0x191   : > { %v5150_v45 = vpop.f32.mrf.mxu0  ;;  %v5152_v20 = vpop.f32.mrf.mxu1 }
 0x192   : > { %6118 = vst [vmem:[#allocation49_spill] sm:$0xff] %v5150_v45  ;;  %6119 = vst [vmem:[#allocation50_spill] sm:$0xff] %v5152_v20 }
 0x193   : > { %v3571_v42 = vpop.f32.mrf.mxu0  ;;  %v3709_v46 = vpop.f32.mrf.mxu1 }
 0x195   : > { %v5156_v35 = vpop.f32.mrf.mxu0  ;;  %3821 = vmatmul.mubr.msk.bf16.gmra.mxu0 %vm465_vm2, %v4606_v47  ;;  %v5160_v39 = vpop.f32.mrf.mxu1  ;;  %3959 = vmatmul.mubr.msk.bf16.gmra.mxu1 %vm465_vm2, %v4606_v47 }
 0x196   : > { %6120 = vst [vmem:[#allocation51_spill] sm:$0xff] %v5160_v39  ;;  %3824 = vmatprep.mubr.msk.bf16.mxu0 %vm4271_vm1, %v6063_v0  ;;  %3962 = vmatprep.mubr.msk.bf16.mxu1 %vm4271_vm1, %v6063_v0 }
 0x197   : > { %v3574_v41 = vpop.f32.mrf.mxu0  ;;  %v3712_v42 = vpop.f32.mrf.mxu1 }
 0x199   : > { %v5170_v46 = vpop.f32.mrf.mxu0  ;;  %v5172_v60 = vpop.f32.mrf.mxu1 }
 0x19a   : > { %6121 = vst [vmem:[#allocation52_spill] sm:$0xff] %v5170_v46  ;;  %6122 = vst [vmem:[#allocation53_spill] sm:$0xff] %v5172_v60 }
 0x19b   : > { %v3575_v45 = vpop.f32.mrf.mxu0  ;;  %v3713_v47 = vpop.f32.mrf.mxu1 }
 0x19d   : > { %v5176_v38 = vpop.f32.mrf.mxu0  ;;  %3825 = vmatmul.mubr.msk.bf16.gmra.mxu0 %vm465_vm2, %v4617_v48  ;;  %v5180_v40 = vpop.f32.mrf.mxu1  ;;  %3963 = vmatmul.mubr.msk.bf16.gmra.mxu1 %vm465_vm2, %v4617_v48 }
 0x19e   : > { %6123 = vst [vmem:[#allocation54_spill] sm:$0xff] %v5180_v40  ;;  %3828 = vmatprep.mubr.msk.bf16.mxu0 %vm4271_vm1, %v6063_v0  ;;  %3966 = vmatprep.mubr.msk.bf16.mxu1 %vm4271_vm1, %v6063_v0 }
 0x19f   : > { %v3578_v42 = vpop.f32.mrf.mxu0  ;;  %v3716_v45 = vpop.f32.mrf.mxu1 }
 0x1a1   : > { %v5190_v47 = vpop.f32.mrf.mxu0  ;;  %v5192_v20 = vpop.f32.mrf.mxu1 }
 0x1a2   : > { %6124 = vst [vmem:[#allocation55_spill] sm:$0xff] %v5190_v47  ;;  %6125 = vst [vmem:[#allocation56_spill] sm:$0xff] %v5192_v20 }
 0x1a3   : > { %v3579_v46 = vpop.f32.mrf.mxu0  ;;  %v3717_v48 = vpop.f32.mrf.mxu1 }
 0x1a5   : > { %v5196_v39 = vpop.f32.mrf.mxu0  ;;  %3829 = vmatmul.mubr.msk.bf16.gmra.mxu0 %vm465_vm2, %v4628_v49  ;;  %v5200_v41 = vpop.f32.mrf.mxu1  ;;  %3967 = vmatmul.mubr.msk.bf16.gmra.mxu1 %vm465_vm2, %v4628_v49 }
 0x1a6   : > { %6126 = vst [vmem:[#allocation57_spill] sm:$0xff] %v5200_v41  ;;  %3832 = vmatprep.mubr.msk.bf16.mxu0 %vm4271_vm1, %v6063_v0  ;;  %3970 = vmatprep.mubr.msk.bf16.mxu1 %vm4271_vm1, %v6063_v0 }
 0x1a7   : > { %v3582_v45 = vpop.f32.mrf.mxu0  ;;  %v3720_v46 = vpop.f32.mrf.mxu1 }
 0x1a9   : > { %v5210_v48 = vpop.f32.mrf.mxu0  ;;  %v5212_v60 = vpop.f32.mrf.mxu1 }
 0x1aa   : > { %6127 = vst [vmem:[#allocation58_spill] sm:$0xff] %v5210_v48  ;;  %6128 = vst [vmem:[#allocation59_spill] sm:$0xff] %v5212_v60 }
 0x1ab   : > { %v3583_v47 = vpop.f32.mrf.mxu0  ;;  %v3721_v49 = vpop.f32.mrf.mxu1 }
 0x1ad   : > { %v5216_v40 = vpop.f32.mrf.mxu0  ;;  %3833 = vmatmul.mubr.msk.bf16.gmra.mxu0 %vm465_vm2, %v4639_v50  ;;  %v5220_v42 = vpop.f32.mrf.mxu1  ;;  %3971 = vmatmul.mubr.msk.bf16.gmra.mxu1 %vm465_vm2, %v4639_v50 }
 0x1ae   : > { %6129 = vst [vmem:[#allocation60_spill] sm:$0xff] %v5220_v42  ;;  %3836 = vmatprep.mubr.msk.bf16.mxu0 %vm4271_vm1, %v6063_v0  ;;  %3974 = vmatprep.mubr.msk.bf16.mxu1 %vm4271_vm1, %v6063_v0 }
 0x1af   : > { %v3586_v46 = vpop.f32.mrf.mxu0  ;;  %v3724_v47 = vpop.f32.mrf.mxu1 }
 0x1b1   : > { %v5230_v49 = vpop.f32.mrf.mxu0  ;;  %v5232_v20 = vpop.f32.mrf.mxu1 }
 0x1b2   : > { %6130 = vst [vmem:[#allocation61_spill] sm:$0xff] %v5230_v49  ;;  %6131 = vst [vmem:[#allocation62_spill] sm:$0xff] %v5232_v20 }
 0x1b3   : > { %v3587_v48 = vpop.f32.mrf.mxu0  ;;  %v3725_v50 = vpop.f32.mrf.mxu1 }
 0x1b5   : > { %v5236_v41 = vpop.f32.mrf.mxu0  ;;  %3837 = vmatmul.mubr.msk.bf16.gmra.mxu0 %vm465_vm2, %v4650_v51  ;;  %v5240_v45 = vpop.f32.mrf.mxu1  ;;  %3975 = vmatmul.mubr.msk.bf16.gmra.mxu1 %vm465_vm2, %v4650_v51 }
 0x1b6   : > { %6132 = vst [vmem:[#allocation63_spill] sm:$0xff] %v5240_v45  ;;  %3840 = vmatprep.mubr.msk.bf16.mxu0 %vm4271_vm1, %v6063_v0  ;;  %3978 = vmatprep.mubr.msk.bf16.mxu1 %vm4271_vm1, %v6063_v0 }
 0x1b7   : > { %v3590_v47 = vpop.f32.mrf.mxu0  ;;  %v3728_v48 = vpop.f32.mrf.mxu1 }
 0x1b9   : > { %v5250_v50 = vpop.f32.mrf.mxu0  ;;  %v5252_v60 = vpop.f32.mrf.mxu1 }
 0x1ba   : > { %6133 = vst [vmem:[#allocation64_spill] sm:$0xff] %v5250_v50  ;;  %6134 = vst [vmem:[#allocation65_spill] sm:$0xff] %v5252_v60 }
 0x1bb   : > { %v3591_v49 = vpop.f32.mrf.mxu0  ;;  %v3729_v51 = vpop.f32.mrf.mxu1 }
 0x1bd   : > { %v5256_v42 = vpop.f32.mrf.mxu0  ;;  %3841 = vmatmul.mubr.msk.bf16.gmra.mxu0 %vm465_vm2, %v4661_v52  ;;  %v5260_v46 = vpop.f32.mrf.mxu1  ;;  %3979 = vmatmul.mubr.msk.bf16.gmra.mxu1 %vm465_vm2, %v4661_v52 }
 0x1be   : > { %6135 = vst [vmem:[#allocation66_spill] sm:$0xff] %v5260_v46  ;;  %3844 = vmatprep.mubr.msk.bf16.mxu0 %vm4271_vm1, %v6063_v0  ;;  %3982 = vmatprep.mubr.msk.bf16.mxu1 %vm4271_vm1, %v6063_v0 }
 0x1bf   : > { %v3594_v48 = vpop.f32.mrf.mxu0  ;;  %v3732_v49 = vpop.f32.mrf.mxu1 }
 0x1c1   : > { %v5270_v51 = vpop.f32.mrf.mxu0  ;;  %v5272_v20 = vpop.f32.mrf.mxu1 }
 0x1c2   : > { %6136 = vst [vmem:[#allocation67_spill] sm:$0xff] %v5270_v51  ;;  %6137 = vst [vmem:[#allocation68_spill] sm:$0xff] %v5272_v20 }
 0x1c3   : > { %v3595_v50 = vpop.f32.mrf.mxu0  ;;  %v3733_v52 = vpop.f32.mrf.mxu1 }
 0x1c5   : > { %v5276_v45 = vpop.f32.mrf.mxu0  ;;  %3845 = vmatmul.mubr.msk.bf16.gmra.mxu0 %vm465_vm2, %v4672_v53  ;;  %v5280_v47 = vpop.f32.mrf.mxu1  ;;  %3983 = vmatmul.mubr.msk.bf16.gmra.mxu1 %vm465_vm2, %v4672_v53 }
 0x1c6   : > { %6138 = vst [vmem:[#allocation69_spill] sm:$0xff] %v5280_v47  ;;  %3848 = vmatprep.mubr.msk.bf16.mxu0 %vm4271_vm1, %v6063_v0  ;;  %3986 = vmatprep.mubr.msk.bf16.mxu1 %vm4271_vm1, %v6063_v0 }
 0x1c7   : > { %v3598_v49 = vpop.f32.mrf.mxu0  ;;  %v3736_v50 = vpop.f32.mrf.mxu1 }
 0x1c9   : > { %v5290_v52 = vpop.f32.mrf.mxu0  ;;  %v5292_v60 = vpop.f32.mrf.mxu1 }
 0x1ca   : > { %6139 = vst [vmem:[#allocation70_spill] sm:$0xff] %v5290_v52  ;;  %6140 = vst [vmem:[#allocation71_spill] sm:$0xff] %v5292_v60 }
 0x1cb   : > { %v3599_v51 = vpop.f32.mrf.mxu0  ;;  %v3737_v53 = vpop.f32.mrf.mxu1 }
 0x1cd   : > { %v5296_v46 = vpop.f32.mrf.mxu0  ;;  %3849 = vmatmul.mubr.msk.bf16.gmra.mxu0 %vm465_vm2, %v4683_v54  ;;  %v5300_v48 = vpop.f32.mrf.mxu1  ;;  %3987 = vmatmul.mubr.msk.bf16.gmra.mxu1 %vm465_vm2, %v4683_v54 }
 0x1ce   : > { %6141 = vst [vmem:[#allocation72_spill] sm:$0xff] %v5296_v46  ;;  %6142 = vst [vmem:[#allocation73_spill] sm:$0xff] %v5300_v48  ;;  %3852 = vmatprep.mubr.msk.bf16.mxu0 %vm4271_vm1, %v6063_v0  ;;  %3990 = vmatprep.mubr.msk.bf16.mxu1 %vm4271_vm1, %v6063_v0 }
 0x1cf   : > { %v3602_v50 = vpop.f32.mrf.mxu0  ;;  %v3740_v51 = vpop.f32.mrf.mxu1 }
 0x1d1   : > { %v5310_v53 = vpop.f32.mrf.mxu0  ;;  %v5312_v20 = vpop.f32.mrf.mxu1 }
 0x1d2   : > { %6143 = vst [vmem:[#allocation74_spill] sm:$0xff] %v5310_v53  ;;  %6144 = vst [vmem:[#allocation75_spill] sm:$0xff] %v5312_v20 }
 0x1d3   : > { %v3603_v52 = vpop.f32.mrf.mxu0  ;;  %v3741_v54 = vpop.f32.mrf.mxu1 }
 0x1d5   : > { %v5316_v47 = vpop.f32.mrf.mxu0  ;;  %3853 = vmatmul.mubr.msk.bf16.gmra.mxu0 %vm465_vm2, %v4694_v55  ;;  %v5320_v49 = vpop.f32.mrf.mxu1  ;;  %3991 = vmatmul.mubr.msk.bf16.gmra.mxu1 %vm465_vm2, %v4694_v55 }
 0x1d6   : > { %6145 = vst [vmem:[#allocation76_spill] sm:$0xff] %v5316_v47  ;;  %6146 = vst [vmem:[#allocation77_spill] sm:$0xff] %v5320_v49  ;;  %3856 = vmatprep.mubr.msk.bf16.mxu0 %vm4271_vm1, %v6063_v0  ;;  %3994 = vmatprep.mubr.msk.bf16.mxu1 %vm4271_vm1, %v6063_v0 }
 0x1d7   : > { %v3606_v51 = vpop.f32.mrf.mxu0  ;;  %v3744_v52 = vpop.f32.mrf.mxu1 }
 0x1d9   : > { %v5330_v54 = vpop.f32.mrf.mxu0  ;;  %v5332_v60 = vpop.f32.mrf.mxu1 }
 0x1da   : > { %6147 = vst [vmem:[#allocation78_spill] sm:$0xff] %v5330_v54  ;;  %6148 = vst [vmem:[#allocation79_spill] sm:$0xff] %v5332_v60 }
 0x1db   : > { %v3607_v53 = vpop.f32.mrf.mxu0  ;;  %v3745_v55 = vpop.f32.mrf.mxu1 }
 0x1dd   : > { %v5336_v48 = vpop.f32.mrf.mxu0  ;;  %3857 = vmatmul.mubr.msk.bf16.gmra.mxu0 %vm465_vm2, %v4705_v56  ;;  %v5340_v51 = vpop.f32.mrf.mxu1  ;;  %3995 = vmatmul.mubr.msk.bf16.gmra.mxu1 %vm465_vm2, %v4705_v56 }
 0x1de   : > { %6149 = vst [vmem:[#allocation80_spill] sm:$0xff] %v5336_v48  ;;  %6150 = vst [vmem:[#allocation81_spill] sm:$0xff] %v5340_v51  ;;  %3860 = vmatprep.mubr.msk.bf16.mxu0 %vm4271_vm1, %v6063_v0  ;;  %3998 = vmatprep.mubr.msk.bf16.mxu1 %vm4271_vm1, %v6063_v0 }
 0x1df   : > { %v3610_v20 = vpop.f32.mrf.mxu0  ;;  %v3748_v53 = vpop.f32.mrf.mxu1 }
 0x1e0   : > { %v6153_v20 = vmax.f32 %v4718_v58, %v4722_v59  ;;  %v6154_v53 = vmov 0.0  }
 0x1e1   : > { %v5350_v55 = vpop.f32.mrf.mxu0  ;;  %v5352_v50 = vpop.f32.mrf.mxu1 }
 0x1e2   : > { %6151 = vst [vmem:[#allocation82_spill] sm:$0xff] %v5350_v55  ;;  %6152 = vst [vmem:[#allocation83_spill] sm:$0xff] %v5352_v50 }
 0x1e3   : > { %v3611_v54 = vpop.f32.mrf.mxu0  ;;  %v3749_v56 = vpop.f32.mrf.mxu1 }
 0x1e4   : > { %v5369_v54 = vld [vmem:[%s5985_s2] ss:$0 sm:$0xff] }
 0x1e5   : > { %v1339_v49 = vpop.f32.mrf.mxu0  ;;  %3861 = vmatmul.mubr.msk.bf16.gmra.mxu0 %vm465_vm2, %v4716_v57  ;;  %v1741_v0 = vpop.f32.mrf.mxu1  ;;  %3999 = vmatmul.mubr.msk.bf16.gmra.mxu1 %vm465_vm2, %v4716_v57  ;;  %v6155_v57 = vmax.f32 %v4732_v63, %v4737_v2 }
 0x1e6   : > { %v1586_v52 = vmax.f32 %v6153_v20, %v1339_v49  ;;  %3864 = vmatprep.mubr.msk.bf16.mxu0 %vm4271_vm1, %v6154_v53  ;;  %4002 = vmatprep.mubr.msk.bf16.mxu1 %vm4271_vm1, %v6154_v53 }
 0x1e7   : > { %v3766_v56 = vpop.f32.mrf.mxu0  ;;  %v3904_v58 = vpop.f32.mrf.mxu1 }
 0x1e8   : > { %v1988_v60 = vmax.f32 %v1586_v52, %v1741_v0 }
 0x1e9   : > { %v1342_v59 = vpop.f32.mrf.mxu0  ;;  %v1744_v50 = vpop.f32.mrf.mxu1 }
 0x1ea   : > { %v2057_v49 = vadd.f32 %v5369_v54, %v1988_v60  ;;  %v1587_v20 = vmax.f32 %v6155_v57, %v1342_v59  ;;  %v6156_v60 = vmax.f32 %v4741_v6, %v4745_v7 }
 0x1eb   : > { %v3767_v55 = vpop.f32.mrf.mxu0  ;;  %v3905_v47 = vpop.f32.mrf.mxu1 }
 0x1ec   : > { %v2119_v51 = vmax.f32 %v2057_v49, 0.0  ;;  %v1989_v48 = vmax.f32 %v1587_v20, %v1744_v50  ;;  %v6157_v50 = vmax.f32 %v4755_v11, %v4760_v13 }
 0x1ed   : > { %v1347_v56 = vpop.f32.mrf.mxu0  ;;  %3865 = vmatmul.mubr.msk.bf16.gmra.mxu0 %vm465_vm2, %v4735_v1  ;;  %v1749_v46 = vpop.f32.mrf.mxu1  ;;  %4003 = vmatmul.mubr.msk.bf16.gmra.mxu1 %vm465_vm2, %v4735_v1 }
 0x1ee   : > { %v3259_v0 = vpack.c.bf16 %v2119_v51, %v2119_v51  ;;  %v2058_v52 = vadd.f32 %v5369_v54, %v1989_v48  ;;  %v1588_v58 = vmax.f32 %v6156_v60, %v1347_v56  ;;  %3868 = vmatprep.mubr.msk.bf16.mxu0 %vm4271_vm1, %v6154_v53  ;;  %4006 = vmatprep.mubr.msk.bf16.mxu1 %vm4271_vm1, %v6154_v53 }
 0x1ef   : > { %v3770_v63 = vpop.f32.mrf.mxu0  ;;  %v3908_v7 = vpop.f32.mrf.mxu1 }
 0x1f0   : > { %2430 = vst.msk [vmem:[%s5389_s12] sm:$0xf] %vm2429_vm3, %v3259_v0  ;;  %v2120_v2 = vmax.f32 %v2058_v52, 0.0  ;;  %v1990_v6 = vmax.f32 %v1588_v58, %v1749_v46  ;;  %v6158_v52 = vmax.f32 %v4764_v17, %v4768_v18  ;;  %v6159_v7 = vmax.f32 %v4778_v23, %v4783_v26 }
 0x1f1   : > { %v1350_v47 = vpop.f32.mrf.mxu0  ;;  %v1752_v55 = vpop.f32.mrf.mxu1 }
 0x1f2   : > { %v3260_v48 = vpack.c.bf16 %v2120_v2, %v2120_v2  ;;  %v2059_v1 = vadd.f32 %v5369_v54, %v1990_v6  ;;  %v1589_v51 = vmax.f32 %v6157_v50, %v1350_v47 }
 0x1f3   : > { %v3771_v59 = vpop.f32.mrf.mxu0  ;;  %v3909_v20 = vpop.f32.mrf.mxu1 }
 0x1f4   : > { %2431 = vst.msk [vmem:[%s5389_s12 + $0x4] sm:$0xf] %vm2429_vm3, %v3260_v48  ;;  %v2121_v49 = vmax.f32 %v2059_v1, 0.0  ;;  %v1991_v57 = vmax.f32 %v1589_v51, %v1752_v55 }
 0x1f5   : > { %v1355_v56 = vpop.f32.mrf.mxu0  ;;  %3869 = vmatmul.mubr.msk.bf16.gmra.mxu0 %vm465_vm2, %v4758_v12  ;;  %v1757_v13 = vpop.f32.mrf.mxu1  ;;  %4007 = vmatmul.mubr.msk.bf16.gmra.mxu1 %vm465_vm2, %v4758_v12 }
 0x1f6   : > { %v3261_v46 = vpack.c.bf16 %v2121_v49, %v2121_v49  ;;  %v2060_v0 = vadd.f32 %v5369_v54, %v1991_v57  ;;  %v1590_v11 = vmax.f32 %v6158_v52, %v1355_v56  ;;  %3872 = vmatprep.mubr.msk.bf16.mxu0 %vm4271_vm1, %v6154_v53  ;;  %4010 = vmatprep.mubr.msk.bf16.mxu1 %vm4271_vm1, %v6154_v53 }
 0x1f7   : > { %v3774_v60 = vpop.f32.mrf.mxu0  ;;  %v3912_v2 = vpop.f32.mrf.mxu1  ;;  %v6160_v57 = vmax.f32 %v4787_v31, %v4791_v36 }
 0x1f8   : > { %2432 = vst.msk [vmem:[%s5389_s12 + $0x8] sm:$0xf] %vm2429_vm3, %v3261_v46  ;;  %v2122_v58 = vmax.f32 %v2060_v0, 0.0  ;;  %v1992_v63 = vmax.f32 %v1590_v11, %v1757_v13  ;;  %v6161_v11 = vmax.f32 %v4801_v61, %v4806_v4 }
 0x1f9   : > { %v1358_v6 = vpop.f32.mrf.mxu0  ;;  %v1760_v47 = vpop.f32.mrf.mxu1 }
 0x1fa   : > { %v3262_v17 = vpack.c.bf16 %v2122_v58, %v2122_v58  ;;  %v2061_v18 = vadd.f32 %v5369_v54, %v1992_v63  ;;  %v1591_v12 = vmax.f32 %v6159_v7, %v1358_v6  ;;  %v6162_v7 = vmax.f32 %v4810_v15, %v4814_v16 }
 0x1fb   : > { %v3775_v48 = vpop.f32.mrf.mxu0  ;;  %v3913_v51 = vpop.f32.mrf.mxu1 }
 0x1fc   : > { %2433 = vst.msk [vmem:[%s5389_s12 + $0xc] sm:$0xf] %vm2429_vm3, %v3262_v17  ;;  %v2123_v1 = vmax.f32 %v2061_v18, 0.0  ;;  %v1993_v50 = vmax.f32 %v1591_v12, %v1760_v47  ;;  %v6163_v51 = vmax.f32 %v4824_v30, %v4829_v44 }
 0x1fd   : > { %v1363_v55 = vpop.f32.mrf.mxu0  ;;  %3873 = vmatmul.mubr.msk.bf16.gmra.mxu0 %vm465_vm2, %v4781_v25  ;;  %v1765_v26 = vpop.f32.mrf.mxu1  ;;  %4011 = vmatmul.mubr.msk.bf16.gmra.mxu1 %vm465_vm2, %v4781_v25 }
 0x1fe   : > { %v3263_v59 = vpack.c.bf16 %v2123_v1, %v2123_v1  ;;  %v2062_v49 = vadd.f32 %v5369_v54, %v1993_v50  ;;  %v1592_v23 = vmax.f32 %v6160_v57, %v1363_v55  ;;  %3876 = vmatprep.mubr.msk.bf16.mxu0 %vm4271_vm1, %v6154_v53  ;;  %4014 = vmatprep.mubr.msk.bf16.mxu1 %vm4271_vm1, %v6154_v53 }
 0x1ff   : > { %v3778_v20 = vpop.f32.mrf.mxu0  ;;  %v3916_v0 = vpop.f32.mrf.mxu1 }
 0x200   : > { %2434 = vst.msk [vmem:[%s5389_s12 + $0x10] sm:$0xf] %vm2429_vm3, %v3263_v59  ;;  %v2124_v56 = vmax.f32 %v2062_v49, 0.0  ;;  %v1994_v46 = vmax.f32 %v1592_v23, %v1765_v26 }
 0x201   : > { %v1366_v52 = vpop.f32.mrf.mxu0  ;;  %v1768_v13 = vpop.f32.mrf.mxu1 }
 0x202   : > { %v3264_v31 = vpack.c.bf16 %v2124_v56, %v2124_v56  ;;  %v2063_v36 = vadd.f32 %v5369_v54, %v1994_v46  ;;  %v1593_v25 = vmax.f32 %v6161_v11, %v1366_v52  ;;  %v6164_v46 = vmax.f32 %v4833_v37, %v4837_v22 }
 0x203   : > { %v3779_v60 = vpop.f32.mrf.mxu0  ;;  %v3917_v2 = vpop.f32.mrf.mxu1 }
 0x204   : > { %2435 = vst.msk [vmem:[%s5389_s12 + $0x14] sm:$0xf] %vm2429_vm3, %v3264_v31  ;;  %v2125_v58 = vmax.f32 %v2063_v36, 0.0  ;;  %v1995_v63 = vmax.f32 %v1593_v25, %v1768_v13  ;;  %v6165_v25 = vld [vmem:[#allocation3_spill] sm:$0xff]  ;;  %v6166_v13 = vld [vmem:[#allocation5_spill] sm:$0xff] }
 0x205   : > { %v1371_v6 = vpop.f32.mrf.mxu0  ;;  %3877 = vmatmul.mubr.msk.bf16.gmra.mxu0 %vm465_vm2, %v4804_v62  ;;  %v1773_v4 = vpop.f32.mrf.mxu1  ;;  %4015 = vmatmul.mubr.msk.bf16.gmra.mxu1 %vm465_vm2, %v4804_v62  ;;  %v6167_v60 = vmax.f32 %v6165_v25, %v6166_v13 }
 0x206   : > { %v3265_v17 = vpack.c.bf16 %v2125_v58, %v2125_v58  ;;  %v2064_v18 = vadd.f32 %v5369_v54, %v1995_v63  ;;  %v1594_v61 = vmax.f32 %v6162_v7, %v1371_v6  ;;  %3880 = vmatprep.mubr.msk.bf16.mxu0 %vm4271_vm1, %v6154_v53  ;;  %4018 = vmatprep.mubr.msk.bf16.mxu1 %vm4271_vm1, %v6154_v53 }
 0x207   : > { %v3782_v12 = vpop.f32.mrf.mxu0  ;;  %v3920_v1 = vpop.f32.mrf.mxu1 }
 0x208   : > { %2436 = vst.msk [vmem:[%s5389_s12 + $0x18] sm:$0xf] %vm2429_vm3, %v3265_v17  ;;  %v2126_v47 = vmax.f32 %v2064_v18, 0.0  ;;  %v1996_v48 = vmax.f32 %v1594_v61, %v1773_v4  ;;  %v6168_v18 = vld [vmem:[#allocation4_spill] sm:$0xff]  ;;  %v6169_v4 = vld [vmem:[#allocation6_spill] sm:$0xff] }
 0x209   : > { %v1374_v50 = vpop.f32.mrf.mxu0  ;;  %v1776_v55 = vpop.f32.mrf.mxu1  ;;  %v6170_v12 = vmax.f32 %v4856_v3, %v6169_v4 }
 0x20a   : > { %v3266_v15 = vpack.c.bf16 %v2126_v47, %v2126_v47  ;;  %v2065_v16 = vadd.f32 %v5369_v54, %v1996_v48  ;;  %v1595_v62 = vmax.f32 %v6163_v51, %v1374_v50 }
 0x20b   : > { %v3783_v59 = vpop.f32.mrf.mxu0  ;;  %v3921_v23 = vpop.f32.mrf.mxu1 }
 0x20c   : > { %2437 = vst.msk [vmem:[%s5389_s12 + $0x1c] sm:$0xf] %vm2429_vm3, %v3266_v15  ;;  %v2127_v49 = vmax.f32 %v2065_v16, 0.0  ;;  %v1997_v57 = vmax.f32 %v1595_v62, %v1776_v55  ;;  %v6171_v59 = vld [vmem:[#allocation7_spill] sm:$0xff] }
 0x20d   : > { %v1379_v26 = vpop.f32.mrf.mxu0  ;;  %3881 = vmatmul.mubr.msk.bf16.gmra.mxu0 %vm465_vm2, %v4827_v43  ;;  %v1781_v44 = vpop.f32.mrf.mxu1  ;;  %4019 = vmatmul.mubr.msk.bf16.gmra.mxu1 %vm465_vm2, %v4827_v43 }
 0x20e   : > { %v3267_v20 = vpack.c.bf16 %v2127_v49, %v2127_v49  ;;  %v2066_v56 = vadd.f32 %v5369_v54, %v1997_v57  ;;  %v1596_v30 = vmax.f32 %v6164_v46, %v1379_v26  ;;  %3884 = vmatprep.mubr.msk.bf16.mxu0 %vm4271_vm1, %v6154_v53  ;;  %4022 = vmatprep.mubr.msk.bf16.mxu1 %vm4271_vm1, %v6154_v53  ;;  %v6172_v49 = vld [vmem:[#allocation8_spill] sm:$0xff] }
 0x20f   : > { %v3786_v0 = vpop.f32.mrf.mxu0  ;;  %v3924_v36 = vpop.f32.mrf.mxu1  ;;  %v6173_v57 = vmax.f32 %v6171_v59, %v6172_v49 }
 0x210   : > { %2438 = vst.msk [vmem:[%s5389_s12 + $0x20] sm:$0xf] %vm2429_vm3, %v3267_v20  ;;  %v2128_v52 = vmax.f32 %v2066_v56, 0.0  ;;  %v1998_v31 = vmax.f32 %v1596_v30, %v1781_v44 }
 0x211   : > { %v1382_v11 = vpop.f32.mrf.mxu0  ;;  %v1784_v58 = vpop.f32.mrf.mxu1 }
 0x212   : > { %v3268_v37 = vpack.c.bf16 %v2128_v52, %v2128_v52  ;;  %v2067_v22 = vadd.f32 %v5369_v54, %v1998_v31  ;;  %v1597_v43 = vmax.f32 %v6167_v60, %v1382_v11  ;;  %v6174_v52 = vld [vmem:[#allocation9_spill] sm:$0xff] }
 0x213   : > { %v3787_v63 = vpop.f32.mrf.mxu0  ;;  %v3925_v6 = vpop.f32.mrf.mxu1  ;;  %v6175_v31 = vmax.f32 %v4876_v10, %v6174_v52 }
 0x214   : > { %2439 = vst.msk [vmem:[%s5389_s12 + $0x24] sm:$0xf] %vm2429_vm3, %v3268_v37  ;;  %v2129_v2 = vmax.f32 %v2067_v22, 0.0  ;;  %v1999_v53 = vmax.f32 %v1597_v43, %v1784_v58  ;;  %v6176_v63 = vld [vmem:[#allocation10_spill] sm:$0xff] }
 0x215   : > { %v1387_v17 = vpop.f32.mrf.mxu0  ;;  %3885 = vmatmul.mubr.msk.bf16.gmra.mxu0 %vm465_vm2, %v6168_v18  ;;  %v1789_v48 = vpop.f32.mrf.mxu1  ;;  %4023 = vmatmul.mubr.msk.bf16.gmra.mxu1 %vm465_vm2, %v6168_v18 }
 0x216   : > { %v3269_v7 = vpack.c.bf16 %v2129_v2, %v2129_v2  ;;  %v2068_v61 = vadd.f32 %v5369_v54, %v1999_v53  ;;  %v1598_v47 = vmax.f32 %v6170_v12, %v1387_v17  ;;  %v6177_v2 = vld [vmem:[#allocation11_spill] sm:$0xff] }
 0x217   : > { %v3790_v1 = vpop.f32.mrf.mxu0  ;;  %v3928_v16 = vpop.f32.mrf.mxu1  ;;  %v6178_v53 = vmax.f32 %v6176_v63, %v6177_v2 }
 0x218   : > { %2440 = vst.msk [vmem:[%s5389_s12 + $0x28] sm:$0xf] %vm2429_vm3, %v3269_v7  ;;  %v2130_v50 = vmax.f32 %v2068_v61, 0.0  ;;  %v2000_v15 = vmax.f32 %v1598_v47, %v1789_v48  ;;  %v6179_v48 = vld [vmem:[#allocation12_spill] sm:$0xff] }
 0x219   : > { %v1390_v51 = vpop.f32.mrf.mxu0  ;;  %v1792_v23 = vpop.f32.mrf.mxu1  ;;  %v6180_v1 = vmax.f32 %v4896_v21, %v6179_v48 }
 0x21a   : > { %v3270_v62 = vpack.c.bf16 %v2130_v50, %v2130_v50  ;;  %v2069_v55 = vadd.f32 %v5369_v54, %v2000_v15  ;;  %v1599_v3 = vmax.f32 %v6173_v57, %v1390_v51 }
 0x21b   : > { %v3791_v26 = vpop.f32.mrf.mxu0  ;;  %v3929_v46 = vpop.f32.mrf.mxu1 }
 0x21c   : > { %2441 = vst.msk [vmem:[%s5389_s12 + $0x2c] sm:$0xf] %vm2429_vm3, %v3270_v62  ;;  %v2131_v20 = vmax.f32 %v2069_v55, 0.0  ;;  %v2001_v56 = vmax.f32 %v1599_v3, %v1792_v23  ;;  %v6181_v3 = vld [vmem:[#allocation13_spill] sm:$0xff]  ;;  %v6182_v23 = vld [vmem:[#allocation14_spill] sm:$0xff] }
 0x21d   : > { %v1395_v30 = vpop.f32.mrf.mxu0  ;;  %v1797_v11 = vpop.f32.mrf.mxu1  ;;  %v6183_v26 = vmax.f32 %v6181_v3, %v6182_v23  ;;  %v6191_v23 = vld [vmem:[#allocation19_spill] sm:$0xff] }
 0x21e   : > { %v3271_v44 = vpack.c.bf16 %v2131_v20, %v2131_v20  ;;  %v2070_v0 = vadd.f32 %v5369_v54, %v2001_v56  ;;  %v1600_v36 = vmax.f32 %v6175_v31, %v1395_v30 }
 0x21f   : > { %v3794_v37 = vpop.f32.mrf.mxu0  ;;  %v3932_v13 = vpop.f32.mrf.mxu1 }
 0x220   : > { %2442 = vst.msk [vmem:[%s5389_s12 + $0x30] sm:$0xf] %vm2429_vm3, %v3271_v44  ;;  %v2132_v22 = vmax.f32 %v2070_v0, 0.0  ;;  %v2002_v25 = vmax.f32 %v1600_v36, %v1797_v11  ;;  %v6184_v36 = vld [vmem:[#allocation15_spill] sm:$0xff] }
 0x221   : > { %v1398_v60 = vpop.f32.mrf.mxu0  ;;  %v1800_v17 = vpop.f32.mrf.mxu1  ;;  %v6185_v11 = vmax.f32 %v4916_v5, %v6184_v36  ;;  %v6194_v36 = vld [vmem:[#allocation21_spill] sm:$0xff] }
 0x222   : > { %v3272_v43 = vpack.c.bf16 %v2132_v22, %v2132_v22  ;;  %v2071_v58 = vadd.f32 %v5369_v54, %v2002_v25  ;;  %v1601_v6 = vmax.f32 %v6178_v53, %v1398_v60  ;;  %v6186_v53 = vld [vmem:[#allocation16_spill] sm:$0xff] }
 0x223   : > { %v3795_v18 = vpop.f32.mrf.mxu0  ;;  %v3933_v61 = vpop.f32.mrf.mxu1 }
 0x224   : > { %2443 = vst.msk [vmem:[%s5389_s12 + $0x34] sm:$0xf] %vm2429_vm3, %v3272_v43  ;;  %v2133_v10 = vmax.f32 %v2071_v58, 0.0  ;;  %v2003_v7 = vmax.f32 %v1601_v6, %v1800_v17  ;;  %v6187_v6 = vld [vmem:[#allocation17_spill] sm:$0xff] }
 0x225   : > { %v1403_v4 = vpop.f32.mrf.mxu0  ;;  %v1805_v15 = vpop.f32.mrf.mxu1  ;;  %v6188_v17 = vmax.f32 %v6186_v53, %v6187_v6  ;;  %v6196_v53 = vld [vmem:[#allocation22_spill] sm:$0xff]  ;;  %v6197_v6 = vld [vmem:[#allocation23_spill] sm:$0xff] }
 0x226   : > { %v3273_v12 = vpack.c.bf16 %v2133_v10, %v2133_v10  ;;  %v2072_v47 = vadd.f32 %v5369_v54, %v2003_v7  ;;  %v1602_v50 = vmax.f32 %v6180_v1, %v1403_v4  ;;  %v6189_v1 = vld [vmem:[#allocation18_spill] sm:$0xff] }
 0x227   : > { %v3798_v16 = vpop.f32.mrf.mxu0  ;;  %v3936_v55 = vpop.f32.mrf.mxu1 }
 0x228   : > { %2444 = vst.msk [vmem:[%s5389_s12 + $0x38] sm:$0xf] %vm2429_vm3, %v3273_v12  ;;  %v2134_v51 = vmax.f32 %v2072_v47, 0.0  ;;  %v2004_v62 = vmax.f32 %v1602_v50, %v1805_v15  ;;  %v6190_v50 = vmax.f32 %v4936_v29, %v6189_v1 }
 0x229   : > { %v1406_v59 = vpop.f32.mrf.mxu0  ;;  %v1808_v56 = vpop.f32.mrf.mxu1 }
 0x22a   : > { %v3274_v49 = vpack.c.bf16 %v2134_v51, %v2134_v51  ;;  %v2073_v57 = vadd.f32 %v5369_v54, %v2004_v62  ;;  %v1603_v20 = vmax.f32 %v6183_v26, %v1406_v59  ;;  %v6192_v26 = vld [vmem:[#allocation20_spill] sm:$0xff] }
 0x22b   : > { %v3799_v46 = vpop.f32.mrf.mxu0  ;;  %v3937_v44 = vpop.f32.mrf.mxu1 }
 0x22c   : > { %2445 = vst.msk [vmem:[%s5389_s12 + $0x3c] sm:$0xf] %vm2429_vm3, %v3274_v49  ;;  %v2135_v21 = vmax.f32 %v2073_v57, 0.0  ;;  %v2005_v30 = vmax.f32 %v1603_v20, %v1808_v56  ;;  %v6193_v20 = vmax.f32 %v6191_v23, %v6192_v26  ;;  %v6202_v23 = vld [vmem:[#allocation26_spill] sm:$0xff] }
 0x22d   : > { %v1411_v0 = vpop.f32.mrf.mxu0  ;;  %v1813_v22 = vpop.f32.mrf.mxu1 }
 0x22e   : > { %v3275_v52 = vpack.c.bf16 %v2135_v21, %v2135_v21  ;;  %v2074_v31 = vadd.f32 %v5369_v54, %v2005_v30  ;;  %v1604_v37 = vmax.f32 %v6185_v11, %v1411_v0  ;;  %v6195_v11 = vmax.f32 %v4956_v8, %v6194_v36 }
 0x22f   : > { %v3802_v25 = vpop.f32.mrf.mxu0  ;;  %v3940_v43 = vpop.f32.mrf.mxu1 }
 0x230   : > { %2446 = vst.msk [vmem:[%s5389_s12 + $0x40] sm:$0xf] %vm2429_vm3, %v3275_v52  ;;  %v2136_v13 = vmax.f32 %v2074_v31, 0.0  ;;  %v2006_v60 = vmax.f32 %v1604_v37, %v1813_v22 }
 0x231   : > { %v1414_v58 = vpop.f32.mrf.mxu0  ;;  %v1816_v10 = vpop.f32.mrf.mxu1 }
 0x232   : > { %v3276_v63 = vpack.c.bf16 %v2136_v13, %v2136_v13  ;;  %v2075_v2 = vadd.f32 %v5369_v54, %v2006_v60  ;;  %v1605_v18 = vmax.f32 %v6188_v17, %v1414_v58  ;;  %v6198_v17 = vmax.f32 %v6196_v53, %v6197_v6 }
 0x233   : > { %v3803_v7 = vpop.f32.mrf.mxu0  ;;  %v3941_v4 = vpop.f32.mrf.mxu1 }
 0x234   : > { %2447 = vst.msk [vmem:[%s5389_s12 + $0x44] sm:$0xf] %vm2429_vm3, %v3276_v63  ;;  %v2137_v5 = vmax.f32 %v2075_v2, 0.0  ;;  %v2007_v61 = vmax.f32 %v1605_v18, %v1816_v10 }
 0x235   : > { %v1419_v12 = vpop.f32.mrf.mxu0  ;;  %v1821_v16 = vpop.f32.mrf.mxu1 }
 0x236   : > { %v3277_v47 = vpack.c.bf16 %v2137_v5, %v2137_v5  ;;  %v2076_v48 = vadd.f32 %v5369_v54, %v2007_v61  ;;  %v1606_v15 = vmax.f32 %v6190_v50, %v1419_v12 }
 0x237   : > { %v3806_v51 = vpop.f32.mrf.mxu0  ;;  %v3944_v59 = vpop.f32.mrf.mxu1 }
 0x238   : > { %2448 = vst.msk [vmem:[%s5389_s12 + $0x48] sm:$0xf] %vm2429_vm3, %v3277_v47  ;;  %v2138_v62 = vmax.f32 %v2076_v48, 0.0  ;;  %v2008_v55 = vmax.f32 %v1606_v15, %v1821_v16  ;;  %v6199_v48 = vld [vmem:[#allocation24_spill] sm:$0xff] }
 0x239   : > { %v1422_v49 = vpop.f32.mrf.mxu0  ;;  %v1824_v46 = vpop.f32.mrf.mxu1  ;;  %v6200_v1 = vmax.f32 %v4976_v28, %v6199_v48 }
 0x23a   : > { %v3278_v57 = vpack.c.bf16 %v2138_v62, %v2138_v62  ;;  %v2077_v3 = vadd.f32 %v5369_v54, %v2008_v55  ;;  %v1607_v56 = vmax.f32 %v6193_v20, %v1422_v49 }
 0x23b   : > { %v3807_v21 = vpop.f32.mrf.mxu0  ;;  %v3945_v44 = vpop.f32.mrf.mxu1 }
 0x23c   : > { %2449 = vst.msk [vmem:[%s5389_s12 + $0x4c] sm:$0xf] %vm2429_vm3, %v3278_v57  ;;  %v2139_v29 = vmax.f32 %v2077_v3, 0.0  ;;  %v2009_v30 = vmax.f32 %v1607_v56, %v1824_v46  ;;  %v6201_v3 = vld [vmem:[#allocation25_spill] sm:$0xff] }
 0x23d   : > { %v1427_v0 = vpop.f32.mrf.mxu0  ;;  %v1829_v22 = vpop.f32.mrf.mxu1  ;;  %v6203_v26 = vmax.f32 %v6201_v3, %v6202_v23 }
 0x23e   : > { %v3279_v52 = vpack.c.bf16 %v2139_v29, %v2139_v29  ;;  %v2078_v31 = vadd.f32 %v5369_v54, %v2009_v30  ;;  %v1608_v37 = vmax.f32 %v6195_v11, %v1427_v0 }
 0x23f   : > { %v3810_v25 = vpop.f32.mrf.mxu0  ;;  %v3948_v43 = vpop.f32.mrf.mxu1 }
 0x240   : > { %2450 = vst.msk [vmem:[%s5389_s12 + $0x50] sm:$0xf] %vm2429_vm3, %v3279_v52  ;;  %v2140_v13 = vmax.f32 %v2078_v31, 0.0  ;;  %v2010_v60 = vmax.f32 %v1608_v37, %v1829_v22  ;;  %v6204_v52 = vld [vmem:[#allocation27_spill] sm:$0xff] }
 0x241   : > { %v1430_v58 = vpop.f32.mrf.mxu0  ;;  %v1832_v10 = vpop.f32.mrf.mxu1  ;;  %v6205_v31 = vmax.f32 %v4996_v14, %v6204_v52 }
 0x242   : > { %v3280_v63 = vpack.c.bf16 %v2140_v13, %v2140_v13  ;;  %v2079_v2 = vadd.f32 %v5369_v54, %v2010_v60  ;;  %v1609_v18 = vmax.f32 %v6198_v17, %v1430_v58 }
 0x243   : > { %v3811_v7 = vpop.f32.mrf.mxu0  ;;  %v3949_v61 = vpop.f32.mrf.mxu1 }
 0x244   : > { %2451 = vst.msk [vmem:[%s5389_s12 + $0x54] sm:$0xf] %vm2429_vm3, %v3280_v63  ;;  %v2141_v8 = vmax.f32 %v2079_v2, 0.0  ;;  %v2011_v5 = vmax.f32 %v1609_v18, %v1832_v10  ;;  %v6206_v63 = vld [vmem:[#allocation28_spill] sm:$0xff]  ;;  %v6207_v2 = vld [vmem:[#allocation29_spill] sm:$0xff] }
 0x245   : > { %v1435_v4 = vpop.f32.mrf.mxu0  ;;  %v1837_v15 = vpop.f32.mrf.mxu1  ;;  %v6208_v53 = vmax.f32 %v6206_v63, %v6207_v2 }
 0x246   : > { %v3281_v12 = vpack.c.bf16 %v2141_v8, %v2141_v8  ;;  %v2080_v47 = vadd.f32 %v5369_v54, %v2011_v5  ;;  %v1610_v50 = vmax.f32 %v6200_v1, %v1435_v4  ;;  %v6209_v4 = vld [vmem:[#allocation30_spill] sm:$0xff] }
 0x247   : > { %v3814_v16 = vpop.f32.mrf.mxu0  ;;  %v3952_v55 = vpop.f32.mrf.mxu1 }
 0x248   : > { %2452 = vst.msk [vmem:[%s5389_s12 + $0x58] sm:$0xf] %vm2429_vm3, %v3281_v12  ;;  %v2142_v51 = vmax.f32 %v2080_v47, 0.0  ;;  %v2012_v62 = vmax.f32 %v1610_v50, %v1837_v15  ;;  %v6210_v12 = vmax.f32 %v5016_v9, %v6209_v4 }
 0x249   : > { %v1438_v59 = vpop.f32.mrf.mxu0  ;;  %v1840_v56 = vpop.f32.mrf.mxu1 }
 0x24a   : > { %v3282_v49 = vpack.c.bf16 %v2142_v51, %v2142_v51  ;;  %v2081_v57 = vadd.f32 %v5369_v54, %v2012_v62  ;;  %v1611_v20 = vmax.f32 %v6203_v26, %v1438_v59  ;;  %v6211_v59 = vld [vmem:[#allocation31_spill] sm:$0xff] }
 0x24b   : > { %v3815_v46 = vpop.f32.mrf.mxu0  ;;  %v3953_v29 = vpop.f32.mrf.mxu1 }
 0x24c   : > { %2453 = vst.msk [vmem:[%s5389_s12 + $0x5c] sm:$0xf] %vm2429_vm3, %v3282_v49  ;;  %v2143_v28 = vmax.f32 %v2081_v57, 0.0  ;;  %v2013_v21 = vmax.f32 %v1611_v20, %v1840_v56  ;;  %v6212_v49 = vld [vmem:[#allocation32_spill] sm:$0xff]  ;;  %v6214_v29 = vld [vmem:[#allocation33_spill] sm:$0xff] }
 0x24d   : > { %v1443_v30 = vpop.f32.mrf.mxu0  ;;  %v1845_v11 = vpop.f32.mrf.mxu1  ;;  %v6213_v57 = vmax.f32 %v6211_v59, %v6212_v49 }
 0x24e   : > { %v3283_v44 = vpack.c.bf16 %v2143_v28, %v2143_v28  ;;  %v2082_v0 = vadd.f32 %v5369_v54, %v2013_v21  ;;  %v1612_v36 = vmax.f32 %v6205_v31, %v1443_v30  ;;  %v6215_v30 = vmax.f32 %v5036_v19, %v6214_v29 }
 0x24f   : > { %v3818_v37 = vpop.f32.mrf.mxu0  ;;  %v3956_v13 = vpop.f32.mrf.mxu1 }
 0x250   : > { %2454 = vst.msk [vmem:[%s5389_s12 + $0x60] sm:$0xf] %vm2429_vm3, %v3283_v44  ;;  %v2144_v22 = vmax.f32 %v2082_v0, 0.0  ;;  %v2014_v25 = vmax.f32 %v1612_v36, %v1845_v11  ;;  %v6216_v13 = vld [vmem:[#allocation34_spill] sm:$0xff] }
 0x251   : > { %v1446_v60 = vpop.f32.mrf.mxu0  ;;  %v1848_v17 = vpop.f32.mrf.mxu1 }
 0x252   : > { %v3284_v43 = vpack.c.bf16 %v2144_v22, %v2144_v22  ;;  %v2083_v58 = vadd.f32 %v5369_v54, %v2014_v25  ;;  %v1613_v6 = vmax.f32 %v6208_v53, %v1446_v60  ;;  %v6217_v60 = vld [vmem:[#allocation35_spill] sm:$0xff] }
 0x253   : > { %v3819_v18 = vpop.f32.mrf.mxu0  ;;  %v3957_v7 = vpop.f32.mrf.mxu1 }
 0x254   : > { %2455 = vst.msk [vmem:[%s5389_s12 + $0x64] sm:$0xf] %vm2429_vm3, %v3284_v43  ;;  %v2145_v14 = vmax.f32 %v2083_v58, 0.0  ;;  %v2015_v10 = vmax.f32 %v1613_v6, %v1848_v17  ;;  %v6218_v43 = vmax.f32 %v6216_v13, %v6217_v60 }
 0x255   : > { %v1451_v8 = vpop.f32.mrf.mxu0  ;;  %v1853_v48 = vpop.f32.mrf.mxu1 }
 0x256   : > { %v3285_v5 = vpack.c.bf16 %v2145_v14, %v2145_v14  ;;  %v2084_v61 = vadd.f32 %v5369_v54, %v2015_v10  ;;  %v1614_v47 = vmax.f32 %v6210_v12, %v1451_v8  ;;  %v6219_v10 = vld [vmem:[#allocation36_spill] sm:$0xff] }
 0x257   : > { %v3822_v1 = vpop.f32.mrf.mxu0  ;;  %v3960_v16 = vpop.f32.mrf.mxu1  ;;  %v6220_v7 = vmax.f32 %v5056_v24, %v6219_v10 }
 0x258   : > { %2456 = vst.msk [vmem:[%s5389_s12 + $0x68] sm:$0xf] %vm2429_vm3, %v3285_v5  ;;  %v2146_v50 = vmax.f32 %v2084_v61, 0.0  ;;  %v2016_v15 = vmax.f32 %v1614_v47, %v1853_v48  ;;  %v6222_v16 = vld [vmem:[#allocation38_spill] sm:$0xff] }
 0x259   : > { %v1454_v51 = vpop.f32.mrf.mxu0  ;;  %v1856_v23 = vpop.f32.mrf.mxu1 }
 0x25a   : > { %v3286_v62 = vpack.c.bf16 %v2146_v50, %v2146_v50  ;;  %v2085_v55 = vadd.f32 %v5369_v54, %v2016_v15  ;;  %v1615_v3 = vmax.f32 %v6213_v57, %v1454_v51  ;;  %v6221_v15 = vld [vmem:[#allocation37_spill] sm:$0xff] }
 0x25b   : > { %v3823_v26 = vpop.f32.mrf.mxu0  ;;  %v3961_v56 = vpop.f32.mrf.mxu1  ;;  %v6223_v51 = vmax.f32 %v6221_v15, %v6222_v16 }
 0x25c   : > { %2457 = vst.msk [vmem:[%s5389_s12 + $0x6c] sm:$0xf] %vm2429_vm3, %v3286_v62  ;;  %v2147_v9 = vmax.f32 %v2085_v55, 0.0  ;;  %v2017_v20 = vmax.f32 %v1615_v3, %v1856_v23 }
 0x25d   : > { %v1459_v46 = vpop.f32.mrf.mxu0  ;;  %v1861_v0 = vpop.f32.mrf.mxu1 }
 0x25e   : > { %v3287_v28 = vpack.c.bf16 %v2147_v9, %v2147_v9  ;;  %v2086_v21 = vadd.f32 %v5369_v54, %v2017_v20  ;;  %v1616_v44 = vmax.f32 %v6215_v30, %v1459_v46  ;;  %v6224_v9 = vld [vmem:[#allocation39_spill] sm:$0xff] }
 0x25f   : > { %v3826_v52 = vpop.f32.mrf.mxu0  ;;  %v3964_v11 = vpop.f32.mrf.mxu1  ;;  %v6225_v20 = vmax.f32 %v5076_v27, %v6224_v9 }
 0x260   : > { %2458 = vst.msk [vmem:[%s5389_s12 + $0x70] sm:$0xf] %vm2429_vm3, %v3287_v28  ;;  %v2148_v31 = vmax.f32 %v2086_v21, 0.0  ;;  %v2018_v36 = vmax.f32 %v1616_v44, %v1861_v0 }
 0x261   : > { %v1462_v37 = vpop.f32.mrf.mxu0  ;;  %v1864_v63 = vpop.f32.mrf.mxu1 }
 0x262   : > { %v3288_v22 = vpack.c.bf16 %v2148_v31, %v2148_v31  ;;  %v2087_v25 = vadd.f32 %v5369_v54, %v2018_v36  ;;  %v1617_v58 = vmax.f32 %v6218_v43, %v1462_v37  ;;  %v6226_v31 = vld [vmem:[#allocation40_spill] sm:$0xff]  ;;  %v6227_v36 = vld [vmem:[#allocation41_spill] sm:$0xff] }
 0x263   : > { %v3827_v2 = vpop.f32.mrf.mxu0  ;;  %v3965_v6 = vpop.f32.mrf.mxu1  ;;  %v6228_v11 = vmax.f32 %v6226_v31, %v6227_v36 }
 0x264   : > { %2459 = vst.msk [vmem:[%s5389_s12 + $0x74] sm:$0xf] %vm2429_vm3, %v3288_v22  ;;  %v2149_v19 = vmax.f32 %v2087_v25, 0.0  ;;  %v2019_v53 = vmax.f32 %v1617_v58, %v1864_v63  ;;  %v6229_v2 = vld [vmem:[#allocation42_spill] sm:$0xff] }
 0x265   : > { %v1467_v17 = vpop.f32.mrf.mxu0  ;;  %v1869_v5 = vpop.f32.mrf.mxu1 }
 0x266   : > { %v3289_v18 = vpack.c.bf16 %v2149_v19, %v2149_v19  ;;  %v2088_v14 = vadd.f32 %v5369_v54, %v2019_v53  ;;  %v1618_v8 = vmax.f32 %v6220_v7, %v1467_v17  ;;  %v6230_v19 = vmax.f32 %v5096_v32, %v6229_v2 }
 0x267   : > { %v3830_v61 = vpop.f32.mrf.mxu0  ;;  %v3968_v47 = vpop.f32.mrf.mxu1 }
 0x268   : > { %2460 = vst.msk [vmem:[%s5389_s12 + $0x78] sm:$0xf] %vm2429_vm3, %v3289_v18  ;;  %v2150_v4 = vmax.f32 %v2088_v14, 0.0  ;;  %v2020_v12 = vmax.f32 %v1618_v8, %v1869_v5  ;;  %v6231_v61 = vld [vmem:[#allocation43_spill] sm:$0xff] }
 0x269   : > { %v1470_v48 = vpop.f32.mrf.mxu0  ;;  %v1872_v55 = vpop.f32.mrf.mxu1 }
 0x26a   : > { %v3290_v1 = vpack.c.bf16 %v2150_v4, %v2150_v4  ;;  %v2089_v50 = vadd.f32 %v5369_v54, %v2020_v12  ;;  %v1619_v62 = vmax.f32 %v6223_v51, %v1470_v48  ;;  %v6232_v4 = vld [vmem:[#allocation44_spill] sm:$0xff] }
 0x26b   : > { %v3831_v59 = vpop.f32.mrf.mxu0  ;;  %v3969_v57 = vpop.f32.mrf.mxu1  ;;  %v6233_v12 = vmax.f32 %v6231_v61, %v6232_v4 }
 0x26c   : > { %2461 = vst.msk [vmem:[%s5389_s12 + $0x7c] sm:$0xf] %vm2429_vm3, %v3290_v1  ;;  %v2151_v24 = vmax.f32 %v2089_v50, 0.0  ;;  %v2021_v49 = vmax.f32 %v1619_v62, %v1872_v55  ;;  %v6234_v55 = vld [vmem:[#allocation45_spill] sm:$0xff] }
 0x26d   : > { %v1475_v3 = vpop.f32.mrf.mxu0  ;;  %v1877_v46 = vpop.f32.mrf.mxu1  ;;  %v6235_v59 = vmax.f32 %v5116_v33, %v6234_v55 }
 0x26e   : > { %v3291_v23 = vpack.c.bf16 %v2151_v24, %v2151_v24  ;;  %v2090_v26 = vadd.f32 %v5369_v54, %v2021_v49  ;;  %v1620_v56 = vmax.f32 %v6225_v20, %v1475_v3 }
 0x26f   : > { %v3834_v28 = vpop.f32.mrf.mxu0  ;;  %v3972_v30 = vpop.f32.mrf.mxu1 }
 0x270   : > { %2462 = vst.msk [vmem:[%s5389_s12 + $0x80] sm:$0xf] %vm2429_vm3, %v3291_v23  ;;  %v2152_v21 = vmax.f32 %v2090_v26, 0.0  ;;  %v2022_v29 = vmax.f32 %v1620_v56, %v1877_v46  ;;  %v6236_v46 = vld [vmem:[#allocation46_spill] sm:$0xff]  ;;  %v6237_v28 = vld [vmem:[#allocation47_spill] sm:$0xff] }
 0x271   : > { %v1478_v44 = vpop.f32.mrf.mxu0  ;;  %v1880_v22 = vpop.f32.mrf.mxu1 }
 0x272   : > { %v3292_v0 = vpack.c.bf16 %v2152_v21, %v2152_v21  ;;  %v2091_v52 = vadd.f32 %v5369_v54, %v2022_v29  ;;  %v1621_v37 = vmax.f32 %v6228_v11, %v1478_v44  ;;  %v6238_v21 = vmax.f32 %v6236_v46, %v6237_v28  ;;  %v6249_v28 = vld [vmem:[#allocation54_spill] sm:$0xff] }
 0x273   : > { %v3835_v25 = vpop.f32.mrf.mxu0  ;;  %v3973_v60 = vpop.f32.mrf.mxu1 }
 0x274   : > { %2463 = vst.msk [vmem:[%s5389_s12 + $0x84] sm:$0xf] %vm2429_vm3, %v3292_v0  ;;  %v2153_v27 = vmax.f32 %v2091_v52, 0.0  ;;  %v2023_v13 = vmax.f32 %v1621_v37, %v1880_v22  ;;  %v6239_v37 = vld [vmem:[#allocation48_spill] sm:$0xff] }
 0x275   : > { %v1483_v43 = vpop.f32.mrf.mxu0  ;;  %v1885_v6 = vpop.f32.mrf.mxu1  ;;  %v6240_v22 = vmax.f32 %v5136_v34, %v6239_v37  ;;  %v6251_v37 = vld [vmem:[#allocation55_spill] sm:$0xff] }
 0x276   : > { %v3293_v58 = vpack.c.bf16 %v2153_v27, %v2153_v27  ;;  %v2092_v63 = vadd.f32 %v5369_v54, %v2023_v13  ;;  %v1622_v53 = vmax.f32 %v6230_v19, %v1483_v43 }
 0x277   : > { %v3838_v17 = vpop.f32.mrf.mxu0  ;;  %v3976_v10 = vpop.f32.mrf.mxu1 }
 0x278   : > { %2464 = vst.msk [vmem:[%s5389_s12 + $0x88] sm:$0xf] %vm2429_vm3, %v3293_v58  ;;  %v2154_v18 = vmax.f32 %v2092_v63, 0.0  ;;  %v2024_v14 = vmax.f32 %v1622_v53, %v1885_v6  ;;  %v6241_v53 = vld [vmem:[#allocation49_spill] sm:$0xff]  ;;  %v6242_v6 = vld [vmem:[#allocation50_spill] sm:$0xff] }
 0x279   : > { %v1486_v7 = vpop.f32.mrf.mxu0  ;;  %v1888_v48 = vpop.f32.mrf.mxu1  ;;  %v6243_v17 = vmax.f32 %v6241_v53, %v6242_v6  ;;  %v6254_v53 = vld [vmem:[#allocation57_spill] sm:$0xff] }
 0x27a   : > { %v3294_v8 = vpack.c.bf16 %v2154_v18, %v2154_v18  ;;  %v2093_v5 = vadd.f32 %v5369_v54, %v2024_v14  ;;  %v1623_v47 = vmax.f32 %v6233_v12, %v1486_v7  ;;  %v6244_v12 = vld [vmem:[#allocation51_spill] sm:$0xff]  ;;  %v6255_v6 = vmax.f32 %v5196_v39, %v6254_v53 }
 0x27b   : > { %v3839_v1 = vpop.f32.mrf.mxu0  ;;  %v3977_v15 = vpop.f32.mrf.mxu1 }
 0x27c   : > { %2465 = vst.msk [vmem:[%s5389_s12 + $0x8c] sm:$0xf] %vm2429_vm3, %v3294_v8  ;;  %v2155_v32 = vmax.f32 %v2093_v5, 0.0  ;;  %v2025_v50 = vmax.f32 %v1623_v47, %v1888_v48  ;;  %v6245_v47 = vmax.f32 %v5156_v35, %v6244_v12  ;;  %v6257_v12 = vld [vmem:[#allocation59_spill] sm:$0xff] }
 0x27d   : > { %v1491_v16 = vpop.f32.mrf.mxu0  ;;  %v1893_v49 = vpop.f32.mrf.mxu1 }
 0x27e   : > { %v3295_v51 = vpack.c.bf16 %v2155_v32, %v2155_v32  ;;  %v2094_v62 = vadd.f32 %v5369_v54, %v2025_v50  ;;  %v1624_v24 = vmax.f32 %v6235_v59, %v1491_v16  ;;  %v6246_v59 = vld [vmem:[#allocation52_spill] sm:$0xff] }
 0x27f   : > { %v3842_v57 = vpop.f32.mrf.mxu0  ;;  %v3980_v26 = vpop.f32.mrf.mxu1 }
 0x280   : > { %2466 = vst.msk [vmem:[%s5389_s12 + $0x90] sm:$0xf] %vm2429_vm3, %v3295_v51  ;;  %v2156_v3 = vmax.f32 %v2094_v62, 0.0  ;;  %v2026_v23 = vmax.f32 %v1624_v24, %v1893_v49  ;;  %v6247_v24 = vld [vmem:[#allocation53_spill] sm:$0xff] }
 0x281   : > { %v1494_v9 = vpop.f32.mrf.mxu0  ;;  %v1896_v30 = vpop.f32.mrf.mxu1  ;;  %v6248_v49 = vmax.f32 %v6246_v59, %v6247_v24 }
 0x282   : > { %v3296_v20 = vpack.c.bf16 %v2156_v3, %v2156_v3  ;;  %v2095_v56 = vadd.f32 %v5369_v54, %v2026_v23  ;;  %v1625_v29 = vmax.f32 %v6238_v21, %v1494_v9  ;;  %v6250_v21 = vmax.f32 %v5176_v38, %v6249_v28 }
 0x283   : > { %v3843_v44 = vpop.f32.mrf.mxu0  ;;  %v3981_v52 = vpop.f32.mrf.mxu1 }
 0x284   : > { %2467 = vst.msk [vmem:[%s5389_s12 + $0x94] sm:$0xf] %vm2429_vm3, %v3296_v20  ;;  %v2157_v33 = vmax.f32 %v2095_v56, 0.0  ;;  %v2027_v0 = vmax.f32 %v1625_v29, %v1896_v30 }
 0x285   : > { %v1499_v31 = vpop.f32.mrf.mxu0  ;;  %v1901_v27 = vpop.f32.mrf.mxu1 }
 0x286   : > { %v3297_v36 = vpack.c.bf16 %v2157_v33, %v2157_v33  ;;  %v2096_v11 = vadd.f32 %v5369_v54, %v2027_v0  ;;  %v1626_v25 = vmax.f32 %v6240_v22, %v1499_v31  ;;  %v6252_v22 = vld [vmem:[#allocation56_spill] sm:$0xff] }
 0x287   : > { %v3846_v13 = vpop.f32.mrf.mxu0  ;;  %v3984_v58 = vpop.f32.mrf.mxu1 }
 0x288   : > { %2468 = vst.msk [vmem:[%s5389_s12 + $0x98] sm:$0xf] %vm2429_vm3, %v3297_v36  ;;  %v2158_v60 = vmax.f32 %v2096_v11, 0.0  ;;  %v2028_v43 = vmax.f32 %v1626_v25, %v1901_v27  ;;  %v6253_v25 = vmax.f32 %v6251_v37, %v6252_v22 }
 0x289   : > { %v1502_v63 = vpop.f32.mrf.mxu0  ;;  %v1904_v14 = vpop.f32.mrf.mxu1 }
 0x28a   : > { %v3298_v2 = vpack.c.bf16 %v2158_v60, %v2158_v60  ;;  %v2097_v19 = vadd.f32 %v5369_v54, %v2028_v43  ;;  %v1627_v18 = vmax.f32 %v6243_v17, %v1502_v63 }
 0x28b   : > { %v3847_v10 = vpop.f32.mrf.mxu0  ;;  %v3985_v8 = vpop.f32.mrf.mxu1 }
 0x28c   : > { %2469 = vst.msk [vmem:[%s5389_s12 + $0x9c] sm:$0xf] %vm2429_vm3, %v3298_v2  ;;  %v2159_v34 = vmax.f32 %v2097_v19, 0.0  ;;  %v2029_v7 = vmax.f32 %v1627_v18, %v1904_v14 }
 0x28d   : > { %v1507_v5 = vpop.f32.mrf.mxu0  ;;  %v1909_v1 = vpop.f32.mrf.mxu1 }
 0x28e   : > { %v3299_v61 = vpack.c.bf16 %v2159_v34, %v2159_v34  ;;  %v2098_v4 = vadd.f32 %v5369_v54, %v2029_v7  ;;  %v1628_v48 = vmax.f32 %v6245_v47, %v1507_v5 }
 0x28f   : > { %v3850_v32 = vpop.f32.mrf.mxu0  ;;  %v3988_v16 = vpop.f32.mrf.mxu1 }
 0x290   : > { %2470 = vst.msk [vmem:[%s5389_s12 + $0xa0] sm:$0xf] %vm2429_vm3, %v3299_v61  ;;  %v2160_v50 = vmax.f32 %v2098_v4, 0.0  ;;  %v2030_v15 = vmax.f32 %v1628_v48, %v1909_v1  ;;  %v6256_v4 = vld [vmem:[#allocation58_spill] sm:$0xff] }
 0x291   : > { %v1510_v51 = vpop.f32.mrf.mxu0  ;;  %v1912_v3 = vpop.f32.mrf.mxu1  ;;  %v6258_v47 = vmax.f32 %v6256_v4, %v6257_v12 }
 0x292   : > { %v3300_v62 = vpack.c.bf16 %v2160_v50, %v2160_v50  ;;  %v2099_v55 = vadd.f32 %v5369_v54, %v2030_v15  ;;  %v1629_v57 = vmax.f32 %v6248_v49, %v1510_v51 }
 0x293   : > { %v3851_v23 = vpop.f32.mrf.mxu0  ;;  %v3989_v9 = vpop.f32.mrf.mxu1 }
 0x294   : > { %2471 = vst.msk [vmem:[%s5389_s12 + $0xa4] sm:$0xf] %vm2429_vm3, %v3300_v62  ;;  %v2161_v35 = vmax.f32 %v2099_v55, 0.0  ;;  %v2031_v26 = vmax.f32 %v1629_v57, %v1912_v3  ;;  %v6259_v55 = vld [vmem:[#allocation60_spill] sm:$0xff] }
 0x295   : > { %v1515_v20 = vpop.f32.mrf.mxu0  ;;  %v1917_v30 = vpop.f32.mrf.mxu1  ;;  %v6260_v59 = vmax.f32 %v5216_v40, %v6259_v55 }
 0x296   : > { %v3301_v56 = vpack.c.bf16 %v2161_v35, %v2161_v35  ;;  %v2100_v46 = vadd.f32 %v5369_v54, %v2031_v26  ;;  %v1630_v29 = vmax.f32 %v6250_v21, %v1515_v20 }
 0x297   : > { %v3854_v44 = vpop.f32.mrf.mxu0  ;;  %v3992_v52 = vpop.f32.mrf.mxu1 }
 0x298   : > { %2472 = vst.msk [vmem:[%s5389_s12 + $0xa8] sm:$0xf] %vm2429_vm3, %v3301_v56  ;;  %v2162_v33 = vmax.f32 %v2100_v46, 0.0  ;;  %v2032_v0 = vmax.f32 %v1630_v29, %v1917_v30  ;;  %v6261_v56 = vld [vmem:[#allocation61_spill] sm:$0xff]  ;;  %v6262_v46 = vld [vmem:[#allocation62_spill] sm:$0xff] }
 0x299   : > { %v1518_v31 = vpop.f32.mrf.mxu0  ;;  %v1920_v13 = vpop.f32.mrf.mxu1  ;;  %v6263_v28 = vmax.f32 %v6261_v56, %v6262_v46 }
 0x29a   : > { %v3302_v36 = vpack.c.bf16 %v2162_v33, %v2162_v33  ;;  %v2101_v11 = vadd.f32 %v5369_v54, %v2032_v0  ;;  %v1631_v27 = vmax.f32 %v6253_v25, %v1518_v31  ;;  %v5714_v31 = vld [vmem:[%s5985_s2] ss:$0 sm:$0xff] }
 0x29b   : > { %v3855_v60 = vpop.f32.mrf.mxu0  ;;  %v3993_v58 = vpop.f32.mrf.mxu1 }
 0x29c   : > { %2473 = vst.msk [vmem:[%s5389_s12 + $0xac] sm:$0xf] %vm2429_vm3, %v3302_v36  ;;  %v2163_v38 = vmax.f32 %v2101_v11, 0.0  ;;  %v2033_v43 = vmax.f32 %v1631_v27, %v1920_v13  ;;  %v6264_v36 = vld [vmem:[#allocation63_spill] sm:$0xff] }
 0x29d   : > { %v1523_v63 = vpop.f32.mrf.mxu0  ;;  %v1925_v18 = vpop.f32.mrf.mxu1  ;;  %v6265_v11 = vmax.f32 %v5236_v41, %v6264_v36 }
 0x29e   : > { %v3303_v2 = vpack.c.bf16 %v2163_v38, %v2163_v38  ;;  %v2102_v19 = vadd.f32 %v5369_v54, %v2033_v43  ;;  %v1632_v17 = vmax.f32 %v6255_v6, %v1523_v63  ;;  %v6266_v63 = vld [vmem:[#allocation64_spill] sm:$0xff] }
 0x29f   : > { %v3858_v14 = vpop.f32.mrf.mxu0  ;;  %v3996_v7 = vpop.f32.mrf.mxu1 }
 0x2a0   : > { %2474 = vst.msk [vmem:[%s5389_s12 + $0xb0] sm:$0xf] %vm2429_vm3, %v3303_v2  ;;  %v2164_v10 = vmax.f32 %v2102_v19, 0.0  ;;  %v2034_v34 = vmax.f32 %v1632_v17, %v1925_v18  ;;  %v6267_v2 = vld [vmem:[#allocation65_spill] sm:$0xff] }
 0x2a1   : > { %v1526_v8 = vpop.f32.mrf.mxu0  ;;  %v1928_v1 = vpop.f32.mrf.mxu1  ;;  %v6268_v19 = vmax.f32 %v6266_v63, %v6267_v2 }
 0x2a2   : > { %v3304_v5 = vpack.c.bf16 %v2164_v10, %v2164_v10  ;;  %v2103_v61 = vadd.f32 %v5369_v54, %v2034_v34  ;;  %v1633_v48 = vmax.f32 %v6258_v47, %v1526_v8  ;;  %v6269_v8 = vld [vmem:[#allocation66_spill] sm:$0xff] }
 0x2a3   : > { %v3859_v32 = vpop.f32.mrf.mxu0  ;;  %v3997_v15 = vpop.f32.mrf.mxu1 }
 0x2a4   : > { %2475 = vst.msk [vmem:[%s5389_s12 + $0xb4] sm:$0xf] %vm2429_vm3, %v3304_v5  ;;  %v2165_v39 = vmax.f32 %v2103_v61, 0.0  ;;  %v2035_v50 = vmax.f32 %v1633_v48, %v1928_v1  ;;  %v6270_v5 = vmax.f32 %v5256_v42, %v6269_v8  ;;  %v6271_v15 = vld [vmem:[#allocation67_spill] sm:$0xff] }
 0x2a5   : > { %v1531_v16 = vpop.f32.mrf.mxu0  ;;  %v1933_v49 = vpop.f32.mrf.mxu1 }
 0x2a6   : > { %v3305_v51 = vpack.c.bf16 %v2165_v39, %v2165_v39  ;;  %v2104_v62 = vadd.f32 %v5369_v54, %v2035_v50  ;;  %v1634_v24 = vmax.f32 %v6260_v59, %v1531_v16  ;;  %v6272_v16 = vld [vmem:[#allocation68_spill] sm:$0xff] }
 0x2a7   : > { %v3862_v57 = vpop.f32.mrf.mxu0  ;;  %v4000_v35 = vpop.f32.mrf.mxu1 }
 0x2a8   : > { %2476 = vst.msk [vmem:[%s5389_s12 + $0xb8] sm:$0xf] %vm2429_vm3, %v3305_v51  ;;  %v2166_v3 = vmax.f32 %v2104_v62, 0.0  ;;  %v2036_v23 = vmax.f32 %v1634_v24, %v1933_v49  ;;  %v6273_v51 = vmax.f32 %v6271_v15, %v6272_v16  ;;  %v6274_v35 = vld [vmem:[#allocation69_spill] sm:$0xff] }
 0x2a9   : > { %v1534_v26 = vpop.f32.mrf.mxu0  ;;  %v1936_v29 = vpop.f32.mrf.mxu1 }
 0x2aa   : > { %v3306_v9 = vpack.c.bf16 %v2166_v3, %v2166_v3  ;;  %v2105_v20 = vadd.f32 %v5369_v54, %v2036_v23  ;;  %v1635_v21 = vmax.f32 %v6263_v28, %v1534_v26  ;;  %v6275_v26 = vmax.f32 %v5276_v45, %v6274_v35 }
 0x2ab   : > { %v3863_v30 = vpop.f32.mrf.mxu0  ;;  %v4001_v33 = vpop.f32.mrf.mxu1 }
 0x2ac   : > { %2477 = vst.msk [vmem:[%s5389_s12 + $0xbc] sm:$0xf] %vm2429_vm3, %v3306_v9  ;;  %v2167_v40 = vmax.f32 %v2105_v20, 0.0  ;;  %v2037_v44 = vmax.f32 %v1635_v21, %v1936_v29  ;;  %v6277_v33 = vld [vmem:[#allocation71_spill] sm:$0xff] }
 0x2ad   : > { %v1539_v0 = vpop.f32.mrf.mxu0  ;;  %v1941_v22 = vpop.f32.mrf.mxu1 }
 0x2ae   : > { %v3307_v52 = vpack.c.bf16 %v2167_v40, %v2167_v40  ;;  %v2106_v54 = vadd.f32 %v5714_v31, %v2037_v44  ;;  %v1636_v37 = vmax.f32 %v6265_v11, %v1539_v0  ;;  %v6276_v44 = vld [vmem:[#allocation70_spill] sm:$0xff] }
 0x2af   : > { %v3866_v25 = vpop.f32.mrf.mxu0  ;;  %v4004_v60 = vpop.f32.mrf.mxu1  ;;  %v6278_v0 = vmax.f32 %v6276_v44, %v6277_v33 }
 0x2b0   : > { %2478 = vst.msk [vmem:[%s5389_s12 + $0xc0] sm:$0xf] %vm2429_vm3, %v3307_v52  ;;  %v2168_v27 = vmax.f32 %v2106_v54, 0.0  ;;  %v2038_v13 = vmax.f32 %v1636_v37, %v1941_v22  ;;  %v6280_v60 = vld [vmem:[#allocation73_spill] sm:$0xff] }
 0x2b1   : > { %v1542_v38 = vpop.f32.mrf.mxu0  ;;  %v1944_v6 = vpop.f32.mrf.mxu1 }
 0x2b2   : > { %v3308_v43 = vpack.c.bf16 %v2168_v27, %v2168_v27  ;;  %v2107_v58 = vadd.f32 %v5714_v31, %v2038_v13  ;;  %v1637_v53 = vmax.f32 %v6268_v19, %v1542_v38  ;;  %v6279_v13 = vld [vmem:[#allocation72_spill] sm:$0xff] }
 0x2b3   : > { %v3867_v17 = vpop.f32.mrf.mxu0  ;;  %v4005_v14 = vpop.f32.mrf.mxu1  ;;  %v6281_v38 = vmax.f32 %v6279_v13, %v6280_v60 }
 0x2b4   : > { %2479 = vst.msk [vmem:[%s5389_s12 + $0xc4] sm:$0xf] %vm2429_vm3, %v3308_v43  ;;  %v2169_v41 = vmax.f32 %v2107_v58, 0.0  ;;  %v2039_v18 = vmax.f32 %v1637_v53, %v1944_v6  ;;  %v6283_v14 = vld [vmem:[#allocation75_spill] sm:$0xff] }
 0x2b5   : > { %v1547_v10 = vpop.f32.mrf.mxu0  ;;  %v1949_v4 = vpop.f32.mrf.mxu1 }
 0x2b6   : > { %v3309_v34 = vpack.c.bf16 %v2169_v41, %v2169_v41  ;;  %v2108_v7 = vadd.f32 %v5714_v31, %v2039_v18  ;;  %v1638_v61 = vmax.f32 %v6270_v5, %v1547_v10  ;;  %v6282_v18 = vld [vmem:[#allocation74_spill] sm:$0xff] }
 0x2b7   : > { %v3870_v12 = vpop.f32.mrf.mxu0  ;;  %v4008_v1 = vpop.f32.mrf.mxu1  ;;  %v6284_v10 = vmax.f32 %v6282_v18, %v6283_v14 }
 0x2b8   : > { %2480 = vst.msk [vmem:[%s5389_s12 + $0xc8] sm:$0xf] %vm2429_vm3, %v3309_v34  ;;  %v2170_v47 = vmax.f32 %v2108_v7, 0.0  ;;  %v2040_v48 = vmax.f32 %v1638_v61, %v1949_v4  ;;  %v6285_v1 = vld [vmem:[#allocation76_spill] sm:$0xff] }
 0x2b9   : > { %v1550_v32 = vpop.f32.mrf.mxu0  ;;  %v1952_v55 = vpop.f32.mrf.mxu1 }
 0x2ba   : > { %v3310_v39 = vpack.c.bf16 %v2170_v47, %v2170_v47  ;;  %v2109_v50 = vadd.f32 %v5714_v31, %v2040_v48  ;;  %v1639_v62 = vmax.f32 %v6273_v51, %v1550_v32  ;;  %v6286_v32 = vld [vmem:[#allocation77_spill] sm:$0xff] }
 0x2bb   : > { %v3871_v59 = vpop.f32.mrf.mxu0  ;;  %v4009_v49 = vpop.f32.mrf.mxu1 }
 0x2bc   : > { %2481 = vst.msk [vmem:[%s5389_s12 + $0xcc] sm:$0xf] %vm2429_vm3, %v3310_v39  ;;  %v2171_v42 = vmax.f32 %v2109_v50, 0.0  ;;  %v2041_v24 = vmax.f32 %v1639_v62, %v1952_v55  ;;  %v6287_v39 = vmax.f32 %v6285_v1, %v6286_v32  ;;  %v6288_v49 = vld [vmem:[#allocation78_spill] sm:$0xff] }
 0x2bd   : > { %v1555_v57 = vpop.f32.mrf.mxu0  ;;  %v1957_v20 = vpop.f32.mrf.mxu1 }
 0x2be   : > { %v3311_v3 = vpack.c.bf16 %v2171_v42, %v2171_v42  ;;  %v2110_v23 = vadd.f32 %v5714_v31, %v2041_v24  ;;  %v1640_v9 = vmax.f32 %v6275_v26, %v1555_v57  ;;  %v6289_v57 = vld [vmem:[#allocation79_spill] sm:$0xff] }
 0x2bf   : > { %v3874_v56 = vpop.f32.mrf.mxu0  ;;  %v4012_v21 = vpop.f32.mrf.mxu1 }
 0x2c0   : > { %2482 = vst.msk [vmem:[%s5389_s12 + $0xd0] sm:$0xf] %vm2429_vm3, %v3311_v3  ;;  %v2172_v46 = vmax.f32 %v2110_v23, 0.0  ;;  %v2042_v28 = vmax.f32 %v1640_v9, %v1957_v20  ;;  %v6290_v3 = vmax.f32 %v6288_v49, %v6289_v57 }
 0x2c1   : > { %v1558_v29 = vpop.f32.mrf.mxu0  ;;  %v1960_v54 = vpop.f32.mrf.mxu1 }
 0x2c2   : > { %v3312_v30 = vpack.c.bf16 %v2172_v46, %v2172_v46  ;;  %v2111_v40 = vadd.f32 %v5714_v31, %v2042_v28  ;;  %v1641_v52 = vmax.f32 %v6278_v0, %v1558_v29  ;;  %v6291_v29 = vld [vmem:[#allocation80_spill] sm:$0xff] }
 0x2c3   : > { %v3875_v36 = vpop.f32.mrf.mxu0  ;;  %v4013_v37 = vpop.f32.mrf.mxu1 }
 0x2c4   : > { %2483 = vst.msk [vmem:[%s5389_s12 + $0xd4] sm:$0xf] %vm2429_vm3, %v3312_v30  ;;  %v2173_v45 = vmax.f32 %v2111_v40, 0.0  ;;  %v2043_v11 = vmax.f32 %v1641_v52, %v1960_v54  ;;  %v6292_v30 = vld [vmem:[#allocation81_spill] sm:$0xff] }
 0x2c5   : > { %v1563_v22 = vpop.f32.mrf.mxu0  ;;  %v1965_v58 = vpop.f32.mrf.mxu1  ;;  %v6293_v40 = vmax.f32 %v6291_v29, %v6292_v30 }
 0x2c6   : > { %v3313_v25 = vpack.c.bf16 %v2173_v45, %v2173_v45  ;;  %v2112_v27 = vadd.f32 %v5714_v31, %v2043_v11  ;;  %v1642_v43 = vmax.f32 %v6281_v38, %v1563_v22  ;;  %v6294_v22 = vld [vmem:[#allocation82_spill] sm:$0xff] }
 0x2c7   : > { %v3878_v63 = vpop.f32.mrf.mxu0  ;;  %v4016_v53 = vpop.f32.mrf.mxu1 }
 0x2c8   : > { %2484 = vst.msk [vmem:[%s5389_s12 + $0xd8] sm:$0xf] %vm2429_vm3, %v3313_v25  ;;  %v2174_v2 = vmax.f32 %v2112_v27, 0.0  ;;  %v2044_v19 = vmax.f32 %v1642_v43, %v1965_v58  ;;  %v6295_v25 = vld [vmem:[#allocation83_spill] sm:$0xff] }
 0x2c9   : > { %v1566_v6 = vpop.f32.mrf.mxu0  ;;  %v1968_v7 = vpop.f32.mrf.mxu1  ;;  %v6296_v27 = vmax.f32 %v6294_v22, %v6295_v25 }
 0x2ca   : > { %v3314_v17 = vpack.c.bf16 %v2174_v2, %v2174_v2  ;;  %v2113_v41 = vadd.f32 %v5714_v31, %v2044_v19  ;;  %v1643_v34 = vmax.f32 %v6284_v10, %v1566_v6 }
 0x2cb   : > { %v3879_v8 = vpop.f32.mrf.mxu0  ;;  %v4017_v4 = vpop.f32.mrf.mxu1 }
 0x2cc   : > { %2485 = vst.msk [vmem:[%s5389_s12 + $0xdc] sm:$0xf] %vm2429_vm3, %v3314_v17  ;;  %v2175_v5 = vmax.f32 %v2113_v41, 0.0  ;;  %v2045_v61 = vmax.f32 %v1643_v34, %v1968_v7 }
 0x2cd   : > { %v1571_v12 = vpop.f32.mrf.mxu0  ;;  %v1973_v15 = vpop.f32.mrf.mxu1 }
 0x2ce   : > { %v3315_v47 = vpack.c.bf16 %v2175_v5, %v2175_v5  ;;  %v2114_v48 = vadd.f32 %v5714_v31, %v2045_v61  ;;  %v1644_v50 = vmax.f32 %v6287_v39, %v1571_v12 }
 0x2cf   : > { %v3882_v16 = vpop.f32.mrf.mxu0  ;;  %v4020_v55 = vpop.f32.mrf.mxu1 }
 0x2d0   : > { %2486 = vst.msk [vmem:[%s5389_s12 + $0xe0] sm:$0xf] %vm2429_vm3, %v3315_v47  ;;  %v2176_v51 = vmax.f32 %v2114_v48, 0.0  ;;  %v2046_v62 = vmax.f32 %v1644_v50, %v1973_v15 }
 0x2d1   : > { %v1574_v59 = vpop.f32.mrf.mxu0  ;;  %v1976_v35 = vpop.f32.mrf.mxu1 }
 0x2d2   : > { %v3316_v42 = vpack.c.bf16 %v2176_v51, %v2176_v51  ;;  %v2115_v24 = vadd.f32 %v5714_v31, %v2046_v62  ;;  %v1645_v23 = vmax.f32 %v6290_v3, %v1574_v59 }
 0x2d3   : > { %v3883_v26 = vpop.f32.mrf.mxu0  ;;  %v4021_v56 = vpop.f32.mrf.mxu1 }
 0x2d4   : > { %2487 = vst.msk [vmem:[%s5389_s12 + $0xe4] sm:$0xf] %vm2429_vm3, %v3316_v42  ;;  %v2177_v9 = vmax.f32 %v2115_v24, 0.0  ;;  %v2047_v20 = vmax.f32 %v1645_v23, %v1976_v35 }
 0x2d5   : > { %v1579_v46 = vpop.f32.mrf.mxu0  ;;  %v1981_v33 = vpop.f32.mrf.mxu1 }
 0x2d6   : > { %v3317_v28 = vpack.c.bf16 %v2177_v9, %v2177_v9  ;;  %v2116_v21 = vadd.f32 %v5714_v31, %v2047_v20  ;;  %v1646_v44 = vmax.f32 %v6293_v40, %v1579_v46 }
 0x2d7   : > { %v3886_v0 = vpop.f32.mrf.mxu0  ;;  %v4024_v36 = vpop.f32.mrf.mxu1 }
 0x2d8   : > { %2488 = vst.msk [vmem:[%s5389_s12 + $0xe8] sm:$0xf] %vm2429_vm3, %v3317_v28  ;;  %v2178_v52 = vmax.f32 %v2116_v21, 0.0  ;;  %v2048_v54 = vmax.f32 %v1646_v44, %v1981_v33 }
 0x2d9   : > { %v1582_v45 = vpop.f32.mrf.mxu0  ;;  %v1984_v60 = vpop.f32.mrf.mxu1 }
 0x2da   : > { %v3318_v11 = vpack.c.bf16 %v2178_v52, %v2178_v52  ;;  %v2117_v37 = vadd.f32 %v5714_v31, %v2048_v54  ;;  %v1647_v13 = vmax.f32 %v6296_v27, %v1582_v45 }
 0x2db   : > { %v3887_v38 = vpop.f32.mrf.mxu0  ;;  %v4025_v63 = vpop.f32.mrf.mxu1 }
 0x2dc   : > { %2489 = vst.msk [vmem:[%s5389_s12 + $0xec] sm:$0xf] %vm2429_vm3, %v3318_v11  ;;  %v2179_v43 = vmax.f32 %v2117_v37, 0.0  ;;  %v2049_v58 = vmax.f32 %v1647_v13, %v1984_v60 }
 0x2de   : > { %v3319_v2 = vpack.c.bf16 %v2179_v43, %v2179_v43  ;;  %v2118_v19 = vadd.f32 %v5714_v31, %v2049_v58 }
 0x2e0   : > { %2490 = vst.msk [vmem:[%s5389_s12 + $0xf0] sm:$0xf] %vm2429_vm3, %v3319_v2  ;;  %v2180_v53 = vmax.f32 %v2118_v19, 0.0  ;;  %2498 = sbr.rel (!%p4317_p4) target bundleno = 836 (0x344), region = 36 }
 0x2e2   : > { %v3320_v6 = vpack.c.bf16 %v2180_v53, %v2180_v53 }
 0x2e4   : > { %2491 = vst.msk [vmem:[%s5389_s12 + $0xf4] sm:$0xf] %vm2429_vm3, %v3320_v6 }
 0x2e5   : > { %s6304_s30 = smov (!%p2501_p8, %s2500_s30), 62 }
 0x2e6   : > { %s3247_s8 = sshll.u32 %s6304_s30, 6 }
 0x2e7   : > { %p3250_p9 = scmp.eq.s32.totalorder %s3247_s8, 0 }
 0x2e8   : > { %4178 = sdivrem.u32 (!%p3250_p9), %s6304_s30, 62 }
 0x2e9   : > { %2509 = sbr.rel (%p3250_p9) target bundleno = 836 (0x344), region = 40 }
 0x2f1   : > { %s5806_s20 = spop.drf %4178 }
 0x2f2   : > { %p3251_p10 = scmp.le.s32.totalorder %s5806_s20, 0 }
 0x2f3   : > { %s6297_s15 = smov (!%p3251_p10), %s5800_s7  ;;  %s6298_s29 = smov (!%p3251_p10), %s5389_s12 }
 0x2f4   : > { %2910 = sbr.rel (%p3251_p10) target bundleno = 811 (0x32b), region = 115  ;;  %s5815_s9 = smov (!%p3251_p10), 0  }
 0x2f5   : > { %s5817_s10 = smov (!%p3251_p10), 0  }
 0x2f9 LB: >> { %v2527_v31 = vld [vmem:[%s4244_s29] sm:$0xf]  ;;  %v2529_v17 = vld [vmem:[%s4244_s29 + $0x4] sm:$0xf]  ;;  %v2531_v41 = vld [vmem:[%s4244_s29 + $0x8] sm:$0xf]  ;;  %s4252_s10 = sphi %s5817_s10, %s2521_s10   ;;  %s4248_s9 = sphi %s5815_s9, %s6299_s9   ;;  %s4244_s29 = sphi %s6298_s29, %s2656_s29   ;;  %s4240_s15 = sphi %s6297_s15, %s2657_s15  }
 0x2fa   : >> { %2528 = vst [vmem:[%s4240_s15] sm:$0xf] %v2527_v31  ;;  %2530 = vst [vmem:[%s4240_s15 + $0x4] sm:$0xf] %v2529_v17  ;;  %v2533_v18 = vld [vmem:[%s4244_s29 + $0xc] sm:$0xf]  ;;  %s2651_s11 = sadd.s32 1, %s4248_s9 }
 0x2fb   : >> { %2532 = vst [vmem:[%s4240_s15 + $0x8] sm:$0xf] %v2531_v41  ;;  %v2535_v14 = vld [vmem:[%s4244_s29 + $0x10] sm:$0xf]  ;;  %v2537_v10 = vld [vmem:[%s4244_s29 + $0x14] sm:$0xf]  ;;  %p2652_p11 = scmp.ge.s32.totalorder %s2651_s11, %s5806_s20 }
 0x2fc   : >> { %2534 = vst [vmem:[%s4240_s15 + $0xc] sm:$0xf] %v2533_v18  ;;  %2536 = vst [vmem:[%s4240_s15 + $0x10] sm:$0xf] %v2535_v14  ;;  %v2539_v34 = vld [vmem:[%s4244_s29 + $0x18] sm:$0xf] }
 0x2fd   : >> { %2538 = vst [vmem:[%s4240_s15 + $0x14] sm:$0xf] %v2537_v10  ;;  %v2541_v7 = vld [vmem:[%s4244_s29 + $0x1c] sm:$0xf]  ;;  %v2543_v8 = vld [vmem:[%s4244_s29 + $0x20] sm:$0xf] }
 0x2fe   : >> { %2540 = vst [vmem:[%s4240_s15 + $0x18] sm:$0xf] %v2539_v34  ;;  %2542 = vst [vmem:[%s4240_s15 + $0x1c] sm:$0xf] %v2541_v7  ;;  %v2545_v5 = vld [vmem:[%s4244_s29 + $0x24] sm:$0xf] }
 0x2ff   : >> { %2544 = vst [vmem:[%s4240_s15 + $0x20] sm:$0xf] %v2543_v8  ;;  %v2547_v61 = vld [vmem:[%s4244_s29 + $0x28] sm:$0xf]  ;;  %v2549_v4 = vld [vmem:[%s4244_s29 + $0x2c] sm:$0xf] }
 0x300   : >> { %2546 = vst [vmem:[%s4240_s15 + $0x24] sm:$0xf] %v2545_v5  ;;  %2548 = vst [vmem:[%s4240_s15 + $0x28] sm:$0xf] %v2547_v61  ;;  %v2551_v12 = vld [vmem:[%s4244_s29 + $0x30] sm:$0xf] }
 0x301   : >> { %2550 = vst [vmem:[%s4240_s15 + $0x2c] sm:$0xf] %v2549_v4  ;;  %v2553_v47 = vld [vmem:[%s4244_s29 + $0x34] sm:$0xf]  ;;  %v2555_v48 = vld [vmem:[%s4244_s29 + $0x38] sm:$0xf] }
 0x302   : >> { %2552 = vst [vmem:[%s4240_s15 + $0x30] sm:$0xf] %v2551_v12  ;;  %2554 = vst [vmem:[%s4240_s15 + $0x34] sm:$0xf] %v2553_v47  ;;  %v2557_v1 = vld [vmem:[%s4244_s29 + $0x3c] sm:$0xf] }
 0x303   : >> { %2556 = vst [vmem:[%s4240_s15 + $0x38] sm:$0xf] %v2555_v48  ;;  %v2559_v32 = vld [vmem:[%s4244_s29 + $0x40] sm:$0xf]  ;;  %v2561_v39 = vld [vmem:[%s4244_s29 + $0x44] sm:$0xf] }
 0x304   : >> { %2558 = vst [vmem:[%s4240_s15 + $0x3c] sm:$0xf] %v2557_v1  ;;  %2560 = vst [vmem:[%s4240_s15 + $0x40] sm:$0xf] %v2559_v32  ;;  %v2563_v50 = vld [vmem:[%s4244_s29 + $0x48] sm:$0xf] }
 0x305   : >> { %2562 = vst [vmem:[%s4240_s15 + $0x44] sm:$0xf] %v2561_v39  ;;  %v2565_v15 = vld [vmem:[%s4244_s29 + $0x4c] sm:$0xf]  ;;  %v2567_v16 = vld [vmem:[%s4244_s29 + $0x50] sm:$0xf] }
 0x306   : >> { %2564 = vst [vmem:[%s4240_s15 + $0x48] sm:$0xf] %v2563_v50  ;;  %2566 = vst [vmem:[%s4240_s15 + $0x4c] sm:$0xf] %v2565_v15  ;;  %v2569_v51 = vld [vmem:[%s4244_s29 + $0x54] sm:$0xf] }
 0x307   : >> { %2568 = vst [vmem:[%s4240_s15 + $0x50] sm:$0xf] %v2567_v16  ;;  %v2571_v62 = vld [vmem:[%s4244_s29 + $0x58] sm:$0xf]  ;;  %v2573_v55 = vld [vmem:[%s4244_s29 + $0x5c] sm:$0xf] }
 0x308   : >> { %2570 = vst [vmem:[%s4240_s15 + $0x54] sm:$0xf] %v2569_v51  ;;  %2572 = vst [vmem:[%s4240_s15 + $0x58] sm:$0xf] %v2571_v62  ;;  %v2575_v59 = vld [vmem:[%s4244_s29 + $0x60] sm:$0xf] }
 0x309   : >> { %2574 = vst [vmem:[%s4240_s15 + $0x5c] sm:$0xf] %v2573_v55  ;;  %v2577_v42 = vld [vmem:[%s4244_s29 + $0x64] sm:$0xf]  ;;  %v2579_v24 = vld [vmem:[%s4244_s29 + $0x68] sm:$0xf] }
 0x30a   : >> { %2576 = vst [vmem:[%s4240_s15 + $0x60] sm:$0xf] %v2575_v59  ;;  %2578 = vst [vmem:[%s4240_s15 + $0x64] sm:$0xf] %v2577_v42  ;;  %v2581_v49 = vld [vmem:[%s4244_s29 + $0x6c] sm:$0xf] }
 0x30b   : >> { %2580 = vst [vmem:[%s4240_s15 + $0x68] sm:$0xf] %v2579_v24  ;;  %v2583_v57 = vld [vmem:[%s4244_s29 + $0x70] sm:$0xf]  ;;  %v2585_v3 = vld [vmem:[%s4244_s29 + $0x74] sm:$0xf] }
 0x30c   : >> { %2582 = vst [vmem:[%s4240_s15 + $0x6c] sm:$0xf] %v2581_v49  ;;  %2584 = vst [vmem:[%s4240_s15 + $0x70] sm:$0xf] %v2583_v57  ;;  %v2587_v23 = vld [vmem:[%s4244_s29 + $0x78] sm:$0xf] }
 0x30d   : >> { %2586 = vst [vmem:[%s4240_s15 + $0x74] sm:$0xf] %v2585_v3  ;;  %v2589_v35 = vld [vmem:[%s4244_s29 + $0x7c] sm:$0xf]  ;;  %v2591_v26 = vld [vmem:[%s4244_s29 + $0x80] sm:$0xf] }
 0x30e   : >> { %2588 = vst [vmem:[%s4240_s15 + $0x78] sm:$0xf] %v2587_v23  ;;  %2590 = vst [vmem:[%s4240_s15 + $0x7c] sm:$0xf] %v2589_v35  ;;  %v2593_v9 = vld [vmem:[%s4244_s29 + $0x84] sm:$0xf] }
 0x30f   : >> { %2592 = vst [vmem:[%s4240_s15 + $0x80] sm:$0xf] %v2591_v26  ;;  %v2595_v20 = vld [vmem:[%s4244_s29 + $0x88] sm:$0xf]  ;;  %v2597_v56 = vld [vmem:[%s4244_s29 + $0x8c] sm:$0xf] }
 0x310   : >> { %2594 = vst [vmem:[%s4240_s15 + $0x84] sm:$0xf] %v2593_v9  ;;  %2596 = vst [vmem:[%s4240_s15 + $0x88] sm:$0xf] %v2595_v20  ;;  %v2599_v46 = vld [vmem:[%s4244_s29 + $0x90] sm:$0xf] }
 0x311   : >> { %2598 = vst [vmem:[%s4240_s15 + $0x8c] sm:$0xf] %v2597_v56  ;;  %v2601_v28 = vld [vmem:[%s4244_s29 + $0x94] sm:$0xf]  ;;  %v2603_v21 = vld [vmem:[%s4244_s29 + $0x98] sm:$0xf] }
 0x312   : >> { %2600 = vst [vmem:[%s4240_s15 + $0x90] sm:$0xf] %v2599_v46  ;;  %2602 = vst [vmem:[%s4240_s15 + $0x94] sm:$0xf] %v2601_v28  ;;  %v2605_v29 = vld [vmem:[%s4244_s29 + $0x9c] sm:$0xf] }
 0x313   : >> { %2604 = vst [vmem:[%s4240_s15 + $0x98] sm:$0xf] %v2603_v21  ;;  %v2607_v30 = vld [vmem:[%s4244_s29 + $0xa0] sm:$0xf]  ;;  %v2609_v40 = vld [vmem:[%s4244_s29 + $0xa4] sm:$0xf] }
 0x314   : >> { %2606 = vst [vmem:[%s4240_s15 + $0x9c] sm:$0xf] %v2605_v29  ;;  %2608 = vst [vmem:[%s4240_s15 + $0xa0] sm:$0xf] %v2607_v30  ;;  %v2611_v44 = vld [vmem:[%s4244_s29 + $0xa8] sm:$0xf] }
 0x315   : >> { %2610 = vst [vmem:[%s4240_s15 + $0xa4] sm:$0xf] %v2609_v40  ;;  %v2613_v33 = vld [vmem:[%s4244_s29 + $0xac] sm:$0xf]  ;;  %v2615_v0 = vld [vmem:[%s4244_s29 + $0xb0] sm:$0xf] }
 0x316   : >> { %2612 = vst [vmem:[%s4240_s15 + $0xa8] sm:$0xf] %v2611_v44  ;;  %2614 = vst [vmem:[%s4240_s15 + $0xac] sm:$0xf] %v2613_v33  ;;  %v2617_v52 = vld [vmem:[%s4244_s29 + $0xb4] sm:$0xf] }
 0x317   : >> { %2616 = vst [vmem:[%s4240_s15 + $0xb0] sm:$0xf] %v2615_v0  ;;  %v2619_v54 = vld [vmem:[%s4244_s29 + $0xb8] sm:$0xf]  ;;  %v2621_v36 = vld [vmem:[%s4244_s29 + $0xbc] sm:$0xf] }
 0x318   : >> { %2618 = vst [vmem:[%s4240_s15 + $0xb4] sm:$0xf] %v2617_v52  ;;  %2620 = vst [vmem:[%s4240_s15 + $0xb8] sm:$0xf] %v2619_v54  ;;  %v2623_v45 = vld [vmem:[%s4244_s29 + $0xc0] sm:$0xf] }
 0x319   : >> { %2622 = vst [vmem:[%s4240_s15 + $0xbc] sm:$0xf] %v2621_v36  ;;  %v2625_v11 = vld [vmem:[%s4244_s29 + $0xc4] sm:$0xf]  ;;  %v2627_v37 = vld [vmem:[%s4244_s29 + $0xc8] sm:$0xf] }
 0x31a   : >> { %2624 = vst [vmem:[%s4240_s15 + $0xc0] sm:$0xf] %v2623_v45  ;;  %2626 = vst [vmem:[%s4240_s15 + $0xc4] sm:$0xf] %v2625_v11  ;;  %v2629_v22 = vld [vmem:[%s4244_s29 + $0xcc] sm:$0xf] }
 0x31b   : >> { %2628 = vst [vmem:[%s4240_s15 + $0xc8] sm:$0xf] %v2627_v37  ;;  %v2631_v25 = vld [vmem:[%s4244_s29 + $0xd0] sm:$0xf]  ;;  %v2633_v27 = vld [vmem:[%s4244_s29 + $0xd4] sm:$0xf] }
 0x31c   : >> { %2630 = vst [vmem:[%s4240_s15 + $0xcc] sm:$0xf] %v2629_v22  ;;  %2632 = vst [vmem:[%s4240_s15 + $0xd0] sm:$0xf] %v2631_v25  ;;  %v2635_v13 = vld [vmem:[%s4244_s29 + $0xd8] sm:$0xf] }
 0x31d   : >> { %2634 = vst [vmem:[%s4240_s15 + $0xd4] sm:$0xf] %v2633_v27  ;;  %v2637_v60 = vld [vmem:[%s4244_s29 + $0xdc] sm:$0xf]  ;;  %v2639_v38 = vld [vmem:[%s4244_s29 + $0xe0] sm:$0xf] }
 0x31e   : >> { %2636 = vst [vmem:[%s4240_s15 + $0xd8] sm:$0xf] %v2635_v13  ;;  %2638 = vst [vmem:[%s4240_s15 + $0xdc] sm:$0xf] %v2637_v60  ;;  %v2641_v43 = vld [vmem:[%s4244_s29 + $0xe4] sm:$0xf] }
 0x31f   : >> { %2640 = vst [vmem:[%s4240_s15 + $0xe0] sm:$0xf] %v2639_v38  ;;  %v2643_v58 = vld [vmem:[%s4244_s29 + $0xe8] sm:$0xf]  ;;  %v2645_v63 = vld [vmem:[%s4244_s29 + $0xec] sm:$0xf] }
 0x320   : >> { %2642 = vst [vmem:[%s4240_s15 + $0xe4] sm:$0xf] %v2641_v43  ;;  %2644 = vst [vmem:[%s4240_s15 + $0xe8] sm:$0xf] %v2643_v58  ;;  %v2647_v2 = vld [vmem:[%s4244_s29 + $0xf0] sm:$0xf] }
 0x321   : >> { %2646 = vst [vmem:[%s4240_s15 + $0xec] sm:$0xf] %v2645_v63  ;;  %v2649_v19 = vld [vmem:[%s4244_s29 + $0xf4] sm:$0xf]  ;;  %2648 = vst [vmem:[%s4240_s15 + $0xf0] sm:$0xf] %v2647_v2 }
 0x322   : >> { %2650 = vst [vmem:[%s4240_s15 + $0xf4] sm:$0xf] %v2649_v19  ;;  %s6306_s11 = smov (%p2652_p11, %s2651_s11), 0  ;;  %s2521_s10 = sadd.s32 1, %s4252_s10  }
 0x323   : >> { %s2654_s14 = smul.u32 248, %s6306_s11  ;;  %p2520_p12 = scmp.ge.s32.totalorder %s2521_s10, %s5806_s20 }
 0x324   : >> { %s6299_s9 = smov %s6306_s11 }
 0x325   : >> { %s2656_s29 = scalar_lea.vmem %s5389_s12, %s2654_s14 [#allocation2]   ;;  %s2657_s15 = scalar_lea.vmem %s5800_s7, %s2654_s14  }
 0x326   : > { %2523 = sbr.rel (!%p2520_p12) target bundleno = 761 (0x2f9), region = 121 }
 0x32b PF: > { %4180 = sdivrem.u32 %s6304_s30, 62 }
 0x32c   : > { %s3252_s17 = smul.u32 248, %s5806_s20 }
 0x32e   : > { %s2662_s18 = scalar_lea.vmem %s5389_s12, %s3252_s17 [#allocation2]   ;;  %s2664_s22 = scalar_lea.vmem %s5800_s7, %s3252_s17  }
 0x334   : > { %s4181_s23 = spop.drf %4180 }
 0x335   : > { %p3254_p13 = scmp.le.s32.totalorder %s4181_s23, 0 }
 0x336   : > { %s4254_s21 = smov (!%p3254_p13), %s2664_s22   ;;  %s4258_s24 = smov (!%p3254_p13), %s2662_s18  }
 0x337   : > { %2924 = sbr.rel (%p3254_p13) target bundleno = 836 (0x344), region = 126  ;;  %s4262_s25 = smov (!%p3254_p13), 0  }
 0x338   : > { %s4266_s26 = smov (!%p3254_p13), 0  }
 0x33c LB: >> { %v2674_v53 = vld [vmem:[%s4260_s24] sm:$0xf]  ;;  %s2676_s27 = sadd.s32 1, %s4264_s25  ;;  %s2668_s26 = sadd.s32 1, %s4268_s26   ;;  %s4268_s26 = sphi %s4266_s26, %s2668_s26   ;;  %s4264_s25 = sphi %s4262_s25, %s4263_s25   ;;  %s4260_s24 = sphi %s4258_s24, %s2681_s24   ;;  %s4256_s21 = sphi %s4254_s21, %s2682_s21  }
 0x33d   : >> { %2675 = vst [vmem:[%s4256_s21] sm:$0xf] %v2674_v53  ;;  %p2677_p0 = scmp.ge.s32.totalorder %s2676_s27, %s4181_s23  ;;  %p2667_p1 = scmp.ge.s32.totalorder %s2668_s26, %s4181_s23 }
 0x33f   : >> { %s6308_s27 = smov (%p2677_p0, %s2676_s27), 0  ;;  %2670 = sbr.rel (!%p2667_p1) target bundleno = 828 (0x33c), region = 132 }
 0x340   : >> { %s3255_s12 = sshll.u32 %s6308_s27, 2  ;;  %s4263_s25 = smov %s6308_s27  }
 0x341   : >> { %s2681_s24 = scalar_lea.vmem %s2662_s18, %s3255_s12 [#allocation2]   ;;  %s2682_s21 = scalar_lea.vmem %s2664_s22, %s3255_s12  }
 0x344 PF: > { %p10_p2 = scmp.ge.s32.totalorder %s4307_s16, 4   ;;  %s6300_s12 = smov %s4232_s13 }
 0x345   : > { %s6301_s13 = smov %s4315_s19  ;;  %s6302_s14 = smov %s4307_s16 }
 0x346   :  { %12 = sbr.rel (!%p10_p2) target bundleno = 2 (0x2), region = 143 }

// kernel: net_forward.4
= control target key start
LH: loop header
LB: loop body
LE: loop exit
PB: predicated region body
PF: predicated region fallthrough
CT: control target
= control target key end

     0   :  { %s1944_s12 = smov 0   ;;  %s1946_s13 = smov 0   ;;  %s2470_s0 = inlined_call_operand.vmem [shape: bf16[162,216], index: 0, kind: input, shape index: {}]   ;;  %s2471_s1 = inlined_call_operand.vmem [shape: bf16[4,216,16], index: 1, kind: input, shape index: {}]   ;;  %s2472_s2 = inlined_call_operand.vmem [shape: f32[1,16], index: 2, kind: input, shape index: {}]   ;;  %s2473_s3 = inlined_call_operand.vmem [shape: bf16[162,16], index: 3, kind: output, shape index: {}]  }
   0x1   :  { %s1948_s14 = smov 0  }
   0x2 LB: > { %s1957_s15 = sadd.s32 4294967295, %s1889_s14   ;;  %s1959_s16 = sadd.s32 1, %s1889_s14   ;;  %s1889_s14 = sphi %s1948_s14, %s2480_s14   ;;  %s1885_s13 = sphi %s1946_s13, %s2479_s13   ;;  %s1881_s12 = sphi %s1944_s12, %s2478_s12  }
   0x3   : > { %s85_s17 = ssub.s32 %s1889_s14, %s1959_s16  ;;  %s88_s18 = sadd.s32 1, %s1885_s13 }
   0x4   : > { %p86_p0 = scmp.eq.s32.totalorder %s85_s17, 0  ;;  %p98_p1 = scmp.ne.s32.totalorder %s1885_s13, %s1881_s12 }
   0x5   : > { %p99_p2 = scmp.eq.s32.totalorder %s1957_s15, 1  ;;  %p1451_p3 = scmp.ge.s32.totalorder %s1889_s14, 1 }
   0x6   : > { %s1967_s19 = scalar_select %p86_p0, %s1885_s13, %s88_s18  }
   0x7   : > { %p1969_p4 = por %p99_p2, %p98_p1  ;;  %p149_p5 = scmp.lt.s32.totalorder %s1889_s14, 3 }
   0x9   : > { %p150_p6 = pnand %p1451_p3, %p149_p5 }
   0xa   : > { %s2001_s8 = smul.u32 (!%p150_p6), 12, %s1957_s15  ;;  %s175_s21 = sand.u32 (!%p150_p6), 1, %s1881_s12  }
   0xb   : > { %153 = sbr.rel (%p150_p6) target bundleno = 438 (0x1b6), region = 32 }
   0xc   : > { %p184_p7 = scmp.lt.s32.totalorder (!%p150_p6), %s2001_s8, 20  ;;  %s1666_s24 = smul.u32 (!%p150_p6), 48, %s175_s21 }
   0xe   : > { %s2359_s12 = scalar_lea.vmem (!%p150_p6), [#allocation2], %s1666_s24  }
  0x10   : > { %v1757_v0 = vld [vmem:[%s2471_s1 + $0x38] sm:$0xff]   ;;  %v1923_v1 = vmov 0   ;;  %v1758_v2 = vld [vmem:[%s2471_s1 + $0xa4] sm:$0xff]   ;;  %v1759_v3 = vld [vmem:[%s2471_s1 + $0x30] sm:$0xff]   ;;  %s185_s23 = scalar_select %p184_p7, %s2001_s8, 20  ;;  %vm394_vm0 = vcmask 1043456  }
  0x11   : > { %398 = vmatprep.subr.bf16.mxu0 %v1923_v1  ;;  %591 = vmatprep.subr.bf16.mxu1 %v1923_v1  ;;  %v1760_v4 = vld [vmem:[%s2471_s1 + $0x9c] sm:$0xff]   ;;  %v1761_v5 = vld [vmem:[%s2471_s1 + $0x28] sm:$0xff]   ;;  %v1762_v6 = vld [vmem:[%s2471_s1 + $0x94] sm:$0xff]   ;;  %vm375_vm1 = vcmask 719872   ;;  %vm1173_vm2 = vcmask 125952   ;;  %s1194_s25 = ssub.s32 (%p1969_p4), 21, %s2001_s8 }
  0x12   : > { %399 = vmatpush1.bf16.msra.mxu0 %v1757_v0  ;;  %592 = vmatpush1.bf16.msra.mxu1 %v1758_v2  ;;  %v1763_v7 = vld [vmem:[%s2471_s1 + $0x20] sm:$0xff]   ;;  %v1764_v8 = vld [vmem:[%s2471_s1 + $0x8c] sm:$0xff]   ;;  %v1765_v9 = vld [vmem:[%s2471_s1 + $0x18] sm:$0xff]   ;;  %s1652_s28 = sshll.u32 %s185_s23, 3  ;;  %s1665_s26 = smul.u32 (%p1969_p4), 48, %s1957_s15 }
  0x13   : > { %400 = vmatprep.subr.bf16.mxu0 %v1923_v1  ;;  %593 = vmatprep.subr.bf16.mxu1 %v1923_v1  ;;  %v1766_v10 = vld [vmem:[%s2471_s1 + $0x84] sm:$0xff]   ;;  %v1767_v11 = vld [vmem:[%s2471_s1 + $0x10] sm:$0xff]   ;;  %v1768_v12 = vld [vmem:[%s2471_s1 + $0x7c] sm:$0xff]   ;;  %s2040_s9 = scalar_lea.vmem %s2470_s0, %s1652_s28  ;;  %p1195_p8 = scmp.lt.s32.totalorder (%p1969_p4), %s1194_s25, 12 }
  0x14   : > { %v1769_v13 = vld [vmem:[%s2471_s1 + $0x8] sm:$0xff]   ;;  %v1770_v14 = vld [vmem:[%s2471_s1 + $0x74] sm:$0xff]   ;;  %v1771_v15 = vld [vmem:[%s2471_s1] sm:$0xff]  }
  0x15   : > { %v1772_v16 = vld [vmem:[%s2471_s1 + $0x6c] sm:$0xff]   ;;  %v1773_v17 = vld [vmem:[%s2471_s1 + $0x68] ss:$0 sps:$4 sm:$0xff]   ;;  %v1774_v18 = vld [vmem:[%s2471_s1 + $0xd4] ss:$0 sps:$4 sm:$0xff]  }
  0x16   : > { %401 = vmatpush1.bf16.msra.mxu0 %v1759_v3  ;;  %594 = vmatpush1.bf16.msra.mxu1 %v1760_v4  ;;  %v2054_v19 = vld [vmem:[%s2040_s9 + $0x4] ss:$8 sps:$4 sm:$0xff]   ;;  %v396_v20 = vsel %vm394_vm0, %v1773_v17, 0  ;;  %v589_v21 = vsel %vm394_vm0, %v1774_v18, 0  ;;  %v1777_v24 = vld [vmem:[%s2471_s1 + $0x58] sm:$0xff]   ;;  %v1779_v26 = vld [vmem:[%s2471_s1 + $0x50] sm:$0xff]  }
  0x17   : > { %402 = vmatprep.subr.bf16.mxu0 %v1923_v1  ;;  %595 = vmatprep.subr.bf16.mxu1 %v1923_v1  ;;  %v1775_v22 = vld [vmem:[%s2471_s1 + $0x60] sm:$0xff]   ;;  %v1776_v23 = vld [vmem:[%s2471_s1 + $0xcc] sm:$0xff]   ;;  %v1782_v29 = vld [vmem:[%s2471_s1 + $0xb4] sm:$0xff]  }
  0x18   : > { %1480 = vmatprep.mubr.msk.bf16.mxu0 %vm375_vm1, %v2054_v19  ;;  %1527 = vmatprep.mubr.msk.bf16.mxu1 %vm375_vm1, %v2054_v19  ;;  %v1778_v25 = vld [vmem:[%s2471_s1 + $0xc4] sm:$0xff]   ;;  %v1780_v27 = vld [vmem:[%s2471_s1 + $0xbc] sm:$0xff]   ;;  %v1784_v31 = vld [vmem:[%s2471_s1 + $0xac] sm:$0xff]  }
  0x19   : > { %v1781_v28 = vld [vmem:[%s2471_s1 + $0x48] sm:$0xff]   ;;  %v1783_v30 = vld [vmem:[%s2471_s1 + $0x40] sm:$0xff]   ;;  %v1788_v33 = vld [vmem:[%s2471_s1 + $0x110] sm:$0xff]  }
  0x1a   : > { %403 = vmatpush1.bf16.msra.mxu0 %v1761_v5  ;;  %596 = vmatpush1.bf16.msra.mxu1 %v1762_v6  ;;  %v2105_v32 = vld [vmem:[%s2040_s9] ss:$8 sps:$4 sm:$0xff]   ;;  %v2116_v35 = vld [vmem:[%s2040_s9 + $0x14] ss:$8 sps:$4 sm:$0xff]   ;;  %v2131_v38 = vld [vmem:[%s2040_s9 + $0x10] ss:$8 sps:$4 sm:$0xff]  }
  0x1b   : > { %404 = vmatprep.subr.bf16.mxu0 %v1923_v1  ;;  %597 = vmatprep.subr.bf16.mxu1 %v1923_v1  ;;  %v1789_v34 = vld [vmem:[%s2471_s1 + $0x17c] sm:$0xff]   ;;  %v1790_v36 = vld [vmem:[%s2471_s1 + $0x108] sm:$0xff]   ;;  %v1791_v37 = vld [vmem:[%s2471_s1 + $0x174] sm:$0xff]  }
  0x1c   : > { %v1794_v39 = vld [vmem:[%s2471_s1 + $0x100] sm:$0xff]   ;;  %v1795_v40 = vld [vmem:[%s2471_s1 + $0x16c] sm:$0xff]   ;;  %v1797_v42 = vld [vmem:[%s2471_s1 + $0xf8] sm:$0xff]  }
  0x1d   : > { %v2144_v41 = vld [vmem:[%s2040_s9 + $0x24] ss:$8 sps:$4 sm:$0xff]   ;;  %v2159_v44 = vld [vmem:[%s2040_s9 + $0x20] ss:$8 sps:$4 sm:$0xff]   ;;  %v1801_v45 = vld [vmem:[%s2471_s1 + $0xf0] sm:$0xff]  }
  0x1e   : > { %405 = vmatpush1.bf16.msra.mxu0 %v1763_v7  ;;  %598 = vmatpush1.bf16.msra.mxu1 %v1764_v8  ;;  %v1798_v43 = vld [vmem:[%s2471_s1 + $0x164] sm:$0xff]   ;;  %v1802_v46 = vld [vmem:[%s2471_s1 + $0x15c] sm:$0xff]   ;;  %v1805_v49 = vld [vmem:[%s2471_s1 + $0x154] sm:$0xff]  }
  0x1f   : > { %406 = vmatprep.subr.bf16.mxu0 %v1923_v1  ;;  %599 = vmatprep.subr.bf16.mxu1 %v1923_v1  ;;  %v2172_v47 = vld [vmem:[%s2040_s9 + $0x34] ss:$8 sps:$4 sm:$0xff]   ;;  %v1804_v48 = vld [vmem:[%s2471_s1 + $0xe8] sm:$0xff]   ;;  %v2187_v50 = vld [vmem:[%s2040_s9 + $0x30] ss:$8 sps:$4 sm:$0xff]  }
  0x20   : > { %v1808_v51 = vld [vmem:[%s2471_s1 + $0xe0] sm:$0xff]   ;;  %v1809_v52 = vld [vmem:[%s2471_s1 + $0x14c] sm:$0xff]   ;;  %v1811_v54 = vld [vmem:[%s2471_s1 + $0xd8] sm:$0xff]  }
  0x21   : > { %v2200_v53 = vld [vmem:[%s2040_s9 + $0x44] ss:$8 sps:$4 sm:$0xff]   ;;  %v1815_v56 = vld [vmem:[%s2471_s1 + $0x140] ss:$0 sps:$4 sm:$0xff]   ;;  %v1820_v61 = vld [vmem:[%s2040_s9 + $0x54] ss:$8 sps:$4 sm:$0xff]  }
  0x22   : > { %407 = vmatpush1.bf16.msra.mxu0 %v1765_v9  ;;  %600 = vmatpush1.bf16.msra.mxu1 %v1766_v10  ;;  %v1812_v55 = vld [vmem:[%s2471_s1 + $0x144] sm:$0xff]   ;;  %v1816_v57 = vld [vmem:[%s2471_s1 + $0x1ac] ss:$0 sps:$4 sm:$0xff]   ;;  %v794_v59 = vsel %vm394_vm0, %v1815_v56, 0  ;;  %v1818_v62 = vld [vmem:[%s2471_s1 + $0x138] sm:$0xff]  }
  0x23   : > { %408 = vmatprep.subr.bf16.mxu0 %v1923_v1  ;;  %601 = vmatprep.subr.bf16.mxu1 %v1923_v1  ;;  %v2221_v58 = vld [vmem:[%s2040_s9 + $0x40] ss:$8 sps:$4 sm:$0xff]   ;;  %v999_v60 = vsel %vm394_vm0, %v1816_v57, 0  ;;  %v1824_v0 = vld [vmem:[%s2040_s9 + $0x50] ss:$8 sps:$4 sm:$0xff]   ;;  %s2418_s9 = scalar_lea.vmem (%p1969_p4), %s2473_s3, %s1665_s26  }
  0x24   : > { %v1819_v63 = vld [vmem:[%s2471_s1 + $0x1a4] sm:$0xff]   ;;  %v1822_v2 = vld [vmem:[%s2471_s1 + $0x130] sm:$0xff]   ;;  %v1823_v3 = vld [vmem:[%s2471_s1 + $0x19c] sm:$0xff]  }
  0x25   : > { %v1825_v4 = vld [vmem:[%s2471_s1 + $0x128] sm:$0xff]   ;;  %v1826_v5 = vld [vmem:[%s2471_s1 + $0x194] sm:$0xff]   ;;  %v1827_v6 = vld [vmem:[%s2471_s1 + $0x120] sm:$0xff]  }
  0x26   : > { %409 = vmatpush1.bf16.msra.mxu0 %v1767_v11  ;;  %602 = vmatpush1.bf16.msra.mxu1 %v1768_v12  ;;  %v1828_v7 = vld [vmem:[%s2471_s1 + $0x18c] sm:$0xff]   ;;  %v1829_v8 = vld [vmem:[%s2471_s1 + $0x118] sm:$0xff]   ;;  %v1830_v9 = vld [vmem:[%s2471_s1 + $0x184] sm:$0xff]  }
  0x27   : > { %410 = vmatprep.subr.bf16.mxu0 %v1923_v1  ;;  %603 = vmatprep.subr.bf16.mxu1 %v1923_v1 }
  0x2a   : > { %411 = vmatpush1.bf16.msra.mxu0 %v1769_v13  ;;  %604 = vmatpush1.bf16.msra.mxu1 %v1770_v14 }
  0x2b   : > { %412 = vmatprep.subr.bf16.mxu0 %v1923_v1  ;;  %605 = vmatprep.subr.bf16.mxu1 %v1923_v1 }
  0x2e   : > { %413 = vmatpush1.bf16.msra.mxu0 %v1771_v15  ;;  %606 = vmatpush1.bf16.msra.mxu1 %v1772_v16 }
  0x2f   : > { %418 = vmatprep.subr.bf16.mxu0 %v1923_v1  ;;  %611 = vmatprep.subr.bf16.mxu1 %v1923_v1 }
  0x32   : > { %419 = vmatpush2.bf16.msra.mxu0 %v396_v20  ;;  %612 = vmatpush2.bf16.msra.mxu1 %v589_v21 }
  0x33   : > { %420 = vmatprep.subr.bf16.mxu0 %v1923_v1  ;;  %613 = vmatprep.subr.bf16.mxu1 %v1923_v1 }
  0x36   : > { %421 = vmatpush2.bf16.msra.mxu0 %v1775_v22  ;;  %614 = vmatpush2.bf16.msra.mxu1 %v1776_v23 }
  0x37   : > { %422 = vmatprep.subr.bf16.mxu0 %v1923_v1  ;;  %615 = vmatprep.subr.bf16.mxu1 %v1923_v1 }
  0x3a   : > { %423 = vmatpush2.bf16.msra.mxu0 %v1777_v24  ;;  %616 = vmatpush2.bf16.msra.mxu1 %v1778_v25 }
  0x3b   : > { %424 = vmatprep.subr.bf16.mxu0 %v1923_v1  ;;  %617 = vmatprep.subr.bf16.mxu1 %v1923_v1 }
  0x3e   : > { %425 = vmatpush2.bf16.msra.mxu0 %v1779_v26  ;;  %618 = vmatpush2.bf16.msra.mxu1 %v1780_v27 }
  0x3f   : > { %426 = vmatprep.subr.bf16.mxu0 %v1923_v1  ;;  %619 = vmatprep.subr.bf16.mxu1 %v1923_v1 }
  0x42   : > { %427 = vmatpush2.bf16.msra.mxu0 %v1781_v28  ;;  %620 = vmatpush2.bf16.msra.mxu1 %v1782_v29 }
  0x43   : > { %428 = vmatprep.subr.bf16.mxu0 %v1923_v1  ;;  %621 = vmatprep.subr.bf16.mxu1 %v1923_v1 }
  0x46   : > { %429 = vmatpush2.bf16.msra.mxu0 %v1783_v30  ;;  %622 = vmatpush2.bf16.msra.mxu1 %v1784_v31 }
  0x47   : > { %796 = vmatprep.subr.bf16.mxu0 %v1923_v1  ;;  %1001 = vmatprep.subr.bf16.mxu1 %v1923_v1 }
  0x49   : > { %431 = vmatmul.mubr.bf16.vlgmr.msra.gmra.mxu0 %v2105_v32  ;;  %624 = vmatmul.mubr.bf16.vlgmr.msra.gmra.mxu1 %v2105_v32 }
  0x4a   : > { %797 = vmatpush1.bf16.msra.mxu0 %v1788_v33  ;;  %1002 = vmatpush1.bf16.msra.mxu1 %v1789_v34 }
  0x4b   : > { %798 = vmatprep.subr.bf16.mxu0 %v1923_v1  ;;  %1003 = vmatprep.subr.bf16.mxu1 %v1923_v1 }
  0x4c   : > { %1481 = vmatprep.mubr.msk.bf16.mxu0 %vm375_vm1, %v2116_v35  ;;  %1528 = vmatprep.mubr.msk.bf16.mxu1 %vm375_vm1, %v2116_v35 }
  0x4e   : > { %799 = vmatpush1.bf16.msra.mxu0 %v1790_v36  ;;  %1004 = vmatpush1.bf16.msra.mxu1 %v1791_v37 }
  0x4f   : > { %800 = vmatprep.subr.bf16.mxu0 %v1923_v1  ;;  %1005 = vmatprep.subr.bf16.mxu1 %v1923_v1 }
  0x51   : > { %439 = vmatmul.mubr.bf16.gmra.mxu0 %v2131_v38  ;;  %632 = vmatmul.mubr.bf16.gmra.mxu1 %v2131_v38 }
  0x52   : > { %801 = vmatpush1.bf16.msra.mxu0 %v1794_v39  ;;  %1006 = vmatpush1.bf16.msra.mxu1 %v1795_v40 }
  0x53   : > { %802 = vmatprep.subr.bf16.mxu0 %v1923_v1  ;;  %1007 = vmatprep.subr.bf16.mxu1 %v1923_v1 }
  0x54   : > { %1482 = vmatprep.mubr.msk.bf16.mxu0 %vm375_vm1, %v2144_v41  ;;  %1529 = vmatprep.mubr.msk.bf16.mxu1 %vm375_vm1, %v2144_v41 }
  0x56   : > { %803 = vmatpush1.bf16.msra.mxu0 %v1797_v42  ;;  %1008 = vmatpush1.bf16.msra.mxu1 %v1798_v43 }
  0x57   : > { %804 = vmatprep.subr.bf16.mxu0 %v1923_v1  ;;  %1009 = vmatprep.subr.bf16.mxu1 %v1923_v1 }
  0x59   : > { %447 = vmatmul.mubr.bf16.gmra.mxu0 %v2159_v44  ;;  %640 = vmatmul.mubr.bf16.gmra.mxu1 %v2159_v44 }
  0x5a   : > { %805 = vmatpush1.bf16.msra.mxu0 %v1801_v45  ;;  %1010 = vmatpush1.bf16.msra.mxu1 %v1802_v46 }
  0x5b   : > { %806 = vmatprep.subr.bf16.mxu0 %v1923_v1  ;;  %1011 = vmatprep.subr.bf16.mxu1 %v1923_v1 }
  0x5c   : > { %1483 = vmatprep.mubr.msk.bf16.mxu0 %vm375_vm1, %v2172_v47  ;;  %1530 = vmatprep.mubr.msk.bf16.mxu1 %vm375_vm1, %v2172_v47 }
  0x5e   : > { %807 = vmatpush1.bf16.msra.mxu0 %v1804_v48  ;;  %1012 = vmatpush1.bf16.msra.mxu1 %v1805_v49 }
  0x5f   : > { %808 = vmatprep.subr.bf16.mxu0 %v1923_v1  ;;  %1013 = vmatprep.subr.bf16.mxu1 %v1923_v1 }
  0x61   : > { %455 = vmatmul.mubr.bf16.gmra.mxu0 %v2187_v50  ;;  %648 = vmatmul.mubr.bf16.gmra.mxu1 %v2187_v50 }
  0x62   : > { %809 = vmatpush1.bf16.msra.mxu0 %v1808_v51  ;;  %1014 = vmatpush1.bf16.msra.mxu1 %v1809_v52 }
  0x63   : > { %810 = vmatprep.subr.bf16.mxu0 %v1923_v1  ;;  %1015 = vmatprep.subr.bf16.mxu1 %v1923_v1 }
  0x64   : > { %1484 = vmatprep.mubr.msk.bf16.mxu0 %vm375_vm1, %v2200_v53  ;;  %1531 = vmatprep.mubr.msk.bf16.mxu1 %vm375_vm1, %v2200_v53 }
  0x66   : > { %811 = vmatpush1.bf16.msra.mxu0 %v1811_v54  ;;  %1016 = vmatpush1.bf16.msra.mxu1 %v1812_v55 }
  0x67   : > { %816 = vmatprep.subr.bf16.mxu0 %v1923_v1  ;;  %1021 = vmatprep.subr.bf16.mxu1 %v1923_v1 }
  0x69   : > { %463 = vmatmul.mubr.bf16.gmra.mxu0 %v2221_v58  ;;  %656 = vmatmul.mubr.bf16.gmra.mxu1 %v2221_v58 }
  0x6a   : > { %817 = vmatpush2.bf16.msra.mxu0 %v794_v59  ;;  %1022 = vmatpush2.bf16.msra.mxu1 %v999_v60 }
  0x6b   : > { %818 = vmatprep.subr.bf16.mxu0 %v1923_v1  ;;  %1023 = vmatprep.subr.bf16.mxu1 %v1923_v1 }
  0x6c   : > { %1485 = vmatprep.mubr.msk.bf16.mxu0 %vm375_vm1, %v1820_v61  ;;  %1532 = vmatprep.mubr.msk.bf16.mxu1 %vm375_vm1, %v1820_v61 }
  0x6e   : > { %819 = vmatpush2.bf16.msra.mxu0 %v1818_v62  ;;  %1024 = vmatpush2.bf16.msra.mxu1 %v1819_v63 }
  0x6f   : > { %820 = vmatprep.subr.bf16.mxu0 %v1923_v1  ;;  %1025 = vmatprep.subr.bf16.mxu1 %v1923_v1 }
  0x71   : > { %471 = vmatmul.mubr.bf16.gmra.mxu0 %v1824_v0  ;;  %664 = vmatmul.mubr.bf16.gmra.mxu1 %v1824_v0 }
  0x72   : > { %821 = vmatpush2.bf16.msra.mxu0 %v1822_v2  ;;  %1026 = vmatpush2.bf16.msra.mxu1 %v1823_v3 }
  0x73   : > { %822 = vmatprep.subr.bf16.mxu0 %v1923_v1  ;;  %1027 = vmatprep.subr.bf16.mxu1 %v1923_v1 }
  0x74   : > { %1574 = vmatprep.mubr.msk.bf16.mxu0 %vm375_vm1, %v2054_v19  ;;  %1621 = vmatprep.mubr.msk.bf16.mxu1 %vm375_vm1, %v2054_v19 }
  0x76   : > { %823 = vmatpush2.bf16.msra.mxu0 %v1825_v4  ;;  %1028 = vmatpush2.bf16.msra.mxu1 %v1826_v5 }
  0x77   : > { %824 = vmatprep.subr.bf16.mxu0 %v1923_v1  ;;  %1029 = vmatprep.subr.bf16.mxu1 %v1923_v1 }
  0x7a   : > { %825 = vmatpush2.bf16.msra.mxu0 %v1827_v6  ;;  %1030 = vmatpush2.bf16.msra.mxu1 %v1828_v7 }
  0x7b   : > { %826 = vmatprep.subr.bf16.mxu0 %v1923_v1  ;;  %1031 = vmatprep.subr.bf16.mxu1 %v1923_v1 }
  0x7e   : > { %827 = vmatpush2.bf16.msra.mxu0 %v1829_v8  ;;  %1032 = vmatpush2.bf16.msra.mxu1 %v1830_v9 }
  0x81   : > { %829 = vmatmul.mubr.bf16.vlgmr.msra.gmra.mxu0 %v2105_v32  ;;  %1034 = vmatmul.mubr.bf16.vlgmr.msra.gmra.mxu1 %v2105_v32 }
  0x82   : > { %1575 = vmatprep.mubr.msk.bf16.mxu0 %vm375_vm1, %v2116_v35  ;;  %1622 = vmatprep.mubr.msk.bf16.mxu1 %vm375_vm1, %v2116_v35 }
  0x89   : > { %837 = vmatmul.mubr.bf16.gmra.mxu0 %v2131_v38  ;;  %1042 = vmatmul.mubr.bf16.gmra.mxu1 %v2131_v38 }
  0x8a   : > { %1576 = vmatprep.mubr.msk.bf16.mxu0 %vm375_vm1, %v2144_v41  ;;  %1623 = vmatprep.mubr.msk.bf16.mxu1 %vm375_vm1, %v2144_v41 }
  0x91   : > { %845 = vmatmul.mubr.bf16.gmra.mxu0 %v2159_v44  ;;  %1050 = vmatmul.mubr.bf16.gmra.mxu1 %v2159_v44 }
  0x92   : > { %1577 = vmatprep.mubr.msk.bf16.mxu0 %vm375_vm1, %v2172_v47  ;;  %1624 = vmatprep.mubr.msk.bf16.mxu1 %vm375_vm1, %v2172_v47 }
  0x99   : > { %853 = vmatmul.mubr.bf16.gmra.mxu0 %v2187_v50  ;;  %1058 = vmatmul.mubr.bf16.gmra.mxu1 %v2187_v50 }
  0x9a   : > { %1578 = vmatprep.mubr.msk.bf16.mxu0 %vm375_vm1, %v2200_v53  ;;  %1625 = vmatprep.mubr.msk.bf16.mxu1 %vm375_vm1, %v2200_v53 }
  0xa1   : > { %861 = vmatmul.mubr.bf16.gmra.mxu0 %v2221_v58  ;;  %1066 = vmatmul.mubr.bf16.gmra.mxu1 %v2221_v58 }
  0xa2   : > { %1579 = vmatprep.mubr.msk.bf16.mxu0 %vm375_vm1, %v1820_v61  ;;  %1626 = vmatprep.mubr.msk.bf16.mxu1 %vm375_vm1, %v1820_v61  ;;  %v2351_v61 = vld [vmem:[%s2472_s2] ss:$0 sm:$0xff] }
  0xa9   : > { %869 = vmatmul.mubr.bf16.gmra.mxu0 %v1824_v0  ;;  %1074 = vmatmul.mubr.bf16.gmra.mxu1 %v1824_v0 }
 0x109   : > { %v432_v1 = vpop.f32.mrf.mxu0  ;;  %v625_v10 = vpop.f32.mrf.mxu1 }
 0x10a   : > { %v672_v57 = vmax.f32 %v432_v1, %v625_v10 }
 0x10b   : > { %v434_v11 = vpop.f32.mrf.mxu0  ;;  %v627_v12 = vpop.f32.mrf.mxu1 }
 0x10d   : > { %v435_v13 = vpop.f32.mrf.mxu0  ;;  %v628_v14 = vpop.f32.mrf.mxu1 }
 0x10e   : > { %v673_v63 = vmax.f32 %v435_v13, %v628_v14 }
 0x10f   : > { %v437_v15 = vpop.f32.mrf.mxu0  ;;  %v630_v16 = vpop.f32.mrf.mxu1 }
 0x111   : > { %v2307_v17 = vpop.f32.mrf.mxu0  ;;  %v2309_v18 = vpop.f32.mrf.mxu1 }
 0x112   : > { %v674_v8 = vmax.f32 %v2307_v17, %v2309_v18 }
 0x113   : > { %v442_v19 = vpop.f32.mrf.mxu0  ;;  %v635_v20 = vpop.f32.mrf.mxu1 }
 0x115   : > { %v2311_v21 = vpop.f32.mrf.mxu0  ;;  %v2313_v22 = vpop.f32.mrf.mxu1 }
 0x116   : > { %v675_v19 = vmax.f32 %v2311_v21, %v2313_v22 }
 0x117   : > { %v445_v23 = vpop.f32.mrf.mxu0  ;;  %v638_v24 = vpop.f32.mrf.mxu1 }
 0x119   : > { %v2315_v25 = vpop.f32.mrf.mxu0  ;;  %v2317_v26 = vpop.f32.mrf.mxu1 }
 0x11a   : > { %v676_v21 = vmax.f32 %v2315_v25, %v2317_v26 }
 0x11b   : > { %v450_v27 = vpop.f32.mrf.mxu0  ;;  %v643_v28 = vpop.f32.mrf.mxu1 }
 0x11d   : > { %v2319_v29 = vpop.f32.mrf.mxu0  ;;  %v2321_v30 = vpop.f32.mrf.mxu1 }
 0x11f   : > { %v453_v31 = vpop.f32.mrf.mxu0  ;;  %v646_v32 = vpop.f32.mrf.mxu1 }
 0x121   : > { %v2323_v33 = vpop.f32.mrf.mxu0  ;;  %v2325_v34 = vpop.f32.mrf.mxu1 }
 0x123   : > { %v458_v35 = vpop.f32.mrf.mxu0  ;;  %v651_v36 = vpop.f32.mrf.mxu1 }
 0x125   : > { %v2327_v37 = vpop.f32.mrf.mxu0  ;;  %v2329_v38 = vpop.f32.mrf.mxu1 }
 0x127   : > { %v461_v39 = vpop.f32.mrf.mxu0  ;;  %v654_v40 = vpop.f32.mrf.mxu1 }
 0x129   : > { %v2331_v41 = vpop.f32.mrf.mxu0  ;;  %v2333_v42 = vpop.f32.mrf.mxu1 }
 0x12b   : > { %v466_v43 = vpop.f32.mrf.mxu0  ;;  %v659_v44 = vpop.f32.mrf.mxu1 }
 0x12d   : > { %v2335_v45 = vpop.f32.mrf.mxu0  ;;  %v2337_v46 = vpop.f32.mrf.mxu1 }
 0x12f   : > { %v469_v47 = vpop.f32.mrf.mxu0  ;;  %v662_v48 = vpop.f32.mrf.mxu1 }
 0x131   : > { %v2339_v49 = vpop.f32.mrf.mxu0  ;;  %v2341_v50 = vpop.f32.mrf.mxu1 }
 0x133   : > { %v474_v51 = vpop.f32.mrf.mxu0  ;;  %v667_v52 = vpop.f32.mrf.mxu1 }
 0x134   : > { %v677_v51 = vmax.f32 %v2319_v29, %v2321_v30 }
 0x135   : > { %v2343_v53 = vpop.f32.mrf.mxu0  ;;  %v2345_v54 = vpop.f32.mrf.mxu1 }
 0x137   : > { %v477_v55 = vpop.f32.mrf.mxu0  ;;  %v670_v56 = vpop.f32.mrf.mxu1 }
 0x141   : > { %v830_v58 = vpop.f32.mrf.mxu0  ;;  %v1035_v60 = vpop.f32.mrf.mxu1 }
 0x142   : > { %v877_v59 = vmax.f32 %v672_v57, %v830_v58 }
 0x143   : > { %v832_v62 = vpop.f32.mrf.mxu0  ;;  %v1037_v2 = vpop.f32.mrf.mxu1 }
 0x144   : > { %v1082_v0 = vmax.f32 %v877_v59, %v1035_v60  ;;  %v678_v62 = vmax.f32 %v2323_v33, %v2325_v34 }
 0x145   : > { %v833_v3 = vpop.f32.mrf.mxu0  ;;  %v1038_v6 = vpop.f32.mrf.mxu1 }
 0x146   : > { %v1101_v4 = vadd.f32 %v2351_v61, %v1082_v0  ;;  %v878_v5 = vmax.f32 %v673_v63, %v833_v3 }
 0x147   : > { %v835_v7 = vpop.f32.mrf.mxu0  ;;  %v1040_v10 = vpop.f32.mrf.mxu1 }
 0x148   : > { %v1113_v9 = vmax.f32 %v1101_v4, 0.0  ;;  %v1083_v1 = vmax.f32 %v878_v5, %v1038_v6  ;;  %v679_v7 = vmax.f32 %v2327_v37, %v2329_v38 }
 0x149   : > { %v838_v11 = vpop.f32.mrf.mxu0  ;;  %v1043_v15 = vpop.f32.mrf.mxu1 }
 0x14a   : > { %v1653_v12 = vpack.c.bf16 %v1113_v9, %v1113_v9  ;;  %v1102_v13 = vadd.f32 %v2351_v61, %v1083_v1  ;;  %v879_v14 = vmax.f32 %v674_v8, %v838_v11 }
 0x14b   : > { %v840_v16 = vpop.f32.mrf.mxu0  ;;  %v1045_v20 = vpop.f32.mrf.mxu1 }
 0x14c   : > { %1174 = vst.msk [vmem:[%s2359_s12] sm:$0xf] %vm1173_vm2, %v1653_v12  ;;  %v1114_v17 = vmax.f32 %v1102_v13, 0.0  ;;  %v1084_v18 = vmax.f32 %v879_v14, %v1043_v15  ;;  %v680_v14 = vmax.f32 %v2331_v41, %v2333_v42 }
 0x14d   : > { %v841_v23 = vpop.f32.mrf.mxu0  ;;  %v1046_v31 = vpop.f32.mrf.mxu1 }
 0x14e   : > { %v1654_v24 = vpack.c.bf16 %v1114_v17, %v1114_v17  ;;  %v1103_v27 = vadd.f32 %v2351_v61, %v1084_v18  ;;  %v880_v28 = vmax.f32 %v675_v19, %v841_v23 }
 0x14f   : > { %v843_v32 = vpop.f32.mrf.mxu0  ;;  %v1048_v36 = vpop.f32.mrf.mxu1 }
 0x150   : > { %1175 = vst.msk [vmem:[%s2359_s12 + $0x4] sm:$0xf] %vm1173_vm2, %v1654_v24  ;;  %v1115_v22 = vmax.f32 %v1103_v27, 0.0  ;;  %v1085_v35 = vmax.f32 %v880_v28, %v1046_v31  ;;  %v681_v24 = vmax.f32 %v2335_v45, %v2337_v46  ;;  %v682_v36 = vmax.f32 %v2339_v49, %v2341_v50 }
 0x151   : > { %v846_v39 = vpop.f32.mrf.mxu0  ;;  %v1051_v47 = vpop.f32.mrf.mxu1 }
 0x152   : > { %v1655_v40 = vpack.c.bf16 %v1115_v22, %v1115_v22  ;;  %v1104_v43 = vadd.f32 %v2351_v61, %v1085_v35  ;;  %v881_v44 = vmax.f32 %v676_v21, %v846_v39 }
 0x153   : > { %v848_v48 = vpop.f32.mrf.mxu0  ;;  %v1053_v26 = vpop.f32.mrf.mxu1 }
 0x154   : > { %1176 = vst.msk [vmem:[%s2359_s12 + $0x8] sm:$0xf] %vm1173_vm2, %v1655_v40  ;;  %v1116_v52 = vmax.f32 %v1104_v43, 0.0  ;;  %v1086_v25 = vmax.f32 %v881_v44, %v1051_v47 }
 0x155   : > { %v849_v55 = vpop.f32.mrf.mxu0  ;;  %v1054_v59 = vpop.f32.mrf.mxu1 }
 0x156   : > { %v1656_v56 = vpack.c.bf16 %v1116_v52, %v1116_v52  ;;  %v1105_v57 = vadd.f32 %v2351_v61, %v1086_v25  ;;  %v882_v58 = vmax.f32 %v677_v51, %v849_v55  ;;  %v683_v52 = vmax.f32 %v2343_v53, %v2345_v54 }
 0x157   : > { %v851_v60 = vpop.f32.mrf.mxu0  ;;  %v1056_v30 = vpop.f32.mrf.mxu1 }
 0x158   : > { %1177 = vst.msk [vmem:[%s2359_s12 + $0xc] sm:$0xf] %vm1173_vm2, %v1656_v56  ;;  %v1117_v63 = vmax.f32 %v1105_v57, 0.0  ;;  %v1087_v29 = vmax.f32 %v882_v58, %v1054_v59 }
 0x159   : > { %v854_v0 = vpop.f32.mrf.mxu0  ;;  %v1059_v5 = vpop.f32.mrf.mxu1 }
 0x15a   : > { %v1657_v2 = vpack.c.bf16 %v1117_v63, %v1117_v63  ;;  %v1106_v3 = vadd.f32 %v2351_v61, %v1087_v29  ;;  %v883_v4 = vmax.f32 %v678_v62, %v854_v0 }
 0x15b   : > { %v856_v6 = vpop.f32.mrf.mxu0  ;;  %v1061_v34 = vpop.f32.mrf.mxu1 }
 0x15c   : > { %1178 = vst.msk [vmem:[%s2359_s12 + $0x10] sm:$0xf] %vm1173_vm2, %v1657_v2  ;;  %v1118_v8 = vmax.f32 %v1106_v3, 0.0  ;;  %v1088_v33 = vmax.f32 %v883_v4, %v1059_v5 }
 0x15d   : > { %v857_v9 = vpop.f32.mrf.mxu0  ;;  %v1062_v12 = vpop.f32.mrf.mxu1 }
 0x15e   : > { %v1658_v1 = vpack.c.bf16 %v1118_v8, %v1118_v8  ;;  %v1107_v10 = vadd.f32 %v2351_v61, %v1088_v33  ;;  %v884_v11 = vmax.f32 %v679_v7, %v857_v9 }
 0x15f   : > { %v859_v13 = vpop.f32.mrf.mxu0  ;;  %v1064_v38 = vpop.f32.mrf.mxu1 }
 0x160   : > { %1179 = vst.msk [vmem:[%s2359_s12 + $0x14] sm:$0xf] %vm1173_vm2, %v1658_v1  ;;  %v1119_v15 = vmax.f32 %v1107_v10, 0.0  ;;  %v1089_v37 = vmax.f32 %v884_v11, %v1062_v12 }
 0x161   : > { %v862_v16 = vpop.f32.mrf.mxu0  ;;  %v1067_v20 = vpop.f32.mrf.mxu1 }
 0x162   : > { %v1659_v19 = vpack.c.bf16 %v1119_v15, %v1119_v15  ;;  %v1108_v17 = vadd.f32 %v2351_v61, %v1089_v37  ;;  %v885_v18 = vmax.f32 %v680_v14, %v862_v16 }
 0x163   : > { %v864_v23 = vpop.f32.mrf.mxu0  ;;  %v1069_v42 = vpop.f32.mrf.mxu1 }
 0x164   : > { %1180 = vst.msk [vmem:[%s2359_s12 + $0x18] sm:$0xf] %vm1173_vm2, %v1659_v19  ;;  %v1120_v27 = vmax.f32 %v1108_v17, 0.0  ;;  %v1090_v41 = vmax.f32 %v885_v18, %v1067_v20 }
 0x165   : > { %v865_v28 = vpop.f32.mrf.mxu0  ;;  %v1070_v22 = vpop.f32.mrf.mxu1 }
 0x166   : > { %v1660_v31 = vpack.c.bf16 %v1120_v27, %v1120_v27  ;;  %v1109_v32 = vadd.f32 %v2351_v61, %v1090_v41  ;;  %v886_v21 = vmax.f32 %v681_v24, %v865_v28 }
 0x167   : > { %v867_v35 = vpop.f32.mrf.mxu0  ;;  %v1072_v46 = vpop.f32.mrf.mxu1 }
 0x168   : > { %1181 = vst.msk [vmem:[%s2359_s12 + $0x1c] sm:$0xf] %vm1173_vm2, %v1660_v31  ;;  %v1121_v39 = vmax.f32 %v1109_v32, 0.0  ;;  %v1091_v45 = vmax.f32 %v886_v21, %v1070_v22 }
 0x169   : > { %v870_v40 = vpop.f32.mrf.mxu0  ;;  %v1075_v48 = vpop.f32.mrf.mxu1 }
 0x16a   : > { %v1661_v43 = vpack.c.bf16 %v1121_v39, %v1121_v39  ;;  %v1110_v44 = vadd.f32 %v2351_v61, %v1091_v45  ;;  %v887_v47 = vmax.f32 %v682_v36, %v870_v40 }
 0x16b   : > { %v872_v51 = vpop.f32.mrf.mxu0  ;;  %v1077_v25 = vpop.f32.mrf.mxu1 }
 0x16c   : > { %1182 = vst.msk [vmem:[%s2359_s12 + $0x20] sm:$0xf] %vm1173_vm2, %v1661_v43  ;;  %v1122_v49 = vmax.f32 %v1110_v44, 0.0  ;;  %v1092_v50 = vmax.f32 %v887_v47, %v1075_v48 }
 0x16d   : > { %v873_v26 = vpop.f32.mrf.mxu0  ;;  %v1078_v58 = vpop.f32.mrf.mxu1 }
 0x16e   : > { %v1662_v55 = vpack.c.bf16 %v1122_v49, %v1122_v49  ;;  %v1111_v56 = vadd.f32 %v2351_v61, %v1092_v50  ;;  %v888_v57 = vmax.f32 %v683_v52, %v873_v26 }
 0x16f   : > { %v875_v59 = vpop.f32.mrf.mxu0  ;;  %v1080_v63 = vpop.f32.mrf.mxu1 }
 0x170   : > { %1183 = vst.msk [vmem:[%s2359_s12 + $0x24] sm:$0xf] %vm1173_vm2, %v1662_v55  ;;  %v1123_v60 = vmax.f32 %v1111_v56, 0.0  ;;  %v1093_v62 = vmax.f32 %v888_v57, %v1078_v58 }
 0x172   : > { %v1663_v53 = vpack.c.bf16 %v1123_v60, %v1123_v60  ;;  %v1112_v54 = vadd.f32 %v2351_v61, %v1093_v62 }
 0x174   : > { %1184 = vst.msk [vmem:[%s2359_s12 + $0x28] sm:$0xf] %vm1173_vm2, %v1663_v53  ;;  %v1124_v29 = vmax.f32 %v1112_v54, 0.0  ;;  %1192 = sbr.rel (!%p1969_p4) target bundleno = 438 (0x1b6), region = 36 }
 0x176   : > { %v1664_v30 = vpack.c.bf16 %v1124_v29, %v1124_v29 }
 0x178   : > { %1185 = vst.msk [vmem:[%s2359_s12 + $0x2c] sm:$0xf] %vm1173_vm2, %v1664_v30 }
 0x179   : > { %s2482_s25 = smov (!%p1195_p8, %s1194_s25), 12 }
 0x17a   : > { %s1640_s29 = sshll.u32 %s2482_s25, 6 }
 0x17b   : > { %p1643_p9 = scmp.eq.s32.totalorder %s1640_s29, 0 }
 0x17c   : > { %1831 = sdivrem.u32 (!%p1643_p9), %s2482_s25, 12 }
 0x17d   : > { %1203 = sbr.rel (%p1643_p9) target bundleno = 438 (0x1b6), region = 40 }
 0x185   : > { %s2424_s20 = spop.drf %1831 }
 0x186   : > { %p1644_p10 = scmp.le.s32.totalorder %s2424_s20, 0 }
 0x187   : > { %s2475_s15 = smov (!%p1644_p10), %s2418_s9  ;;  %s2476_s8 = smov (!%p1644_p10), %s2359_s12 }
 0x188   : > { %1404 = sbr.rel (%p1644_p10) target bundleno = 413 (0x19d), region = 115  ;;  %s2433_s30 = smov (!%p1644_p10), 0  }
 0x189   : > { %s2435_s4 = smov (!%p1644_p10), 0  }
 0x18d LB: >> { %v1221_v61 = vld [vmem:[%s1897_s8] sm:$0xf]  ;;  %v1223_v0 = vld [vmem:[%s1897_s8 + $0x4] sm:$0xf]  ;;  %v1225_v2 = vld [vmem:[%s1897_s8 + $0x8] sm:$0xf]  ;;  %s1905_s4 = sphi %s2435_s4, %s1215_s4   ;;  %s1901_s30 = sphi %s2433_s30, %s2477_s30   ;;  %s1897_s8 = sphi %s2476_s8, %s1250_s8   ;;  %s1893_s15 = sphi %s2475_s15, %s1251_s15  }
 0x18e   : >> { %1222 = vst [vmem:[%s1893_s15] sm:$0xf] %v1221_v61  ;;  %1224 = vst [vmem:[%s1893_s15 + $0x4] sm:$0xf] %v1223_v0  ;;  %v1227_v3 = vld [vmem:[%s1897_s8 + $0xc] sm:$0xf]  ;;  %s1245_s5 = sadd.s32 1, %s1901_s30 }
 0x18f   : >> { %1226 = vst [vmem:[%s1893_s15 + $0x8] sm:$0xf] %v1225_v2  ;;  %v1229_v4 = vld [vmem:[%s1897_s8 + $0x10] sm:$0xf]  ;;  %v1231_v5 = vld [vmem:[%s1897_s8 + $0x14] sm:$0xf]  ;;  %p1246_p11 = scmp.ge.s32.totalorder %s1245_s5, %s2424_s20 }
 0x190   : >> { %1228 = vst [vmem:[%s1893_s15 + $0xc] sm:$0xf] %v1227_v3  ;;  %1230 = vst [vmem:[%s1893_s15 + $0x10] sm:$0xf] %v1229_v4  ;;  %v1233_v6 = vld [vmem:[%s1897_s8 + $0x18] sm:$0xf] }
 0x191   : >> { %1232 = vst [vmem:[%s1893_s15 + $0x14] sm:$0xf] %v1231_v5  ;;  %v1235_v7 = vld [vmem:[%s1897_s8 + $0x1c] sm:$0xf]  ;;  %v1237_v8 = vld [vmem:[%s1897_s8 + $0x20] sm:$0xf] }
 0x192   : >> { %1234 = vst [vmem:[%s1893_s15 + $0x18] sm:$0xf] %v1233_v6  ;;  %1236 = vst [vmem:[%s1893_s15 + $0x1c] sm:$0xf] %v1235_v7  ;;  %v1239_v33 = vld [vmem:[%s1897_s8 + $0x24] sm:$0xf] }
 0x193   : >> { %1238 = vst [vmem:[%s1893_s15 + $0x20] sm:$0xf] %v1237_v8  ;;  %v1241_v34 = vld [vmem:[%s1897_s8 + $0x28] sm:$0xf]  ;;  %v1243_v9 = vld [vmem:[%s1897_s8 + $0x2c] sm:$0xf] }
 0x194   : >> { %1240 = vst [vmem:[%s1893_s15 + $0x24] sm:$0xf] %v1239_v33  ;;  %1242 = vst [vmem:[%s1893_s15 + $0x28] sm:$0xf] %v1241_v34  ;;  %s2484_s5 = smov (%p1246_p11, %s1245_s5), 0  ;;  %s1215_s4 = sadd.s32 1, %s1905_s4  }
 0x195   : >> { %1244 = vst [vmem:[%s1893_s15 + $0x2c] sm:$0xf] %v1243_v9  ;;  %s1248_s6 = smul.u32 48, %s2484_s5  ;;  %p1214_p12 = scmp.ge.s32.totalorder %s1215_s4, %s2424_s20 }
 0x196   : >> { %s2477_s30 = smov %s2484_s5 }
 0x197   : >> { %s1250_s8 = scalar_lea.vmem %s2359_s12, %s1248_s6 [#allocation2]   ;;  %s1251_s15 = scalar_lea.vmem %s2418_s9, %s1248_s6  }
 0x198   : > { %1217 = sbr.rel (!%p1214_p12) target bundleno = 397 (0x18d), region = 121 }
 0x19d PF: > { %1833 = sdivrem.u32 %s2482_s25, 12 }
 0x19e   : > { %s1645_s7 = smul.u32 48, %s2424_s20 }
 0x1a0   : > { %s1256_s10 = scalar_lea.vmem %s2359_s12, %s1645_s7 [#allocation2]   ;;  %s1258_s11 = scalar_lea.vmem %s2418_s9, %s1645_s7  }
 0x1a6   : > { %s1834_s14 = spop.drf %1833 }
 0x1a7   : > { %p1647_p13 = scmp.le.s32.totalorder %s1834_s14, 0 }
 0x1a8   : > { %s1907_s17 = smov (!%p1647_p13), %s1258_s11   ;;  %s1911_s18 = smov (!%p1647_p13), %s1256_s10  }
 0x1a9   : > { %1418 = sbr.rel (%p1647_p13) target bundleno = 438 (0x1b6), region = 126  ;;  %s1915_s21 = smov (!%p1647_p13), 0  }
 0x1aa   : > { %s1919_s22 = smov (!%p1647_p13), 0  }
 0x1ae LB: >> { %v1268_v1 = vld [vmem:[%s1913_s18] sm:$0xf]  ;;  %s1270_s23 = sadd.s32 1, %s1917_s21  ;;  %s1262_s22 = sadd.s32 1, %s1921_s22   ;;  %s1921_s22 = sphi %s1919_s22, %s1262_s22   ;;  %s1917_s21 = sphi %s1915_s21, %s1916_s21   ;;  %s1913_s18 = sphi %s1911_s18, %s1275_s18   ;;  %s1909_s17 = sphi %s1907_s17, %s1276_s17  }
 0x1af   : >> { %1269 = vst [vmem:[%s1909_s17] sm:$0xf] %v1268_v1  ;;  %p1271_p0 = scmp.ge.s32.totalorder %s1270_s23, %s1834_s14  ;;  %p1261_p1 = scmp.ge.s32.totalorder %s1262_s22, %s1834_s14 }
 0x1b1   : >> { %s2486_s23 = smov (%p1271_p0, %s1270_s23), 0  ;;  %1264 = sbr.rel (!%p1261_p1) target bundleno = 430 (0x1ae), region = 132 }
 0x1b2   : >> { %s1648_s24 = sshll.u32 %s2486_s23, 2  ;;  %s1916_s21 = smov %s2486_s23  }
 0x1b3   : >> { %s1275_s18 = scalar_lea.vmem %s1256_s10, %s1648_s24 [#allocation2]   ;;  %s1276_s17 = scalar_lea.vmem %s1258_s11, %s1648_s24  }
 0x1b6 PF: > { %p10_p2 = scmp.ge.s32.totalorder %s1959_s16, 4   ;;  %s2478_s12 = smov %s1885_s13 }
 0x1b7   : > { %s2479_s13 = smov %s1967_s19  ;;  %s2480_s14 = smov %s1959_s16 }
 0x1b8   :  { %12 = sbr.rel (!%p10_p2) target bundleno = 2 (0x2), region = 143 }

// kernel: net_forward.5
= control target key start
LH: loop header
LB: loop body
LE: loop exit
PB: predicated region body
PF: predicated region fallthrough
CT: control target
= control target key end

     0   :  { %14 = vsyncpa [#allocation3], 0  ;;  %s14703_s0 = inlined_call_operand.vmem [shape: bf16[2,1,1296], index: 0, kind: input, shape index: {}]   ;;  %s14704_s1 = inlined_call_operand.vmem [shape: bf16[1296,900], index: 1, kind: input, shape index: {}]   ;;  %s14705_s2 = inlined_call_operand.vmem [shape: f32[1,900], index: 2, kind: input, shape index: {}]   ;;  %s14706_s3 = inlined_call_operand.vmem [shape: bf16[900,600], index: 3, kind: input, shape index: {}]   ;;  %s14707_s4 = inlined_call_operand.vmem [shape: f32[1,600], index: 4, kind: input, shape index: {}]   ;;  %s14708_s5 = inlined_call_operand.vmem [shape: bf16[600,300], index: 5, kind: input, shape index: {}]   ;;  %s14709_s6 = inlined_call_operand.vmem [shape: f32[1,300], index: 6, kind: input, shape index: {}]   ;;  %s14710_s7 = inlined_call_operand.vmem [shape: bf16[300,2], index: 7, kind: input, shape index: {}]   ;;  %s14711_s8 = inlined_call_operand.vmem [shape: f32[1,2], index: 8, kind: input, shape index: {}]   ;;  %s14712_s9 = inlined_call_operand.hbm [shape: f32[2,1,2], index: 9, kind: output, shape index: {}]  }
   0x1   :  { %16 = vsyncpa [#allocation3 + $0x1], 0  ;;  %s11028_s30 = smov 0   ;;  %s11030_s10 = smov 0  }
   0x2   :  { %s11032_s11 = smov 0   ;;  %s11034_s12 = smov 0  }
   0x3 LB: > { %s11049_s13 = sadd.s32 4294967295, %s10971_s12   ;;  %s9041_s14 = sadd.s32 4294967294, %s10971_s12   ;;  %s10971_s12 = sphi %s11034_s12, %s14718_s12   ;;  %s10967_s11 = sphi %s11032_s11, %s14717_s11   ;;  %s10963_s10 = sphi %s11030_s10, %s14716_s10   ;;  %s10959_s30 = sphi %s11028_s30, %s14715_s30  }
   0x4   : > { %s11053_s15 = sadd.s32 1, %s10971_s12   ;;  %s223_s16 = sadd.s32 1, %s10967_s11 }
   0x5   : > { %s220_s17 = ssub.s32 %s10971_s12, %s11053_s15  ;;  %p233_p0 = scmp.ne.s32.totalorder %s10967_s11, %s10963_s10 }
   0x6   : > { %p221_p1 = scmp.eq.s32.totalorder %s220_s17, 0  ;;  %p234_p2 = scmp.eq.s32.totalorder %s11049_s13, 1 }
   0x7   : > { %p239_p3 = scmp.ne.s32.totalorder %s10963_s10, %s10959_s30  ;;  %p240_p4 = scmp.eq.s32.totalorder %s9041_s14, 1 }
   0x8   : > { %s11064_s18 = scalar_select %p221_p1, %s10967_s11, %s223_s16  }
   0x9   : > { %p11066_p5 = por %p234_p2, %p233_p0  ;;  %p11070_p6 = por %p240_p4, %p239_p3 }
   0xa   : > { %p9044_p7 = scmp.ge.s32.totalorder %s10971_s12, 1  ;;  %p289_p8 = scmp.lt.s32.totalorder %s10971_s12, 3 }
   0xc   : > { %p290_p9 = pnand %p9044_p7, %p289_p8 }
   0xd   : > { %p323_p10 = scmp.lt.s32.totalorder (!%p290_p9), %s11049_s13, 1  ;;  %s321_s26 = sand.u32 (!%p290_p9), 1, %s10963_s10  }
   0xe   : > { %293 = sbr.rel (%p290_p9) target bundleno = 1735 (0x6c7), region = 56  ;;  %s322_s16 = scalar_lea.vmem (!%p290_p9), [#allocation2], %s321_s26 }
   0xf   : > { %s8986_s17 = sshll.u32 (!%p290_p9), %s322_s16, 4  ;;  %s10977_s24 = smov (!%p290_p9), [#allocation2]   ;;  %s14664_s17 = int_to_ptr.vmem [resolvable:$true] %s8986_s17 }
  0x10   : > { %s10915_s25 = sshll.u32 (!%p290_p9), %s10977_s24, 4  ;;  %s10916_s25 = int_to_ptr.vmem [resolvable:$false] %s10915_s25 }
  0x11   : > { %s10917_s27 = scalar_lea.vmem (!%p290_p9), %s10916_s25, 32  ;;  %p10918_p0 = scmp.lt.s32.totalorder (!%p290_p9), %s14664_s17, %s10916_s25 }
  0x13   : > { %v386_v0 = vld [vmem:[%s14704_s1 + $0x1c0] sm:$0xff]  ;;  %s11132_s21 = scalar_select %p323_p10, %s11049_s13, 1  ;;  %v10973_v32 = vmov 1966171168   ;;  %v985_v34 = vlaneseq  ;;  %vm4344_vm0 = vcmask 130048   ;;  %vm7187_vm1 = vcmask 1041408  }
  0x14   : > { %v390_v1 = vld [vmem:[%s14704_s1 + $0x1e0] sm:$0xff]  ;;  %v983_v33 = vunpack.c.l.s4 %v10973_v32  ;;  %vm7183_vm2 = vcmask 31744   ;;  %vm8472_vm3 = vcmask 1043456   ;;  %vm10976_vm4 = vmmov 0  }
  0x15   : > { %v514_v2 = vld [vmem:[%s14704_s1 + $0x5c0] sm:$0xff]  ;;  %v9103_v3 = vcombine.high %v386_v0, %v390_v1  ;;  %v9102_v5 = vcombine.low %v386_v0, %v390_v1  ;;  %s10297_s14 = smul.u32 11, %s11132_s21  ;;  %v11147_v44 = vshrl.u32 %v985_v34, 7  ;;  %vm8468_vm5 = vcmask 719872   ;;  %s10911_s21 = scalar_lea.vmem %s14664_s17, 16 }
  0x16   : > { %v518_v4 = vld [vmem:[%s14704_s1 + $0x5e0] sm:$0xff]  ;;  %v984_v43 = vunpack.c.0.s8 %v983_v33  ;;  %vm8887_vm6 = vcmask 1045504   ;;  %vm8883_vm7 = vcmask 359424   ;;  %vm8971_vm8 = vcmask 8192   ;;  %p10912_p11 = scmp.ne.s32.totalorder %s14664_s17, %s10911_s21  ;;  %p10919_p1 = scmp.lt.s32.totalorder %s10917_s27, %s10911_s21 }
  0x17   : > { %v378_v6 = vld [vmem:[%s14704_s1 + $0x180] sm:$0xff]  ;;  %v9231_v8 = vcombine.high %v514_v2, %v518_v4  ;;  %v9230_v9 = vcombine.low %v514_v2, %v518_v4  ;;  %4348 = vmatprep.subr.bf16.mxu0 %v9103_v3  ;;  %s326_s29 = scalar_lea.vmem %s14703_s0, %s10297_s14 }
  0x18   : > { %v382_v7 = vld [vmem:[%s14704_s1 + $0x1a0] sm:$0xff]  ;;  %4349 = vmatpush1.bf16.msra.mxu0 %v9102_v5  ;;  %v11165_v53 = vsub.s32 %v984_v43, %v11147_v44  ;;  %v11173_v60 = vld.sshfl [vmem:[%s326_s29 + $0x8] sm:$0x13 pattern:$0x75316420]  ;;  %p10913_p12 = pnand %p10912_p11, %p11066_p5  ;;  %p10920_p2 = por %p10919_p1, %p10918_p0 }
  0x19   : > { %v9095_v10 = vcombine.high %v378_v6, %v382_v7  ;;  %v506_v11 = vld [vmem:[%s14704_s1 + $0x580] sm:$0xff]  ;;  %4389 = vmatprep.subr.bf16.mxu1 %v9231_v8  ;;  %v9094_v18 = vcombine.low %v378_v6, %v382_v7 }
  0x1a   : > { %v510_v12 = vld [vmem:[%s14704_s1 + $0x5a0] sm:$0xff]  ;;  %4390 = vmatpush1.bf16.msra.mxu1 %v9230_v9  ;;  %v11186_v1 = vrot.slane %v11173_v60, %v11165_v53  ;;  %p10914_p13 = pneg %p10913_p12 }
  0x1b   : > { %v370_v13 = vld [vmem:[%s14704_s1 + $0x140] sm:$0xff]  ;;  %v9223_v14 = vcombine.high %v506_v11, %v510_v12  ;;  %4350 = vmatprep.subr.bf16.mxu0 %v9095_v10  ;;  %v9222_v19 = vcombine.low %v506_v11, %v510_v12 }
  0x1c   : > { %v374_v15 = vld [vmem:[%s14704_s1 + $0x160] sm:$0xff]  ;;  %4351 = vmatpush1.bf16.msra.mxu0 %v9094_v18  ;;  %p10921_p3 = pnand %p10920_p2, %p10914_p13 }
  0x1d   : > { %v498_v16 = vld [vmem:[%s14704_s1 + $0x540] sm:$0xff]  ;;  %v9087_v20 = vcombine.high %v370_v13, %v374_v15  ;;  %4391 = vmatprep.subr.bf16.mxu1 %v9223_v14  ;;  %v9086_v26 = vcombine.low %v370_v13, %v374_v15 }
  0x1e   : > { %v502_v17 = vld [vmem:[%s14704_s1 + $0x560] sm:$0xff]  ;;  %4392 = vmatpush1.bf16.msra.mxu1 %v9222_v19 }
  0x1f   : > { %v9215_v21 = vcombine.high %v498_v16, %v502_v17  ;;  %v362_v22 = vld [vmem:[%s14704_s1 + $0x100] sm:$0xff]  ;;  %4352 = vmatprep.subr.bf16.mxu0 %v9087_v20  ;;  %v9214_v27 = vcombine.low %v498_v16, %v502_v17 }
  0x20   : > { %v366_v23 = vld [vmem:[%s14704_s1 + $0x120] sm:$0xff]  ;;  %4353 = vmatpush1.bf16.msra.mxu0 %v9086_v26 }
  0x21   : > { %v490_v24 = vld [vmem:[%s14704_s1 + $0x500] sm:$0xff]  ;;  %v9079_v28 = vcombine.high %v362_v22, %v366_v23  ;;  %4393 = vmatprep.subr.bf16.mxu1 %v9215_v21  ;;  %v9078_v37 = vcombine.low %v362_v22, %v366_v23 }
  0x22   : > { %v494_v25 = vld [vmem:[%s14704_s1 + $0x520] sm:$0xff]  ;;  %4394 = vmatpush1.bf16.msra.mxu1 %v9214_v27 }
  0x23   : > { %v9207_v29 = vcombine.high %v490_v24, %v494_v25  ;;  %v354_v30 = vld [vmem:[%s14704_s1 + $0xc0] sm:$0xff]  ;;  %4354 = vmatprep.subr.bf16.mxu0 %v9079_v28  ;;  %v9206_v38 = vcombine.low %v490_v24, %v494_v25 }
  0x24   : > { %v358_v31 = vld [vmem:[%s14704_s1 + $0xe0] sm:$0xff]  ;;  %4355 = vmatpush1.bf16.msra.mxu0 %v9078_v37 }
  0x25   : > { %v482_v35 = vld [vmem:[%s14704_s1 + $0x4c0] sm:$0xff]  ;;  %v9071_v39 = vcombine.high %v354_v30, %v358_v31  ;;  %4395 = vmatprep.subr.bf16.mxu1 %v9207_v29  ;;  %v9070_v47 = vcombine.low %v354_v30, %v358_v31 }
  0x26   : > { %v486_v36 = vld [vmem:[%s14704_s1 + $0x4e0] sm:$0xff]  ;;  %4396 = vmatpush1.bf16.msra.mxu1 %v9206_v38 }
  0x27   : > { %v9199_v40 = vcombine.high %v482_v35, %v486_v36  ;;  %v346_v41 = vld [vmem:[%s14704_s1 + $0x80] sm:$0xff]  ;;  %4356 = vmatprep.subr.bf16.mxu0 %v9071_v39  ;;  %v9198_v48 = vcombine.low %v482_v35, %v486_v36 }
  0x28   : > { %v350_v42 = vld [vmem:[%s14704_s1 + $0xa0] sm:$0xff]  ;;  %4357 = vmatpush1.bf16.msra.mxu0 %v9070_v47 }
  0x29   : > { %v474_v45 = vld [vmem:[%s14704_s1 + $0x480] sm:$0xff]  ;;  %v9063_v49 = vcombine.high %v346_v41, %v350_v42  ;;  %4397 = vmatprep.subr.bf16.mxu1 %v9199_v40  ;;  %v9062_v56 = vcombine.low %v346_v41, %v350_v42 }
  0x2a   : > { %v478_v46 = vld [vmem:[%s14704_s1 + $0x4a0] sm:$0xff]  ;;  %4398 = vmatpush1.bf16.msra.mxu1 %v9198_v48 }
  0x2b   : > { %v9191_v50 = vcombine.high %v474_v45, %v478_v46  ;;  %v338_v51 = vld [vmem:[%s14704_s1 + $0x40] sm:$0xff]  ;;  %4358 = vmatprep.subr.bf16.mxu0 %v9063_v49  ;;  %v9190_v57 = vcombine.low %v474_v45, %v478_v46 }
  0x2c   : > { %v342_v52 = vld [vmem:[%s14704_s1 + $0x60] sm:$0xff]  ;;  %4359 = vmatpush1.bf16.msra.mxu0 %v9062_v56 }
  0x2d   : > { %v466_v54 = vld [vmem:[%s14704_s1 + $0x440] sm:$0xff]  ;;  %v9055_v58 = vcombine.high %v338_v51, %v342_v52  ;;  %4399 = vmatprep.subr.bf16.mxu1 %v9191_v50  ;;  %v9054_v4 = vcombine.low %v338_v51, %v342_v52 }
  0x2e   : > { %v470_v55 = vld [vmem:[%s14704_s1 + $0x460] sm:$0xff]  ;;  %4400 = vmatpush1.bf16.msra.mxu1 %v9190_v57 }
  0x2f   : > { %v328_v59 = vld [vmem:[%s326_s29] sm:$0xff]  ;;  %v9183_v61 = vcombine.high %v466_v54, %v470_v55  ;;  %4360 = vmatprep.subr.bf16.mxu0 %v9055_v58  ;;  %v9182_v6 = vcombine.low %v466_v54, %v470_v55  ;;  %s10125_s29 = sshll.u32 %s11049_s13, 4  ;;  %s8974_s13 = scalar_lea.sflag [#allocation3], %s321_s26 }
  0x30   : > { %v330_v62 = vld [vmem:[%s14704_s1] sm:$0xff]  ;;  %v11182_v0 = vrot.slane %v328_v59, %v11165_v53  ;;  %4361 = vmatpush1.bf16.msra.mxu0 %v9054_v4  ;;  %v981_v26 = vcombine.high %v328_v59, %v328_v59  ;;  %s14662_s14 = scalar_lea.hbm %s14712_s9, %s10125_s29 }
  0x31   : > { %v334_v63 = vld [vmem:[%s14704_s1 + $0x20] sm:$0xff]  ;;  %4401 = vmatprep.subr.bf16.mxu1 %v9183_v61 }
  0x32   : > { %v458_v2 = vld [vmem:[%s14704_s1 + $0x400] sm:$0xff]  ;;  %v996_v5 = vcombine.high %v11182_v0, %v11182_v0  ;;  %v9047_v7 = vcombine.high %v330_v62, %v334_v63  ;;  %v9046_v14 = vcombine.low %v330_v62, %v334_v63  ;;  %4402 = vmatpush1.bf16.msra.mxu1 %v9182_v6  ;;  %v11242_v35 = vrot.slane %v981_v26, %v11165_v53 }
  0x33   : > { %v462_v3 = vld [vmem:[%s14704_s1 + $0x420] sm:$0xff] }
  0x34   : > { %v9175_v8 = vcombine.high %v458_v2, %v462_v3  ;;  %v450_v9 = vld [vmem:[%s14704_s1 + $0x3c0] sm:$0xff]  ;;  %v11203_v11 = vrot.slane %v996_v5, %v11165_v53  ;;  %4362 = vmatprep.subr.bf16.mxu0 %v9047_v7  ;;  %v9174_v16 = vcombine.low %v458_v2, %v462_v3  ;;  %v11258_v41 = vrot.slane %v11242_v35, %v11165_v53 }
  0x35   : > { %v454_v10 = vld [vmem:[%s14704_s1 + $0x3e0] sm:$0xff]  ;;  %4363 = vmatpush1.bf16.msra.mxu0 %v9046_v14 }
  0x36   : > { %v578_v12 = vld [vmem:[%s14704_s1 + $0x7c0] sm:$0xff]  ;;  %4380 = vmatprep.mubr.bf16.mxu0 %v11203_v11  ;;  %v11214_v15 = vcombine.high %v11203_v11, %v11203_v11  ;;  %v9167_v17 = vcombine.high %v450_v9, %v454_v10  ;;  %4403 = vmatprep.subr.bf16.mxu1 %v9175_v8  ;;  %v9166_v23 = vcombine.low %v450_v9, %v454_v10 }
  0x37   : > { %v582_v13 = vld [vmem:[%s14704_s1 + $0x7e0] sm:$0xff]  ;;  %4404 = vmatpush1.bf16.msra.mxu1 %v9174_v16 }
  0x38   : > { %v9295_v18 = vcombine.high %v578_v12, %v582_v13  ;;  %v442_v19 = vld [vmem:[%s14704_s1 + $0x380] sm:$0xff]  ;;  %4421 = vmatprep.mubr.bf16.mxu1 %v11214_v15  ;;  %4364 = vmatprep.subr.bf16.mxu0 %v9167_v17  ;;  %v9294_v24 = vcombine.low %v578_v12, %v582_v13 }
  0x39   : > { %v446_v20 = vld [vmem:[%s14704_s1 + $0x3a0] sm:$0xff]  ;;  %4365 = vmatpush2.bf16.msra.mxu0 %v9166_v23 }
  0x3a   : > { %v570_v21 = vld [vmem:[%s14704_s1 + $0x780] sm:$0xff]  ;;  %v9159_v25 = vcombine.high %v442_v19, %v446_v20  ;;  %4405 = vmatprep.subr.bf16.mxu1 %v9295_v18  ;;  %v9158_v32 = vcombine.low %v442_v19, %v446_v20 }
  0x3b   : > { %v574_v22 = vld [vmem:[%s14704_s1 + $0x7a0] sm:$0xff]  ;;  %4406 = vmatpush2.bf16.msra.mxu1 %v9294_v24 }
  0x3c   : > { %v9287_v27 = vcombine.high %v570_v21, %v574_v22  ;;  %v434_v28 = vld [vmem:[%s14704_s1 + $0x340] sm:$0xff]  ;;  %4366 = vmatprep.subr.bf16.mxu0 %v9159_v25  ;;  %v9286_v33 = vcombine.low %v570_v21, %v574_v22  ;;  %v997_v25 = vcombine.high %v11242_v35, %v11242_v35 }
  0x3d   : > { %v438_v29 = vld [vmem:[%s14704_s1 + $0x360] sm:$0xff]  ;;  %4367 = vmatpush2.bf16.msra.mxu0 %v9158_v32 }
  0x3e   : > { %v562_v30 = vld [vmem:[%s14704_s1 + $0x740] sm:$0xff]  ;;  %v9151_v34 = vcombine.high %v434_v28, %v438_v29  ;;  %4407 = vmatprep.subr.bf16.mxu1 %v9287_v27  ;;  %v9150_v42 = vcombine.low %v434_v28, %v438_v29  ;;  %v11324_v27 = vrot.slane %v11182_v0, %v11165_v53 }
  0x3f   : > { %v566_v31 = vld [vmem:[%s14704_s1 + $0x760] sm:$0xff]  ;;  %4408 = vmatpush2.bf16.msra.mxu1 %v9286_v33 }
  0x40   : > { %v9279_v36 = vcombine.high %v562_v30, %v566_v31  ;;  %v426_v37 = vld [vmem:[%s14704_s1 + $0x300] sm:$0xff]  ;;  %4368 = vmatprep.subr.bf16.mxu0 %v9151_v34  ;;  %v9278_v43 = vcombine.low %v562_v30, %v566_v31  ;;  %v11339_v34 = vrot.slane %v997_v25, %v11165_v53  ;;  %v11343_v35 = vcombine.high %v11324_v27, %v11324_v27 }
  0x41   : > { %v430_v38 = vld [vmem:[%s14704_s1 + $0x320] sm:$0xff]  ;;  %4369 = vmatpush2.bf16.msra.mxu0 %v9150_v42  ;;  %v1037_v42 = vcombine.high %v11173_v60, %v11173_v60 }
  0x42   : > { %v554_v39 = vld [vmem:[%s14704_s1 + $0x700] sm:$0xff]  ;;  %v9143_v45 = vcombine.high %v426_v37, %v430_v38  ;;  %4409 = vmatprep.subr.bf16.mxu1 %v9279_v36  ;;  %v9142_v51 = vcombine.low %v426_v37, %v430_v38 }
  0x43   : > { %v558_v40 = vld [vmem:[%s14704_s1 + $0x720] sm:$0xff]  ;;  %4410 = vmatpush2.bf16.msra.mxu1 %v9278_v43 }
  0x44   : > { %v9271_v46 = vcombine.high %v554_v39, %v558_v40  ;;  %v418_v47 = vld [vmem:[%s14704_s1 + $0x2c0] sm:$0xff]  ;;  %4370 = vmatprep.subr.bf16.mxu0 %v9143_v45  ;;  %v9270_v52 = vcombine.low %v554_v39, %v558_v40 }
  0x45   : > { %v422_v48 = vld [vmem:[%s14704_s1 + $0x2e0] sm:$0xff]  ;;  %4371 = vmatpush2.bf16.msra.mxu0 %v9142_v51 }
  0x46   : > { %v546_v49 = vld [vmem:[%s14704_s1 + $0x6c0] sm:$0xff]  ;;  %v9135_v54 = vcombine.high %v418_v47, %v422_v48  ;;  %4411 = vmatprep.subr.bf16.mxu1 %v9271_v46  ;;  %v9134_v61 = vcombine.low %v418_v47, %v422_v48  ;;  %v11362_v47 = vcombine.high %v11339_v34, %v11339_v34  ;;  %v11365_v48 = vrot.slane %v1037_v42, %v11165_v53 }
  0x47   : > { %v550_v50 = vld [vmem:[%s14704_s1 + $0x6e0] sm:$0xff]  ;;  %4412 = vmatpush2.bf16.msra.mxu1 %v9270_v52 }
  0x48   : > { %v9263_v55 = vcombine.high %v546_v49, %v550_v50  ;;  %v410_v56 = vld [vmem:[%s14704_s1 + $0x280] sm:$0xff]  ;;  %4372 = vmatprep.subr.bf16.mxu0 %v9135_v54  ;;  %v9262_v62 = vcombine.low %v546_v49, %v550_v50 }
  0x49   : > { %v414_v57 = vld [vmem:[%s14704_s1 + $0x2a0] sm:$0xff]  ;;  %4373 = vmatpush2.bf16.msra.mxu0 %v9134_v61 }
  0x4a   : > { %v538_v58 = vld [vmem:[%s14704_s1 + $0x680] sm:$0xff]  ;;  %v9127_v63 = vcombine.high %v410_v56, %v414_v57  ;;  %4413 = vmatprep.subr.bf16.mxu1 %v9263_v55  ;;  %v9126_v7 = vcombine.low %v410_v56, %v414_v57 }
  0x4b   : > { %v542_v59 = vld [vmem:[%s14704_s1 + $0x6a0] sm:$0xff]  ;;  %4414 = vmatpush2.bf16.msra.mxu1 %v9262_v62 }
  0x4c   : > { %v9255_v2 = vcombine.high %v538_v58, %v542_v59  ;;  %v402_v3 = vld [vmem:[%s14704_s1 + $0x240] sm:$0xff]  ;;  %4374 = vmatprep.subr.bf16.mxu0 %v9127_v63  ;;  %v9254_v8 = vcombine.low %v538_v58, %v542_v59 }
  0x4d   : > { %v406_v4 = vld [vmem:[%s14704_s1 + $0x260] sm:$0xff]  ;;  %4375 = vmatpush2.bf16.msra.mxu0 %v9126_v7 }
  0x4e   : > { %v530_v5 = vld [vmem:[%s14704_s1 + $0x640] sm:$0xff]  ;;  %v9119_v9 = vcombine.high %v402_v3, %v406_v4  ;;  %4415 = vmatprep.subr.bf16.mxu1 %v9255_v2  ;;  %v9118_v17 = vcombine.low %v402_v3, %v406_v4 }
  0x4f   : > { %v534_v6 = vld [vmem:[%s14704_s1 + $0x660] sm:$0xff]  ;;  %4416 = vmatpush2.bf16.msra.mxu1 %v9254_v8 }
  0x50   : > { %v9247_v10 = vcombine.high %v530_v5, %v534_v6  ;;  %v394_v12 = vld [vmem:[%s14704_s1 + $0x200] sm:$0xff]  ;;  %4376 = vmatprep.subr.bf16.mxu0 %v9119_v9  ;;  %v9246_v18 = vcombine.low %v530_v5, %v534_v6 }
  0x51   : > { %v398_v13 = vld [vmem:[%s14704_s1 + $0x220] sm:$0xff]  ;;  %4377 = vmatpush2.bf16.msra.mxu0 %v9118_v17 }
  0x52   : > { %v522_v14 = vld [vmem:[%s14704_s1 + $0x600] sm:$0xff]  ;;  %v9111_v19 = vcombine.high %v394_v12, %v398_v13  ;;  %4417 = vmatprep.subr.bf16.mxu1 %v9247_v10  ;;  %v9110_v26 = vcombine.low %v394_v12, %v398_v13 }
  0x53   : > { %v526_v16 = vld [vmem:[%s14704_s1 + $0x620] sm:$0xff]  ;;  %4418 = vmatpush2.bf16.msra.mxu1 %v9246_v18 }
  0x54   : > { %v9239_v20 = vcombine.high %v522_v14, %v526_v16  ;;  %v642_v21 = vld [vmem:[%s14704_s1 + $0x9c0] sm:$0xff]  ;;  %4378 = vmatprep.subr.bf16.mxu0 %v9111_v19  ;;  %v9238_v28 = vcombine.low %v522_v14, %v526_v16 }
  0x55   : > { %v646_v22 = vld [vmem:[%s14704_s1 + $0x9e0] sm:$0xff]  ;;  %4379 = vmatpush2.bf16.msra.mxu0 %v9110_v26 }
  0x56   : > { %v770_v23 = vld [vmem:[%s14704_s1 + $0xdc0] sm:$0xff]  ;;  %v9359_v29 = vcombine.high %v642_v21, %v646_v22  ;;  %4419 = vmatprep.subr.bf16.mxu1 %v9239_v20  ;;  %v9358_v36 = vcombine.low %v642_v21, %v646_v22 }
  0x57   : > { %v774_v24 = vld [vmem:[%s14704_s1 + $0xde0] sm:$0xff]  ;;  %4420 = vmatpush2.bf16.msra.mxu1 %v9238_v28 }
  0x58   : > { %v9487_v30 = vcombine.high %v770_v23, %v774_v24  ;;  %v634_v31 = vld [vmem:[%s14704_s1 + $0x980] sm:$0xff]  ;;  %4430 = vmatprep.subr.bf16.mxu0 %v9359_v29  ;;  %v9486_v37 = vcombine.low %v770_v23, %v774_v24  ;;  %4381 = vmatmul.mubr.bf16.vlgmr.msra.gmra.mxu0 %v11324_v27 }
  0x59   : > { %v638_v32 = vld [vmem:[%s14704_s1 + $0x9a0] sm:$0xff]  ;;  %4431 = vmatpush1.bf16.msra.mxu0 %v9358_v36  ;;  %4462 = vmatprep.mubr.bf16.mxu0 %v11339_v34 }
  0x5a   : > { %v762_v33 = vld [vmem:[%s14704_s1 + $0xd80] sm:$0xff]  ;;  %v9351_v38 = vcombine.high %v634_v31, %v638_v32  ;;  %4471 = vmatprep.subr.bf16.mxu1 %v9487_v30  ;;  %4422 = vmatmul.mubr.bf16.vlgmr.msra.gmra.mxu1 %v11343_v35  ;;  %v9350_v60 = vcombine.low %v634_v31, %v638_v32 }
  0x5b   : > { %v766_v0 = vld [vmem:[%s14704_s1 + $0xda0] sm:$0xff]  ;;  %4472 = vmatpush1.bf16.msra.mxu1 %v9486_v37  ;;  %4503 = vmatprep.mubr.bf16.mxu1 %v11362_v47 }
  0x5c   : > { %v626_v39 = vld [vmem:[%s14704_s1 + $0x940] sm:$0xff]  ;;  %v9479_v43 = vcombine.high %v762_v33, %v766_v0  ;;  %4432 = vmatprep.subr.bf16.mxu0 %v9351_v38  ;;  %v9478_v49 = vcombine.low %v762_v33, %v766_v0 }
  0x5d   : > { %v630_v40 = vld [vmem:[%s14704_s1 + $0x960] sm:$0xff]  ;;  %4433 = vmatpush1.bf16.msra.mxu0 %v9350_v60 }
  0x5e   : > { %v754_v45 = vld [vmem:[%s14704_s1 + $0xd40] sm:$0xff]  ;;  %v9343_v50 = vcombine.high %v626_v39, %v630_v40  ;;  %4473 = vmatprep.subr.bf16.mxu1 %v9479_v43  ;;  %v9342_v56 = vcombine.low %v626_v39, %v630_v40 }
  0x5f   : > { %v758_v46 = vld [vmem:[%s14704_s1 + $0xd60] sm:$0xff]  ;;  %4474 = vmatpush1.bf16.msra.mxu1 %v9478_v49 }
  0x60   : > { %v618_v51 = vld [vmem:[%s14704_s1 + $0x900] sm:$0xff]  ;;  %v9471_v54 = vcombine.high %v754_v45, %v758_v46  ;;  %4434 = vmatprep.subr.bf16.mxu0 %v9343_v50  ;;  %v9470_v57 = vcombine.low %v754_v45, %v758_v46 }
  0x61   : > { %v622_v52 = vld [vmem:[%s14704_s1 + $0x920] sm:$0xff]  ;;  %4435 = vmatpush1.bf16.msra.mxu0 %v9342_v56 }
  0x62   : > { %v746_v53 = vld [vmem:[%s14704_s1 + $0xd00] sm:$0xff]  ;;  %v9335_v58 = vcombine.high %v618_v51, %v622_v52  ;;  %4475 = vmatprep.subr.bf16.mxu1 %v9471_v54  ;;  %v9334_v3 = vcombine.low %v618_v51, %v622_v52 }
  0x63   : > { %v750_v55 = vld [vmem:[%s14704_s1 + $0xd20] sm:$0xff]  ;;  %4476 = vmatpush1.bf16.msra.mxu1 %v9470_v57 }
  0x64   : > { %v610_v59 = vld [vmem:[%s14704_s1 + $0x8c0] sm:$0xff]  ;;  %v9463_v62 = vcombine.high %v746_v53, %v750_v55  ;;  %4436 = vmatprep.subr.bf16.mxu0 %v9335_v58  ;;  %v9462_v4 = vcombine.low %v746_v53, %v750_v55 }
  0x65   : > { %v614_v61 = vld [vmem:[%s14704_s1 + $0x8e0] sm:$0xff]  ;;  %4437 = vmatpush1.bf16.msra.mxu0 %v9334_v3 }
  0x66   : > { %v738_v63 = vld [vmem:[%s14704_s1 + $0xcc0] sm:$0xff]  ;;  %v9327_v5 = vcombine.high %v610_v59, %v614_v61  ;;  %4477 = vmatprep.subr.bf16.mxu1 %v9463_v62  ;;  %v9326_v12 = vcombine.low %v610_v59, %v614_v61 }
  0x67   : > { %v742_v2 = vld [vmem:[%s14704_s1 + $0xce0] sm:$0xff]  ;;  %4478 = vmatpush1.bf16.msra.mxu1 %v9462_v4 }
  0x68   : > { %v602_v6 = vld [vmem:[%s14704_s1 + $0x880] sm:$0xff]  ;;  %v9455_v8 = vcombine.high %v738_v63, %v742_v2  ;;  %4438 = vmatprep.subr.bf16.mxu0 %v9327_v5  ;;  %v9454_v13 = vcombine.low %v738_v63, %v742_v2 }
  0x69   : > { %v606_v7 = vld [vmem:[%s14704_s1 + $0x8a0] sm:$0xff]  ;;  %4439 = vmatpush1.bf16.msra.mxu0 %v9326_v12 }
  0x6a   : > { %v730_v9 = vld [vmem:[%s14704_s1 + $0xc80] sm:$0xff]  ;;  %v9319_v14 = vcombine.high %v602_v6, %v606_v7  ;;  %4479 = vmatprep.subr.bf16.mxu1 %v9455_v8  ;;  %v9318_v21 = vcombine.low %v602_v6, %v606_v7 }
  0x6b   : > { %v734_v10 = vld [vmem:[%s14704_s1 + $0xca0] sm:$0xff]  ;;  %4480 = vmatpush1.bf16.msra.mxu1 %v9454_v13 }
  0x6c   : > { %v594_v16 = vld [vmem:[%s14704_s1 + $0x840] sm:$0xff]  ;;  %v9447_v18 = vcombine.high %v730_v9, %v734_v10  ;;  %4440 = vmatprep.subr.bf16.mxu0 %v9319_v14  ;;  %v9446_v22 = vcombine.low %v730_v9, %v734_v10 }
  0x6d   : > { %v598_v17 = vld [vmem:[%s14704_s1 + $0x860] sm:$0xff]  ;;  %4441 = vmatpush1.bf16.msra.mxu0 %v9318_v21 }
  0x6e   : > { %v722_v19 = vld [vmem:[%s14704_s1 + $0xc40] sm:$0xff]  ;;  %v9311_v23 = vcombine.high %v594_v16, %v598_v17  ;;  %4481 = vmatprep.subr.bf16.mxu1 %v9447_v18  ;;  %v9310_v30 = vcombine.low %v594_v16, %v598_v17 }
  0x6f   : > { %v726_v20 = vld [vmem:[%s14704_s1 + $0xc60] sm:$0xff]  ;;  %4482 = vmatpush1.bf16.msra.mxu1 %v9446_v22 }
  0x70   : > { %v586_v24 = vld [vmem:[%s14704_s1 + $0x800] sm:$0xff]  ;;  %v9439_v26 = vcombine.high %v722_v19, %v726_v20  ;;  %4442 = vmatprep.subr.bf16.mxu0 %v9311_v23  ;;  %v9438_v31 = vcombine.low %v722_v19, %v726_v20 }
  0x71   : > { %v590_v25 = vld [vmem:[%s14704_s1 + $0x820] sm:$0xff]  ;;  %4443 = vmatpush1.bf16.msra.mxu0 %v9310_v30 }
  0x72   : > { %v714_v28 = vld [vmem:[%s14704_s1 + $0xc00] sm:$0xff]  ;;  %v9303_v32 = vcombine.high %v586_v24, %v590_v25  ;;  %4483 = vmatprep.subr.bf16.mxu1 %v9439_v26  ;;  %v9302_v39 = vcombine.low %v586_v24, %v590_v25 }
  0x73   : > { %v718_v29 = vld [vmem:[%s14704_s1 + $0xc20] sm:$0xff]  ;;  %4484 = vmatpush1.bf16.msra.mxu1 %v9438_v31 }
  0x74   : > { %v706_v33 = vld [vmem:[%s14704_s1 + $0xbc0] sm:$0xff]  ;;  %v9431_v36 = vcombine.high %v714_v28, %v718_v29  ;;  %4444 = vmatprep.subr.bf16.mxu0 %v9303_v32  ;;  %v9430_v40 = vcombine.low %v714_v28, %v718_v29 }
  0x75   : > { %v710_v0 = vld [vmem:[%s14704_s1 + $0xbe0] sm:$0xff]  ;;  %4445 = vmatpush1.bf16.msra.mxu0 %v9302_v39 }
  0x76   : > { %v834_v37 = vld [vmem:[%s14704_s1 + $0xfc0] sm:$0xff]  ;;  %v9423_v42 = vcombine.high %v706_v33, %v710_v0  ;;  %4485 = vmatprep.subr.bf16.mxu1 %v9431_v36  ;;  %v9422_v50 = vcombine.low %v706_v33, %v710_v0 }
  0x77   : > { %v838_v38 = vld [vmem:[%s14704_s1 + $0xfe0] sm:$0xff]  ;;  %4486 = vmatpush1.bf16.msra.mxu1 %v9430_v40 }
  0x78   : > { %v698_v43 = vld [vmem:[%s14704_s1 + $0xb80] sm:$0xff]  ;;  %v9551_v46 = vcombine.high %v834_v37, %v838_v38  ;;  %4446 = vmatprep.subr.bf16.mxu0 %v9423_v42  ;;  %v9550_v51 = vcombine.low %v834_v37, %v838_v38 }
  0x79   : > { %v702_v45 = vld [vmem:[%s14704_s1 + $0xba0] sm:$0xff]  ;;  %4447 = vmatpush2.bf16.msra.mxu0 %v9422_v50 }
  0x7a   : > { %v826_v60 = vld [vmem:[%s14704_s1 + $0xf80] sm:$0xff]  ;;  %v9415_v52 = vcombine.high %v698_v43, %v702_v45  ;;  %4487 = vmatprep.subr.bf16.mxu1 %v9551_v46  ;;  %v9414_v58 = vcombine.low %v698_v43, %v702_v45 }
  0x7b   : > { %v830_v49 = vld [vmem:[%s14704_s1 + $0xfa0] sm:$0xff]  ;;  %4488 = vmatpush2.bf16.msra.mxu1 %v9550_v51 }
  0x7c   : > { %v690_v54 = vld [vmem:[%s14704_s1 + $0xb40] sm:$0xff]  ;;  %v9543_v55 = vcombine.high %v826_v60, %v830_v49  ;;  %4448 = vmatprep.subr.bf16.mxu0 %v9415_v52  ;;  %v9542_v59 = vcombine.low %v826_v60, %v830_v49 }
  0x7d   : > { %v694_v53 = vld [vmem:[%s14704_s1 + $0xb60] sm:$0xff]  ;;  %4449 = vmatpush2.bf16.msra.mxu0 %v9414_v58  ;;  %v387_v58 = vld [vmem:[%s14704_s1 + $0x1c8] sm:$0xff] }
  0x7e   : > { %v818_v56 = vld [vmem:[%s14704_s1 + $0xf40] sm:$0xff]  ;;  %v9407_v61 = vcombine.high %v690_v54, %v694_v53  ;;  %4489 = vmatprep.subr.bf16.mxu1 %v9543_v55  ;;  %v9406_v5 = vcombine.low %v690_v54, %v694_v53 }
  0x7f   : > { %v822_v57 = vld [vmem:[%s14704_s1 + $0xf60] sm:$0xff]  ;;  %4490 = vmatpush2.bf16.msra.mxu1 %v9542_v59  ;;  %v391_v59 = vld [vmem:[%s14704_s1 + $0x1e8] sm:$0xff] }
  0x80   : > { %v682_v62 = vld [vmem:[%s14704_s1 + $0xb00] sm:$0xff]  ;;  %v9535_v2 = vcombine.high %v818_v56, %v822_v57  ;;  %4450 = vmatprep.subr.bf16.mxu0 %v9407_v61  ;;  %v9534_v6 = vcombine.low %v818_v56, %v822_v57  ;;  %v11552_v61 = vcombine.high %v11258_v41, %v11258_v41 }
  0x81   : > { %v686_v63 = vld [vmem:[%s14704_s1 + $0xb20] sm:$0xff]  ;;  %4451 = vmatpush2.bf16.msra.mxu0 %v9406_v5 }
  0x82   : > { %v810_v3 = vld [vmem:[%s14704_s1 + $0xf00] sm:$0xff]  ;;  %v9399_v7 = vcombine.high %v682_v62, %v686_v63  ;;  %4491 = vmatprep.subr.bf16.mxu1 %v9535_v2  ;;  %v9398_v14 = vcombine.low %v682_v62, %v686_v63 }
  0x83   : > { %v814_v4 = vld [vmem:[%s14704_s1 + $0xf20] sm:$0xff]  ;;  %4492 = vmatpush2.bf16.msra.mxu1 %v9534_v6 }
  0x84   : > { %v674_v8 = vld [vmem:[%s14704_s1 + $0xac0] sm:$0xff]  ;;  %v9527_v10 = vcombine.high %v810_v3, %v814_v4  ;;  %4452 = vmatprep.subr.bf16.mxu0 %v9399_v7  ;;  %v9526_v16 = vcombine.low %v810_v3, %v814_v4  ;;  %v9105_v3 = vcombine.high %v387_v58, %v391_v59 }
  0x85   : > { %v678_v9 = vld [vmem:[%s14704_s1 + $0xae0] sm:$0xff]  ;;  %4453 = vmatpush2.bf16.msra.mxu0 %v9398_v14 }
  0x86   : > { %v802_v12 = vld [vmem:[%s14704_s1 + $0xec0] sm:$0xff]  ;;  %v9391_v17 = vcombine.high %v674_v8, %v678_v9  ;;  %4493 = vmatprep.subr.bf16.mxu1 %v9527_v10  ;;  %v9390_v23 = vcombine.low %v674_v8, %v678_v9  ;;  %v379_v8 = vld [vmem:[%s14704_s1 + $0x188] sm:$0xff]  ;;  %v10974_v10 = vmov 0  }
  0x87   : > { %v806_v13 = vld [vmem:[%s14704_s1 + $0xee0] sm:$0xff]  ;;  %4494 = vmatpush2.bf16.msra.mxu1 %v9526_v16  ;;  %v383_v9 = vld [vmem:[%s14704_s1 + $0x1a8] sm:$0xff]  ;;  %v11578_v16 = vcombine.high %v11186_v1, %v11186_v1 }
  0x88   : > { %v666_v18 = vld [vmem:[%s14704_s1 + $0xa80] sm:$0xff]  ;;  %v9519_v20 = vcombine.high %v802_v12, %v806_v13  ;;  %4454 = vmatprep.subr.bf16.mxu0 %v9391_v17  ;;  %v9518_v24 = vcombine.low %v802_v12, %v806_v13  ;;  %v9104_v17 = vcombine.low %v387_v58, %v391_v59 }
  0x89   : > { %v670_v19 = vld [vmem:[%s14704_s1 + $0xaa0] sm:$0xff]  ;;  %4455 = vmatpush2.bf16.msra.mxu0 %v9390_v23 }
  0x8a   : > { %v794_v21 = vld [vmem:[%s14704_s1 + $0xe80] sm:$0xff]  ;;  %v9383_v25 = vcombine.high %v666_v18, %v670_v19  ;;  %4495 = vmatprep.subr.bf16.mxu1 %v9519_v20  ;;  %v9382_v32 = vcombine.low %v666_v18, %v670_v19  ;;  %v371_v19 = vld [vmem:[%s14704_s1 + $0x148] sm:$0xff] }
  0x8b   : > { %v798_v22 = vld [vmem:[%s14704_s1 + $0xea0] sm:$0xff]  ;;  %4496 = vmatpush2.bf16.msra.mxu1 %v9518_v24  ;;  %v375_v20 = vld [vmem:[%s14704_s1 + $0x168] sm:$0xff] }
  0x8c   : > { %v658_v26 = vld [vmem:[%s14704_s1 + $0xa40] sm:$0xff]  ;;  %v9511_v29 = vcombine.high %v794_v21, %v798_v22  ;;  %4456 = vmatprep.subr.bf16.mxu0 %v9383_v25  ;;  %v9510_v33 = vcombine.low %v794_v21, %v798_v22  ;;  %v9097_v21 = vcombine.high %v379_v8, %v383_v9  ;;  %v9096_v25 = vcombine.low %v379_v8, %v383_v9 }
  0x8d   : > { %v662_v28 = vld [vmem:[%s14704_s1 + $0xa60] sm:$0xff]  ;;  %4457 = vmatpush2.bf16.msra.mxu0 %v9382_v32 }
  0x8e   : > { %v786_v30 = vld [vmem:[%s14704_s1 + $0xe40] sm:$0xff]  ;;  %v9375_v0 = vcombine.high %v658_v26, %v662_v28  ;;  %4497 = vmatprep.subr.bf16.mxu1 %v9511_v29  ;;  %v9374_v42 = vcombine.low %v658_v26, %v662_v28  ;;  %v363_v28 = vld [vmem:[%s14704_s1 + $0x108] sm:$0xff] }
  0x8f   : > { %v790_v31 = vld [vmem:[%s14704_s1 + $0xe60] sm:$0xff]  ;;  %4498 = vmatpush2.bf16.msra.mxu1 %v9510_v33  ;;  %v367_v29 = vld [vmem:[%s14704_s1 + $0x128] sm:$0xff] }
  0x90   : > { %v650_v36 = vld [vmem:[%s14704_s1 + $0xa00] sm:$0xff]  ;;  %v9503_v38 = vcombine.high %v786_v30, %v790_v31  ;;  %4458 = vmatprep.subr.bf16.mxu0 %v9375_v0  ;;  %v9502_v43 = vcombine.low %v786_v30, %v790_v31  ;;  %v9089_v30 = vcombine.high %v371_v19, %v375_v20  ;;  %v9088_v0 = vcombine.low %v371_v19, %v375_v20 }
  0x91   : > { %v654_v37 = vld [vmem:[%s14704_s1 + $0xa20] sm:$0xff]  ;;  %4459 = vmatpush2.bf16.msra.mxu0 %v9374_v42 }
  0x92   : > { %v778_v39 = vld [vmem:[%s14704_s1 + $0xe00] sm:$0xff]  ;;  %v9367_v45 = vcombine.high %v650_v36, %v654_v37  ;;  %4499 = vmatprep.subr.bf16.mxu1 %v9503_v38  ;;  %v9366_v52 = vcombine.low %v650_v36, %v654_v37  ;;  %v355_v37 = vld [vmem:[%s14704_s1 + $0xc8] sm:$0xff] }
  0x93   : > { %v782_v40 = vld [vmem:[%s14704_s1 + $0xe20] sm:$0xff]  ;;  %4500 = vmatpush2.bf16.msra.mxu1 %v9502_v43  ;;  %v359_v38 = vld [vmem:[%s14704_s1 + $0xe8] sm:$0xff] }
  0x94   : > { %v898_v46 = vld [vmem:[%s14704_s1 + $0x11c0] sm:$0xff]  ;;  %v9495_v49 = vcombine.high %v778_v39, %v782_v40  ;;  %4460 = vmatprep.subr.bf16.mxu0 %v9367_v45  ;;  %v9494_v54 = vcombine.low %v778_v39, %v782_v40  ;;  %v9081_v39 = vcombine.high %v363_v28, %v367_v29  ;;  %v9080_v45 = vcombine.low %v363_v28, %v367_v29 }
  0x95   : > { %v902_v60 = vld [vmem:[%s14704_s1 + $0x11e0] sm:$0xff]  ;;  %4461 = vmatpush2.bf16.msra.mxu0 %v9366_v52 }
  0x96   : > { %v970_v50 = vld [vmem:[%s14704_s1 + $0x1400] sm:$0xff]  ;;  %v9615_v53 = vcombine.high %v898_v46, %v902_v60  ;;  %4501 = vmatprep.subr.bf16.mxu1 %v9495_v49  ;;  %v9614_v62 = vcombine.low %v898_v46, %v902_v60  ;;  %v347_v60 = vld [vmem:[%s14704_s1 + $0x88] sm:$0xff] }
  0x97   : > { %v974_v51 = vld [vmem:[%s14704_s1 + $0x1420] sm:$0xff]  ;;  %4502 = vmatpush2.bf16.msra.mxu1 %v9494_v54  ;;  %v351_v49 = vld [vmem:[%s14704_s1 + $0xa8] sm:$0xff] }
  0x98   : > { %v890_v55 = vld [vmem:[%s14704_s1 + $0x1180] sm:$0xff]  ;;  %v9687_v57 = vcombine.high %v970_v50, %v974_v51  ;;  %4512 = vmatprep.subr.bf16.mxu0 %v9615_v53  ;;  %v9686_v63 = vcombine.low %v970_v50, %v974_v51  ;;  %4463 = vmatmul.mubr.bf16.vlgmr.msra.gmra.mxu0 %v11258_v41  ;;  %v9073_v50 = vcombine.high %v355_v37, %v359_v38 }
  0x99   : > { %v894_v56 = vld [vmem:[%s14704_s1 + $0x11a0] sm:$0xff]  ;;  %4513 = vmatpush1.bf16.msra.mxu0 %v9614_v62  ;;  %4544 = vmatprep.mubr.bf16.mxu0 %v11365_v48  ;;  %v9072_v53 = vcombine.low %v355_v37, %v359_v38  ;;  %v9065_v58 = vcombine.high %v347_v60, %v351_v49 }
  0x9a   : > { %v9607_v2 = vcombine.high %v890_v55, %v894_v56  ;;  %4567 = vmatprep.subr.bf16.mxu1 %v9687_v57  ;;  %v882_v4 = vld [vmem:[%s14704_s1 + $0x1140] sm:$0xff]  ;;  %4504 = vmatmul.mubr.bf16.vlgmr.msra.gmra.mxu1 %v11552_v61  ;;  %v9606_v6 = vcombine.low %v890_v55, %v894_v56  ;;  %v339_v56 = vld [vmem:[%s14704_s1 + $0x48] sm:$0xff] }
  0x9b   : > { %v886_v5 = vld [vmem:[%s14704_s1 + $0x1160] sm:$0xff]  ;;  %4568 = vmatpush1.bf16.msra.mxu1 %v9686_v63  ;;  %4585 = vmatprep.mubr.bf16.mxu1 %v10974_v10  ;;  %v343_v57 = vld [vmem:[%s14704_s1 + $0x68] sm:$0xff] }
  0x9c   : > { %4514 = vmatprep.subr.bf16.mxu0 %v9607_v2  ;;  %v9599_v7 = vcombine.high %v882_v4, %v886_v5  ;;  %4594 = vmatprep.subr.bf16.mxu1 %v9105_v3  ;;  %v874_v12 = vld [vmem:[%s14704_s1 + $0x1100] sm:$0xff]  ;;  %v9598_v14 = vcombine.low %v882_v4, %v886_v5  ;;  %v9064_v2 = vcombine.low %v347_v60, %v351_v49  ;;  %v331_v4 = vld [vmem:[%s14704_s1 + $0x8] sm:$0xff] }
  0x9d   : > { %v878_v13 = vld [vmem:[%s14704_s1 + $0x1120] sm:$0xff]  ;;  %4515 = vmatpush1.bf16.msra.mxu0 %v9606_v6  ;;  %v335_v5 = vld [vmem:[%s14704_s1 + $0x28] sm:$0xff]  ;;  %v9057_v6 = vcombine.high %v339_v56, %v343_v57 }
  0x9e   : > { %4516 = vmatprep.subr.bf16.mxu0 %v9599_v7  ;;  %v9591_v18 = vcombine.high %v874_v12, %v878_v13  ;;  %v866_v22 = vld [vmem:[%s14704_s1 + $0x10c0] sm:$0xff]  ;;  %v9590_v24 = vcombine.low %v874_v12, %v878_v13  ;;  %v9056_v12 = vcombine.low %v339_v56, %v343_v57 }
  0x9f   : > { %v870_v23 = vld [vmem:[%s14704_s1 + $0x10e0] sm:$0xff] }
  0xa0   : > { %v9583_v26 = vcombine.high %v866_v22, %v870_v23  ;;  %v858_v31 = vld [vmem:[%s14704_s1 + $0x1080] sm:$0xff]  ;;  %v9582_v33 = vcombine.low %v866_v22, %v870_v23  ;;  %v9048_v22 = vcombine.low %v331_v4, %v335_v5 }
  0xa1   : > { %4517 = vmatpush1.bf16.msra.mxu0 %v9598_v14  ;;  %v862_v32 = vld [vmem:[%s14704_s1 + $0x10a0] sm:$0xff]  ;;  %v451_v14 = vld [vmem:[%s14704_s1 + $0x3c8] sm:$0xff] }
  0xa2   : > { %9694 = vmatmul.mubr.msk.bf16.vlgmr.msra.gmra.mxu1 %vm4344_vm0, %v11578_v16  ;;  %4518 = vmatprep.subr.bf16.mxu0 %v9591_v18  ;;  %v9575_v36 = vcombine.high %v858_v31, %v862_v32  ;;  %v850_v40 = vld [vmem:[%s14704_s1 + $0x1040] sm:$0xff]  ;;  %v9574_v43 = vcombine.low %v858_v31, %v862_v32  ;;  %v9049_v18 = vcombine.high %v331_v4, %v335_v5 }
  0xa3   : > { %4595 = vmatpush1.bf16.msra.mxu1 %v9104_v17  ;;  %4626 = vmatprep.mubr.bf16.mxu1 %v11203_v11  ;;  %v854_v42 = vld [vmem:[%s14704_s1 + $0x1060] sm:$0xff]  ;;  %v455_v17 = vld [vmem:[%s14704_s1 + $0x3e8] sm:$0xff] }
  0xa4   : > { %4596 = vmatprep.subr.bf16.mxu1 %v9097_v21  ;;  %v9567_v46 = vcombine.high %v850_v40, %v854_v42  ;;  %v842_v51 = vld [vmem:[%s14704_s1 + $0x1000] sm:$0xff]  ;;  %v9566_v54 = vcombine.low %v850_v40, %v854_v42  ;;  %v9168_v31 = vcombine.low %v451_v14, %v455_v17 }
  0xa5   : > { %4519 = vmatpush1.bf16.msra.mxu0 %v9590_v24  ;;  %v846_v52 = vld [vmem:[%s14704_s1 + $0x1020] sm:$0xff]  ;;  %v443_v24 = vld [vmem:[%s14704_s1 + $0x388] sm:$0xff] }
  0xa6   : > { %4520 = vmatprep.subr.bf16.mxu0 %v9583_v26  ;;  %v9559_v55 = vcombine.high %v842_v51, %v846_v52  ;;  %v962_v59 = vld [vmem:[%s14704_s1 + $0x13c0] sm:$0xff]  ;;  %v9558_v63 = vcombine.low %v842_v51, %v846_v52  ;;  %v9169_v26 = vcombine.high %v451_v14, %v455_v17  ;;  %v515_v14 = vld [vmem:[%s14704_s1 + $0x5c8] sm:$0xff] }
  0xa7   : > { %4597 = vmatpush1.bf16.msra.mxu1 %v9096_v25  ;;  %v966_v62 = vld [vmem:[%s14704_s1 + $0x13e0] sm:$0xff]  ;;  %v447_v25 = vld [vmem:[%s14704_s1 + $0x3a8] sm:$0xff] }
  0xa8   : > { %4598 = vmatprep.subr.bf16.mxu1 %v9089_v30  ;;  %v9679_v3 = vcombine.high %v962_v59, %v966_v62  ;;  %v954_v7 = vld [vmem:[%s14704_s1 + $0x1380] sm:$0xff]  ;;  %v9678_v9 = vcombine.low %v962_v59, %v966_v62  ;;  %v9160_v40 = vcombine.low %v443_v24, %v447_v25  ;;  %v519_v17 = vld [vmem:[%s14704_s1 + $0x5e8] sm:$0xff] }
  0xa9   : > { %4521 = vmatpush1.bf16.msra.mxu0 %v9582_v33  ;;  %v958_v8 = vld [vmem:[%s14704_s1 + $0x13a0] sm:$0xff]  ;;  %v435_v33 = vld [vmem:[%s14704_s1 + $0x348] sm:$0xff] }
  0xaa   : > { %4522 = vmatprep.subr.bf16.mxu0 %v9575_v36  ;;  %v9671_v13 = vcombine.high %v954_v7, %v958_v8  ;;  %v946_v19 = vld [vmem:[%s14704_s1 + $0x1340] sm:$0xff]  ;;  %v9670_v21 = vcombine.low %v954_v7, %v958_v8  ;;  %v9161_v36 = vcombine.high %v443_v24, %v447_v25  ;;  %v507_v24 = vld [vmem:[%s14704_s1 + $0x588] sm:$0xff] }
  0xab   : > { %4599 = vmatpush1.bf16.msra.mxu1 %v9088_v0  ;;  %v950_v20 = vld [vmem:[%s14704_s1 + $0x1360] sm:$0xff]  ;;  %v439_v0 = vld [vmem:[%s14704_s1 + $0x368] sm:$0xff] }
  0xac   : > { %4600 = vmatprep.subr.bf16.mxu1 %v9081_v39  ;;  %v9663_v23 = vcombine.high %v946_v19, %v950_v20  ;;  %v938_v28 = vld [vmem:[%s14704_s1 + $0x1300] sm:$0xff]  ;;  %v9662_v30 = vcombine.low %v946_v19, %v950_v20  ;;  %v9152_v51 = vcombine.low %v435_v33, %v439_v0  ;;  %v9233_v20 = vcombine.high %v515_v14, %v519_v17  ;;  %v511_v25 = vld [vmem:[%s14704_s1 + $0x5a8] sm:$0xff] }
  0xad   : > { %4523 = vmatpush1.bf16.msra.mxu0 %v9574_v43  ;;  %v942_v29 = vld [vmem:[%s14704_s1 + $0x1320] sm:$0xff]  ;;  %v427_v43 = vld [vmem:[%s14704_s1 + $0x308] sm:$0xff] }
  0xae   : > { %4524 = vmatprep.subr.bf16.mxu0 %v9567_v46  ;;  %v9655_v32 = vcombine.high %v938_v28, %v942_v29  ;;  %v930_v37 = vld [vmem:[%s14704_s1 + $0x12c0] sm:$0xff]  ;;  %v9654_v39 = vcombine.low %v938_v28, %v942_v29  ;;  %v9153_v46 = vcombine.high %v435_v33, %v439_v0  ;;  %v9225_v29 = vcombine.high %v507_v24, %v511_v25  ;;  %v499_v33 = vld [vmem:[%s14704_s1 + $0x548] sm:$0xff] }
  0xaf   : > { %4601 = vmatpush1.bf16.msra.mxu1 %v9080_v45  ;;  %v934_v38 = vld [vmem:[%s14704_s1 + $0x12e0] sm:$0xff]  ;;  %v431_v45 = vld [vmem:[%s14704_s1 + $0x328] sm:$0xff] }
  0xb0   : > { %4602 = vmatprep.subr.bf16.mxu1 %v9073_v50  ;;  %v9647_v42 = vcombine.high %v930_v37, %v934_v38  ;;  %v922_v60 = vld [vmem:[%s14704_s1 + $0x1280] sm:$0xff]  ;;  %v9646_v50 = vcombine.low %v930_v37, %v934_v38  ;;  %v9144_v59 = vcombine.low %v427_v43, %v431_v45  ;;  %v503_v0 = vld [vmem:[%s14704_s1 + $0x568] sm:$0xff] }
  0xb1   : > { %4525 = vmatpush1.bf16.msra.mxu0 %v9566_v54  ;;  %v926_v49 = vld [vmem:[%s14704_s1 + $0x12a0] sm:$0xff]  ;;  %v419_v54 = vld [vmem:[%s14704_s1 + $0x2c8] sm:$0xff]  ;;  %v9217_v38 = vcombine.high %v499_v33, %v503_v0 }
  0xb2   : > { %4526 = vmatprep.subr.bf16.mxu0 %v9559_v55  ;;  %v9639_v52 = vcombine.high %v922_v60, %v926_v49  ;;  %v9145_v55 = vcombine.high %v427_v43, %v431_v45  ;;  %v914_v56 = vld [vmem:[%s14704_s1 + $0x1240] sm:$0xff]  ;;  %v491_v43 = vld [vmem:[%s14704_s1 + $0x508] sm:$0xff] }
  0xb3   : > { %4603 = vmatpush1.bf16.msra.mxu1 %v9072_v53  ;;  %v423_v53 = vld [vmem:[%s14704_s1 + $0x2e8] sm:$0xff]  ;;  %v918_v57 = vld [vmem:[%s14704_s1 + $0x1260] sm:$0xff] }
  0xb4   : > { %4604 = vmatprep.subr.bf16.mxu1 %v9065_v58  ;;  %v9638_v58 = vcombine.low %v922_v60, %v926_v49  ;;  %v9631_v62 = vcombine.high %v914_v56, %v918_v57  ;;  %v906_v4 = vld [vmem:[%s14704_s1 + $0x1200] sm:$0xff]  ;;  %v9136_v7 = vcombine.low %v419_v54, %v423_v53  ;;  %v495_v45 = vld [vmem:[%s14704_s1 + $0x528] sm:$0xff] }
  0xb5   : > { %4527 = vmatpush1.bf16.msra.mxu0 %v9558_v63  ;;  %v411_v63 = vld [vmem:[%s14704_s1 + $0x288] sm:$0xff]  ;;  %v910_v5 = vld [vmem:[%s14704_s1 + $0x1220] sm:$0xff]  ;;  %v9209_v49 = vcombine.high %v491_v43, %v495_v45 }
  0xb6   : > { %4528 = vmatprep.subr.bf16.mxu0 %v9679_v3  ;;  %v9137_v3 = vcombine.high %v419_v54, %v423_v53  ;;  %v9623_v8 = vcombine.high %v906_v4, %v910_v5  ;;  %v483_v54 = vld [vmem:[%s14704_s1 + $0x4c8] sm:$0xff] }
  0xb7   : > { %4605 = vmatpush1.bf16.msra.mxu1 %v9064_v2  ;;  %v415_v2 = vld [vmem:[%s14704_s1 + $0x2a8] sm:$0xff] }
  0xb8   : > { %4606 = vmatprep.subr.bf16.mxu1 %v9057_v6  ;;  %v9630_v6 = vcombine.low %v914_v56, %v918_v57  ;;  %v9128_v19 = vcombine.low %v411_v63, %v415_v2  ;;  %v487_v53 = vld [vmem:[%s14704_s1 + $0x4e8] sm:$0xff] }
  0xb9   : > { %4529 = vmatpush2.bf16.msra.mxu0 %v9678_v9  ;;  %v403_v9 = vld [vmem:[%s14704_s1 + $0x248] sm:$0xff]  ;;  %v9201_v57 = vcombine.high %v483_v54, %v487_v53 }
  0xba   : > { %4530 = vmatprep.subr.bf16.mxu0 %v9671_v13  ;;  %v9129_v13 = vcombine.high %v411_v63, %v415_v2  ;;  %v475_v63 = vld [vmem:[%s14704_s1 + $0x488] sm:$0xff] }
  0xbb   : > { %4607 = vmatpush1.bf16.msra.mxu1 %v9056_v12  ;;  %v407_v12 = vld [vmem:[%s14704_s1 + $0x268] sm:$0xff] }
  0xbc   : > { %4608 = vmatprep.subr.bf16.mxu1 %v9049_v18  ;;  %v9622_v18 = vcombine.low %v906_v4, %v910_v5  ;;  %v9120_v28 = vcombine.low %v403_v9, %v407_v12  ;;  %v479_v2 = vld [vmem:[%s14704_s1 + $0x4a8] sm:$0xff] }
  0xbd   : > { %4531 = vmatpush2.bf16.msra.mxu0 %v9670_v21  ;;  %v395_v21 = vld [vmem:[%s14704_s1 + $0x208] sm:$0xff] }
  0xbe   : > { %4532 = vmatprep.subr.bf16.mxu0 %v9663_v23  ;;  %v9121_v23 = vcombine.high %v403_v9, %v407_v12  ;;  %v467_v4 = vld [vmem:[%s14704_s1 + $0x448] sm:$0xff] }
  0xbf   : > { %4609 = vmatpush1.bf16.msra.mxu1 %v9048_v22  ;;  %v399_v22 = vld [vmem:[%s14704_s1 + $0x228] sm:$0xff] }
  0xc0   : > { %4610 = vmatprep.subr.bf16.mxu1 %v9169_v26  ;;  %v9232_v26 = vcombine.low %v515_v14, %v519_v17  ;;  %v9112_v37 = vcombine.low %v395_v21, %v399_v22  ;;  %v471_v5 = vld [vmem:[%s14704_s1 + $0x468] sm:$0xff] }
  0xc1   : > { %4533 = vmatpush2.bf16.msra.mxu0 %v9662_v30  ;;  %v643_v30 = vld [vmem:[%s14704_s1 + $0x9c8] sm:$0xff]  ;;  %v9185_v17 = vcombine.high %v467_v4, %v471_v5 }
  0xc2   : > { %4534 = vmatprep.subr.bf16.mxu0 %v9655_v32  ;;  %v9113_v32 = vcombine.high %v395_v21, %v399_v22  ;;  %v611_v9 = vld [vmem:[%s14704_s1 + $0x8c8] sm:$0xff] }
  0xc3   : > { %4611 = vmatpush2.bf16.msra.mxu1 %v9168_v31  ;;  %v647_v31 = vld [vmem:[%s14704_s1 + $0x9e8] sm:$0xff] }
  0xc4   : > { %4612 = vmatprep.subr.bf16.mxu1 %v9161_v36  ;;  %v9224_v36 = vcombine.low %v507_v24, %v511_v25  ;;  %v9360_v60 = vcombine.low %v643_v30, %v647_v31  ;;  %v615_v12 = vld [vmem:[%s14704_s1 + $0x8e8] sm:$0xff] }
  0xc5   : > { %4535 = vmatpush2.bf16.msra.mxu0 %v9654_v39  ;;  %v635_v39 = vld [vmem:[%s14704_s1 + $0x988] sm:$0xff]  ;;  %v9328_v24 = vcombine.low %v611_v9, %v615_v12 }
  0xc6   : > { %4536 = vmatprep.subr.bf16.mxu0 %v9647_v42  ;;  %v9361_v42 = vcombine.high %v643_v30, %v647_v31  ;;  %v603_v21 = vld [vmem:[%s14704_s1 + $0x888] sm:$0xff] }
  0xc7   : > { %4613 = vmatpush2.bf16.msra.mxu1 %v9160_v40  ;;  %v639_v40 = vld [vmem:[%s14704_s1 + $0x9a8] sm:$0xff] }
  0xc8   : > { %4614 = vmatprep.subr.bf16.mxu1 %v9153_v46  ;;  %v9216_v46 = vcombine.low %v499_v33, %v503_v0  ;;  %v9352_v56 = vcombine.low %v635_v39, %v639_v40  ;;  %v607_v22 = vld [vmem:[%s14704_s1 + $0x8a8] sm:$0xff] }
  0xc9   : > { %4537 = vmatpush2.bf16.msra.mxu0 %v9646_v50  ;;  %v627_v50 = vld [vmem:[%s14704_s1 + $0x948] sm:$0xff]  ;;  %v9320_v33 = vcombine.low %v603_v21, %v607_v22 }
  0xca   : > { %4538 = vmatprep.subr.bf16.mxu0 %v9639_v52  ;;  %v9353_v52 = vcombine.high %v635_v39, %v639_v40  ;;  %v595_v30 = vld [vmem:[%s14704_s1 + $0x848] sm:$0xff] }
  0xcb   : > { %4615 = vmatpush2.bf16.msra.mxu1 %v9152_v51  ;;  %v631_v51 = vld [vmem:[%s14704_s1 + $0x968] sm:$0xff] }
  0xcc   : > { %4616 = vmatprep.subr.bf16.mxu1 %v9145_v55  ;;  %v9208_v55 = vcombine.low %v491_v43, %v495_v45  ;;  %v599_v31 = vld [vmem:[%s14704_s1 + $0x868] sm:$0xff] }
  0xcd   : > { %4539 = vmatpush2.bf16.msra.mxu0 %v9638_v58  ;;  %v619_v58 = vld [vmem:[%s14704_s1 + $0x908] sm:$0xff]  ;;  %v9312_v43 = vcombine.low %v595_v30, %v599_v31 }
  0xce   : > { %4540 = vmatprep.subr.bf16.mxu0 %v9631_v62  ;;  %v9345_v62 = vcombine.high %v627_v50, %v631_v51  ;;  %v587_v39 = vld [vmem:[%s14704_s1 + $0x808] sm:$0xff] }
  0xcf   : > { %4617 = vmatpush2.bf16.msra.mxu1 %v9144_v59  ;;  %v623_v59 = vld [vmem:[%s14704_s1 + $0x928] sm:$0xff] }
  0xd0   : > { %4618 = vmatprep.subr.bf16.mxu1 %v9137_v3  ;;  %v9200_v3 = vcombine.low %v483_v54, %v487_v53  ;;  %v9336_v14 = vcombine.low %v619_v58, %v623_v59  ;;  %v591_v40 = vld [vmem:[%s14704_s1 + $0x828] sm:$0xff] }
  0xd1   : > { %4541 = vmatpush2.bf16.msra.mxu0 %v9630_v6  ;;  %v9344_v6 = vcombine.low %v627_v50, %v631_v51  ;;  %v707_v50 = vld [vmem:[%s14704_s1 + $0xbc8] sm:$0xff]  ;;  %v9304_v54 = vcombine.low %v587_v39, %v591_v40 }
  0xd2   : > { %4542 = vmatprep.subr.bf16.mxu0 %v9623_v8  ;;  %v9337_v8 = vcombine.high %v619_v58, %v623_v59  ;;  %v711_v51 = vld [vmem:[%s14704_s1 + $0xbe8] sm:$0xff] }
  0xd3   : > { %4619 = vmatpush2.bf16.msra.mxu1 %v9136_v7  ;;  %v9193_v7 = vcombine.high %v475_v63, %v479_v2  ;;  %v699_v58 = vld [vmem:[%s14704_s1 + $0xb88] sm:$0xff] }
  0xd4   : > { %4620 = vmatprep.subr.bf16.mxu1 %v9129_v13  ;;  %v9192_v13 = vcombine.low %v475_v63, %v479_v2  ;;  %v703_v59 = vld [vmem:[%s14704_s1 + $0xba8] sm:$0xff]  ;;  %v9424_v63 = vcombine.low %v707_v50, %v711_v51 }
  0xd5   : > { %4543 = vmatpush2.bf16.msra.mxu0 %v9622_v18  ;;  %v459_v18 = vld [vmem:[%s14704_s1 + $0x408] sm:$0xff] }
  0xd6   : > { %4635 = vmatprep.subr.bf16.mxu0 %v9233_v20  ;;  %v9329_v20 = vcombine.high %v611_v9, %v615_v12  ;;  %v9416_v9 = vcombine.low %v699_v58, %v703_v59 }
  0xd7   : > { %4621 = vmatpush2.bf16.msra.mxu1 %v9128_v19  ;;  %v463_v19 = vld [vmem:[%s14704_s1 + $0x428] sm:$0xff] }
  0xd8   : > { %4622 = vmatprep.subr.bf16.mxu1 %v9121_v23  ;;  %4545 = vmatmul.mubr.bf16.vlgmr.msra.gmra.mxu0 %v11186_v1  ;;  %v9184_v23 = vcombine.low %v467_v4, %v471_v5  ;;  %v9177_v25 = vcombine.high %v459_v18, %v463_v19  ;;  %v551_v4 = vld [vmem:[%s14704_s1 + $0x6e8] sm:$0xff]  ;;  %v9417_v5 = vcombine.high %v699_v58, %v703_v59 }
  0xd9   : > { %4636 = vmatpush1.bf16.msra.mxu0 %v9232_v26  ;;  %4667 = vmatprep.mubr.bf16.mxu0 %v11214_v15  ;;  %v579_v26 = vld [vmem:[%s14704_s1 + $0x7c8] sm:$0xff] }
  0xda   : > { %4637 = vmatprep.subr.bf16.mxu0 %v9225_v29  ;;  %v9321_v29 = vcombine.high %v603_v21, %v607_v22  ;;  %v651_v58 = vld [vmem:[%s14704_s1 + $0xa08] sm:$0xff] }
  0xdb   : > { %4623 = vmatpush2.bf16.msra.mxu1 %v9120_v28  ;;  %v583_v28 = vld [vmem:[%s14704_s1 + $0x7e8] sm:$0xff] }
  0xdc   : > { %4624 = vmatprep.subr.bf16.mxu1 %v9113_v32  ;;  %v9176_v32 = vcombine.low %v459_v18, %v463_v19  ;;  %v9297_v0 = vcombine.high %v579_v26, %v583_v28  ;;  %v683_v18 = vld [vmem:[%s14704_s1 + $0xb08] sm:$0xff] }
  0xdd   : > { %4638 = vmatpush1.bf16.msra.mxu0 %v9224_v36  ;;  %v571_v36 = vld [vmem:[%s14704_s1 + $0x788] sm:$0xff] }
  0xde   : > { %4639 = vmatprep.subr.bf16.mxu0 %v9217_v38  ;;  %v9313_v38 = vcombine.high %v595_v30, %v599_v31  ;;  %v687_v19 = vld [vmem:[%s14704_s1 + $0xb28] sm:$0xff] }
  0xdf   : > { %4625 = vmatpush2.bf16.msra.mxu1 %v9112_v37  ;;  %v575_v37 = vld [vmem:[%s14704_s1 + $0x7a8] sm:$0xff]  ;;  %v9400_v30 = vcombine.low %v683_v18, %v687_v19 }
  0xe0   : > { %4676 = vmatprep.subr.bf16.mxu1 %v9361_v42  ;;  %v9296_v42 = vcombine.low %v579_v26, %v583_v28  ;;  %v9289_v45 = vcombine.high %v571_v36, %v575_v37  ;;  %v675_v26 = vld [vmem:[%s14704_s1 + $0xac8] sm:$0xff] }
  0xe1   : > { %4640 = vmatpush1.bf16.msra.mxu0 %v9216_v46  ;;  %v563_v46 = vld [vmem:[%s14704_s1 + $0x748] sm:$0xff] }
  0xe2   : > { %4627 = vmatmul.mubr.bf16.vlgmr.msra.gmra.mxu1 %v11324_v27  ;;  %4641 = vmatprep.subr.bf16.mxu0 %v9209_v49  ;;  %v9305_v49 = vcombine.high %v587_v39, %v591_v40  ;;  %v679_v28 = vld [vmem:[%s14704_s1 + $0xae8] sm:$0xff] }
  0xe3   : > { %4677 = vmatpush1.bf16.msra.mxu1 %v9360_v60  ;;  %4708 = vmatprep.mubr.bf16.mxu1 %v11339_v34  ;;  %v567_v60 = vld [vmem:[%s14704_s1 + $0x768] sm:$0xff]  ;;  %v9392_v39 = vcombine.low %v675_v26, %v679_v28 }
  0xe4   : > { %4678 = vmatprep.subr.bf16.mxu1 %v9353_v52  ;;  %v9288_v52 = vcombine.low %v571_v36, %v575_v37  ;;  %v9281_v53 = vcombine.high %v563_v46, %v567_v60  ;;  %v667_v36 = vld [vmem:[%s14704_s1 + $0xa88] sm:$0xff] }
  0xe5   : > { %4642 = vmatpush1.bf16.msra.mxu0 %v9208_v55  ;;  %v555_v55 = vld [vmem:[%s14704_s1 + $0x708] sm:$0xff] }
  0xe6   : > { %4643 = vmatprep.subr.bf16.mxu0 %v9201_v57  ;;  %v9425_v57 = vcombine.high %v707_v50, %v711_v51  ;;  %v671_v37 = vld [vmem:[%s14704_s1 + $0xaa8] sm:$0xff]  ;;  %v11939_v51 = vsub.s32 0, %v11147_v44 }
  0xe7   : > { %4679 = vmatpush1.bf16.msra.mxu1 %v9352_v56  ;;  %v559_v56 = vld [vmem:[%s14704_s1 + $0x728] sm:$0xff] }
  0xe8   : > { %4680 = vmatprep.subr.bf16.mxu1 %v9345_v62  ;;  %v9280_v62 = vcombine.low %v563_v46, %v567_v60  ;;  %v9273_v2 = vcombine.high %v555_v55, %v559_v56  ;;  %v9385_v46 = vcombine.high %v667_v36, %v671_v37  ;;  %v663_v60 = vld [vmem:[%s14704_s1 + $0xa68] sm:$0xff] }
  0xe9   : > { %4644 = vmatpush1.bf16.msra.mxu0 %v9200_v3  ;;  %v547_v3 = vld [vmem:[%s14704_s1 + $0x6c8] sm:$0xff] }
  0xea   : > { %4645 = vmatprep.subr.bf16.mxu0 %v9193_v7  ;;  %v695_v7 = vld [vmem:[%s14704_s1 + $0xb68] sm:$0xff]  ;;  %v9265_v12 = vcombine.high %v547_v3, %v551_v4 }
  0xeb   : > { %4681 = vmatpush1.bf16.msra.mxu1 %v9344_v6  ;;  %v691_v6 = vld [vmem:[%s14704_s1 + $0xb48] sm:$0xff] }
  0xec   : > { %4682 = vmatprep.subr.bf16.mxu1 %v9337_v8  ;;  %v9272_v8 = vcombine.low %v555_v55, %v559_v56  ;;  %v9408_v21 = vcombine.low %v691_v6, %v695_v7  ;;  %v767_v55 = vld [vmem:[%s14704_s1 + $0xda8] sm:$0xff] }
  0xed   : > { %4646 = vmatpush1.bf16.msra.mxu0 %v9192_v13  ;;  %v539_v13 = vld [vmem:[%s14704_s1 + $0x688] sm:$0xff] }
  0xee   : > { %4647 = vmatprep.subr.bf16.mxu0 %v9185_v17  ;;  %v9409_v17 = vcombine.high %v691_v6, %v695_v7  ;;  %v655_v59 = vld [vmem:[%s14704_s1 + $0xa28] sm:$0xff] }
  0xef   : > { %4683 = vmatpush1.bf16.msra.mxu1 %v9336_v14  ;;  %v543_v14 = vld [vmem:[%s14704_s1 + $0x6a8] sm:$0xff]  ;;  %v9369_v7 = vcombine.high %v651_v58, %v655_v59 }
  0xf0   : > { %4684 = vmatprep.subr.bf16.mxu1 %v9329_v20  ;;  %v9264_v20 = vcombine.low %v547_v3, %v551_v4  ;;  %v9257_v22 = vcombine.high %v539_v13, %v543_v14  ;;  %v755_v4 = vld [vmem:[%s14704_s1 + $0xd48] sm:$0xff] }
  0xf1   : > { %4648 = vmatpush1.bf16.msra.mxu0 %v9184_v23  ;;  %v531_v23 = vld [vmem:[%s14704_s1 + $0x648] sm:$0xff] }
  0xf2   : > { %4649 = vmatprep.subr.bf16.mxu0 %v9177_v25  ;;  %v9401_v25 = vcombine.high %v683_v18, %v687_v19  ;;  %v9368_v19 = vcombine.low %v651_v58, %v655_v59 }
  0xf3   : > { %4685 = vmatpush1.bf16.msra.mxu1 %v9328_v24  ;;  %v535_v24 = vld [vmem:[%s14704_s1 + $0x668] sm:$0xff] }
  0xf4   : > { %4686 = vmatprep.subr.bf16.mxu1 %v9321_v29  ;;  %v9256_v29 = vcombine.low %v539_v13, %v543_v14  ;;  %v9249_v31 = vcombine.high %v531_v23, %v535_v24 }
  0xf5   : > { %4650 = vmatpush1.bf16.msra.mxu0 %v9176_v32  ;;  %v523_v32 = vld [vmem:[%s14704_s1 + $0x608] sm:$0xff] }
  0xf6   : > { %4651 = vmatprep.subr.bf16.mxu0 %v9297_v0  ;;  %v9393_v0 = vcombine.high %v675_v26, %v679_v28  ;;  %v891_v28 = vld [vmem:[%s14704_s1 + $0x1188] sm:$0xff] }
  0xf7   : > { %4687 = vmatpush1.bf16.msra.mxu1 %v9320_v33  ;;  %v527_v33 = vld [vmem:[%s14704_s1 + $0x628] sm:$0xff] }
  0xf8   : > { %4688 = vmatprep.subr.bf16.mxu1 %v9313_v38  ;;  %v9248_v38 = vcombine.low %v531_v23, %v535_v24  ;;  %v9241_v40 = vcombine.high %v523_v32, %v527_v33  ;;  %v9240_v50 = vcombine.low %v523_v32, %v527_v33 }
  0xf9   : > { %4652 = vmatpush2.bf16.msra.mxu0 %v9296_v42  ;;  %v659_v42 = vld [vmem:[%s14704_s1 + $0xa48] sm:$0xff] }
  0xfa   : > { %4653 = vmatprep.subr.bf16.mxu0 %v9289_v45  ;;  %v775_v45 = vld [vmem:[%s14704_s1 + $0xde8] sm:$0xff]  ;;  %v9377_v56 = vcombine.high %v659_v42, %v663_v60 }
  0xfb   : > { %4689 = vmatpush1.bf16.msra.mxu1 %v9312_v43  ;;  %v771_v43 = vld [vmem:[%s14704_s1 + $0xdc8] sm:$0xff] }
  0xfc   : > { %4690 = vmatprep.subr.bf16.mxu1 %v9305_v49  ;;  %v978_v49 = vld [vmem:[%s14705_s2] sm:$0xff] }
  0xfd   : > { %4654 = vmatpush2.bf16.msra.mxu0 %v9288_v52  ;;  %v9384_v52 = vcombine.low %v667_v36, %v671_v37 }
  0xfe   : > { %4655 = vmatprep.subr.bf16.mxu0 %v9281_v53  ;;  %v763_v53 = vld [vmem:[%s14704_s1 + $0xd88] sm:$0xff] }
  0xff   : > { %4691 = vmatpush1.bf16.msra.mxu1 %v9304_v54  ;;  %v9489_v54 = vcombine.high %v771_v43, %v775_v45  ;;  %v9481_v3 = vcombine.high %v763_v53, %v767_v55 }
 0x100   : > { %4692 = vmatprep.subr.bf16.mxu1 %v9425_v57  ;;  %v11948_v57 = vsub.s32 1, %v11147_v44 }
 0x101   : > { %4656 = vmatpush2.bf16.msra.mxu0 %v9280_v62  ;;  %v4307_v62 = vrot.slane %v978_v49, %v11939_v51 }
 0x102   : > { %4657 = vmatprep.subr.bf16.mxu0 %v9273_v2  ;;  %v9376_v2 = vcombine.low %v659_v42, %v663_v60  ;;  %v4311_v6 = vrot.slane %v978_v49, %v11948_v57 }
 0x103   : > { %4693 = vmatpush2.bf16.msra.mxu1 %v9424_v63  ;;  %v9488_v63 = vcombine.low %v771_v43, %v775_v45  ;;  %v883_v43 = vld [vmem:[%s14704_s1 + $0x1148] sm:$0xff] }
 0x104   : > { %4694 = vmatprep.subr.bf16.mxu1 %v9417_v5  ;;  %v759_v5 = vld [vmem:[%s14704_s1 + $0xd68] sm:$0xff] }
 0x105   : > { %4658 = vmatpush2.bf16.msra.mxu0 %v9272_v8  ;;  %v9472_v33 = vcombine.low %v755_v4, %v759_v5  ;;  %v887_v45 = vld [vmem:[%s14704_s1 + $0x1168] sm:$0xff] }
 0x106   : > { %4659 = vmatprep.subr.bf16.mxu0 %v9265_v12  ;;  %v903_v12 = vld [vmem:[%s14704_s1 + $0x11e8] sm:$0xff]  ;;  %v9600_v58 = vcombine.low %v883_v43, %v887_v45 }
 0x107   : > { %4695 = vmatpush2.bf16.msra.mxu1 %v9416_v9  ;;  %v899_v9 = vld [vmem:[%s14704_s1 + $0x11c8] sm:$0xff] }
 0x108   : > { %4696 = vmatprep.subr.bf16.mxu1 %v9409_v17  ;;  %v9480_v17 = vcombine.low %v763_v53, %v767_v55  ;;  %v9617_v26 = vcombine.high %v899_v9, %v903_v12  ;;  %v875_v53 = vld [vmem:[%s14704_s1 + $0x1108] sm:$0xff] }
 0x109   : > { %4660 = vmatpush2.bf16.msra.mxu0 %v9264_v20  ;;  %v9473_v20 = vcombine.high %v755_v4, %v759_v5  ;;  %v879_v55 = vld [vmem:[%s14704_s1 + $0x1128] sm:$0xff] }
 0x10a   : > { %4661 = vmatprep.subr.bf16.mxu0 %v9257_v22  ;;  %v751_v22 = vld [vmem:[%s14704_s1 + $0xd28] sm:$0xff] }
 0x10b   : > { %4697 = vmatpush2.bf16.msra.mxu1 %v9408_v21  ;;  %v747_v21 = vld [vmem:[%s14704_s1 + $0xd08] sm:$0xff] }
 0x10c   : > { %4698 = vmatprep.subr.bf16.mxu1 %v9401_v25  ;;  %v9465_v36 = vcombine.high %v747_v21, %v751_v22  ;;  %v871_v4 = vld [vmem:[%s14704_s1 + $0x10e8] sm:$0xff] }
 0x10d   : > { %4662 = vmatpush2.bf16.msra.mxu0 %v9256_v29  ;;  %v895_v29 = vld [vmem:[%s14704_s1 + $0x11a8] sm:$0xff] }
 0x10e   : > { %4663 = vmatprep.subr.bf16.mxu0 %v9249_v31  ;;  %v9609_v42 = vcombine.high %v891_v28, %v895_v29  ;;  %v9608_v60 = vcombine.low %v891_v28, %v895_v29 }
 0x10f   : > { %4699 = vmatpush2.bf16.msra.mxu1 %v9400_v30 }
 0x110   : > { %4700 = vmatprep.subr.bf16.mxu1 %v9393_v0  ;;  %v9616_v0 = vcombine.low %v899_v9, %v903_v12  ;;  %v719_v9 = vld [vmem:[%s14704_s1 + $0xc28] sm:$0xff] }
 0x111   : > { %4664 = vmatpush2.bf16.msra.mxu0 %v9248_v38  ;;  %v739_v38 = vld [vmem:[%s14704_s1 + $0xcc8] sm:$0xff] }
 0x112   : > { %4665 = vmatprep.subr.bf16.mxu0 %v9241_v40 }
 0x113   : > { %4701 = vmatpush2.bf16.msra.mxu1 %v9392_v39  ;;  %v743_v39 = vld [vmem:[%s14704_s1 + $0xce8] sm:$0xff] }
 0x114   : > { %4702 = vmatprep.subr.bf16.mxu1 %v9385_v46  ;;  %v9464_v46 = vcombine.low %v747_v21, %v751_v22  ;;  %v9457_v49 = vcombine.high %v739_v38, %v743_v39  ;;  %v839_v21 = vld [vmem:[%s14704_s1 + $0xfe8] sm:$0xff] }
 0x115   : > { %4666 = vmatpush2.bf16.msra.mxu0 %v9240_v50  ;;  %v731_v50 = vld [vmem:[%s14704_s1 + $0xc88] sm:$0xff] }
 0x116   : > { %4717 = vmatprep.subr.bf16.mxu0 %v9489_v54  ;;  %v9601_v54 = vcombine.high %v883_v43, %v887_v45  ;;  %v963_v45 = vld [vmem:[%s14704_s1 + $0x13c8] sm:$0xff] }
 0x117   : > { %4703 = vmatpush2.bf16.msra.mxu1 %v9384_v52  ;;  %v735_v52 = vld [vmem:[%s14704_s1 + $0xca8] sm:$0xff] }
 0x118   : > { %4704 = vmatprep.subr.bf16.mxu1 %v9377_v56  ;;  %v4382_v8 = vpop.f32.mrf.mxu0  ;;  %4668 = vmatmul.mubr.bf16.vlgmr.msra.gmra.mxu0 %v11343_v35  ;;  %v9456_v56 = vcombine.low %v739_v38, %v743_v39  ;;  %v9449_v59 = vcombine.high %v731_v50, %v735_v52  ;;  %v9448_v5 = vcombine.low %v731_v50, %v735_v52  ;;  %v811_v52 = vld [vmem:[%s14704_s1 + $0xf08] sm:$0xff] }
 0x119   : > { %v4383_v13 = vadd.f32 %v4382_v8, %v4307_v62  ;;  %4718 = vmatpush1.bf16.msra.mxu0 %v9488_v63  ;;  %4749 = vmatprep.mubr.bf16.mxu0 %v11362_v47  ;;  %v723_v62 = vld [vmem:[%s14704_s1 + $0xc48] sm:$0xff] }
 0x11a   : > { %v4423_v14 = vpop.f32.mrf.mxu1  ;;  %v4384_v18 = vpop.f32.mrf.mxu0  ;;  %4719 = vmatprep.subr.bf16.mxu0 %v9481_v3  ;;  %v727_v63 = vld [vmem:[%s14704_s1 + $0xc68] sm:$0xff] }
 0x11b   : > { %4705 = vmatpush2.bf16.msra.mxu1 %v9376_v2  ;;  %v11978_v23 = vadd.f32 %v4423_v14, %v4383_v13  ;;  %v4385_v24 = vadd.f32 %v4384_v18, %v4311_v6  ;;  %v9593_v2 = vcombine.high %v875_v53, %v879_v55  ;;  %v867_v3 = vld [vmem:[%s14704_s1 + $0x10c8] sm:$0xff]  ;;  %v9592_v6 = vcombine.low %v875_v53, %v879_v55 }
 0x11c   : > { %v4425_v25 = vpop.f32.mrf.mxu1  ;;  %4706 = vmatprep.subr.bf16.mxu1 %v9369_v7  ;;  %v4386_v30 = vpop.f32.mrf.mxu0  ;;  %v9441_v7 = vcombine.high %v723_v62, %v727_v63  ;;  %v715_v8 = vld [vmem:[%s14704_s1 + $0xc08] sm:$0xff]  ;;  %v9585_v12 = vcombine.high %v867_v3, %v871_v4  ;;  %v9584_v18 = vcombine.low %v867_v3, %v871_v4 }
 0x11d   : > { %v11986_v31 = vadd.f32 %v4425_v25, %v4385_v24  ;;  %4720 = vmatpush1.bf16.msra.mxu0 %v9480_v17  ;;  %v859_v13 = vld [vmem:[%s14704_s1 + $0x1088] sm:$0xff]  ;;  %v9440_v17 = vcombine.low %v723_v62, %v727_v63 }
 0x11e   : > { %v4427_v32 = vpop.f32.mrf.mxu1  ;;  %4721 = vmatprep.subr.bf16.mxu0 %v9473_v20  ;;  %v4387_v37 = vpop.f32.mrf.mxu0  ;;  %v863_v14 = vld [vmem:[%s14704_s1 + $0x10a8] sm:$0xff] }
 0x11f   : > { %4707 = vmatpush2.bf16.msra.mxu1 %v9368_v19  ;;  %v9433_v19 = vcombine.high %v715_v8, %v719_v9  ;;  %v835_v20 = vld [vmem:[%s14704_s1 + $0xfc8] sm:$0xff]  ;;  %v9577_v22 = vcombine.high %v859_v13, %v863_v14  ;;  %v9576_v28 = vcombine.low %v859_v13, %v863_v14 }
 0x120   : > { %v4428_v40 = vpop.f32.mrf.mxu1  ;;  %4758 = vmatprep.subr.bf16.mxu1 %v9617_v26  ;;  %v851_v24 = vld [vmem:[%s14704_s1 + $0x1048] sm:$0xff]  ;;  %v9432_v26 = vcombine.low %v715_v8, %v719_v9  ;;  %v9553_v29 = vcombine.high %v835_v20, %v839_v21  ;;  %v9552_v37 = vcombine.low %v835_v20, %v839_v21 }
 0x121   : > { %4722 = vmatpush1.bf16.msra.mxu0 %v9472_v33  ;;  %v855_v25 = vld [vmem:[%s14704_s1 + $0x1068] sm:$0xff] }
 0x122   : > { %4709 = vmatmul.mubr.bf16.vlgmr.msra.gmra.mxu1 %v11258_v41  ;;  %4723 = vmatprep.subr.bf16.mxu0 %v9465_v36  ;;  %v827_v30 = vld [vmem:[%s14704_s1 + $0xf88] sm:$0xff]  ;;  %v9569_v33 = vcombine.high %v851_v24, %v855_v25  ;;  %v9568_v38 = vcombine.low %v851_v24, %v855_v25 }
 0x123   : > { %4759 = vmatpush1.bf16.msra.mxu1 %v9616_v0  ;;  %4790 = vmatprep.mubr.bf16.mxu1 %v11365_v48  ;;  %v831_v32 = vld [vmem:[%s14704_s1 + $0xfa8] sm:$0xff] }
 0x124   : > { %4760 = vmatprep.subr.bf16.mxu1 %v9609_v42  ;;  %v843_v0 = vld [vmem:[%s14704_s1 + $0x1008] sm:$0xff]  ;;  %v9545_v39 = vcombine.high %v827_v30, %v831_v32 }
 0x125   : > { %4724 = vmatpush1.bf16.msra.mxu0 %v9464_v46  ;;  %v847_v36 = vld [vmem:[%s14704_s1 + $0x1028] sm:$0xff] }
 0x126   : > { %4725 = vmatprep.subr.bf16.mxu0 %v9457_v49  ;;  %v819_v40 = vld [vmem:[%s14704_s1 + $0xf48] sm:$0xff]  ;;  %v9561_v43 = vcombine.high %v843_v0, %v847_v36  ;;  %v9560_v49 = vcombine.low %v843_v0, %v847_v36 }
 0x127   : > { %4761 = vmatpush1.bf16.msra.mxu1 %v9608_v60  ;;  %v823_v42 = vld [vmem:[%s14704_s1 + $0xf68] sm:$0xff]  ;;  %v9544_v60 = vcombine.low %v827_v30, %v831_v32 }
 0x128   : > { %4762 = vmatprep.subr.bf16.mxu1 %v9601_v54  ;;  %v967_v46 = vld [vmem:[%s14704_s1 + $0x13e8] sm:$0xff]  ;;  %v9537_v50 = vcombine.high %v819_v40, %v823_v42 }
 0x129   : > { %4726 = vmatpush1.bf16.msra.mxu0 %v9456_v56  ;;  %v815_v54 = vld [vmem:[%s14704_s1 + $0xf28] sm:$0xff]  ;;  %v9681_v53 = vcombine.high %v963_v45, %v967_v46 }
 0x12a   : > { %4727 = vmatprep.subr.bf16.mxu0 %v9449_v59  ;;  %v955_v55 = vld [vmem:[%s14704_s1 + $0x1388] sm:$0xff]  ;;  %v9680_v59 = vcombine.low %v963_v45, %v967_v46  ;;  %v9529_v62 = vcombine.high %v811_v52, %v815_v54 }
 0x12b   : > { %4763 = vmatpush1.bf16.msra.mxu1 %v9600_v58  ;;  %v959_v56 = vld [vmem:[%s14704_s1 + $0x13a8] sm:$0xff]  ;;  %v9536_v58 = vcombine.low %v819_v40, %v823_v42  ;;  %v388_v42 = vld [vmem:[%s14704_s1 + $0x1d0] sm:$0xff] }
 0x12c   : > { %4764 = vmatprep.subr.bf16.mxu1 %v9593_v2  ;;  %v803_v63 = vld [vmem:[%s14704_s1 + $0xec8] sm:$0xff]  ;;  %v9673_v3 = vcombine.high %v955_v55, %v959_v56 }
 0x12d   : > { %4728 = vmatpush1.bf16.msra.mxu0 %v9448_v5  ;;  %v807_v2 = vld [vmem:[%s14704_s1 + $0xee8] sm:$0xff] }
 0x12e   : > { %4729 = vmatprep.subr.bf16.mxu0 %v9441_v7  ;;  %v947_v4 = vld [vmem:[%s14704_s1 + $0x1348] sm:$0xff]  ;;  %v9672_v7 = vcombine.low %v955_v55, %v959_v56  ;;  %v9521_v8 = vcombine.high %v803_v63, %v807_v2 }
 0x12f   : > { %4765 = vmatpush1.bf16.msra.mxu1 %v9592_v6  ;;  %v951_v5 = vld [vmem:[%s14704_s1 + $0x1368] sm:$0xff]  ;;  %v9528_v6 = vcombine.low %v811_v52, %v815_v54  ;;  %v380_v54 = vld [vmem:[%s14704_s1 + $0x190] sm:$0xff] }
 0x130   : > { %4766 = vmatprep.subr.bf16.mxu1 %v9585_v12  ;;  %v795_v9 = vld [vmem:[%s14704_s1 + $0xe88] sm:$0xff]  ;;  %v9665_v13 = vcombine.high %v947_v4, %v951_v5 }
 0x131   : > { %4730 = vmatpush1.bf16.msra.mxu0 %v9440_v17  ;;  %v799_v12 = vld [vmem:[%s14704_s1 + $0xea8] sm:$0xff] }
 0x132   : > { %4731 = vmatprep.subr.bf16.mxu0 %v9433_v19  ;;  %v939_v14 = vld [vmem:[%s14704_s1 + $0x1308] sm:$0xff]  ;;  %v9664_v19 = vcombine.low %v947_v4, %v951_v5  ;;  %v9513_v20 = vcombine.high %v795_v9, %v799_v12 }
 0x133   : > { %4767 = vmatpush1.bf16.msra.mxu1 %v9584_v18  ;;  %v943_v17 = vld [vmem:[%s14704_s1 + $0x1328] sm:$0xff]  ;;  %v9520_v18 = vcombine.low %v803_v63, %v807_v2  ;;  %v372_v2 = vld [vmem:[%s14704_s1 + $0x150] sm:$0xff] }
 0x134   : > { %4768 = vmatprep.subr.bf16.mxu1 %v9577_v22  ;;  %v787_v21 = vld [vmem:[%s14704_s1 + $0xe48] sm:$0xff]  ;;  %v9657_v24 = vcombine.high %v939_v14, %v943_v17 }
 0x135   : > { %4732 = vmatpush1.bf16.msra.mxu0 %v9432_v26  ;;  %v791_v22 = vld [vmem:[%s14704_s1 + $0xe68] sm:$0xff] }
 0x136   : > { %4733 = vmatprep.subr.bf16.mxu0 %v9553_v29  ;;  %v931_v25 = vld [vmem:[%s14704_s1 + $0x12c8] sm:$0xff]  ;;  %v9656_v29 = vcombine.low %v939_v14, %v943_v17  ;;  %v9505_v30 = vcombine.high %v787_v21, %v791_v22 }
 0x137   : > { %4769 = vmatpush1.bf16.msra.mxu1 %v9576_v28  ;;  %v935_v26 = vld [vmem:[%s14704_s1 + $0x12e8] sm:$0xff]  ;;  %v9512_v28 = vcombine.low %v795_v9, %v799_v12 }
 0x138   : > { %4770 = vmatprep.subr.bf16.mxu1 %v9569_v33  ;;  %v779_v32 = vld [vmem:[%s14704_s1 + $0xe08] sm:$0xff]  ;;  %v9649_v0 = vcombine.high %v931_v25, %v935_v26 }
 0x139   : > { %4734 = vmatpush2.bf16.msra.mxu0 %v9552_v37  ;;  %v783_v33 = vld [vmem:[%s14704_s1 + $0xe28] sm:$0xff] }
 0x13a   : > { %4735 = vmatprep.subr.bf16.mxu0 %v9545_v39  ;;  %v923_v36 = vld [vmem:[%s14704_s1 + $0x1288] sm:$0xff]  ;;  %v9648_v39 = vcombine.low %v931_v25, %v935_v26  ;;  %v9497_v40 = vcombine.high %v779_v32, %v783_v33  ;;  %v516_v25 = vld [vmem:[%s14704_s1 + $0x5d0] sm:$0xff] }
 0x13b   : > { %4771 = vmatpush1.bf16.msra.mxu1 %v9568_v38  ;;  %v927_v37 = vld [vmem:[%s14704_s1 + $0x12a8] sm:$0xff]  ;;  %v9504_v38 = vcombine.low %v787_v21, %v791_v22  ;;  %v368_v22 = vld [vmem:[%s14704_s1 + $0x130] sm:$0xff] }
 0x13c   : > { %4772 = vmatprep.subr.bf16.mxu1 %v9561_v43  ;;  %v392_v43 = vld [vmem:[%s14704_s1 + $0x1f0] sm:$0xff]  ;;  %v9641_v45 = vcombine.high %v923_v36, %v927_v37  ;;  %v915_v46 = vld [vmem:[%s14704_s1 + $0x1248] sm:$0xff] }
 0x13d   : > { %4736 = vmatpush2.bf16.msra.mxu0 %v9544_v60  ;;  %v919_v60 = vld [vmem:[%s14704_s1 + $0x1268] sm:$0xff]  ;;  %v9107_v52 = vcombine.high %v388_v42, %v392_v43 }
 0x13e   : > { %4737 = vmatprep.subr.bf16.mxu0 %v9537_v50  ;;  %v9640_v50 = vcombine.low %v923_v36, %v927_v37  ;;  %v9633_v55 = vcombine.high %v915_v46, %v919_v60  ;;  %v907_v56 = vld [vmem:[%s14704_s1 + $0x1208] sm:$0xff]  ;;  %v356_v37 = vld [vmem:[%s14704_s1 + $0xd0] sm:$0xff] }
 0x13f   : > { %4773 = vmatpush1.bf16.msra.mxu1 %v9560_v49  ;;  %v9496_v49 = vcombine.low %v779_v32, %v783_v33 }
 0x140   : > { %4774 = vmatprep.subr.bf16.mxu1 %v9681_v53  ;;  %v384_v53 = vld [vmem:[%s14704_s1 + $0x1b0] sm:$0xff] }
 0x141   : > { %4738 = vmatpush2.bf16.msra.mxu0 %v9536_v58  ;;  %v911_v58 = vld [vmem:[%s14704_s1 + $0x1228] sm:$0xff]  ;;  %v9099_v63 = vcombine.high %v380_v54, %v384_v53  ;;  %v9098_v12 = vcombine.low %v380_v54, %v384_v53 }
 0x142   : > { %4739 = vmatprep.subr.bf16.mxu0 %v9529_v62  ;;  %v9632_v62 = vcombine.low %v915_v46, %v919_v60  ;;  %v9625_v4 = vcombine.high %v907_v56, %v911_v58  ;;  %v9624_v14 = vcombine.low %v907_v56, %v911_v58  ;;  %v352_v46 = vld [vmem:[%s14704_s1 + $0xb0] sm:$0xff] }
 0x143   : > { %4775 = vmatpush2.bf16.msra.mxu1 %v9680_v59  ;;  %v9106_v59 = vcombine.low %v388_v42, %v392_v43  ;;  %v508_v60 = vld [vmem:[%s14704_s1 + $0x590] sm:$0xff] }
 0x144   : > { %4776 = vmatprep.subr.bf16.mxu1 %v9673_v3  ;;  %v376_v3 = vld [vmem:[%s14704_s1 + $0x170] sm:$0xff] }
 0x145   : > { %4740 = vmatpush2.bf16.msra.mxu0 %v9528_v6  ;;  %v971_v6 = vld [vmem:[%s14704_s1 + $0x1408] sm:$0xff]  ;;  %v9091_v17 = vcombine.high %v372_v2, %v376_v3  ;;  %v340_v58 = vld [vmem:[%s14704_s1 + $0x50] sm:$0xff] }
 0x146   : > { %4741 = vmatprep.subr.bf16.mxu0 %v9521_v8 }
 0x147   : > { %4777 = vmatpush2.bf16.msra.mxu1 %v9672_v7  ;;  %v975_v7 = vld [vmem:[%s14704_s1 + $0x1428] sm:$0xff] }
 0x148   : > { %4778 = vmatprep.subr.bf16.mxu1 %v9665_v13  ;;  %v9689_v21 = vcombine.high %v971_v6, %v975_v7 }
 0x149   : > { %4742 = vmatpush2.bf16.msra.mxu0 %v9520_v18 }
 0x14a   : > { %4743 = vmatprep.subr.bf16.mxu0 %v9513_v20 }
 0x14b   : > { %4779 = vmatpush2.bf16.msra.mxu1 %v9664_v19 }
 0x14c   : > { %4780 = vmatprep.subr.bf16.mxu1 %v9657_v24 }
 0x14d   : > { %4744 = vmatpush2.bf16.msra.mxu0 %v9512_v28 }
 0x14e   : > { %4745 = vmatprep.subr.bf16.mxu0 %v9505_v30  ;;  %v9688_v30 = vcombine.low %v971_v6, %v975_v7  ;;  %v332_v6 = vld [vmem:[%s14704_s1 + $0x10] sm:$0xff] }
 0x14f   : > { %4781 = vmatpush2.bf16.msra.mxu1 %v9656_v29  ;;  %v9090_v29 = vcombine.low %v372_v2, %v376_v3  ;;  %v336_v7 = vld [vmem:[%s14704_s1 + $0x30] sm:$0xff] }
 0x150   : > { %4782 = vmatprep.subr.bf16.mxu1 %v9649_v0 }
 0x151   : > { %4746 = vmatpush2.bf16.msra.mxu0 %v9504_v38  ;;  %v360_v38 = vld [vmem:[%s14704_s1 + $0xf0] sm:$0xff] }
 0x152   : > { %4747 = vmatprep.subr.bf16.mxu0 %v9497_v40  ;;  %v9075_v42 = vcombine.high %v356_v37, %v360_v38 }
 0x153   : > { %4783 = vmatpush2.bf16.msra.mxu1 %v9648_v39 }
 0x154   : > { %4784 = vmatprep.subr.bf16.mxu1 %v9641_v45  ;;  %v348_v45 = vld [vmem:[%s14704_s1 + $0x90] sm:$0xff] }
 0x155   : > { %4748 = vmatpush2.bf16.msra.mxu0 %v9496_v49  ;;  %v512_v49 = vld [vmem:[%s14704_s1 + $0x5b0] sm:$0xff]  ;;  %v9067_v53 = vcombine.high %v348_v45, %v352_v46  ;;  %v9066_v2 = vcombine.low %v348_v45, %v352_v46 }
 0x156   : > { %4840 = vmatprep.subr.bf16.mxu0 %v9107_v52  ;;  %v9074_v52 = vcombine.low %v356_v37, %v360_v38  ;;  %v9227_v56 = vcombine.high %v508_v60, %v512_v49  ;;  %v9226_v3 = vcombine.low %v508_v60, %v512_v49  ;;  %v436_v38 = vld [vmem:[%s14704_s1 + $0x350] sm:$0xff] }
 0x157   : > { %4785 = vmatpush2.bf16.msra.mxu1 %v9640_v50  ;;  %v472_v45 = vld [vmem:[%s14704_s1 + $0x470] sm:$0xff] }
 0x158   : > { %4786 = vmatprep.subr.bf16.mxu1 %v9633_v55  ;;  %v4464_v5 = vpop.f32.mrf.mxu0  ;;  %4750 = vmatmul.mubr.bf16.vlgmr.msra.gmra.mxu0 %v11552_v61 }
 0x159   : > { %v4465_v8 = vadd.f32 %v4464_v5, %v11978_v23  ;;  %4841 = vmatpush1.bf16.msra.mxu0 %v9106_v59  ;;  %4872 = vmatprep.mubr.bf16.mxu0 %v11203_v11  ;;  %v364_v23 = vld [vmem:[%s14704_s1 + $0x110] sm:$0xff] }
 0x15a   : > { %v4505_v9 = vpop.f32.mrf.mxu1  ;;  %v4466_v13 = vpop.f32.mrf.mxu0  ;;  %4842 = vmatprep.subr.bf16.mxu0 %v9099_v63  ;;  %v9083_v32 = vcombine.high %v364_v23, %v368_v22  ;;  %v9082_v40 = vcombine.low %v364_v23, %v368_v22  ;;  %v344_v59 = vld [vmem:[%s14704_s1 + $0x70] sm:$0xff]  ;;  %v9050_v22 = vcombine.low %v332_v6, %v336_v7 }
 0x15b   : > { %4787 = vmatpush2.bf16.msra.mxu1 %v9632_v62  ;;  %v12173_v18 = vadd.f32 %v4505_v9, %v4465_v8  ;;  %v4467_v19 = vadd.f32 %v4466_v13, %v11986_v31  ;;  %v520_v31 = vld [vmem:[%s14704_s1 + $0x5f0] sm:$0xff] }
 0x15c   : > { %v4507_v20 = vpop.f32.mrf.mxu1  ;;  %4788 = vmatprep.subr.bf16.mxu1 %v9625_v4  ;;  %v4468_v24 = vpop.f32.mrf.mxu0  ;;  %v9235_v36 = vcombine.high %v516_v25, %v520_v31  ;;  %v9234_v54 = vcombine.low %v516_v25, %v520_v31  ;;  %v500_v62 = vld [vmem:[%s14704_s1 + $0x550] sm:$0xff]  ;;  %v9059_v4 = vcombine.high %v340_v58, %v344_v59 }
 0x15d   : > { %v12188_v26 = vadd.f32 %v4507_v20, %v4467_v19  ;;  %4843 = vmatpush1.bf16.msra.mxu0 %v9098_v12  ;;  %v504_v63 = vld [vmem:[%s14704_s1 + $0x570] sm:$0xff]  ;;  %v9058_v12 = vcombine.low %v340_v58, %v344_v59 }
 0x15e   : > { %v4509_v28 = vpop.f32.mrf.mxu1  ;;  %4844 = vmatprep.subr.bf16.mxu0 %v9091_v17  ;;  %v4469_v33 = vpop.f32.mrf.mxu0  ;;  %v9219_v5 = vcombine.high %v500_v62, %v504_v63  ;;  %v492_v8 = vld [vmem:[%s14704_s1 + $0x510] sm:$0xff]  ;;  %v9218_v13 = vcombine.low %v500_v62, %v504_v63 }
 0x15f   : > { %4789 = vmatpush2.bf16.msra.mxu1 %v9624_v14  ;;  %v496_v9 = vld [vmem:[%s14704_s1 + $0x530] sm:$0xff]  ;;  %v9051_v14 = vcombine.high %v332_v6, %v336_v7 }
 0x160   : > { %v4510_v0 = vpop.f32.mrf.mxu1  ;;  %4813 = vmatprep.subr.bf16.mxu1 %v9689_v21  ;;  %v9211_v17 = vcombine.high %v492_v8, %v496_v9  ;;  %v452_v19 = vld [vmem:[%s14704_s1 + $0x3d0] sm:$0xff]  ;;  %v9210_v24 = vcombine.low %v492_v8, %v496_v9 }
 0x161   : > { %4845 = vmatpush1.bf16.msra.mxu0 %v9090_v29  ;;  %v456_v20 = vld [vmem:[%s14704_s1 + $0x3f0] sm:$0xff] }
 0x162   : > { %4791 = vmatmul.mubr.bf16.vlgmr.msra.gmra.mxu1 %v11186_v1  ;;  %v12197_v39 = vpop.f32.mrf.mxu1  ;;  %4846 = vmatprep.subr.bf16.mxu0 %v9083_v32  ;;  %v484_v21 = vld [vmem:[%s14704_s1 + $0x4d0] sm:$0xff]  ;;  %v9171_v25 = vcombine.high %v452_v19, %v456_v20  ;;  %v9170_v33 = vcombine.low %v452_v19, %v456_v20 }
 0x163   : > { %4814 = vmatpush1.bf16.msra.mxu1 %v9688_v30  ;;  %4831 = vmatprep.mubr.bf16.mxu1 %v10974_v10  ;;  %v488_v23 = vld [vmem:[%s14704_s1 + $0x4f0] sm:$0xff] }
 0x164   : > { %v12199_v43 = vpop.f32.mrf.mxu1  ;;  %4881 = vmatprep.subr.bf16.mxu1 %v9235_v36  ;;  %v9203_v31 = vcombine.high %v484_v21, %v488_v23  ;;  %v444_v28 = vld [vmem:[%s14704_s1 + $0x390] sm:$0xff]  ;;  %v9202_v0 = vcombine.low %v484_v21, %v488_v23 }
 0x165   : > { %4847 = vmatpush1.bf16.msra.mxu0 %v9082_v40  ;;  %v448_v29 = vld [vmem:[%s14704_s1 + $0x3b0] sm:$0xff] }
 0x166   : > { %v4591_v50 = vpop.f32.mrf.mxu1  ;;  %4848 = vmatprep.subr.bf16.mxu0 %v9075_v42  ;;  %v476_v30 = vld [vmem:[%s14704_s1 + $0x490] sm:$0xff]  ;;  %v9163_v36 = vcombine.high %v444_v28, %v448_v29  ;;  %v9162_v46 = vcombine.low %v444_v28, %v448_v29 }
 0x167   : > { %v480_v32 = vld [vmem:[%s14704_s1 + $0x4b0] sm:$0xff] }
 0x168   : > { %v4592_v55 = vpop.f32.mrf.mxu1  ;;  %v9195_v37 = vcombine.high %v476_v30, %v480_v32  ;;  %v440_v40 = vld [vmem:[%s14704_s1 + $0x370] sm:$0xff]  ;;  %v9194_v60 = vcombine.low %v476_v30, %v480_v32 }
 0x169   : > { %4849 = vmatpush1.bf16.msra.mxu0 %v9074_v52  ;;  %v468_v42 = vld [vmem:[%s14704_s1 + $0x450] sm:$0xff]  ;;  %v9155_v49 = vcombine.high %v436_v38, %v440_v40 }
 0x16a   : > { %9695 = vmatmul.mubr.msk.bf16.vlgmr.msra.gmra.mxu1 %vm4344_vm0, %v11578_v16  ;;  %4850 = vmatprep.subr.bf16.mxu0 %v9067_v53  ;;  %v9187_v50 = vcombine.high %v468_v42, %v472_v45  ;;  %v428_v52 = vld [vmem:[%s14704_s1 + $0x310] sm:$0xff]  ;;  %v9186_v58 = vcombine.low %v468_v42, %v472_v45 }
 0x16b   : > { %4882 = vmatpush1.bf16.msra.mxu1 %v9234_v54  ;;  %4913 = vmatprep.mubr.bf16.mxu1 %v11214_v15  ;;  %v432_v54 = vld [vmem:[%s14704_s1 + $0x330] sm:$0xff] }
 0x16c   : > { %4883 = vmatprep.subr.bf16.mxu1 %v9227_v56  ;;  %v460_v53 = vld [vmem:[%s14704_s1 + $0x410] sm:$0xff]  ;;  %v9154_v56 = vcombine.low %v436_v38, %v440_v40  ;;  %v9147_v59 = vcombine.high %v428_v52, %v432_v54 }
 0x16d   : > { %4851 = vmatpush1.bf16.msra.mxu0 %v9066_v2  ;;  %v464_v55 = vld [vmem:[%s14704_s1 + $0x430] sm:$0xff] }
 0x16e   : > { %4852 = vmatprep.subr.bf16.mxu0 %v9059_v4  ;;  %v9179_v62 = vcombine.high %v460_v53, %v464_v55  ;;  %v420_v63 = vld [vmem:[%s14704_s1 + $0x2d0] sm:$0xff]  ;;  %v9178_v6 = vcombine.low %v460_v53, %v464_v55 }
 0x16f   : > { %4884 = vmatpush1.bf16.msra.mxu1 %v9226_v3  ;;  %v424_v2 = vld [vmem:[%s14704_s1 + $0x2f0] sm:$0xff] }
 0x170   : > { %4885 = vmatprep.subr.bf16.mxu1 %v9219_v5  ;;  %v580_v3 = vld [vmem:[%s14704_s1 + $0x7d0] sm:$0xff]  ;;  %v9146_v5 = vcombine.low %v428_v52, %v432_v54  ;;  %v9139_v7 = vcombine.high %v420_v63, %v424_v2 }
 0x171   : > { %4853 = vmatpush1.bf16.msra.mxu0 %v9058_v12  ;;  %v584_v4 = vld [vmem:[%s14704_s1 + $0x7f0] sm:$0xff] }
 0x172   : > { %4854 = vmatprep.subr.bf16.mxu0 %v9051_v14  ;;  %v9299_v8 = vcombine.high %v580_v3, %v584_v4  ;;  %v412_v9 = vld [vmem:[%s14704_s1 + $0x290] sm:$0xff]  ;;  %v9298_v19 = vcombine.low %v580_v3, %v584_v4 }
 0x173   : > { %4886 = vmatpush1.bf16.msra.mxu1 %v9218_v13  ;;  %v416_v12 = vld [vmem:[%s14704_s1 + $0x2b0] sm:$0xff] }
 0x174   : > { %4887 = vmatprep.subr.bf16.mxu1 %v9211_v17  ;;  %v572_v13 = vld [vmem:[%s14704_s1 + $0x790] sm:$0xff]  ;;  %v9138_v17 = vcombine.low %v420_v63, %v424_v2  ;;  %v9131_v20 = vcombine.high %v412_v9, %v416_v12 }
 0x175   : > { %4855 = vmatpush1.bf16.msra.mxu0 %v9050_v22  ;;  %v576_v14 = vld [vmem:[%s14704_s1 + $0x7b0] sm:$0xff] }
 0x176   : > { %4856 = vmatprep.subr.bf16.mxu0 %v9171_v25  ;;  %v9291_v21 = vcombine.high %v572_v13, %v576_v14  ;;  %v404_v23 = vld [vmem:[%s14704_s1 + $0x250] sm:$0xff]  ;;  %v9290_v28 = vcombine.low %v572_v13, %v576_v14 }
 0x177   : > { %4888 = vmatpush1.bf16.msra.mxu1 %v9210_v24  ;;  %v408_v22 = vld [vmem:[%s14704_s1 + $0x270] sm:$0xff] }
 0x178   : > { %4889 = vmatprep.subr.bf16.mxu1 %v9203_v31  ;;  %v564_v24 = vld [vmem:[%s14704_s1 + $0x750] sm:$0xff]  ;;  %v9130_v31 = vcombine.low %v412_v9, %v416_v12  ;;  %v9123_v29 = vcombine.high %v404_v23, %v408_v22 }
 0x179   : > { %4857 = vmatpush2.bf16.msra.mxu0 %v9170_v33  ;;  %v568_v25 = vld [vmem:[%s14704_s1 + $0x770] sm:$0xff] }
 0x17a   : > { %4858 = vmatprep.subr.bf16.mxu0 %v9163_v36  ;;  %v9283_v30 = vcombine.high %v564_v24, %v568_v25  ;;  %v396_v32 = vld [vmem:[%s14704_s1 + $0x210] sm:$0xff]  ;;  %v9282_v38 = vcombine.low %v564_v24, %v568_v25 }
 0x17b   : > { %4890 = vmatpush1.bf16.msra.mxu1 %v9202_v0  ;;  %v400_v33 = vld [vmem:[%s14704_s1 + $0x230] sm:$0xff] }
 0x17c   : > { %4891 = vmatprep.subr.bf16.mxu1 %v9195_v37  ;;  %v556_v0 = vld [vmem:[%s14704_s1 + $0x710] sm:$0xff]  ;;  %v9122_v37 = vcombine.low %v404_v23, %v408_v22  ;;  %v9115_v40 = vcombine.high %v396_v32, %v400_v33 }
 0x17d   : > { %4859 = vmatpush2.bf16.msra.mxu0 %v9162_v46  ;;  %v560_v36 = vld [vmem:[%s14704_s1 + $0x730] sm:$0xff] }
 0x17e   : > { %4860 = vmatprep.subr.bf16.mxu0 %v9155_v49  ;;  %v9275_v42 = vcombine.high %v556_v0, %v560_v36  ;;  %v644_v45 = vld [vmem:[%s14704_s1 + $0x9d0] sm:$0xff]  ;;  %v9274_v52 = vcombine.low %v556_v0, %v560_v36 }
 0x17f   : > { %4892 = vmatpush1.bf16.msra.mxu1 %v9194_v60  ;;  %v648_v46 = vld [vmem:[%s14704_s1 + $0x9f0] sm:$0xff] }
 0x180   : > { %4893 = vmatprep.subr.bf16.mxu1 %v9187_v50  ;;  %v548_v60 = vld [vmem:[%s14704_s1 + $0x6d0] sm:$0xff]  ;;  %v9114_v50 = vcombine.low %v396_v32, %v400_v33  ;;  %v9363_v54 = vcombine.high %v644_v45, %v648_v46 }
 0x181   : > { %4861 = vmatpush2.bf16.msra.mxu0 %v9154_v56  ;;  %v552_v49 = vld [vmem:[%s14704_s1 + $0x6f0] sm:$0xff] }
 0x182   : > { %4862 = vmatprep.subr.bf16.mxu0 %v9147_v59  ;;  %v9267_v53 = vcombine.high %v548_v60, %v552_v49  ;;  %v636_v55 = vld [vmem:[%s14704_s1 + $0x990] sm:$0xff]  ;;  %v9266_v63 = vcombine.low %v548_v60, %v552_v49 }
 0x183   : > { %4894 = vmatpush1.bf16.msra.mxu1 %v9186_v58  ;;  %v640_v56 = vld [vmem:[%s14704_s1 + $0x9b0] sm:$0xff] }
 0x184   : > { %4895 = vmatprep.subr.bf16.mxu1 %v9179_v62  ;;  %v540_v58 = vld [vmem:[%s14704_s1 + $0x690] sm:$0xff]  ;;  %v9362_v62 = vcombine.low %v644_v45, %v648_v46  ;;  %v9355_v2 = vcombine.high %v636_v55, %v640_v56  ;;  %v9354_v12 = vcombine.low %v636_v55, %v640_v56 }
 0x185   : > { %4863 = vmatpush2.bf16.msra.mxu0 %v9146_v5  ;;  %v544_v59 = vld [vmem:[%s14704_s1 + $0x6b0] sm:$0xff] }
 0x186   : > { %4864 = vmatprep.subr.bf16.mxu0 %v9139_v7  ;;  %v9259_v3 = vcombine.high %v540_v58, %v544_v59  ;;  %v628_v4 = vld [vmem:[%s14704_s1 + $0x950] sm:$0xff]  ;;  %v9258_v14 = vcombine.low %v540_v58, %v544_v59 }
 0x187   : > { %4896 = vmatpush1.bf16.msra.mxu1 %v9178_v6  ;;  %v632_v5 = vld [vmem:[%s14704_s1 + $0x970] sm:$0xff] }
 0x188   : > { %4897 = vmatprep.subr.bf16.mxu1 %v9299_v8  ;;  %v532_v7 = vld [vmem:[%s14704_s1 + $0x650] sm:$0xff]  ;;  %v9346_v25 = vcombine.low %v628_v4, %v632_v5 }
 0x189   : > { %4865 = vmatpush2.bf16.msra.mxu0 %v9138_v17  ;;  %v536_v8 = vld [vmem:[%s14704_s1 + $0x670] sm:$0xff]  ;;  %v9347_v17 = vcombine.high %v628_v4, %v632_v5 }
 0x18a   : > { %4866 = vmatprep.subr.bf16.mxu0 %v9131_v20  ;;  %v624_v23 = vld [vmem:[%s14704_s1 + $0x930] sm:$0xff] }
 0x18b   : > { %4898 = vmatpush2.bf16.msra.mxu1 %v9298_v19  ;;  %v524_v22 = vld [vmem:[%s14704_s1 + $0x610] sm:$0xff] }
 0x18c   : > { %4899 = vmatprep.subr.bf16.mxu1 %v9291_v21  ;;  %v9251_v21 = vcombine.high %v532_v7, %v536_v8  ;;  %v612_v32 = vld [vmem:[%s14704_s1 + $0x8d0] sm:$0xff] }
 0x18d   : > { %4867 = vmatpush2.bf16.msra.mxu0 %v9130_v31  ;;  %v9250_v31 = vcombine.low %v532_v7, %v536_v8  ;;  %v616_v33 = vld [vmem:[%s14704_s1 + $0x8f0] sm:$0xff] }
 0x18e   : > { %4868 = vmatprep.subr.bf16.mxu0 %v9123_v29  ;;  %v776_v0 = vld [vmem:[%s14704_s1 + $0xdf0] sm:$0xff] }
 0x18f   : > { %4900 = vmatpush2.bf16.msra.mxu1 %v9290_v28  ;;  %v604_v46 = vld [vmem:[%s14704_s1 + $0x890] sm:$0xff] }
 0x190   : > { %4901 = vmatprep.subr.bf16.mxu1 %v9283_v30  ;;  %v608_v60 = vld [vmem:[%s14704_s1 + $0x8b0] sm:$0xff] }
 0x191   : > { %4869 = vmatpush2.bf16.msra.mxu0 %v9122_v37  ;;  %v764_v49 = vld [vmem:[%s14704_s1 + $0xd90] sm:$0xff]  ;;  %v9323_v55 = vcombine.high %v604_v46, %v608_v60 }
 0x192   : > { %4870 = vmatprep.subr.bf16.mxu0 %v9115_v40  ;;  %v9331_v40 = vcombine.high %v612_v32, %v616_v33  ;;  %v596_v59 = vld [vmem:[%s14704_s1 + $0x850] sm:$0xff] }
 0x193   : > { %4902 = vmatpush2.bf16.msra.mxu1 %v9282_v38  ;;  %v588_v7 = vld [vmem:[%s14704_s1 + $0x810] sm:$0xff] }
 0x194   : > { %4903 = vmatprep.subr.bf16.mxu1 %v9275_v42  ;;  %v592_v8 = vld [vmem:[%s14704_s1 + $0x830] sm:$0xff] }
 0x195   : > { %4871 = vmatpush2.bf16.msra.mxu0 %v9114_v50  ;;  %v768_v50 = vld [vmem:[%s14704_s1 + $0xdb0] sm:$0xff] }
 0x196   : > { %4922 = vmatprep.subr.bf16.mxu0 %v9363_v54  ;;  %v9330_v54 = vcombine.low %v612_v32, %v616_v33  ;;  %v9483_v58 = vcombine.high %v764_v49, %v768_v50  ;;  %v9482_v4 = vcombine.low %v764_v49, %v768_v50  ;;  %v736_v32 = vld [vmem:[%s14704_s1 + $0xcb0] sm:$0xff] }
 0x197   : > { %4904 = vmatpush2.bf16.msra.mxu1 %v9274_v52 }
 0x198   : > { %4905 = vmatprep.subr.bf16.mxu1 %v9267_v53  ;;  %v4546_v6 = vpop.f32.mrf.mxu0  ;;  %4873 = vmatmul.mubr.bf16.vlgmr.msra.gmra.mxu0 %v11324_v27 }
 0x199   : > { %v4547_v9 = vadd.f32 %v4546_v6, %v12173_v18  ;;  %4923 = vmatpush1.bf16.msra.mxu0 %v9362_v62  ;;  %4954 = vmatprep.mubr.bf16.mxu0 %v11339_v34  ;;  %v620_v18 = vld [vmem:[%s14704_s1 + $0x910] sm:$0xff] }
 0x19a   : > { %v4548_v13 = vpop.f32.mrf.mxu0  ;;  %4924 = vmatprep.subr.bf16.mxu0 %v9355_v2  ;;  %v9339_v28 = vcombine.high %v620_v18, %v624_v23  ;;  %v9338_v37 = vcombine.low %v620_v18, %v624_v23  ;;  %v600_v62 = vld [vmem:[%s14704_s1 + $0x870] sm:$0xff] }
 0x19b   : > { %4906 = vmatpush2.bf16.msra.mxu1 %v9266_v63  ;;  %v12377_v19 = vadd.f32 %v12197_v39, %v4547_v9  ;;  %v4549_v20 = vadd.f32 %v4548_v13, %v12188_v26  ;;  %v528_v39 = vld [vmem:[%s14704_s1 + $0x630] sm:$0xff]  ;;  %v9315_v5 = vcombine.high %v596_v59, %v600_v62  ;;  %v9314_v13 = vcombine.low %v596_v59, %v600_v62 }
 0x19c   : > { %4907 = vmatprep.subr.bf16.mxu1 %v9259_v3  ;;  %v4550_v24 = vpop.f32.mrf.mxu0  ;;  %v9243_v30 = vcombine.high %v524_v22, %v528_v39  ;;  %v9242_v38 = vcombine.low %v524_v22, %v528_v39  ;;  %v756_v63 = vld [vmem:[%s14704_s1 + $0xd50] sm:$0xff]  ;;  %v9322_v3 = vcombine.low %v604_v46, %v608_v60  ;;  %v9306_v39 = vcombine.low %v588_v7, %v592_v8 }
 0x19d   : > { %v12393_v26 = vadd.f32 %v12199_v43, %v4549_v20  ;;  %4925 = vmatpush1.bf16.msra.mxu0 %v9354_v12  ;;  %v772_v43 = vld [vmem:[%s14704_s1 + $0xdd0] sm:$0xff] }
 0x19e   : > { %4926 = vmatprep.subr.bf16.mxu0 %v9347_v17  ;;  %v4551_v29 = vpop.f32.mrf.mxu0  ;;  %v9491_v45 = vcombine.high %v772_v43, %v776_v0  ;;  %v9490_v53 = vcombine.low %v772_v43, %v776_v0  ;;  %v760_v2 = vld [vmem:[%s14704_s1 + $0xd70] sm:$0xff]  ;;  %v9307_v17 = vcombine.high %v588_v7, %v592_v8 }
 0x19f   : > { %4908 = vmatpush2.bf16.msra.mxu1 %v9258_v14  ;;  %v9475_v6 = vcombine.high %v756_v63, %v760_v2  ;;  %v748_v9 = vld [vmem:[%s14704_s1 + $0xd10] sm:$0xff]  ;;  %v9474_v14 = vcombine.low %v756_v63, %v760_v2 }
 0x1a0   : > { %4909 = vmatprep.subr.bf16.mxu1 %v9251_v21  ;;  %v752_v12 = vld [vmem:[%s14704_s1 + $0xd30] sm:$0xff] }
 0x1a1   : > { %4927 = vmatpush1.bf16.msra.mxu0 %v9346_v25  ;;  %v9467_v20 = vcombine.high %v748_v9, %v752_v12  ;;  %v708_v21 = vld [vmem:[%s14704_s1 + $0xbd0] sm:$0xff]  ;;  %v9466_v24 = vcombine.low %v748_v9, %v752_v12 }
 0x1a2   : > { %v12407_v36 = vpop.f32.mrf.mxu1  ;;  %4928 = vmatprep.subr.bf16.mxu0 %v9339_v28  ;;  %v712_v18 = vld [vmem:[%s14704_s1 + $0xbf0] sm:$0xff] }
 0x1a3   : > { %4910 = vmatpush2.bf16.msra.mxu1 %v9250_v31  ;;  %v740_v23 = vld [vmem:[%s14704_s1 + $0xcd0] sm:$0xff]  ;;  %v9427_v25 = vcombine.high %v708_v21, %v712_v18  ;;  %v9426_v33 = vcombine.low %v708_v21, %v712_v18 }
 0x1a4   : > { %v12409_v42 = vpop.f32.mrf.mxu1  ;;  %4911 = vmatprep.subr.bf16.mxu1 %v9243_v30  ;;  %v744_v22 = vld [vmem:[%s14704_s1 + $0xcf0] sm:$0xff] }
 0x1a5   : > { %4929 = vmatpush1.bf16.msra.mxu0 %v9338_v37  ;;  %v9459_v31 = vcombine.high %v740_v23, %v744_v22  ;;  %v700_v28 = vld [vmem:[%s14704_s1 + $0xb90] sm:$0xff]  ;;  %v9458_v43 = vcombine.low %v740_v23, %v744_v22 }
 0x1a6   : > { %v4632_v52 = vpop.f32.mrf.mxu1  ;;  %4930 = vmatprep.subr.bf16.mxu0 %v9331_v40  ;;  %v704_v29 = vld [vmem:[%s14704_s1 + $0xbb0] sm:$0xff] }
 0x1a7   : > { %4912 = vmatpush2.bf16.msra.mxu1 %v9242_v38  ;;  %v732_v30 = vld [vmem:[%s14704_s1 + $0xc90] sm:$0xff]  ;;  %v9419_v0 = vcombine.high %v700_v28, %v704_v29  ;;  %v9418_v60 = vcombine.low %v700_v28, %v704_v29 }
 0x1a8   : > { %v4633_v56 = vpop.f32.mrf.mxu1  ;;  %4963 = vmatprep.subr.bf16.mxu1 %v9491_v45  ;;  %v9451_v37 = vcombine.high %v732_v30, %v736_v32  ;;  %v692_v38 = vld [vmem:[%s14704_s1 + $0xb50] sm:$0xff]  ;;  %v9450_v49 = vcombine.low %v732_v30, %v736_v32 }
 0x1a9   : > { %4931 = vmatpush1.bf16.msra.mxu0 %v9330_v54  ;;  %v696_v40 = vld [vmem:[%s14704_s1 + $0xb70] sm:$0xff] }
 0x1aa   : > { %4914 = vmatmul.mubr.bf16.vlgmr.msra.gmra.mxu1 %v11343_v35  ;;  %4932 = vmatprep.subr.bf16.mxu0 %v9323_v55  ;;  %v724_v45 = vld [vmem:[%s14704_s1 + $0xc50] sm:$0xff]  ;;  %v9411_v50 = vcombine.high %v692_v38, %v696_v40 }
 0x1ab   : > { %4964 = vmatpush1.bf16.msra.mxu1 %v9490_v53  ;;  %4995 = vmatprep.mubr.bf16.mxu1 %v11362_v47  ;;  %v728_v46 = vld [vmem:[%s14704_s1 + $0xc70] sm:$0xff] }
 0x1ac   : > { %4965 = vmatprep.subr.bf16.mxu1 %v9483_v58  ;;  %v9443_v52 = vcombine.high %v724_v45, %v728_v46  ;;  %v684_v54 = vld [vmem:[%s14704_s1 + $0xb10] sm:$0xff]  ;;  %v9410_v58 = vcombine.low %v692_v38, %v696_v40  ;;  %v9442_v59 = vcombine.low %v724_v45, %v728_v46  ;;  %v12546_v45 = vsub.s32 2, %v11147_v44 }
 0x1ad   : > { %4933 = vmatpush1.bf16.msra.mxu0 %v9322_v3  ;;  %v688_v53 = vld [vmem:[%s14704_s1 + $0xb30] sm:$0xff] }
 0x1ae   : > { %4934 = vmatprep.subr.bf16.mxu0 %v9315_v5  ;;  %v716_v55 = vld [vmem:[%s14704_s1 + $0xc10] sm:$0xff]  ;;  %v9403_v62 = vcombine.high %v684_v54, %v688_v53 }
 0x1af   : > { %4966 = vmatpush1.bf16.msra.mxu1 %v9482_v4  ;;  %v720_v56 = vld [vmem:[%s14704_s1 + $0xc30] sm:$0xff] }
 0x1b0   : > { %4967 = vmatprep.subr.bf16.mxu1 %v9475_v6  ;;  %v9435_v63 = vcombine.high %v716_v55, %v720_v56  ;;  %v676_v2 = vld [vmem:[%s14704_s1 + $0xad0] sm:$0xff]  ;;  %v9402_v6 = vcombine.low %v684_v54, %v688_v53  ;;  %v9434_v7 = vcombine.low %v716_v55, %v720_v56  ;;  %v4318_v54 = vsub.s32 3, %v11147_v44 }
 0x1b1   : > { %4935 = vmatpush1.bf16.msra.mxu0 %v9314_v13  ;;  %v680_v3 = vld [vmem:[%s14704_s1 + $0xaf0] sm:$0xff] }
 0x1b2   : > { %4936 = vmatprep.subr.bf16.mxu0 %v9307_v17  ;;  %v836_v4 = vld [vmem:[%s14704_s1 + $0xfd0] sm:$0xff]  ;;  %v9395_v8 = vcombine.high %v676_v2, %v680_v3 }
 0x1b3   : > { %4968 = vmatpush1.bf16.msra.mxu1 %v9474_v14  ;;  %v840_v5 = vld [vmem:[%s14704_s1 + $0xff0] sm:$0xff] }
 0x1b4   : > { %4969 = vmatprep.subr.bf16.mxu1 %v9467_v20  ;;  %v9555_v9 = vcombine.high %v836_v4, %v840_v5  ;;  %v668_v12 = vld [vmem:[%s14704_s1 + $0xa90] sm:$0xff]  ;;  %v9394_v20 = vcombine.low %v676_v2, %v680_v3  ;;  %v9554_v21 = vcombine.low %v836_v4, %v840_v5 }
 0x1b5   : > { %4937 = vmatpush1.bf16.msra.mxu0 %v9306_v39  ;;  %v672_v13 = vld [vmem:[%s14704_s1 + $0xab0] sm:$0xff] }
 0x1b6   : > { %4938 = vmatprep.subr.bf16.mxu0 %v9427_v25  ;;  %v828_v14 = vld [vmem:[%s14704_s1 + $0xf90] sm:$0xff]  ;;  %v9387_v18 = vcombine.high %v668_v12, %v672_v13 }
 0x1b7   : > { %4970 = vmatpush1.bf16.msra.mxu1 %v9466_v24  ;;  %v832_v17 = vld [vmem:[%s14704_s1 + $0xfb0] sm:$0xff] }
 0x1b8   : > { %4971 = vmatprep.subr.bf16.mxu1 %v9459_v31  ;;  %v9547_v23 = vcombine.high %v828_v14, %v832_v17  ;;  %v660_v22 = vld [vmem:[%s14704_s1 + $0xa50] sm:$0xff]  ;;  %v9386_v31 = vcombine.low %v668_v12, %v672_v13  ;;  %v9546_v28 = vcombine.low %v828_v14, %v832_v17 }
 0x1b9   : > { %4939 = vmatpush2.bf16.msra.mxu0 %v9426_v33  ;;  %v664_v39 = vld [vmem:[%s14704_s1 + $0xa70] sm:$0xff] }
 0x1ba   : > { %4940 = vmatprep.subr.bf16.mxu0 %v9419_v0  ;;  %v820_v24 = vld [vmem:[%s14704_s1 + $0xf50] sm:$0xff]  ;;  %v9379_v29 = vcombine.high %v660_v22, %v664_v39 }
 0x1bb   : > { %4972 = vmatpush1.bf16.msra.mxu1 %v9458_v43  ;;  %v824_v25 = vld [vmem:[%s14704_s1 + $0xf70] sm:$0xff] }
 0x1bc   : > { %4973 = vmatprep.subr.bf16.mxu1 %v9451_v37  ;;  %v9539_v30 = vcombine.high %v820_v24, %v824_v25  ;;  %v652_v32 = vld [vmem:[%s14704_s1 + $0xa10] sm:$0xff]  ;;  %v9378_v37 = vcombine.low %v660_v22, %v664_v39  ;;  %v9538_v38 = vcombine.low %v820_v24, %v824_v25 }
 0x1bd   : > { %4941 = vmatpush2.bf16.msra.mxu0 %v9418_v60  ;;  %v656_v33 = vld [vmem:[%s14704_s1 + $0xa30] sm:$0xff] }
 0x1be   : > { %4942 = vmatprep.subr.bf16.mxu0 %v9411_v50  ;;  %v812_v43 = vld [vmem:[%s14704_s1 + $0xf10] sm:$0xff]  ;;  %v9371_v40 = vcombine.high %v652_v32, %v656_v33  ;;  %v9370_v53 = vcombine.low %v652_v32, %v656_v33 }
 0x1bf   : > { %4974 = vmatpush1.bf16.msra.mxu1 %v9450_v49  ;;  %v816_v0 = vld [vmem:[%s14704_s1 + $0xf30] sm:$0xff] }
 0x1c0   : > { %4975 = vmatprep.subr.bf16.mxu1 %v9443_v52  ;;  %v9531_v46 = vcombine.high %v812_v43, %v816_v0  ;;  %v900_v60 = vld [vmem:[%s14704_s1 + $0x11d0] sm:$0xff]  ;;  %v9530_v55 = vcombine.low %v812_v43, %v816_v0 }
 0x1c1   : > { %4943 = vmatpush2.bf16.msra.mxu0 %v9410_v58  ;;  %v904_v49 = vld [vmem:[%s14704_s1 + $0x11f0] sm:$0xff]  ;;  %v12564_v58 = vld [vmem:[%s14705_s2] sm:$0xff] }
 0x1c2   : > { %4944 = vmatprep.subr.bf16.mxu0 %v9403_v62  ;;  %v804_v50 = vld [vmem:[%s14704_s1 + $0xed0] sm:$0xff]  ;;  %v9619_v56 = vcombine.high %v900_v60, %v904_v49  ;;  %v4319_v5 = vrot.slane %v12564_v58, %v4318_v54 }
 0x1c3   : > { %4976 = vmatpush1.bf16.msra.mxu1 %v9442_v59  ;;  %v808_v52 = vld [vmem:[%s14704_s1 + $0xef0] sm:$0xff]  ;;  %v4315_v59 = vrot.slane %v12564_v58, %v12546_v45 }
 0x1c4   : > { %4977 = vmatprep.subr.bf16.mxu1 %v9435_v63  ;;  %v9523_v62 = vcombine.high %v804_v50, %v808_v52  ;;  %v892_v63 = vld [vmem:[%s14704_s1 + $0x1190] sm:$0xff] }
 0x1c5   : > { %4945 = vmatpush2.bf16.msra.mxu0 %v9402_v6  ;;  %v896_v2 = vld [vmem:[%s14704_s1 + $0x11b0] sm:$0xff]  ;;  %v9618_v6 = vcombine.low %v900_v60, %v904_v49 }
 0x1c6   : > { %4946 = vmatprep.subr.bf16.mxu0 %v9395_v8  ;;  %v796_v3 = vld [vmem:[%s14704_s1 + $0xe90] sm:$0xff]  ;;  %v9611_v8 = vcombine.high %v892_v63, %v896_v2 }
 0x1c7   : > { %4978 = vmatpush1.bf16.msra.mxu1 %v9434_v7  ;;  %v800_v4 = vld [vmem:[%s14704_s1 + $0xeb0] sm:$0xff]  ;;  %v9522_v7 = vcombine.low %v804_v50, %v808_v52 }
 0x1c8   : > { %4979 = vmatprep.subr.bf16.mxu1 %v9555_v9  ;;  %v4629_v9 = vadd.f32 %v12407_v36, %v4315_v59  ;;  %v9515_v12 = vcombine.high %v796_v3, %v800_v4  ;;  %v884_v13 = vld [vmem:[%s14704_s1 + $0x1150] sm:$0xff]  ;;  %v9514_v39 = vcombine.low %v796_v3, %v800_v4  ;;  %v389_v4 = vld [vmem:[%s14704_s1 + $0x1d8] sm:$0xff] }
 0x1c9   : > { %4947 = vmatpush2.bf16.msra.mxu0 %v9394_v20  ;;  %v888_v14 = vld [vmem:[%s14704_s1 + $0x1170] sm:$0xff] }
 0x1ca   : > { %4948 = vmatprep.subr.bf16.mxu0 %v9387_v18  ;;  %v788_v20 = vld [vmem:[%s14704_s1 + $0xe50] sm:$0xff]  ;;  %v9603_v24 = vcombine.high %v884_v13, %v888_v14  ;;  %v9602_v33 = vcombine.low %v884_v13, %v888_v14 }
 0x1cb   : > { %4980 = vmatpush2.bf16.msra.mxu1 %v9554_v21  ;;  %v792_v36 = vld [vmem:[%s14704_s1 + $0xe70] sm:$0xff]  ;;  %v4631_v21 = vadd.f32 %v12409_v42, %v4319_v5  ;;  %v393_v5 = vld [vmem:[%s14704_s1 + $0x1f8] sm:$0xff] }
 0x1cc   : > { %4981 = vmatprep.subr.bf16.mxu1 %v9547_v23  ;;  %v9610_v23 = vcombine.low %v892_v63, %v896_v2  ;;  %v880_v42 = vld [vmem:[%s14704_s1 + $0x1130] sm:$0xff]  ;;  %v9506_v43 = vcombine.low %v788_v20, %v792_v36  ;;  %v9109_v13 = vcombine.high %v389_v4, %v393_v5 }
 0x1cd   : > { %4949 = vmatpush2.bf16.msra.mxu0 %v9386_v31  ;;  %v9507_v31 = vcombine.high %v788_v20, %v792_v36  ;;  %v972_v60 = vld [vmem:[%s14704_s1 + $0x1410] sm:$0xff] }
 0x1ce   : > { %4950 = vmatprep.subr.bf16.mxu0 %v9379_v29  ;;  %v780_v29 = vld [vmem:[%s14704_s1 + $0xe10] sm:$0xff] }
 0x1cf   : > { %4982 = vmatpush2.bf16.msra.mxu1 %v9546_v28  ;;  %v876_v28 = vld [vmem:[%s14704_s1 + $0x1110] sm:$0xff] }
 0x1d0   : > { %4983 = vmatprep.subr.bf16.mxu1 %v9539_v30  ;;  %v784_v30 = vld [vmem:[%s14704_s1 + $0xe30] sm:$0xff]  ;;  %v9595_v0 = vcombine.high %v876_v28, %v880_v42  ;;  %v9594_v52 = vcombine.low %v876_v28, %v880_v42 }
 0x1d1   : > { %4951 = vmatpush2.bf16.msra.mxu0 %v9378_v37  ;;  %v976_v49 = vld [vmem:[%s14704_s1 + $0x1430] sm:$0xff] }
 0x1d2   : > { %4952 = vmatprep.subr.bf16.mxu0 %v9371_v40  ;;  %v868_v40 = vld [vmem:[%s14704_s1 + $0x10d0] sm:$0xff] }
 0x1d3   : > { %4984 = vmatpush2.bf16.msra.mxu1 %v9538_v38  ;;  %v9499_v38 = vcombine.high %v780_v29, %v784_v30  ;;  %v860_v63 = vld [vmem:[%s14704_s1 + $0x1090] sm:$0xff] }
 0x1d4   : > { %4985 = vmatprep.subr.bf16.mxu1 %v9531_v46  ;;  %v872_v46 = vld [vmem:[%s14704_s1 + $0x10f0] sm:$0xff] }
 0x1d5   : > { %4953 = vmatpush2.bf16.msra.mxu0 %v9370_v53  ;;  %v864_v2 = vld [vmem:[%s14704_s1 + $0x10b0] sm:$0xff] }
 0x1d6   : > { %5004 = vmatprep.subr.bf16.mxu0 %v9619_v56  ;;  %v9587_v56 = vcombine.high %v868_v40, %v872_v46  ;;  %v852_v14 = vld [vmem:[%s14704_s1 + $0x1050] sm:$0xff]  ;;  %v9578_v20 = vcombine.low %v860_v63, %v864_v2 }
 0x1d7   : > { %4986 = vmatpush2.bf16.msra.mxu1 %v9530_v55  ;;  %v9498_v55 = vcombine.low %v780_v29, %v784_v30  ;;  %v964_v28 = vld [vmem:[%s14704_s1 + $0x13d0] sm:$0xff]  ;;  %v373_v29 = vld [vmem:[%s14704_s1 + $0x158] sm:$0xff] }
 0x1d8   : > { %4987 = vmatprep.subr.bf16.mxu1 %v9523_v62  ;;  %v4669_v17 = vpop.f32.mrf.mxu0  ;;  %4955 = vmatmul.mubr.bf16.vlgmr.msra.gmra.mxu0 %v11258_v41  ;;  %v9691_v62 = vcombine.high %v972_v60, %v976_v49  ;;  %v968_v42 = vld [vmem:[%s14704_s1 + $0x13f0] sm:$0xff]  ;;  %v377_v30 = vld [vmem:[%s14704_s1 + $0x178] sm:$0xff] }
 0x1d9   : > { %v4670_v18 = vadd.f32 %v4669_v17, %v4629_v9  ;;  %5005 = vmatpush1.bf16.msra.mxu0 %v9618_v6  ;;  %5036 = vmatprep.mubr.bf16.mxu0 %v11365_v48  ;;  %v9579_v9 = vcombine.high %v860_v63, %v864_v2  ;;  %v856_v17 = vld [vmem:[%s14704_s1 + $0x1070] sm:$0xff] }
 0x1da   : > { %v4671_v22 = vpop.f32.mrf.mxu0  ;;  %5006 = vmatprep.subr.bf16.mxu0 %v9611_v8  ;;  %v9690_v8 = vcombine.low %v972_v60, %v976_v49  ;;  %v9571_v36 = vcombine.high %v852_v14, %v856_v17  ;;  %v9682_v60 = vcombine.low %v964_v28, %v968_v42  ;;  %v9092_v49 = vcombine.low %v373_v29, %v377_v30 }
 0x1db   : > { %4988 = vmatpush2.bf16.msra.mxu1 %v9522_v7  ;;  %v4672_v25 = vadd.f32 %v4671_v22, %v4631_v21  ;;  %v9586_v7 = vcombine.low %v868_v40, %v872_v46  ;;  %v844_v21 = vld [vmem:[%s14704_s1 + $0x1010] sm:$0xff]  ;;  %v385_v22 = vld [vmem:[%s14704_s1 + $0x1b8] sm:$0xff] }
 0x1dc   : > { %4989 = vmatprep.subr.bf16.mxu1 %v9515_v12  ;;  %v4673_v32 = vpop.f32.mrf.mxu0  ;;  %v365_v40 = vld [vmem:[%s14704_s1 + $0x118] sm:$0xff] }
 0x1dd   : > { %5007 = vmatpush1.bf16.msra.mxu0 %v9610_v23  ;;  %v381_v23 = vld [vmem:[%s14704_s1 + $0x198] sm:$0xff] }
 0x1de   : > { %5008 = vmatprep.subr.bf16.mxu0 %v9603_v24  ;;  %v4674_v37 = vpop.f32.mrf.mxu0  ;;  %v9108_v24 = vcombine.low %v389_v4, %v393_v5  ;;  %v369_v46 = vld [vmem:[%s14704_s1 + $0x138] sm:$0xff]  ;;  %v940_v5 = vld [vmem:[%s14704_s1 + $0x1310] sm:$0xff] }
 0x1df   : > { %4990 = vmatpush2.bf16.msra.mxu1 %v9514_v39  ;;  %v9570_v39 = vcombine.low %v852_v14, %v856_v17  ;;  %v956_v37 = vld [vmem:[%s14704_s1 + $0x1390] sm:$0xff]  ;;  %v9084_v63 = vcombine.low %v365_v40, %v369_v46 }
 0x1e0   : > { %4991 = vmatprep.subr.bf16.mxu1 %v9507_v31  ;;  %v9101_v31 = vcombine.high %v381_v23, %v385_v22  ;;  %v932_v17 = vld [vmem:[%s14704_s1 + $0x12d0] sm:$0xff] }
 0x1e1   : > { %5009 = vmatpush1.bf16.msra.mxu0 %v9602_v33  ;;  %v9100_v33 = vcombine.low %v381_v23, %v385_v22 }
 0x1e2   : > { %v4710_v50 = vpop.f32.mrf.mxu1  ;;  %5010 = vmatprep.subr.bf16.mxu0 %v9595_v0  ;;  %v9093_v0 = vcombine.high %v373_v29, %v377_v30 }
 0x1e3   : > { %v12623_v53 = vadd.f32 %v4710_v50, %v4670_v18  ;;  %4992 = vmatpush2.bf16.msra.mxu1 %v9506_v43  ;;  %v848_v18 = vld [vmem:[%s14704_s1 + $0x1030] sm:$0xff]  ;;  %v9683_v43 = vcombine.high %v964_v28, %v968_v42  ;;  %v337_v28 = vld [vmem:[%s14704_s1 + $0x38] sm:$0xff] }
 0x1e4   : > { %v4712_v59 = vpop.f32.mrf.mxu1  ;;  %4993 = vmatprep.subr.bf16.mxu1 %v9499_v38  ;;  %v9562_v32 = vcombine.low %v844_v21, %v848_v18  ;;  %v960_v38 = vld [vmem:[%s14704_s1 + $0x13b0] sm:$0xff] }
 0x1e5   : > { %v12631_v3 = vadd.f32 %v4712_v59, %v4672_v25  ;;  %5011 = vmatpush1.bf16.msra.mxu0 %v9594_v52  ;;  %v9563_v25 = vcombine.high %v844_v21, %v848_v18  ;;  %v9675_v50 = vcombine.high %v956_v37, %v960_v38  ;;  %v9085_v52 = vcombine.high %v365_v40, %v369_v46  ;;  %v361_v59 = vld [vmem:[%s14704_s1 + $0xf8] sm:$0xff] }
 0x1e6   : > { %v4714_v6 = vpop.f32.mrf.mxu1  ;;  %5012 = vmatprep.subr.bf16.mxu0 %v9587_v56  ;;  %v357_v56 = vld [vmem:[%s14704_s1 + $0xd8] sm:$0xff] }
 0x1e7   : > { %4994 = vmatpush2.bf16.msra.mxu1 %v9498_v55  ;;  %v952_v55 = vld [vmem:[%s14704_s1 + $0x1370] sm:$0xff]  ;;  %v9077_v4 = vcombine.high %v357_v56, %v361_v59  ;;  %v345_v21 = vld [vmem:[%s14704_s1 + $0x78] sm:$0xff] }
 0x1e8   : > { %v4715_v12 = vpop.f32.mrf.mxu1  ;;  %5059 = vmatprep.subr.bf16.mxu1 %v9691_v62  ;;  %v9674_v62 = vcombine.low %v956_v37, %v960_v38  ;;  %v944_v6 = vld [vmem:[%s14704_s1 + $0x1330] sm:$0xff]  ;;  %v457_v37 = vld [vmem:[%s14704_s1 + $0x3f8] sm:$0xff] }
 0x1e9   : > { %5013 = vmatpush1.bf16.msra.mxu0 %v9586_v7  ;;  %v349_v7 = vld [vmem:[%s14704_s1 + $0x98] sm:$0xff]  ;;  %v9076_v12 = vcombine.low %v357_v56, %v361_v59  ;;  %v9658_v18 = vcombine.low %v940_v5, %v944_v6 }
 0x1ea   : > { %4996 = vmatmul.mubr.bf16.vlgmr.msra.gmra.mxu1 %v11552_v61  ;;  %5014 = vmatprep.subr.bf16.mxu0 %v9579_v9 }
 0x1eb   : > { %5060 = vmatpush1.bf16.msra.mxu1 %v9690_v8  ;;  %5077 = vmatprep.mubr.bf16.mxu1 %v10974_v10  ;;  %v353_v8 = vld [vmem:[%s14704_s1 + $0xb8] sm:$0xff] }
 0x1ec   : > { %5086 = vmatprep.subr.bf16.mxu1 %v9109_v13  ;;  %v9659_v13 = vcombine.high %v940_v5, %v944_v6  ;;  %v9069_v14 = vcombine.high %v349_v7, %v353_v8  ;;  %v9068_v23 = vcombine.low %v349_v7, %v353_v8  ;;  %v441_v5 = vld [vmem:[%s14704_s1 + $0x378] sm:$0xff] }
 0x1ed   : > { %5015 = vmatpush1.bf16.msra.mxu0 %v9578_v20  ;;  %v936_v20 = vld [vmem:[%s14704_s1 + $0x12f0] sm:$0xff] }
 0x1ee   : > { %5016 = vmatprep.subr.bf16.mxu0 %v9571_v36  ;;  %v341_v36 = vld [vmem:[%s14704_s1 + $0x58] sm:$0xff]  ;;  %v9651_v22 = vcombine.high %v932_v17, %v936_v20  ;;  %v9650_v42 = vcombine.low %v932_v17, %v936_v20 }
 0x1ef   : > { %v9060_v29 = vcombine.low %v341_v36, %v345_v21  ;;  %v433_v17 = vld [vmem:[%s14704_s1 + $0x338] sm:$0xff] }
 0x1f1   : > { %5017 = vmatpush1.bf16.msra.mxu0 %v9570_v39  ;;  %v9061_v39 = vcombine.high %v341_v36, %v345_v21 }
 0x1f2   : > { %9696 = vmatmul.mubr.msk.bf16.vlgmr.msra.gmra.mxu1 %vm4344_vm0, %v11578_v16  ;;  %5018 = vmatprep.subr.bf16.mxu0 %v9563_v25  ;;  %v928_v25 = vld [vmem:[%s14704_s1 + $0x12b0] sm:$0xff] }
 0x1f3   : > { %5087 = vmatpush1.bf16.msra.mxu1 %v9108_v24  ;;  %5118 = vmatprep.mubr.bf16.mxu1 %v11203_v11  ;;  %v948_v11 = vld [vmem:[%s14704_s1 + $0x1350] sm:$0xff] }
 0x1f4   : > { %5088 = vmatprep.subr.bf16.mxu1 %v9101_v31  ;;  %v9667_v2 = vcombine.high %v948_v11, %v952_v55  ;;  %v9666_v9 = vcombine.low %v948_v11, %v952_v55  ;;  %v924_v24 = vld [vmem:[%s14704_s1 + $0x1290] sm:$0xff]  ;;  %v333_v31 = vld [vmem:[%s14704_s1 + $0x18] sm:$0xff] }
 0x1f5   : > { %5019 = vmatpush1.bf16.msra.mxu0 %v9562_v32  ;;  %v9643_v30 = vcombine.high %v924_v24, %v928_v25  ;;  %v9053_v32 = vcombine.high %v333_v31, %v337_v28  ;;  %v9642_v38 = vcombine.low %v924_v24, %v928_v25  ;;  %v9052_v40 = vcombine.low %v333_v31, %v337_v28  ;;  %v449_v11 = vld [vmem:[%s14704_s1 + $0x3b8] sm:$0xff] }
 0x1f6   : > { %5020 = vmatprep.subr.bf16.mxu0 %v9683_v43  ;;  %v920_v43 = vld [vmem:[%s14704_s1 + $0x1270] sm:$0xff]  ;;  %v421_v24 = vld [vmem:[%s14704_s1 + $0x2d8] sm:$0xff] }
 0x1f7   : > { %5089 = vmatpush1.bf16.msra.mxu1 %v9100_v33  ;;  %v916_v33 = vld [vmem:[%s14704_s1 + $0x1250] sm:$0xff]  ;;  %v425_v25 = vld [vmem:[%s14704_s1 + $0x2f8] sm:$0xff] }
 0x1f8   : > { %5090 = vmatprep.subr.bf16.mxu1 %v9093_v0  ;;  %v453_v0 = vld [vmem:[%s14704_s1 + $0x3d8] sm:$0xff]  ;;  %v9635_v46 = vcombine.high %v916_v33, %v920_v43  ;;  %v9634_v55 = vcombine.low %v916_v33, %v920_v43  ;;  %v9141_v33 = vcombine.high %v421_v24, %v425_v25 }
 0x1f9   : > { %5021 = vmatpush2.bf16.msra.mxu0 %v9682_v60  ;;  %v9173_v60 = vcombine.high %v453_v0, %v457_v37  ;;  %v9172_v56 = vcombine.low %v453_v0, %v457_v37  ;;  %v493_v43 = vld [vmem:[%s14704_s1 + $0x518] sm:$0xff] }
 0x1fa   : > { %5022 = vmatprep.subr.bf16.mxu0 %v9675_v50  ;;  %v912_v50 = vld [vmem:[%s14704_s1 + $0x1230] sm:$0xff]  ;;  %v417_v0 = vld [vmem:[%s14704_s1 + $0x2b8] sm:$0xff] }
 0x1fb   : > { %5091 = vmatpush1.bf16.msra.mxu1 %v9092_v49  ;;  %v908_v49 = vld [vmem:[%s14704_s1 + $0x1210] sm:$0xff] }
 0x1fc   : > { %5092 = vmatprep.subr.bf16.mxu1 %v9085_v52  ;;  %v445_v52 = vld [vmem:[%s14704_s1 + $0x398] sm:$0xff]  ;;  %v9627_v59 = vcombine.high %v908_v49, %v912_v50  ;;  %v9626_v6 = vcombine.low %v908_v49, %v912_v50 }
 0x1fd   : > { %5023 = vmatpush2.bf16.msra.mxu0 %v9674_v62  ;;  %v9165_v62 = vcombine.high %v445_v52, %v449_v11  ;;  %v9164_v7 = vcombine.low %v445_v52, %v449_v11  ;;  %v485_v49 = vld [vmem:[%s14704_s1 + $0x4d8] sm:$0xff] }
 0x1fe   : > { %5024 = vmatprep.subr.bf16.mxu0 %v9667_v2  ;;  %v521_v2 = vld [vmem:[%s14704_s1 + $0x5f8] sm:$0xff] }
 0x1ff   : > { %5093 = vmatpush1.bf16.msra.mxu1 %v9084_v63  ;;  %v517_v63 = vld [vmem:[%s14704_s1 + $0x5d8] sm:$0xff] }
 0x200   : > { %5094 = vmatprep.subr.bf16.mxu1 %v9077_v4  ;;  %v437_v4 = vld [vmem:[%s14704_s1 + $0x358] sm:$0xff]  ;;  %v9237_v8 = vcombine.high %v517_v63, %v521_v2  ;;  %v9236_v20 = vcombine.low %v517_v63, %v521_v2 }
 0x201   : > { %5025 = vmatpush2.bf16.msra.mxu0 %v9666_v9  ;;  %v9157_v9 = vcombine.high %v437_v4, %v441_v5  ;;  %v9156_v36 = vcombine.low %v437_v4, %v441_v5  ;;  %v489_v50 = vld [vmem:[%s14704_s1 + $0x4f8] sm:$0xff] }
 0x202   : > { %5026 = vmatprep.subr.bf16.mxu0 %v9659_v13  ;;  %v513_v13 = vld [vmem:[%s14704_s1 + $0x5b8] sm:$0xff]  ;;  %v9205_v63 = vcombine.high %v485_v49, %v489_v50 }
 0x203   : > { %5095 = vmatpush1.bf16.msra.mxu1 %v9076_v12  ;;  %v509_v12 = vld [vmem:[%s14704_s1 + $0x598] sm:$0xff] }
 0x204   : > { %5096 = vmatprep.subr.bf16.mxu1 %v9069_v14  ;;  %v429_v14 = vld [vmem:[%s14704_s1 + $0x318] sm:$0xff]  ;;  %v9229_v21 = vcombine.high %v509_v12, %v513_v13  ;;  %v9228_v28 = vcombine.low %v509_v12, %v513_v13  ;;  %v9204_v13 = vcombine.low %v485_v49, %v489_v50 }
 0x205   : > { %5027 = vmatpush2.bf16.msra.mxu0 %v9658_v18  ;;  %v9149_v18 = vcombine.high %v429_v14, %v433_v17  ;;  %v405_v52 = vld [vmem:[%s14704_s1 + $0x258] sm:$0xff] }
 0x206   : > { %5028 = vmatprep.subr.bf16.mxu0 %v9651_v22  ;;  %v505_v22 = vld [vmem:[%s14704_s1 + $0x578] sm:$0xff] }
 0x207   : > { %5097 = vmatpush1.bf16.msra.mxu1 %v9068_v23  ;;  %v501_v23 = vld [vmem:[%s14704_s1 + $0x558] sm:$0xff] }
 0x208   : > { %5098 = vmatprep.subr.bf16.mxu1 %v9061_v39  ;;  %v409_v11 = vld [vmem:[%s14704_s1 + $0x278] sm:$0xff] }
 0x209   : > { %5029 = vmatpush2.bf16.msra.mxu0 %v9650_v42  ;;  %v9148_v42 = vcombine.low %v429_v14, %v433_v17  ;;  %v9125_v4 = vcombine.high %v405_v52, %v409_v11  ;;  %v477_v5 = vld [vmem:[%s14704_s1 + $0x498] sm:$0xff]  ;;  %v9124_v14 = vcombine.low %v405_v52, %v409_v11 }
 0x20a   : > { %5030 = vmatprep.subr.bf16.mxu0 %v9643_v30  ;;  %v9221_v30 = vcombine.high %v501_v23, %v505_v22  ;;  %v629_v49 = vld [vmem:[%s14704_s1 + $0x958] sm:$0xff] }
 0x20b   : > { %5099 = vmatpush1.bf16.msra.mxu1 %v9060_v29  ;;  %v633_v50 = vld [vmem:[%s14704_s1 + $0x978] sm:$0xff] }
 0x20c   : > { %5100 = vmatprep.subr.bf16.mxu1 %v9053_v32 }
 0x20d   : > { %5031 = vmatpush2.bf16.msra.mxu0 %v9642_v38  ;;  %v9140_v38 = vcombine.low %v421_v24, %v425_v25 }
 0x20e   : > { %5032 = vmatprep.subr.bf16.mxu0 %v9635_v46 }
 0x20f   : > { %5101 = vmatpush1.bf16.msra.mxu1 %v9052_v40 }
 0x210   : > { %5102 = vmatprep.subr.bf16.mxu1 %v9173_v60 }
 0x211   : > { %5033 = vmatpush2.bf16.msra.mxu0 %v9634_v55 }
 0x212   : > { %5034 = vmatprep.subr.bf16.mxu0 %v9627_v59 }
 0x213   : > { %5103 = vmatpush2.bf16.msra.mxu1 %v9172_v56 }
 0x214   : > { %5104 = vmatprep.subr.bf16.mxu1 %v9165_v62 }
 0x215   : > { %5035 = vmatpush2.bf16.msra.mxu0 %v9626_v6  ;;  %v481_v6 = vld [vmem:[%s14704_s1 + $0x4b8] sm:$0xff] }
 0x216   : > { %5127 = vmatprep.subr.bf16.mxu0 %v9237_v8  ;;  %v397_v8 = vld [vmem:[%s14704_s1 + $0x218] sm:$0xff]  ;;  %v9197_v17 = vcombine.high %v477_v5, %v481_v6  ;;  %v9196_v24 = vcombine.low %v477_v5, %v481_v6 }
 0x217   : > { %5105 = vmatpush2.bf16.msra.mxu1 %v9164_v7 }
 0x218   : > { %5106 = vmatprep.subr.bf16.mxu1 %v9157_v9  ;;  %v4751_v39 = vpop.f32.mrf.mxu0  ;;  %5037 = vmatmul.mubr.bf16.vlgmr.msra.gmra.mxu0 %v11186_v1  ;;  %v401_v9 = vld [vmem:[%s14704_s1 + $0x238] sm:$0xff] }
 0x219   : > { %v4752_v31 = vadd.f32 %v4751_v39, %v12623_v53  ;;  %5128 = vmatpush1.bf16.msra.mxu0 %v9236_v20  ;;  %5159 = vmatprep.mubr.bf16.mxu0 %v11214_v15  ;;  %v497_v53 = vld [vmem:[%s14704_s1 + $0x538] sm:$0xff] }
 0x21a   : > { %v4753_v29 = vpop.f32.mrf.mxu0  ;;  %5129 = vmatprep.subr.bf16.mxu0 %v9229_v21  ;;  %v413_v15 = vld [vmem:[%s14704_s1 + $0x298] sm:$0xff]  ;;  %v9213_v40 = vcombine.high %v493_v43, %v497_v53  ;;  %v9212_v56 = vcombine.low %v493_v43, %v497_v53 }
 0x21b   : > { %5107 = vmatpush2.bf16.msra.mxu1 %v9156_v36  ;;  %v4754_v32 = vadd.f32 %v4753_v29, %v12631_v3  ;;  %v9220_v3 = vcombine.low %v501_v23, %v505_v22  ;;  %v9133_v60 = vcombine.high %v413_v15, %v417_v0  ;;  %v9132_v62 = vcombine.low %v413_v15, %v417_v0  ;;  %v469_v21 = vld [vmem:[%s14704_s1 + $0x458] sm:$0xff] }
 0x21c   : > { %5108 = vmatprep.subr.bf16.mxu1 %v9149_v18  ;;  %v4755_v37 = vpop.f32.mrf.mxu0  ;;  %v9117_v36 = vcombine.high %v397_v8, %v401_v9  ;;  %v473_v18 = vld [vmem:[%s14704_s1 + $0x478] sm:$0xff] }
 0x21d   : > { %5130 = vmatpush1.bf16.msra.mxu0 %v9228_v28  ;;  %v645_v23 = vld [vmem:[%s14704_s1 + $0x9d8] sm:$0xff]  ;;  %v9189_v28 = vcombine.high %v469_v21, %v473_v18  ;;  %v9188_v0 = vcombine.low %v469_v21, %v473_v18 }
 0x21e   : > { %5131 = vmatprep.subr.bf16.mxu0 %v9221_v30  ;;  %v4756_v46 = vpop.f32.mrf.mxu0  ;;  %v649_v22 = vld [vmem:[%s14704_s1 + $0x9f8] sm:$0xff] }
 0x21f   : > { %5109 = vmatpush2.bf16.msra.mxu1 %v9148_v42  ;;  %v9365_v29 = vcombine.high %v645_v23, %v649_v22  ;;  %v461_v30 = vld [vmem:[%s14704_s1 + $0x418] sm:$0xff]  ;;  %v9364_v37 = vcombine.low %v645_v23, %v649_v22 }
 0x220   : > { %5110 = vmatprep.subr.bf16.mxu1 %v9141_v33  ;;  %v637_v43 = vld [vmem:[%s14704_s1 + $0x998] sm:$0xff] }
 0x221   : > { %5132 = vmatpush1.bf16.msra.mxu0 %v9220_v3  ;;  %v641_v53 = vld [vmem:[%s14704_s1 + $0x9b8] sm:$0xff] }
 0x222   : > { %v4792_v55 = vpop.f32.mrf.mxu1  ;;  %5133 = vmatprep.subr.bf16.mxu0 %v9213_v40  ;;  %v9357_v40 = vcombine.high %v637_v43, %v641_v53  ;;  %v581_v46 = vld [vmem:[%s14704_s1 + $0x7d8] sm:$0xff]  ;;  %v9356_v11 = vcombine.low %v637_v43, %v641_v53 }
 0x223   : > { %5111 = vmatpush2.bf16.msra.mxu1 %v9140_v38  ;;  %v4793_v59 = vadd.f32 %v4792_v55, %v4752_v31  ;;  %v9116_v31 = vcombine.low %v397_v8, %v401_v9  ;;  %v613_v8 = vld [vmem:[%s14704_s1 + $0x8d8] sm:$0xff] }
 0x224   : > { %v4794_v2 = vpop.f32.mrf.mxu1  ;;  %5112 = vmatprep.subr.bf16.mxu1 %v9133_v60  ;;  %v585_v60 = vld [vmem:[%s14704_s1 + $0x7f8] sm:$0xff] }
 0x225   : > { %v4795_v7 = vadd.f32 %v4794_v2, %v4754_v32  ;;  %5134 = vmatpush1.bf16.msra.mxu0 %v9212_v56  ;;  %v465_v32 = vld [vmem:[%s14704_s1 + $0x438] sm:$0xff]  ;;  %v9301_v55 = vcombine.high %v581_v46, %v585_v60  ;;  %v9349_v56 = vcombine.high %v629_v49, %v633_v50  ;;  %v9300_v2 = vcombine.low %v581_v46, %v585_v60 }
 0x226   : > { %v4796_v12 = vpop.f32.mrf.mxu1  ;;  %5135 = vmatprep.subr.bf16.mxu0 %v9205_v63  ;;  %v9181_v3 = vcombine.high %v461_v30, %v465_v32  ;;  %v9180_v52 = vcombine.low %v461_v30, %v465_v32  ;;  %v625_v63 = vld [vmem:[%s14704_s1 + $0x938] sm:$0xff] }
 0x227   : > { %5113 = vmatpush2.bf16.msra.mxu1 %v9132_v62  ;;  %v577_v62 = vld [vmem:[%s14704_s1 + $0x7b8] sm:$0xff] }
 0x228   : > { %v4797_v20 = vpop.f32.mrf.mxu1  ;;  %5114 = vmatprep.subr.bf16.mxu1 %v9125_v4  ;;  %v9348_v4 = vcombine.low %v629_v49, %v633_v50  ;;  %v617_v9 = vld [vmem:[%s14704_s1 + $0x8f8] sm:$0xff] }
 0x229   : > { %5136 = vmatpush1.bf16.msra.mxu0 %v9204_v13  ;;  %v557_v20 = vld [vmem:[%s14704_s1 + $0x718] sm:$0xff]  ;;  %v9332_v22 = vcombine.low %v613_v8, %v617_v9 }
 0x22a   : > { %v4833_v39 = vpop.f32.mrf.mxu1  ;;  %5137 = vmatprep.subr.bf16.mxu0 %v9197_v17  ;;  %v9333_v17 = vcombine.high %v613_v8, %v617_v9  ;;  %v605_v21 = vld [vmem:[%s14704_s1 + $0x898] sm:$0xff] }
 0x22b   : > { %5115 = vmatpush2.bf16.msra.mxu1 %v9124_v14  ;;  %v12846_v25 = vadd.f32 %v4833_v39, %v4793_v59  ;;  %v573_v59 = vld [vmem:[%s14704_s1 + $0x798] sm:$0xff] }
 0x22c   : > { %v4835_v42 = vpop.f32.mrf.mxu1  ;;  %5116 = vmatprep.subr.bf16.mxu1 %v9117_v36  ;;  %v9293_v5 = vcombine.high %v573_v59, %v577_v62  ;;  %v9292_v12 = vcombine.low %v573_v59, %v577_v62  ;;  %v561_v36 = vld [vmem:[%s14704_s1 + $0x738] sm:$0xff] }
 0x22d   : > { %v12854_v33 = vadd.f32 %v4835_v42, %v4795_v7  ;;  %5138 = vmatpush1.bf16.msra.mxu0 %v9196_v24  ;;  %v569_v7 = vld [vmem:[%s14704_s1 + $0x778] sm:$0xff]  ;;  %v9277_v39 = vcombine.high %v557_v20, %v561_v36  ;;  %v9276_v30 = vcombine.low %v557_v20, %v561_v36 }
 0x22e   : > { %v4837_v15 = vpop.f32.mrf.mxu1  ;;  %5139 = vmatprep.subr.bf16.mxu0 %v9189_v28  ;;  %v609_v18 = vld [vmem:[%s14704_s1 + $0x8b8] sm:$0xff] }
 0x22f   : > { %5117 = vmatpush2.bf16.msra.mxu1 %v9116_v31  ;;  %v9325_v24 = vcombine.high %v605_v21, %v609_v18  ;;  %v549_v31 = vld [vmem:[%s14704_s1 + $0x6d8] sm:$0xff]  ;;  %v9324_v32 = vcombine.low %v605_v21, %v609_v18 }
 0x230   : > { %v4838_v38 = vpop.f32.mrf.mxu1  ;;  %5168 = vmatprep.subr.bf16.mxu1 %v9365_v29  ;;  %v553_v28 = vld [vmem:[%s14704_s1 + $0x6f8] sm:$0xff] }
 0x231   : > { %5140 = vmatpush1.bf16.msra.mxu0 %v9188_v0  ;;  %v597_v42 = vld [vmem:[%s14704_s1 + $0x858] sm:$0xff]  ;;  %v9269_v43 = vcombine.high %v549_v31, %v553_v28  ;;  %v9268_v38 = vcombine.low %v549_v31, %v553_v28 }
 0x232   : > { %5119 = vmatmul.mubr.bf16.vlgmr.msra.gmra.mxu1 %v11324_v27  ;;  %5141 = vmatprep.subr.bf16.mxu0 %v9181_v3  ;;  %v621_v27 = vld [vmem:[%s14704_s1 + $0x918] sm:$0xff] }
 0x233   : > { %5169 = vmatpush1.bf16.msra.mxu1 %v9364_v37  ;;  %5200 = vmatprep.mubr.bf16.mxu1 %v11339_v34  ;;  %v9341_v6 = vcombine.high %v621_v27, %v625_v63  ;;  %v565_v34 = vld [vmem:[%s14704_s1 + $0x758] sm:$0xff]  ;;  %v9340_v13 = vcombine.low %v621_v27, %v625_v63 }
 0x234   : > { %5170 = vmatprep.subr.bf16.mxu1 %v9357_v40  ;;  %v9285_v14 = vcombine.high %v565_v34, %v569_v7  ;;  %v9284_v23 = vcombine.low %v565_v34, %v569_v7  ;;  %v601_v29 = vld [vmem:[%s14704_s1 + $0x878] sm:$0xff] }
 0x235   : > { %5142 = vmatpush1.bf16.msra.mxu0 %v9180_v52  ;;  %v9317_v53 = vcombine.high %v597_v42, %v601_v29  ;;  %v541_v15 = vld [vmem:[%s14704_s1 + $0x698] sm:$0xff]  ;;  %v9316_v40 = vcombine.low %v597_v42, %v601_v29 }
 0x236   : > { %5143 = vmatprep.subr.bf16.mxu0 %v9301_v55  ;;  %v545_v0 = vld [vmem:[%s14704_s1 + $0x6b8] sm:$0xff] }
 0x237   : > { %5171 = vmatpush1.bf16.msra.mxu1 %v9356_v11  ;;  %v589_v37 = vld [vmem:[%s14704_s1 + $0x818] sm:$0xff]  ;;  %v9261_v46 = vcombine.high %v541_v15, %v545_v0  ;;  %v9260_v55 = vcombine.low %v541_v15, %v545_v0 }
 0x238   : > { %5172 = vmatprep.subr.bf16.mxu1 %v9349_v56  ;;  %v593_v3 = vld [vmem:[%s14704_s1 + $0x838] sm:$0xff] }
 0x239   : > { %5144 = vmatpush2.bf16.msra.mxu0 %v9300_v2  ;;  %v9309_v60 = vcombine.high %v589_v37, %v593_v3  ;;  %v533_v49 = vld [vmem:[%s14704_s1 + $0x658] sm:$0xff]  ;;  %v9308_v56 = vcombine.low %v589_v37, %v593_v3 }
 0x23a   : > { %5145 = vmatprep.subr.bf16.mxu0 %v9293_v5  ;;  %v537_v50 = vld [vmem:[%s14704_s1 + $0x678] sm:$0xff] }
 0x23b   : > { %5173 = vmatpush1.bf16.msra.mxu1 %v9348_v4  ;;  %v709_v52 = vld [vmem:[%s14704_s1 + $0xbd8] sm:$0xff]  ;;  %v9253_v59 = vcombine.high %v533_v49, %v537_v50  ;;  %v9252_v5 = vcombine.low %v533_v49, %v537_v50  ;;  %v4322_v50 = vsub.s32 4, %v11147_v44 }
 0x23c   : > { %5174 = vmatprep.subr.bf16.mxu1 %v9341_v6  ;;  %v713_v11 = vld [vmem:[%s14704_s1 + $0xbf8] sm:$0xff] }
 0x23d   : > { %5146 = vmatpush2.bf16.msra.mxu0 %v9292_v12  ;;  %v9429_v62 = vcombine.high %v709_v52, %v713_v11  ;;  %v525_v27 = vld [vmem:[%s14704_s1 + $0x618] sm:$0xff]  ;;  %v9428_v6 = vcombine.low %v709_v52, %v713_v11 }
 0x23e   : > { %5147 = vmatprep.subr.bf16.mxu0 %v9285_v14  ;;  %v529_v63 = vld [vmem:[%s14704_s1 + $0x638] sm:$0xff] }
 0x23f   : > { %5175 = vmatpush1.bf16.msra.mxu1 %v9340_v13  ;;  %v701_v2 = vld [vmem:[%s14704_s1 + $0xb98] sm:$0xff]  ;;  %v9245_v34 = vcombine.high %v525_v27, %v529_v63  ;;  %v9244_v14 = vcombine.low %v525_v27, %v529_v63 }
 0x240   : > { %5176 = vmatprep.subr.bf16.mxu1 %v9333_v17  ;;  %v705_v4 = vld [vmem:[%s14704_s1 + $0xbb8] sm:$0xff] }
 0x241   : > { %5148 = vmatpush2.bf16.msra.mxu0 %v9284_v23  ;;  %v9421_v7 = vcombine.high %v701_v2, %v705_v4  ;;  %v773_v8 = vld [vmem:[%s14704_s1 + $0xdd8] sm:$0xff]  ;;  %v9420_v17 = vcombine.low %v701_v2, %v705_v4 }
 0x242   : > { %5149 = vmatprep.subr.bf16.mxu0 %v9277_v39  ;;  %v777_v9 = vld [vmem:[%s14704_s1 + $0xdf8] sm:$0xff] }
 0x243   : > { %5177 = vmatpush1.bf16.msra.mxu1 %v9332_v22  ;;  %v693_v12 = vld [vmem:[%s14704_s1 + $0xb58] sm:$0xff]  ;;  %v9493_v20 = vcombine.high %v773_v8, %v777_v9  ;;  %v9492_v39 = vcombine.low %v773_v8, %v777_v9 }
 0x244   : > { %5178 = vmatprep.subr.bf16.mxu1 %v9325_v24  ;;  %v697_v13 = vld [vmem:[%s14704_s1 + $0xb78] sm:$0xff] }
 0x245   : > { %5150 = vmatpush2.bf16.msra.mxu0 %v9276_v30  ;;  %v9413_v36 = vcombine.high %v693_v12, %v697_v13  ;;  %v765_v21 = vld [vmem:[%s14704_s1 + $0xd98] sm:$0xff]  ;;  %v9412_v24 = vcombine.low %v693_v12, %v697_v13 }
 0x246   : > { %5151 = vmatprep.subr.bf16.mxu0 %v9269_v43  ;;  %v769_v18 = vld [vmem:[%s14704_s1 + $0xdb8] sm:$0xff] }
 0x247   : > { %5179 = vmatpush1.bf16.msra.mxu1 %v9324_v32  ;;  %v685_v23 = vld [vmem:[%s14704_s1 + $0xb18] sm:$0xff]  ;;  %v9485_v31 = vcombine.high %v765_v21, %v769_v18 }
 0x248   : > { %5180 = vmatprep.subr.bf16.mxu1 %v9317_v53  ;;  %v689_v22 = vld [vmem:[%s14704_s1 + $0xb38] sm:$0xff]  ;;  %v9484_v53 = vcombine.low %v765_v21, %v769_v18 }
 0x249   : > { %5152 = vmatpush2.bf16.msra.mxu0 %v9268_v38  ;;  %v9405_v28 = vcombine.high %v685_v23, %v689_v22  ;;  %v757_v42 = vld [vmem:[%s14704_s1 + $0xd58] sm:$0xff]  ;;  %v9404_v15 = vcombine.low %v685_v23, %v689_v22 }
 0x24a   : > { %5153 = vmatprep.subr.bf16.mxu0 %v9261_v46  ;;  %v761_v29 = vld [vmem:[%s14704_s1 + $0xd78] sm:$0xff] }
 0x24b   : > { %5181 = vmatpush1.bf16.msra.mxu1 %v9316_v40  ;;  %v677_v30 = vld [vmem:[%s14704_s1 + $0xad8] sm:$0xff]  ;;  %v9477_v0 = vcombine.high %v757_v42, %v761_v29 }
 0x24c   : > { %5182 = vmatprep.subr.bf16.mxu1 %v9309_v60  ;;  %v681_v32 = vld [vmem:[%s14704_s1 + $0xaf8] sm:$0xff]  ;;  %v9476_v60 = vcombine.low %v757_v42, %v761_v29 }
 0x24d   : > { %5154 = vmatpush2.bf16.msra.mxu0 %v9260_v55  ;;  %v749_v3 = vld [vmem:[%s14704_s1 + $0xd18] sm:$0xff]  ;;  %v9396_v49 = vcombine.low %v677_v30, %v681_v32 }
 0x24e   : > { %5155 = vmatprep.subr.bf16.mxu0 %v9253_v59  ;;  %v753_v38 = vld [vmem:[%s14704_s1 + $0xd38] sm:$0xff] }
 0x24f   : > { %5183 = vmatpush1.bf16.msra.mxu1 %v9308_v56  ;;  %v669_v40 = vld [vmem:[%s14704_s1 + $0xa98] sm:$0xff]  ;;  %v9469_v52 = vcombine.high %v749_v3, %v753_v38  ;;  %v9468_v2 = vcombine.low %v749_v3, %v753_v38 }
 0x250   : > { %5184 = vmatprep.subr.bf16.mxu1 %v9429_v62  ;;  %v741_v56 = vld [vmem:[%s14704_s1 + $0xcd8] sm:$0xff]  ;;  %v4326_v62 = vsub.s32 5, %v11147_v44 }
 0x251   : > { %5156 = vmatpush2.bf16.msra.mxu0 %v9252_v5  ;;  %v745_v59 = vld [vmem:[%s14704_s1 + $0xcf8] sm:$0xff]  ;;  %v4323_v5 = vrot.slane %v12564_v58, %v4322_v50 }
 0x252   : > { %5157 = vmatprep.subr.bf16.mxu0 %v9245_v34  ;;  %v661_v27 = vld [vmem:[%s14704_s1 + $0xa58] sm:$0xff]  ;;  %v4327_v9 = vrot.slane %v12564_v58, %v4326_v62 }
 0x253   : > { %5185 = vmatpush2.bf16.msra.mxu1 %v9428_v6  ;;  %v665_v63 = vld [vmem:[%s14704_s1 + $0xa78] sm:$0xff]  ;;  %v9461_v6 = vcombine.high %v741_v56, %v745_v59 }
 0x254   : > { %5186 = vmatprep.subr.bf16.mxu1 %v9421_v7  ;;  %v9381_v34 = vcombine.high %v661_v27, %v665_v63  ;;  %v733_v7 = vld [vmem:[%s14704_s1 + $0xc98] sm:$0xff] }
 0x255   : > { %5158 = vmatpush2.bf16.msra.mxu0 %v9244_v14  ;;  %v737_v8 = vld [vmem:[%s14704_s1 + $0xcb8] sm:$0xff]  ;;  %v9460_v14 = vcombine.low %v741_v56, %v745_v59 }
 0x256   : > { %5209 = vmatprep.subr.bf16.mxu0 %v9493_v20  ;;  %v653_v12 = vld [vmem:[%s14704_s1 + $0xa18] sm:$0xff]  ;;  %v9380_v20 = vcombine.low %v661_v27, %v665_v63 }
 0x257   : > { %5187 = vmatpush2.bf16.msra.mxu1 %v9420_v17  ;;  %v657_v13 = vld [vmem:[%s14704_s1 + $0xa38] sm:$0xff] }
 0x258   : > { %5188 = vmatprep.subr.bf16.mxu1 %v9413_v36  ;;  %5160 = vmatmul.mubr.bf16.vlgmr.msra.gmra.mxu0 %v11343_v35  ;;  %v4874_v43 = vpop.f32.mrf.mxu0  ;;  %v9397_v35 = vcombine.high %v677_v30, %v681_v32  ;;  %v9453_v36 = vcombine.high %v733_v7, %v737_v8  ;;  %v9373_v21 = vcombine.high %v653_v12, %v657_v13  ;;  %v725_v58 = vld [vmem:[%s14704_s1 + $0xc58] sm:$0xff] }
 0x259   : > { %5210 = vmatpush1.bf16.msra.mxu0 %v9492_v39  ;;  %5241 = vmatprep.mubr.bf16.mxu0 %v11362_v47  ;;  %v673_v47 = vld [vmem:[%s14704_s1 + $0xab8] sm:$0xff]  ;;  %v4875_v17 = vadd.f32 %v4874_v43, %v4323_v5  ;;  %v9372_v42 = vcombine.low %v653_v12, %v657_v13 }
 0x25a   : > { %5211 = vmatprep.subr.bf16.mxu0 %v9485_v31  ;;  %v4876_v37 = vpop.f32.mrf.mxu0  ;;  %v9389_v55 = vcombine.high %v669_v40, %v673_v47  ;;  %v9388_v4 = vcombine.low %v669_v40, %v673_v47  ;;  %v729_v18 = vld [vmem:[%s14704_s1 + $0xc78] sm:$0xff]  ;;  %v9452_v31 = vcombine.low %v733_v7, %v737_v8 }
 0x25b   : > { %5189 = vmatpush2.bf16.msra.mxu1 %v9412_v24  ;;  %v4877_v23 = vadd.f32 %v4876_v37, %v4327_v9  ;;  %v901_v22 = vld [vmem:[%s14704_s1 + $0x11d8] sm:$0xff]  ;;  %v9445_v29 = vcombine.high %v725_v58, %v729_v18  ;;  %v9444_v3 = vcombine.low %v725_v58, %v729_v18 }
 0x25c   : > { %5190 = vmatprep.subr.bf16.mxu1 %v9405_v28  ;;  %v4878_v46 = vpop.f32.mrf.mxu0  ;;  %v905_v39 = vld [vmem:[%s14704_s1 + $0x11f8] sm:$0xff] }
 0x25d   : > { %5212 = vmatpush1.bf16.msra.mxu0 %v9484_v53  ;;  %v9621_v32 = vcombine.high %v901_v22, %v905_v39  ;;  %v717_v43 = vld [vmem:[%s14704_s1 + $0xc18] sm:$0xff]  ;;  %v9620_v38 = vcombine.low %v901_v22, %v905_v39 }
 0x25e   : > { %5213 = vmatprep.subr.bf16.mxu0 %v9477_v0  ;;  %v4879_v11 = vpop.f32.mrf.mxu0  ;;  %v721_v53 = vld [vmem:[%s14704_s1 + $0xc38] sm:$0xff] }
 0x25f   : > { %5191 = vmatpush2.bf16.msra.mxu1 %v9404_v15  ;;  %v893_v0 = vld [vmem:[%s14704_s1 + $0x1198] sm:$0xff]  ;;  %v9437_v40 = vcombine.high %v717_v43, %v721_v53 }
 0x260   : > { %5192 = vmatprep.subr.bf16.mxu1 %v9397_v35  ;;  %v897_v37 = vld [vmem:[%s14704_s1 + $0x11b8] sm:$0xff] }
 0x261   : > { %5214 = vmatpush1.bf16.msra.mxu0 %v9476_v60  ;;  %v9613_v46 = vcombine.high %v893_v0, %v897_v37  ;;  %v837_v60 = vld [vmem:[%s14704_s1 + $0xfd8] sm:$0xff]  ;;  %v9612_v56 = vcombine.low %v893_v0, %v897_v37 }
 0x262   : > { %5215 = vmatprep.subr.bf16.mxu0 %v9469_v52  ;;  %v885_v52 = vld [vmem:[%s14704_s1 + $0x1158] sm:$0xff] }
 0x263   : > { %5193 = vmatpush2.bf16.msra.mxu1 %v9396_v49  ;;  %v841_v49 = vld [vmem:[%s14704_s1 + $0xff8] sm:$0xff] }
 0x264   : > { %5194 = vmatprep.subr.bf16.mxu1 %v9389_v55  ;;  %v889_v11 = vld [vmem:[%s14704_s1 + $0x1178] sm:$0xff]  ;;  %v9436_v55 = vcombine.low %v717_v43, %v721_v53  ;;  %v9557_v59 = vcombine.high %v837_v60, %v841_v49 }
 0x265   : > { %5216 = vmatpush1.bf16.msra.mxu0 %v9468_v2  ;;  %v9605_v62 = vcombine.high %v885_v52, %v889_v11  ;;  %v829_v27 = vld [vmem:[%s14704_s1 + $0xf98] sm:$0xff]  ;;  %v9604_v5 = vcombine.low %v885_v52, %v889_v11 }
 0x266   : > { %5217 = vmatprep.subr.bf16.mxu0 %v9461_v6  ;;  %v833_v63 = vld [vmem:[%s14704_s1 + $0xfb8] sm:$0xff] }
 0x267   : > { %5195 = vmatpush2.bf16.msra.mxu1 %v9388_v4  ;;  %v881_v2 = vld [vmem:[%s14704_s1 + $0x1138] sm:$0xff]  ;;  %v9556_v4 = vcombine.low %v837_v60, %v841_v49  ;;  %v9549_v6 = vcombine.high %v829_v27, %v833_v63  ;;  %v9548_v12 = vcombine.low %v829_v27, %v833_v63 }
 0x268   : > { %5196 = vmatprep.subr.bf16.mxu1 %v9381_v34  ;;  %v825_v7 = vld [vmem:[%s14704_s1 + $0xf78] sm:$0xff] }
 0x269   : > { %5218 = vmatpush1.bf16.msra.mxu0 %v9460_v14  ;;  %v869_v8 = vld [vmem:[%s14704_s1 + $0x10d8] sm:$0xff] }
 0x26a   : > { %v4915_v24 = vpop.f32.mrf.mxu1  ;;  %5219 = vmatprep.subr.bf16.mxu0 %v9453_v36  ;;  %v873_v9 = vld [vmem:[%s14704_s1 + $0x10f8] sm:$0xff] }
 0x26b   : > { %v13052_v28 = vadd.f32 %v4915_v24, %v4875_v17  ;;  %5197 = vmatpush2.bf16.msra.mxu1 %v9380_v20  ;;  %v9589_v17 = vcombine.high %v869_v8, %v873_v9  ;;  %v813_v20 = vld [vmem:[%s14704_s1 + $0xf18] sm:$0xff] }
 0x26c   : > { %v4917_v30 = vpop.f32.mrf.mxu1  ;;  %5198 = vmatprep.subr.bf16.mxu1 %v9373_v21  ;;  %v817_v36 = vld [vmem:[%s14704_s1 + $0xf38] sm:$0xff] }
 0x26d   : > { %v13060_v15 = vadd.f32 %v4917_v30, %v4877_v23  ;;  %5220 = vmatpush1.bf16.msra.mxu0 %v9452_v31  ;;  %v861_v21 = vld [vmem:[%s14704_s1 + $0x1098] sm:$0xff]  ;;  %v9588_v23 = vcombine.low %v869_v8, %v873_v9  ;;  %v9533_v22 = vcombine.high %v813_v20, %v817_v36  ;;  %v9532_v30 = vcombine.low %v813_v20, %v817_v36 }
 0x26e   : > { %v4919_v35 = vpop.f32.mrf.mxu1  ;;  %5221 = vmatprep.subr.bf16.mxu0 %v9445_v29  ;;  %v865_v58 = vld [vmem:[%s14704_s1 + $0x10b8] sm:$0xff] }
 0x26f   : > { %5199 = vmatpush2.bf16.msra.mxu1 %v9372_v42  ;;  %v9581_v39 = vcombine.high %v861_v21, %v865_v58  ;;  %v805_v24 = vld [vmem:[%s14704_s1 + $0xed8] sm:$0xff] }
 0x270   : > { %v4920_v47 = vpop.f32.mrf.mxu1  ;;  %5250 = vmatprep.subr.bf16.mxu1 %v9621_v32  ;;  %v809_v31 = vld [vmem:[%s14704_s1 + $0xef8] sm:$0xff]  ;;  %v9580_v32 = vcombine.low %v861_v21, %v865_v58 }
 0x271   : > { %5222 = vmatpush1.bf16.msra.mxu0 %v9444_v3  ;;  %v853_v42 = vld [vmem:[%s14704_s1 + $0x1058] sm:$0xff]  ;;  %v9525_v43 = vcombine.high %v805_v24, %v809_v31 }
 0x272   : > { %5201 = vmatmul.mubr.bf16.vlgmr.msra.gmra.mxu1 %v11258_v41  ;;  %5223 = vmatprep.subr.bf16.mxu0 %v9437_v40  ;;  %v877_v41 = vld [vmem:[%s14704_s1 + $0x1118] sm:$0xff] }
 0x273   : > { %5251 = vmatpush1.bf16.msra.mxu1 %v9620_v38  ;;  %5282 = vmatprep.mubr.bf16.mxu1 %v11365_v48  ;;  %v9597_v34 = vcombine.high %v877_v41, %v881_v2  ;;  %v821_v48 = vld [vmem:[%s14704_s1 + $0xf58] sm:$0xff]  ;;  %v9596_v13 = vcombine.low %v877_v41, %v881_v2  ;;  %v9524_v38 = vcombine.low %v805_v24, %v809_v31 }
 0x274   : > { %5252 = vmatprep.subr.bf16.mxu1 %v9613_v46  ;;  %v9541_v14 = vcombine.high %v821_v48, %v825_v7  ;;  %v9540_v18 = vcombine.low %v821_v48, %v825_v7  ;;  %v857_v29 = vld [vmem:[%s14704_s1 + $0x1078] sm:$0xff] }
 0x275   : > { %5224 = vmatpush1.bf16.msra.mxu0 %v9436_v55  ;;  %v9573_v53 = vcombine.high %v853_v42, %v857_v29  ;;  %v797_v0 = vld [vmem:[%s14704_s1 + $0xe98] sm:$0xff]  ;;  %v9572_v40 = vcombine.low %v853_v42, %v857_v29 }
 0x276   : > { %5225 = vmatprep.subr.bf16.mxu0 %v9557_v59  ;;  %v801_v37 = vld [vmem:[%s14704_s1 + $0xeb8] sm:$0xff] }
 0x277   : > { %5253 = vmatpush1.bf16.msra.mxu1 %v9612_v56  ;;  %v845_v35 = vld [vmem:[%s14704_s1 + $0x1018] sm:$0xff]  ;;  %v9517_v47 = vcombine.high %v797_v0, %v801_v37  ;;  %v9516_v55 = vcombine.low %v797_v0, %v801_v37 }
 0x278   : > { %5254 = vmatprep.subr.bf16.mxu1 %v9605_v62  ;;  %v849_v3 = vld [vmem:[%s14704_s1 + $0x1038] sm:$0xff] }
 0x279   : > { %5226 = vmatpush2.bf16.msra.mxu0 %v9556_v4  ;;  %v9565_v46 = vcombine.high %v845_v35, %v849_v3  ;;  %v789_v60 = vld [vmem:[%s14704_s1 + $0xe58] sm:$0xff]  ;;  %v9564_v56 = vcombine.low %v845_v35, %v849_v3 }
 0x27a   : > { %5227 = vmatprep.subr.bf16.mxu0 %v9549_v6  ;;  %v793_v49 = vld [vmem:[%s14704_s1 + $0xe78] sm:$0xff] }
 0x27b   : > { %5255 = vmatpush1.bf16.msra.mxu1 %v9604_v5  ;;  %v965_v52 = vld [vmem:[%s14704_s1 + $0x13d8] sm:$0xff]  ;;  %v9509_v59 = vcombine.high %v789_v60, %v793_v49  ;;  %v9508_v4 = vcombine.low %v789_v60, %v793_v49 }
 0x27c   : > { %5256 = vmatprep.subr.bf16.mxu1 %v9597_v34  ;;  %v969_v11 = vld [vmem:[%s14704_s1 + $0x13f8] sm:$0xff] }
 0x27d   : > { %5228 = vmatpush2.bf16.msra.mxu0 %v9548_v12  ;;  %v9685_v62 = vcombine.high %v965_v52, %v969_v11  ;;  %v781_v27 = vld [vmem:[%s14704_s1 + $0xe18] sm:$0xff]  ;;  %v9684_v5 = vcombine.low %v965_v52, %v969_v11 }
 0x27e   : > { %5229 = vmatprep.subr.bf16.mxu0 %v9541_v14  ;;  %v785_v63 = vld [vmem:[%s14704_s1 + $0xe38] sm:$0xff] }
 0x27f   : > { %5257 = vmatpush1.bf16.msra.mxu1 %v9596_v13  ;;  %v957_v41 = vld [vmem:[%s14704_s1 + $0x1398] sm:$0xff]  ;;  %v9501_v6 = vcombine.high %v781_v27, %v785_v63  ;;  %v9500_v12 = vcombine.low %v781_v27, %v785_v63  ;;  %v10351_v27 = vld [vmem:[%s14706_s3 + $0xa0] ss:$20 sps:$4 sm:$0xff]  }
 0x280   : > { %5258 = vmatprep.subr.bf16.mxu1 %v9589_v17  ;;  %v961_v2 = vld [vmem:[%s14704_s1 + $0x13b8] sm:$0xff] }
 0x281   : > { %5230 = vmatpush2.bf16.msra.mxu0 %v9540_v18  ;;  %v9677_v34 = vcombine.high %v957_v41, %v961_v2  ;;  %v973_v48 = vld [vmem:[%s14704_s1 + $0x1418] sm:$0xff]  ;;  %v9676_v13 = vcombine.low %v957_v41, %v961_v2 }
 0x282   : > { %5231 = vmatprep.subr.bf16.mxu0 %v9533_v22  ;;  %v977_v7 = vld [vmem:[%s14704_s1 + $0x1438] sm:$0xff] }
 0x283   : > { %5259 = vmatpush1.bf16.msra.mxu1 %v9588_v23  ;;  %v949_v8 = vld [vmem:[%s14704_s1 + $0x1358] sm:$0xff]  ;;  %v9693_v14 = vcombine.high %v973_v48, %v977_v7  ;;  %v9692_v21 = vcombine.low %v973_v48, %v977_v7 }
 0x284   : > { %5260 = vmatprep.subr.bf16.mxu1 %v9581_v39  ;;  %v953_v9 = vld [vmem:[%s14704_s1 + $0x1378] sm:$0xff] }
 0x285   : > { %5232 = vmatpush2.bf16.msra.mxu0 %v9532_v30  ;;  %v9669_v17 = vcombine.high %v949_v8, %v953_v9  ;;  %v941_v20 = vld [vmem:[%s14704_s1 + $0x1318] sm:$0xff]  ;;  %v9668_v58 = vcombine.low %v949_v8, %v953_v9  ;;  %v10362_v9 = vld [vmem:[%s14706_s3 + $0x374] ss:$20 sps:$4 sm:$0xff]  }
 0x286   : > { %5233 = vmatprep.subr.bf16.mxu0 %v9525_v43  ;;  %v945_v36 = vld [vmem:[%s14704_s1 + $0x1338] sm:$0xff] }
 0x287   : > { %5261 = vmatpush1.bf16.msra.mxu1 %v9580_v32  ;;  %v10344_v18 = vld [vmem:[%s14706_s3 + $0x11c] ss:$20 sps:$4 sm:$0xff]   ;;  %v9661_v23 = vcombine.high %v941_v20, %v945_v36  ;;  %v9660_v42 = vcombine.low %v941_v20, %v945_v36  ;;  %v10357_v48 = vld [vmem:[%s14706_s3 + $0x78] ss:$20 sps:$4 sm:$0xff]  }
 0x288   : > { %5262 = vmatprep.subr.bf16.mxu1 %v9573_v53  ;;  %v933_v39 = vld [vmem:[%s14704_s1 + $0x12d8] sm:$0xff]  ;;  %v10371_v20 = vld [vmem:[%s14706_s3 + $0x2c] ss:$20 sps:$4 sm:$0xff]  }
 0x289   : > { %5234 = vmatpush2.bf16.msra.mxu0 %v9524_v38  ;;  %v937_v24 = vld [vmem:[%s14704_s1 + $0x12f8] sm:$0xff] }
 0x28a   : > { %5235 = vmatprep.subr.bf16.mxu0 %v9517_v47  ;;  %v9653_v30 = vcombine.high %v933_v39, %v937_v24  ;;  %v925_v32 = vld [vmem:[%s14704_s1 + $0x1298] sm:$0xff]  ;;  %v9652_v0 = vcombine.low %v933_v39, %v937_v24  ;;  %v10345_v47 = vld [vmem:[%s14706_s3 + $0xf0] ss:$20 sps:$4 sm:$0xff]   ;;  %v10375_v24 = vld [vmem:[%s14706_s3] ss:$20 sps:$4 sm:$0xff]  }
 0x28b   : > { %5263 = vmatpush1.bf16.msra.mxu1 %v9572_v40  ;;  %v10342_v53 = vld [vmem:[%s14706_s3 + $0x118] ss:$20 sps:$4 sm:$0xff]   ;;  %v10348_v11 = vld [vmem:[%s14706_s3 + $0xc8] ss:$20 sps:$4 sm:$0xff]  }
 0x28c   : > { %5264 = vmatprep.subr.bf16.mxu1 %v9565_v46  ;;  %v917_v38 = vld [vmem:[%s14704_s1 + $0x1258] sm:$0xff] }
 0x28d   : > { %5236 = vmatpush2.bf16.msra.mxu0 %v9516_v55  ;;  %v921_v40 = vld [vmem:[%s14704_s1 + $0x1278] sm:$0xff] }
 0x28e   : > { %5237 = vmatprep.subr.bf16.mxu0 %v9509_v59  ;;  %v9637_v60 = vcombine.high %v917_v38, %v921_v40  ;;  %v909_v49 = vld [vmem:[%s14704_s1 + $0x1218] sm:$0xff]  ;;  %v9636_v55 = vcombine.low %v917_v38, %v921_v40 }
 0x28f   : > { %5265 = vmatpush1.bf16.msra.mxu1 %v9564_v56  ;;  %v913_v52 = vld [vmem:[%s14704_s1 + $0x1238] sm:$0xff] }
 0x290   : > { %5266 = vmatprep.subr.bf16.mxu1 %v9685_v62  ;;  %v10353_v56 = vld [vmem:[%s14706_s3 + $0xa4] ss:$20 sps:$4 sm:$0xff]   ;;  %v9629_v59 = vcombine.high %v909_v49, %v913_v52  ;;  %v9628_v41 = vcombine.low %v909_v49, %v913_v52  ;;  %v10359_v2 = vld [vmem:[%s14706_s3 + $0x7c] ss:$20 sps:$4 sm:$0xff]  }
 0x291   : > { %5238 = vmatpush2.bf16.msra.mxu0 %v9508_v4  ;;  %v10354_v7 = vld [vmem:[%s14706_s3 + $0x398] ss:$20 sps:$4 sm:$0xff]   ;;  %v10390_v38 = vld [vmem:[%s14706_s3 + $0x2a8] ss:$20 sps:$4 sm:$0xff]  }
 0x292   : > { %5239 = vmatprep.subr.bf16.mxu0 %v9501_v6  ;;  %v5335_v6 = vmax.f32 %v12854_v33, 0.0  ;;  %v10365_v33 = vld [vmem:[%s14706_s3 + $0x54] ss:$20 sps:$4 sm:$0xff]   ;;  %v10374_v39 = vld [vmem:[%s14706_s3 + $0x324] ss:$20 sps:$4 sm:$0xff]  }
 0x293   : > { %5267 = vmatpush2.bf16.msra.mxu1 %v9684_v5  ;;  %v10356_v5 = vld [vmem:[%s14706_s3 + $0x39c] ss:$20 sps:$4 sm:$0xff]   ;;  %v10401_v40 = vld [vmem:[%s14706_s3 + $0x1e4] ss:$20 sps:$4 sm:$0xff]  }
 0x294   : > { %5268 = vmatprep.subr.bf16.mxu1 %v9677_v34  ;;  %v10404_v49 = vld [vmem:[%s14706_s3 + $0x4dc] ss:$20 sps:$4 sm:$0xff]   ;;  %v10405_v52 = vld [vmem:[%s14706_s3 + $0x1b8] ss:$20 sps:$4 sm:$0xff]  }
 0x295   : > { %5240 = vmatpush2.bf16.msra.mxu0 %v9500_v12  ;;  %v13266_v12 = vpack.c.bf16 %v5335_v6, %v5335_v6  ;;  %v10425_v6 = vld [vmem:[%s14706_s3 + $0x144] ss:$20 sps:$4 sm:$0xff]  }
 0x296   : > { %5305 = vmatprep.subr.bf16.mxu0 %v9693_v14  ;;  %v10363_v14 = vld [vmem:[%s14706_s3 + $0x50] ss:$20 sps:$4 sm:$0xff]  }
 0x297   : > { %5269 = vmatpush2.bf16.msra.mxu1 %v9676_v13 }
 0x298   : > { %5270 = vmatprep.subr.bf16.mxu1 %v9669_v17  ;;  %v4956_v22 = vpop.f32.mrf.mxu0  ;;  %5242 = vmatmul.mubr.bf16.vlgmr.msra.gmra.mxu0 %v11552_v61  ;;  %v5333_v61 = vmax.f32 %v12393_v26, 0.0  ;;  %v10347_v26 = vld [vmem:[%s14706_s3 + $0xf4] ss:$20 sps:$4 sm:$0xff]   ;;  %v10360_v17 = vld [vmem:[%s14706_s3 + $0x370] ss:$20 sps:$4 sm:$0xff]  }
 0x299   : > { %v4957_v31 = vadd.f32 %v4956_v22, %v13052_v28  ;;  %5306 = vmatpush1.bf16.msra.mxu0 %v9692_v21  ;;  %5323 = vmatprep.mubr.bf16.mxu0 %v10974_v10  ;;  %v929_v28 = vld [vmem:[%s14704_s1 + $0x12b8] sm:$0xff] }
 0x29a   : > { %v13196_v29 = vpop.f32.mrf.mxu0  ;;  %7203 = vmatprep.subr.bf16.mxu0 %v10344_v18  ;;  %v13211_v35 = vpack.c.bf16 %v5333_v61, %v5333_v61  ;;  %v9645_v3 = vcombine.high %v925_v32, %v929_v28  ;;  %v9644_v46 = vcombine.low %v925_v32, %v929_v28  ;;  %v10366_v18 = vld [vmem:[%s14706_s3 + $0x348] ss:$20 sps:$4 sm:$0xff]   ;;  %v10378_v32 = vld [vmem:[%s14706_s3 + $0x2f8] ss:$20 sps:$4 sm:$0xff]  }
 0x29b   : > { %5271 = vmatpush2.bf16.msra.mxu1 %v9668_v58  ;;  %v10369_v58 = vld [vmem:[%s14706_s3 + $0x28] ss:$20 sps:$4 sm:$0xff]  }
 0x29c   : > { %5272 = vmatprep.subr.bf16.mxu1 %v9661_v23  ;;  %v4960_v43 = vpop.f32.mrf.mxu0  ;;  %v10377_v23 = vld [vmem:[%s14706_s3 + $0x4] ss:$20 sps:$4 sm:$0xff]   ;;  %v10380_v61 = vld [vmem:[%s14706_s3 + $0x2fc] ss:$20 sps:$4 sm:$0xff]   ;;  %v10389_v28 = vld [vmem:[%s14706_s3 + $0x234] ss:$20 sps:$4 sm:$0xff]  }
 0x29d   : > { %v10386_v43 = vld [vmem:[%s14706_s3 + $0x2d4] ss:$20 sps:$4 sm:$0xff]  }
 0x29e   : > { %v4961_v37 = vpop.f32.mrf.mxu0 }
 0x29f   : > { %5273 = vmatpush2.bf16.msra.mxu1 %v9660_v42  ;;  %v10383_v42 = vld [vmem:[%s14706_s3 + $0x25c] ss:$20 sps:$4 sm:$0xff]   ;;  %v10392_v37 = vld [vmem:[%s14706_s3 + $0x2ac] ss:$20 sps:$4 sm:$0xff]  }
 0x2a0   : > { %5274 = vmatprep.subr.bf16.mxu1 %v9653_v30  ;;  %9697 = vmatmul.mubr.msk.bf16.vlgmr.msra.gmra.mxu0 %vm4344_vm0, %v11578_v16  ;;  %v10350_v16 = vld [vmem:[%s14706_s3 + $0xcc] ss:$20 sps:$4 sm:$0xff]  }
 0x2a1   : > { %7204 = vmatpush1.bf16.msra.mxu0 %v10342_v53  ;;  %7235 = vmatprep.mubr.bf16.mxu0 %v13211_v35  ;;  %v10381_v30 = vld [vmem:[%s14706_s3 + $0x258] ss:$20 sps:$4 sm:$0xff]   ;;  %v10387_v53 = vld [vmem:[%s14706_s3 + $0x230] ss:$20 sps:$4 sm:$0xff]  }
 0x2a2   : > { %7205 = vmatprep.subr.bf16.mxu0 %v10347_v26  ;;  %v10395_v26 = vld [vmem:[%s14706_s3 + $0x20c] ss:$20 sps:$4 sm:$0xff]  }
 0x2a3   : > { %5275 = vmatpush2.bf16.msra.mxu1 %v9652_v0  ;;  %v10384_v0 = vld [vmem:[%s14706_s3 + $0x2d0] ss:$20 sps:$4 sm:$0xff]  }
 0x2a4   : > { %5276 = vmatprep.subr.bf16.mxu1 %v9645_v3  ;;  %v10393_v3 = vld [vmem:[%s14706_s3 + $0x208] ss:$20 sps:$4 sm:$0xff]  }
 0x2a5   : > { %7206 = vmatpush1.bf16.msra.mxu0 %v10345_v47  ;;  %v10398_v47 = vld [vmem:[%s14706_s3 + $0x284] ss:$20 sps:$4 sm:$0xff]  }
 0x2a6   : > { %7207 = vmatprep.subr.bf16.mxu0 %v10350_v16  ;;  %v10396_v16 = vld [vmem:[%s14706_s3 + $0x280] ss:$20 sps:$4 sm:$0xff]  }
 0x2a7   : > { %5277 = vmatpush2.bf16.msra.mxu1 %v9644_v46  ;;  %v10399_v46 = vld [vmem:[%s14706_s3 + $0x1e0] ss:$20 sps:$4 sm:$0xff]  }
 0x2a8   : > { %5278 = vmatprep.subr.bf16.mxu1 %v9637_v60  ;;  %v10407_v60 = vld [vmem:[%s14706_s3 + $0x1bc] ss:$20 sps:$4 sm:$0xff]  }
 0x2a9   : > { %7208 = vmatpush1.bf16.msra.mxu0 %v10348_v11  ;;  %v10402_v11 = vld [vmem:[%s14706_s3 + $0x4d8] ss:$20 sps:$4 sm:$0xff]  }
 0x2aa   : > { %v4997_v62 = vpop.f32.mrf.mxu1  ;;  %7209 = vmatprep.subr.bf16.mxu0 %v10353_v56  ;;  %v10410_v56 = vld [vmem:[%s14706_s3 + $0x4b4] ss:$20 sps:$4 sm:$0xff]  }
 0x2ab   : > { %v13243_v63 = vadd.f32 %v4997_v62, %v4957_v31  ;;  %5279 = vmatpush2.bf16.msra.mxu1 %v9636_v55  ;;  %v10372_v31 = vld [vmem:[%s14706_s3 + $0x320] ss:$20 sps:$4 sm:$0xff]   ;;  %v10408_v62 = vld [vmem:[%s14706_s3 + $0x4b0] ss:$20 sps:$4 sm:$0xff]  }
 0x2ac   : > { %v13248_v4 = vpop.f32.mrf.mxu1  ;;  %5280 = vmatprep.subr.bf16.mxu1 %v9629_v59  ;;  %v10413_v55 = vld [vmem:[%s14706_s3 + $0x194] ss:$20 sps:$4 sm:$0xff]   ;;  %v10411_v59 = vld [vmem:[%s14706_s3 + $0x190] ss:$20 sps:$4 sm:$0xff]  }
 0x2ad   : > { %7210 = vmatpush1.bf16.msra.mxu0 %v10351_v27  ;;  %v10419_v27 = vld [vmem:[%s14706_s3 + $0x16c] ss:$20 sps:$4 sm:$0xff]  }
 0x2ae   : > { %v5001_v34 = vpop.f32.mrf.mxu1  ;;  %7211 = vmatprep.subr.bf16.mxu0 %v10359_v2  ;;  %v10417_v2 = vld [vmem:[%s14706_s3 + $0x168] ss:$20 sps:$4 sm:$0xff]  }
 0x2af   : > { %5281 = vmatpush2.bf16.msra.mxu1 %v9628_v41  ;;  %v10416_v41 = vld [vmem:[%s14706_s3 + $0x48c] ss:$20 sps:$4 sm:$0xff]   ;;  %v4959_v34 = vadd.f32 %v13196_v29, %v13060_v15 }
 0x2b0   : > { %v5002_v8 = vpop.f32.mrf.mxu1  ;;  %7244 = vmatprep.subr.bf16.mxu1 %v10356_v5  ;;  %v10414_v5 = vld [vmem:[%s14706_s3 + $0x488] ss:$20 sps:$4 sm:$0xff]   ;;  %v10420_v15 = vld [vmem:[%s14706_s3 + $0x460] ss:$20 sps:$4 sm:$0xff]  }
 0x2b1   : > { %7212 = vmatpush1.bf16.msra.mxu0 %v10357_v48  ;;  %v10422_v48 = vld [vmem:[%s14706_s3 + $0x464] ss:$20 sps:$4 sm:$0xff]   ;;  %v5000_v8 = vadd.f32 %v13248_v4, %v4959_v34  ;;  %v10431_v4 = vld [vmem:[%s14706_s3 + $0x61c] ss:$20 sps:$4 sm:$0xff]   ;;  %v10546_v34 = vld [vmem:[%s14706_s3 + $0x820] ss:$20 sps:$4 sm:$0xff]  }
 0x2b2   : > { %5283 = vmatmul.mubr.bf16.vlgmr.msra.gmra.mxu1 %v11186_v1  ;;  %v13269_v13 = vpop.f32.mrf.mxu1  ;;  %7213 = vmatprep.subr.bf16.mxu0 %v10365_v33  ;;  %v10368_v1 = vld [vmem:[%s14706_s3 + $0x34c] ss:$20 sps:$4 sm:$0xff]  }
 0x2b3   : > { %7245 = vmatpush1.bf16.msra.mxu1 %v10354_v7  ;;  %7276 = vmatprep.mubr.bf16.mxu1 %v13266_v12  ;;  %v10423_v33 = vld [vmem:[%s14706_s3 + $0x140] ss:$20 sps:$4 sm:$0xff]  }
 0x2b4   : > { %v13281_v36 = vpop.f32.mrf.mxu1  ;;  %7246 = vmatprep.subr.bf16.mxu1 %v10362_v9 }
 0x2b5   : > { %7214 = vmatpush1.bf16.msra.mxu0 %v10363_v14  ;;  %v5332_v14 = vmax.f32 %v12377_v19, 0.0  ;;  %v10428_v19 = vld [vmem:[%s14706_s3 + $0x43c] ss:$20 sps:$4 sm:$0xff]  }
 0x2b6   : > { %v5083_v21 = vpop.f32.mrf.mxu1  ;;  %7215 = vmatprep.subr.bf16.mxu0 %v10371_v20 }
 0x2b7   : > { %7247 = vmatpush1.bf16.msra.mxu1 %v10360_v17  ;;  %v10429_v21 = vld [vmem:[%s14706_s3 + $0x618] ss:$20 sps:$4 sm:$0xff]  }
 0x2b8   : > { %v5084_v22 = vpop.f32.mrf.mxu1  ;;  %7248 = vmatprep.subr.bf16.mxu1 %v10368_v1 }
 0x2b9   : > { %7216 = vmatpush1.bf16.msra.mxu0 %v10369_v58  ;;  %v13418_v58 = vpack.c.bf16 %v5332_v14, %v5332_v14  ;;  %v10465_v14 = vld [vmem:[%s14706_s3 + $0x730] ss:$20 sps:$4 sm:$0xff]  }
 0x2ba   : > { %7217 = vmatprep.subr.bf16.mxu0 %v10377_v23 }
 0x2bb   : > { %7249 = vmatpush1.bf16.msra.mxu1 %v10366_v18  ;;  %v10437_v18 = vld [vmem:[%s14706_s3 + $0x5f4] ss:$20 sps:$4 sm:$0xff]  }
 0x2bc   : > { %7250 = vmatprep.subr.bf16.mxu1 %v10374_v39 }
 0x2bd   : > { %7218 = vmatpush1.bf16.msra.mxu0 %v10375_v24  ;;  %v10435_v24 = vld [vmem:[%s14706_s3 + $0x5f0] ss:$20 sps:$4 sm:$0xff]  }
 0x2be   : > { %7219 = vmatprep.subr.bf16.mxu0 %v10383_v42  ;;  %v10443_v42 = vld [vmem:[%s14706_s3 + $0x5cc] ss:$20 sps:$4 sm:$0xff]  }
 0x2bf   : > { %7251 = vmatpush1.bf16.msra.mxu1 %v10372_v31  ;;  %v10432_v31 = vld [vmem:[%s14706_s3 + $0x410] ss:$20 sps:$4 sm:$0xff]  }
 0x2c0   : > { %7252 = vmatprep.subr.bf16.mxu1 %v10380_v61  ;;  %v10440_v61 = vld [vmem:[%s14706_s3 + $0x3ec] ss:$20 sps:$4 sm:$0xff]  }
 0x2c1   : > { %7220 = vmatpush2.bf16.msra.mxu0 %v10381_v30  ;;  %v10441_v30 = vld [vmem:[%s14706_s3 + $0x5c8] ss:$20 sps:$4 sm:$0xff]  }
 0x2c2   : > { %7221 = vmatprep.subr.bf16.mxu0 %v10389_v28  ;;  %v10449_v28 = vld [vmem:[%s14706_s3 + $0x5a4] ss:$20 sps:$4 sm:$0xff]  }
 0x2c3   : > { %7253 = vmatpush1.bf16.msra.mxu1 %v10378_v32  ;;  %v10438_v32 = vld [vmem:[%s14706_s3 + $0x3e8] ss:$20 sps:$4 sm:$0xff]  }
 0x2c4   : > { %7254 = vmatprep.subr.bf16.mxu1 %v10386_v43  ;;  %v10446_v43 = vld [vmem:[%s14706_s3 + $0x3c4] ss:$20 sps:$4 sm:$0xff]  }
 0x2c5   : > { %7222 = vmatpush2.bf16.msra.mxu0 %v10387_v53  ;;  %v10447_v53 = vld [vmem:[%s14706_s3 + $0x5a0] ss:$20 sps:$4 sm:$0xff]  }
 0x2c6   : > { %7223 = vmatprep.subr.bf16.mxu0 %v10395_v26  ;;  %v10452_v26 = vld [vmem:[%s14706_s3 + $0x57c] ss:$20 sps:$4 sm:$0xff]  }
 0x2c7   : > { %7255 = vmatpush1.bf16.msra.mxu1 %v10384_v0  ;;  %v10444_v0 = vld [vmem:[%s14706_s3 + $0x3c0] ss:$20 sps:$4 sm:$0xff]  }
 0x2c8   : > { %7256 = vmatprep.subr.bf16.mxu1 %v10392_v37  ;;  %v5334_v37 = vmax.f32 %v12846_v25, 0.0  ;;  %v10528_v25 = vld [vmem:[%s14706_s3 + $0x898] ss:$20 sps:$4 sm:$0xff]  }
 0x2c9   : > { %7224 = vmatpush2.bf16.msra.mxu0 %v10393_v3  ;;  %v10530_v3 = vld [vmem:[%s14706_s3 + $0x89c] ss:$20 sps:$4 sm:$0xff]  }
 0x2ca   : > { %7225 = vmatprep.subr.bf16.mxu0 %v10401_v40  ;;  %v10455_v40 = vld [vmem:[%s14706_s3 + $0x554] ss:$20 sps:$4 sm:$0xff]  }
 0x2cb   : > { %7257 = vmatpush1.bf16.msra.mxu1 %v10390_v38  ;;  %v10450_v38 = vld [vmem:[%s14706_s3 + $0x578] ss:$20 sps:$4 sm:$0xff]  }
 0x2cc   : > { %7258 = vmatprep.subr.bf16.mxu1 %v10398_v47  ;;  %v13479_v47 = vpack.c.bf16 %v5334_v37, %v5334_v37  ;;  %v10480_v37 = vld [vmem:[%s14706_s3 + $0x668] ss:$20 sps:$4 sm:$0xff]  }
 0x2cd   : > { %7226 = vmatpush2.bf16.msra.mxu0 %v10399_v46  ;;  %v10536_v46 = vld [vmem:[%s14706_s3 + $0x874] ss:$20 sps:$4 sm:$0xff]  }
 0x2ce   : > { %7227 = vmatprep.subr.bf16.mxu0 %v10407_v60  ;;  %v10453_v60 = vld [vmem:[%s14706_s3 + $0x550] ss:$20 sps:$4 sm:$0xff]  }
 0x2cf   : > { %7259 = vmatpush1.bf16.msra.mxu1 %v10396_v16 }
 0x2d0   : > { %7260 = vmatprep.subr.bf16.mxu1 %v10404_v49  ;;  %v10458_v49 = vld [vmem:[%s14706_s3 + $0x52c] ss:$20 sps:$4 sm:$0xff]  }
 0x2d1   : > { %7228 = vmatpush2.bf16.msra.mxu0 %v10405_v52  ;;  %v10534_v52 = vld [vmem:[%s14706_s3 + $0x870] ss:$20 sps:$4 sm:$0xff]  }
 0x2d2   : > { %7229 = vmatprep.subr.bf16.mxu0 %v10413_v55  ;;  %v10542_v55 = vld [vmem:[%s14706_s3 + $0x84c] ss:$20 sps:$4 sm:$0xff]  }
 0x2d3   : > { %7261 = vmatpush2.bf16.msra.mxu1 %v10402_v11 }
 0x2d4   : > { %7262 = vmatprep.subr.bf16.mxu1 %v10410_v56 }
 0x2d5   : > { %7230 = vmatpush2.bf16.msra.mxu0 %v10411_v59  ;;  %v10456_v59 = vld [vmem:[%s14706_s3 + $0x528] ss:$20 sps:$4 sm:$0xff]  }
 0x2d6   : > { %7231 = vmatprep.subr.bf16.mxu0 %v10419_v27  ;;  %v10540_v27 = vld [vmem:[%s14706_s3 + $0x848] ss:$20 sps:$4 sm:$0xff]  }
 0x2d7   : > { %7263 = vmatpush2.bf16.msra.mxu1 %v10408_v62  ;;  %v10461_v62 = vld [vmem:[%s14706_s3 + $0x504] ss:$20 sps:$4 sm:$0xff]  }
 0x2d8   : > { %7264 = vmatprep.subr.bf16.mxu1 %v10416_v41  ;;  %v5038_v7 = vpop.f32.mrf.mxu0 }
 0x2d9   : > { %v5039_v9 = vadd.f32 %v5038_v7, %v13243_v63  ;;  %7232 = vmatpush2.bf16.msra.mxu0 %v10417_v2  ;;  %v10548_v2 = vld [vmem:[%s14706_s3 + $0x824] ss:$20 sps:$4 sm:$0xff]  }
 0x2da   : > { %v5040_v29 = vpop.f32.mrf.mxu0  ;;  %7233 = vmatprep.subr.bf16.mxu0 %v10425_v6  ;;  %v10464_v6 = vld [vmem:[%s14706_s3 + $0x75c] ss:$20 sps:$4 sm:$0xff]   ;;  %v10462_v7 = vld [vmem:[%s14706_s3 + $0x758] ss:$20 sps:$4 sm:$0xff]  }
 0x2db   : > { %7265 = vmatpush2.bf16.msra.mxu1 %v10414_v5  ;;  %v13409_v63 = vadd.f32 %v13269_v13, %v5039_v9  ;;  %v5041_v17 = vadd.f32 %v5040_v29, %v5000_v8  ;;  %v10426_v13 = vld [vmem:[%s14706_s3 + $0x438] ss:$20 sps:$4 sm:$0xff]   ;;  %v10459_v5 = vld [vmem:[%s14706_s3 + $0x500] ss:$20 sps:$4 sm:$0xff]   ;;  %v10558_v29 = vld [vmem:[%s14706_s3 + $0x7d0] ss:$20 sps:$4 sm:$0xff]  }
 0x2dc   : > { %7266 = vmatprep.subr.bf16.mxu1 %v10422_v48  ;;  %v5042_v20 = vpop.f32.mrf.mxu0  ;;  %v10554_v48 = vld [vmem:[%s14706_s3 + $0x7fc] ss:$20 sps:$4 sm:$0xff]   ;;  %v10467_v8 = vld [vmem:[%s14706_s3 + $0x734] ss:$20 sps:$4 sm:$0xff]   ;;  %v10552_v9 = vld [vmem:[%s14706_s3 + $0x7f8] ss:$20 sps:$4 sm:$0xff]  }
 0x2dd   : > { %v5082_v1 = vadd.f32 %v13281_v36, %v5041_v17  ;;  %7234 = vmatpush2.bf16.msra.mxu0 %v10423_v33  ;;  %v10434_v36 = vld [vmem:[%s14706_s3 + $0x414] ss:$20 sps:$4 sm:$0xff]  }
 0x2de   : > { %7285 = vmatprep.subr.bf16.mxu0 %v10431_v4  ;;  %v5043_v23 = vpop.f32.mrf.mxu0  ;;  %v10560_v33 = vld [vmem:[%s14706_s3 + $0x7d4] ss:$20 sps:$4 sm:$0xff]   ;;  %v10566_v4 = vld [vmem:[%s14706_s3 + $0x7ac] ss:$20 sps:$4 sm:$0xff]  }
 0x2df   : > { %7267 = vmatpush2.bf16.msra.mxu1 %v10420_v15  ;;  %v5337_v22 = vmax.f32 %v5082_v1, 0.0  ;;  %v10470_v15 = vld [vmem:[%s14706_s3 + $0x70c] ss:$20 sps:$4 sm:$0xff]   ;;  %v10468_v17 = vld [vmem:[%s14706_s3 + $0x708] ss:$20 sps:$4 sm:$0xff]  }
 0x2e0   : > { %7268 = vmatprep.subr.bf16.mxu1 %v10428_v19  ;;  %7236 = vmatmul.mubr.bf16.vlgmr.msra.gmra.mxu0 %v13418_v58  ;;  %v10473_v19 = vld [vmem:[%s14706_s3 + $0x6e4] ss:$20 sps:$4 sm:$0xff]   ;;  %v10564_v20 = vld [vmem:[%s14706_s3 + $0x7a8] ss:$20 sps:$4 sm:$0xff]   ;;  %v10570_v23 = vld [vmem:[%s14706_s3 + $0x780] ss:$20 sps:$4 sm:$0xff]  }
 0x2e1   : > { %v13430_v39 = vpack.c.bf16 %v5337_v22, %v5337_v22  ;;  %7286 = vmatpush1.bf16.msra.mxu0 %v10429_v21  ;;  %v10572_v1 = vld [vmem:[%s14706_s3 + $0x784] ss:$20 sps:$4 sm:$0xff]  }
 0x2e2   : > { %7287 = vmatprep.subr.bf16.mxu0 %v10437_v18  ;;  %v5684_v21 = vld [vmem:[%s14706_s3 + $0x8c0] sm:$0x33]  ;;  %v10476_v18 = vld [vmem:[%s14706_s3 + $0x6bc] ss:$20 sps:$4 sm:$0xff]  }
 0x2e3   : > { %7269 = vmatpush2.bf16.msra.mxu1 %v10426_v13  ;;  %7317 = vmatprep.mubr.bf16.mxu0 %v13430_v39  ;;  %v10471_v13 = vld [vmem:[%s14706_s3 + $0x6e0] ss:$20 sps:$4 sm:$0xff]   ;;  %v9979_v22 = vcombine.high %v5684_v21, %v5684_v21 }
 0x2e4   : > { %7270 = vmatprep.subr.bf16.mxu1 %v10434_v36  ;;  %v9978_v36 = vcombine.low %v5684_v21, %v5684_v21  ;;  %v10515_v21 = vld [vmem:[%s14706_s3 + $0x4bc] ss:$20 sps:$4 sm:$0xff]  }
 0x2e5   : > { %7288 = vmatpush1.bf16.msra.mxu0 %v10435_v24  ;;  %v10474_v24 = vld [vmem:[%s14706_s3 + $0x6b8] ss:$20 sps:$4 sm:$0xff]  }
 0x2e6   : > { %7289 = vmatprep.subr.bf16.mxu0 %v10443_v42  ;;  %v4330_v42 = vsub.s32 6, %v11147_v44 }
 0x2e7   : > { %7271 = vmatpush2.bf16.msra.mxu1 %v10432_v31  ;;  %v10479_v31 = vld [vmem:[%s14706_s3 + $0x694] ss:$20 sps:$4 sm:$0xff]  }
 0x2e8   : > { %7272 = vmatprep.subr.bf16.mxu1 %v10440_v61  ;;  %v7189_v61 = vsel %vm7187_vm1, %v9978_v36, 0  ;;  %v10519_v36 = vld [vmem:[%s14706_s3 + $0x468] ss:$20 sps:$4 sm:$0xff]  }
 0x2e9   : > { %7290 = vmatpush1.bf16.msra.mxu0 %v10441_v30  ;;  %v10583_v30 = vld [vmem:[%s14706_s3 + $0x124] ss:$20 sps:$4 sm:$0xff]  }
 0x2ea   : > { %7291 = vmatprep.subr.bf16.mxu0 %v10449_v28  ;;  %v10477_v28 = vld [vmem:[%s14706_s3 + $0x690] ss:$20 sps:$4 sm:$0xff]  }
 0x2eb   : > { %7273 = vmatpush2.bf16.msra.mxu1 %v10438_v32  ;;  %v4334_v32 = vsub.s32 7, %v11147_v44  ;;  %v10850_v44 = vld [vmem:[%s14708_s5 + $0x8] ss:$12 sps:$4 sm:$0xff]  }
 0x2ec   : > { %7274 = vmatprep.subr.bf16.mxu1 %v10446_v43  ;;  %v10482_v43 = vld [vmem:[%s14706_s3 + $0x66c] ss:$20 sps:$4 sm:$0xff]  }
 0x2ed   : > { %7292 = vmatpush1.bf16.msra.mxu0 %v10447_v53  ;;  %v10910_v53 = vld [vmem:[%s14705_s2] sm:$0xff] }
 0x2ee   : > { %7293 = vmatprep.subr.bf16.mxu0 %v10452_v26  ;;  %v4335_v26 = vrot.slane %v10910_v53, %v4334_v32  ;;  %v10531_v32 = vld [vmem:[%s14706_s3 + $0x3f0] ss:$20 sps:$4 sm:$0xff]  }
 0x2ef   : > { %7275 = vmatpush2.bf16.msra.mxu1 %v10444_v0  ;;  %v4331_v0 = vrot.slane %v10910_v53, %v4330_v42  ;;  %v10527_v42 = vld [vmem:[%s14706_s3 + $0x41c] ss:$20 sps:$4 sm:$0xff]  }
 0x2f0   : > { %7326 = vmatprep.subr.bf16.mxu1 %v10530_v3  ;;  %v10485_v3 = vld [vmem:[%s14706_s3 + $0x644] ss:$20 sps:$4 sm:$0xff]   ;;  %v10537_v53 = vld [vmem:[%s14706_s3 + $0x3c8] ss:$20 sps:$4 sm:$0xff]  }
 0x2f1   : > { %7294 = vmatpush1.bf16.msra.mxu0 %v10450_v38 }
 0x2f2   : > { %v13484_v16 = vpop.f32.mrf.mxu1  ;;  %7277 = vmatmul.mubr.bf16.vlgmr.msra.gmra.mxu1 %v13479_v47  ;;  %7295 = vmatprep.subr.bf16.mxu0 %v10455_v40 }
 0x2f3   : > { %7327 = vmatpush1.bf16.msra.mxu1 %v10528_v25  ;;  %v5121_v38 = vadd.f32 %v13484_v16, %v4331_v0 }
 0x2f4   : > { %v13496_v11 = vpop.f32.mrf.mxu1  ;;  %7328 = vmatprep.subr.bf16.mxu1 %v10536_v46 }
 0x2f5   : > { %7296 = vmatpush1.bf16.msra.mxu0 %v10453_v60  ;;  %v5123_v25 = vadd.f32 %v13496_v11, %v4335_v26  ;;  %v10483_v60 = vld [vmem:[%s14706_s3 + $0x640] ss:$20 sps:$4 sm:$0xff]   ;;  %v10545_v26 = vld [vmem:[%s14706_s3 + $0x8a4] ss:$20 sps:$4 sm:$0xff]  }
 0x2f6   : > { %v5124_v56 = vpop.f32.mrf.mxu1  ;;  %7297 = vmatprep.subr.bf16.mxu0 %v10458_v49  ;;  %v5336_v49 = vmax.f32 %v13409_v63, 0.0  ;;  %v10486_v11 = vld [vmem:[%s14706_s3 + $0x3a0] ss:$20 sps:$4 sm:$0xff]   ;;  %v10491_v63 = vld [vmem:[%s14706_s3 + $0x37c] ss:$20 sps:$4 sm:$0xff]  }
 0x2f7   : > { %7329 = vmatpush1.bf16.msra.mxu1 %v10534_v52 }
 0x2f8   : > { %v5125_v41 = vpop.f32.mrf.mxu1  ;;  %7330 = vmatprep.subr.bf16.mxu1 %v10542_v55  ;;  %v10488_v55 = vld [vmem:[%s14706_s3 + $0x3a4] ss:$20 sps:$4 sm:$0xff]  }
 0x2f9   : > { %7298 = vmatpush1.bf16.msra.mxu0 %v10456_v59  ;;  %v13617_v59 = vpack.c.bf16 %v5336_v49, %v5336_v49  ;;  %v10494_v41 = vld [vmem:[%s14706_s3 + $0x354] ss:$20 sps:$4 sm:$0xff]  }
 0x2fa   : > { %7299 = vmatprep.subr.bf16.mxu0 %v10461_v62  ;;  %v10557_v49 = vld [vmem:[%s14706_s3 + $0x854] ss:$20 sps:$4 sm:$0xff]  }
 0x2fb   : > { %7331 = vmatpush1.bf16.msra.mxu1 %v10540_v27  ;;  %v10489_v27 = vld [vmem:[%s14706_s3 + $0x378] ss:$20 sps:$4 sm:$0xff]  }
 0x2fc   : > { %7332 = vmatprep.subr.bf16.mxu1 %v10548_v2  ;;  %v10492_v2 = vld [vmem:[%s14706_s3 + $0x350] ss:$20 sps:$4 sm:$0xff]  }
 0x2fd   : > { %7300 = vmatpush1.bf16.msra.mxu0 %v10459_v5  ;;  %v10497_v5 = vld [vmem:[%s14706_s3 + $0x32c] ss:$20 sps:$4 sm:$0xff]  }
 0x2fe   : > { %7301 = vmatprep.subr.bf16.mxu0 %v10464_v6  ;;  %v10495_v6 = vld [vmem:[%s14706_s3 + $0x328] ss:$20 sps:$4 sm:$0xff]  }
 0x2ff   : > { %7333 = vmatpush1.bf16.msra.mxu1 %v10546_v34  ;;  %v10500_v34 = vld [vmem:[%s14706_s3 + $0x304] ss:$20 sps:$4 sm:$0xff]  }
 0x300   : > { %7334 = vmatprep.subr.bf16.mxu1 %v10554_v48  ;;  %v10498_v48 = vld [vmem:[%s14706_s3 + $0x300] ss:$20 sps:$4 sm:$0xff]  }
 0x301   : > { %7302 = vmatpush2.bf16.msra.mxu0 %v10462_v7  ;;  %v10503_v7 = vld [vmem:[%s14706_s3 + $0x2dc] ss:$20 sps:$4 sm:$0xff]  }
 0x302   : > { %7303 = vmatprep.subr.bf16.mxu0 %v10467_v8 }
 0x303   : > { %7335 = vmatpush1.bf16.msra.mxu1 %v10552_v9  ;;  %v10501_v9 = vld [vmem:[%s14706_s3 + $0x2d8] ss:$20 sps:$4 sm:$0xff]  }
 0x304   : > { %7336 = vmatprep.subr.bf16.mxu1 %v10560_v33  ;;  %v10506_v33 = vld [vmem:[%s14706_s3 + $0x2b4] ss:$20 sps:$4 sm:$0xff]  }
 0x305   : > { %7304 = vmatpush2.bf16.msra.mxu0 %v10465_v14 }
 0x306   : > { %7305 = vmatprep.subr.bf16.mxu0 %v10470_v15 }
 0x307   : > { %7337 = vmatpush1.bf16.msra.mxu1 %v10558_v29  ;;  %v10504_v29 = vld [vmem:[%s14706_s3 + $0x2b0] ss:$20 sps:$4 sm:$0xff]  }
 0x308   : > { %7338 = vmatprep.subr.bf16.mxu1 %v10566_v4  ;;  %v10509_v4 = vld [vmem:[%s14706_s3 + $0x28c] ss:$20 sps:$4 sm:$0xff]  }
 0x309   : > { %7306 = vmatpush2.bf16.msra.mxu0 %v10468_v17 }
 0x30a   : > { %7307 = vmatprep.subr.bf16.mxu0 %v10473_v19  ;;  %v10507_v19 = vld [vmem:[%s14706_s3 + $0x288] ss:$20 sps:$4 sm:$0xff]  }
 0x30b   : > { %7339 = vmatpush1.bf16.msra.mxu1 %v10564_v20  ;;  %v10512_v20 = vld [vmem:[%s14706_s3 + $0x4e4] ss:$20 sps:$4 sm:$0xff]  }
 0x30c   : > { %7340 = vmatprep.subr.bf16.mxu1 %v10572_v1  ;;  %v10510_v1 = vld [vmem:[%s14706_s3 + $0x4e0] ss:$20 sps:$4 sm:$0xff]  }
 0x30d   : > { %7308 = vmatpush2.bf16.msra.mxu0 %v10471_v13  ;;  %v10513_v13 = vld [vmem:[%s14706_s3 + $0x4b8] ss:$20 sps:$4 sm:$0xff]  }
 0x30e   : > { %7309 = vmatprep.subr.bf16.mxu0 %v10476_v18  ;;  %v10518_v18 = vld [vmem:[%s14706_s3 + $0x494] ss:$20 sps:$4 sm:$0xff]  }
 0x30f   : > { %7341 = vmatpush1.bf16.msra.mxu1 %v10570_v23  ;;  %v10516_v23 = vld [vmem:[%s14706_s3 + $0x490] ss:$20 sps:$4 sm:$0xff]  }
 0x310   : > { %9983 = vmatprep.subr.msk.bf16.mxu1 %vm7187_vm1, %v9979_v22  ;;  %v10521_v22 = vld [vmem:[%s14706_s3 + $0x46c] ss:$20 sps:$4 sm:$0xff]  }
 0x311   : > { %7310 = vmatpush2.bf16.msra.mxu0 %v10474_v24  ;;  %v10524_v24 = vld [vmem:[%s14706_s3 + $0x444] ss:$20 sps:$4 sm:$0xff]  }
 0x312   : > { %7311 = vmatprep.subr.bf16.mxu0 %v10479_v31  ;;  %v10522_v31 = vld [vmem:[%s14706_s3 + $0x440] ss:$20 sps:$4 sm:$0xff]  }
 0x313   : > { %7357 = vmatpush2.bf16.msra.mxu1 %v7189_v61  ;;  %v10525_v61 = vld [vmem:[%s14706_s3 + $0x418] ss:$20 sps:$4 sm:$0xff]  }
 0x314   : > { %7367 = vmatprep.subr.bf16.mxu1 %v10583_v30  ;;  %v10533_v30 = vld [vmem:[%s14706_s3 + $0x3f4] ss:$20 sps:$4 sm:$0xff]  }
 0x315   : > { %7312 = vmatpush2.bf16.msra.mxu0 %v10477_v28  ;;  %v10539_v28 = vld [vmem:[%s14706_s3 + $0x3cc] ss:$20 sps:$4 sm:$0xff]  }
 0x316   : > { %7313 = vmatprep.subr.bf16.mxu0 %v10482_v43 }
 0x318   : > { %v5161_v40 = vpop.f32.mrf.mxu0 }
 0x319   : > { %v13603_v46 = vadd.f32 %v5161_v40, %v5121_v38  ;;  %7314 = vmatpush2.bf16.msra.mxu0 %v10480_v37  ;;  %v10551_v38 = vld [vmem:[%s14706_s3 + $0x87c] ss:$20 sps:$4 sm:$0xff]  }
 0x31a   : > { %v5163_v52 = vpop.f32.mrf.mxu0  ;;  %7315 = vmatprep.subr.bf16.mxu0 %v10485_v3  ;;  %v10543_v3 = vld [vmem:[%s14706_s3 + $0x8a0] ss:$20 sps:$4 sm:$0xff]  }
 0x31b   : > { %v13612_v56 = vadd.f32 %v5163_v52, %v5123_v25 }
 0x31c   : > { %v5165_v16 = vpop.f32.mrf.mxu0 }
 0x31d   : > { %7316 = vmatpush2.bf16.msra.mxu0 %v10483_v60  ;;  %v10549_v60 = vld [vmem:[%s14706_s3 + $0x878] ss:$20 sps:$4 sm:$0xff]   ;;  %v10555_v16 = vld [vmem:[%s14706_s3 + $0x850] ss:$20 sps:$4 sm:$0xff]  }
 0x31e   : > { %7408 = vmatprep.subr.bf16.mxu0 %v10488_v55  ;;  %v5166_v62 = vpop.f32.mrf.mxu0 }
 0x31f   : > { %v10561_v62 = vld [vmem:[%s14706_s3 + $0x828] ss:$20 sps:$4 sm:$0xff]  }
 0x320   : > { %7318 = vmatmul.mubr.bf16.vlgmr.msra.gmra.mxu0 %v13617_v59 }
 0x321   : > { %7409 = vmatpush1.bf16.msra.mxu0 %v10486_v11  ;;  %7440 = vmatprep.mubr.bf16.mxu0 %v13266_v12  ;;  %v10563_v11 = vld [vmem:[%s14706_s3 + $0x82c] ss:$20 sps:$4 sm:$0xff]  }
 0x322   : > { %7410 = vmatprep.subr.bf16.mxu0 %v10491_v63 }
 0x325   : > { %7411 = vmatpush1.bf16.msra.mxu0 %v10489_v27  ;;  %v10569_v27 = vld [vmem:[%s14706_s3 + $0x804] ss:$20 sps:$4 sm:$0xff]  }
 0x326   : > { %7412 = vmatprep.subr.bf16.mxu0 %v10494_v41  ;;  %v10567_v41 = vld [vmem:[%s14706_s3 + $0x800] ss:$20 sps:$4 sm:$0xff]  }
 0x329   : > { %7413 = vmatpush1.bf16.msra.mxu0 %v10492_v2 }
 0x32a   : > { %7414 = vmatprep.subr.bf16.mxu0 %v10497_v5  ;;  %v10575_v5 = vld [vmem:[%s14706_s3 + $0x7dc] ss:$20 sps:$4 sm:$0xff]  }
 0x32d   : > { %7415 = vmatpush1.bf16.msra.mxu0 %v10495_v6 }
 0x32e   : > { %7416 = vmatprep.subr.bf16.mxu0 %v10500_v34 }
 0x331   : > { %7417 = vmatpush1.bf16.msra.mxu0 %v10498_v48 }
 0x332   : > { %v13648_v8 = vpop.f32.mrf.mxu1  ;;  %7418 = vmatprep.subr.bf16.mxu0 %v10503_v7  ;;  %v10573_v7 = vld [vmem:[%s14706_s3 + $0x7d8] ss:$20 sps:$4 sm:$0xff]  }
 0x333   : > { %v5203_v2 = vadd.f32 %v13648_v8, %v13603_v46  ;;  %v10580_v46 = vld [vmem:[%s14706_s3 + $0x7b4] ss:$20 sps:$4 sm:$0xff]  }
 0x334   : > { %v13656_v14 = vpop.f32.mrf.mxu1 }
 0x335   : > { %7419 = vmatpush1.bf16.msra.mxu0 %v10501_v9  ;;  %v5205_v6 = vadd.f32 %v13656_v14, %v13612_v56  ;;  %v10578_v56 = vld [vmem:[%s14706_s3 + $0x7b0] ss:$20 sps:$4 sm:$0xff]  }
 0x336   : > { %v5206_v15 = vpop.f32.mrf.mxu1  ;;  %7420 = vmatprep.subr.bf16.mxu0 %v10506_v33 }
 0x338   : > { %v5207_v17 = vpop.f32.mrf.mxu1 }
 0x339   : > { %7421 = vmatpush1.bf16.msra.mxu0 %v10504_v29  ;;  %v10586_v17 = vld [vmem:[%s14706_s3 + $0x78c] ss:$20 sps:$4 sm:$0xff]  }
 0x33a   : > { %7422 = vmatprep.subr.bf16.mxu0 %v10509_v4 }
 0x33d   : > { %7423 = vmatpush1.bf16.msra.mxu0 %v10507_v19 }
 0x33e   : > { %7424 = vmatprep.subr.bf16.mxu0 %v10512_v20 }
 0x341   : > { %7425 = vmatpush2.bf16.msra.mxu0 %v10510_v1  ;;  %v5685_v1 = vld [vmem:[%s14706_s3 + $0x8c8] sm:$0x33] }
 0x342   : > { %7426 = vmatprep.subr.bf16.mxu0 %v10515_v21 }
 0x345   : > { %7427 = vmatpush2.bf16.msra.mxu0 %v10513_v13  ;;  %v10584_v13 = vld [vmem:[%s14706_s3 + $0x788] ss:$20 sps:$4 sm:$0xff]  }
 0x346   : > { %7428 = vmatprep.subr.bf16.mxu0 %v10518_v18 }
 0x349   : > { %7429 = vmatpush2.bf16.msra.mxu0 %v10516_v23  ;;  %v10581_v23 = vld [vmem:[%s14706_s3 + $0x120] ss:$20 sps:$4 sm:$0xff]  }
 0x34a   : > { %7430 = vmatprep.subr.bf16.mxu0 %v10521_v22  ;;  %v9980_v22 = vcombine.low %v5685_v1, %v5685_v1 }
 0x34d   : > { %7431 = vmatpush2.bf16.msra.mxu0 %v10519_v36 }
 0x34e   : > { %7432 = vmatprep.subr.bf16.mxu0 %v10524_v24  ;;  %v10589_v24 = vld [vmem:[%s14706_s3 + $0xfc] ss:$20 sps:$4 sm:$0xff]  }
 0x351   : > { %7433 = vmatpush2.bf16.msra.mxu0 %v10522_v31  ;;  %v9981_v31 = vcombine.high %v5685_v1, %v5685_v1  ;;  %v10644_v1 = vld [vmem:[%s14706_s3 + $0x600] ss:$20 sps:$4 sm:$0xff]  }
 0x352   : > { %7434 = vmatprep.subr.bf16.mxu0 %v10527_v42  ;;  %v10587_v42 = vld [vmem:[%s14706_s3 + $0xf8] ss:$20 sps:$4 sm:$0xff]  }
 0x355   : > { %7435 = vmatpush2.bf16.msra.mxu0 %v10525_v61  ;;  %v7195_v61 = vsel %vm7187_vm1, %v9980_v22, 0  ;;  %v10643_v22 = vld [vmem:[%s14706_s3 + $0x1c4] ss:$20 sps:$4 sm:$0xff]  }
 0x356   : > { %7436 = vmatprep.subr.bf16.mxu0 %v10533_v30  ;;  %v10595_v30 = vld [vmem:[%s14706_s3 + $0x268] ss:$20 sps:$4 sm:$0xff]  }
 0x358   : > { %v5243_v43 = vpop.f32.mrf.mxu0 }
 0x359   : > { %7437 = vmatpush2.bf16.msra.mxu0 %v10531_v32  ;;  %v5244_v34 = vadd.f32 %v5243_v43, %v5203_v2  ;;  %v10593_v32 = vld [vmem:[%s14706_s3 + $0xd4] ss:$20 sps:$4 sm:$0xff]   ;;  %v10591_v43 = vld [vmem:[%s14706_s3 + $0xd0] ss:$20 sps:$4 sm:$0xff]  }
 0x35a   : > { %v5245_v0 = vpop.f32.mrf.mxu0  ;;  %7438 = vmatprep.subr.bf16.mxu0 %v10539_v28  ;;  %v10599_v28 = vld [vmem:[%s14706_s3 + $0x128] ss:$20 sps:$4 sm:$0xff]  }
 0x35b   : > { %v5246_v9 = vadd.f32 %v5245_v0, %v5205_v6  ;;  %v10598_v0 = vld [vmem:[%s14706_s3 + $0xac] ss:$20 sps:$4 sm:$0xff]   ;;  %v10616_v2 = vld [vmem:[%s14706_s3 + $0x8] ss:$20 sps:$4 sm:$0xff]   ;;  %v10623_v6 = vld [vmem:[%s14706_s3 + $0x264] ss:$20 sps:$4 sm:$0xff]  }
 0x35c   : > { %v5247_v37 = vpop.f32.mrf.mxu0 }
 0x35d   : > { %7439 = vmatpush2.bf16.msra.mxu0 %v10537_v53  ;;  %v10600_v53 = vld [vmem:[%s14706_s3 + $0x240] ss:$20 sps:$4 sm:$0xff]   ;;  %v10596_v37 = vld [vmem:[%s14706_s3 + $0xa8] ss:$20 sps:$4 sm:$0xff]  }
 0x35e   : > { %7490 = vmatprep.subr.bf16.mxu0 %v10545_v26  ;;  %v5248_v40 = vpop.f32.mrf.mxu0  ;;  %v10604_v26 = vld [vmem:[%s14706_s3 + $0x100] ss:$20 sps:$4 sm:$0xff]  }
 0x35f   : > { %v10601_v40 = vld [vmem:[%s14706_s3 + $0x80] ss:$20 sps:$4 sm:$0xff]  }
 0x360   : > { %7441 = vmatmul.mubr.bf16.vlgmr.msra.gmra.mxu0 %v13479_v47  ;;  %v5325_v25 = vpop.f32.mrf.mxu0 }
 0x361   : > { %7491 = vmatpush1.bf16.msra.mxu0 %v10543_v3  ;;  %v10605_v3 = vld [vmem:[%s14706_s3 + $0x218] ss:$20 sps:$4 sm:$0xff]  }
 0x362   : > { %7492 = vmatprep.subr.bf16.mxu0 %v10551_v38  ;;  %v5327_v52 = vpop.f32.mrf.mxu0  ;;  %v10603_v38 = vld [vmem:[%s14706_s3 + $0x84] ss:$20 sps:$4 sm:$0xff]  }
 0x364   : > { %v5329_v55 = vpop.f32.mrf.mxu0 }
 0x365   : > { %7493 = vmatpush1.bf16.msra.mxu0 %v10549_v60  ;;  %v10608_v60 = vld [vmem:[%s14706_s3 + $0x5c] ss:$20 sps:$4 sm:$0xff]  }
 0x366   : > { %7494 = vmatprep.subr.bf16.mxu0 %v10557_v49  ;;  %v5330_v63 = vpop.f32.mrf.mxu0  ;;  %v10614_v49 = vld [vmem:[%s14706_s3 + $0xb0] ss:$20 sps:$4 sm:$0xff]   ;;  %v10615_v55 = vld [vmem:[%s14706_s3 + $0x1c8] ss:$20 sps:$4 sm:$0xff]  }
 0x367   : > { %v10611_v63 = vld [vmem:[%s14706_s3 + $0x30] ss:$20 sps:$4 sm:$0xff]  }
 0x369   : > { %7495 = vmatpush1.bf16.msra.mxu0 %v10555_v16  ;;  %v10613_v16 = vld [vmem:[%s14706_s3 + $0x34] ss:$20 sps:$4 sm:$0xff]  }
 0x36a   : > { %7496 = vmatprep.subr.bf16.mxu0 %v10563_v11  ;;  %v10619_v11 = vld [vmem:[%s14706_s3 + $0x88] ss:$20 sps:$4 sm:$0xff]  }
 0x36d   : > { %7497 = vmatpush1.bf16.msra.mxu0 %v10561_v62  ;;  %v10620_v62 = vld [vmem:[%s14706_s3 + $0x1a0] ss:$20 sps:$4 sm:$0xff]  }
 0x36e   : > { %7498 = vmatprep.subr.bf16.mxu0 %v10569_v27  ;;  %v10618_v27 = vld [vmem:[%s14706_s3 + $0xc] ss:$20 sps:$4 sm:$0xff]  }
 0x371   : > { %7499 = vmatpush1.bf16.msra.mxu0 %v10567_v41  ;;  %v10624_v41 = vld [vmem:[%s14706_s3 + $0x60] ss:$20 sps:$4 sm:$0xff]  }
 0x372   : > { %v5284_v48 = vpop.f32.mrf.mxu1  ;;  %7500 = vmatprep.subr.bf16.mxu0 %v10575_v5  ;;  %v10625_v5 = vld [vmem:[%s14706_s3 + $0x178] ss:$20 sps:$4 sm:$0xff]  }
 0x373   : > { %v5285_v33 = vadd.f32 %v5284_v48, %v5244_v34  ;;  %v10629_v34 = vld [vmem:[%s14706_s3 + $0x38] ss:$20 sps:$4 sm:$0xff]   ;;  %v10621_v48 = vld [vmem:[%s14706_s3 + $0x260] ss:$20 sps:$4 sm:$0xff]  }
 0x374   : > { %v5286_v8 = vpop.f32.mrf.mxu1 }
 0x375   : > { %v5326_v15 = vadd.f32 %v5325_v25, %v5285_v33  ;;  %v5287_v29 = vadd.f32 %v5286_v8, %v5246_v9  ;;  %7501 = vmatpush1.bf16.msra.mxu0 %v10573_v7  ;;  %v10610_v25 = vld [vmem:[%s14706_s3 + $0x1f0] ss:$20 sps:$4 sm:$0xff]   ;;  %v10635_v8 = vld [vmem:[%s14706_s3 + $0x768] ss:$20 sps:$4 sm:$0xff]  }
 0x376   : > { %v5288_v4 = vpop.f32.mrf.mxu1  ;;  %7502 = vmatprep.subr.bf16.mxu0 %v10580_v46  ;;  %v10630_v7 = vld [vmem:[%s14706_s3 + $0x150] ss:$20 sps:$4 sm:$0xff]   ;;  %v10626_v46 = vld [vmem:[%s14706_s3 + $0x238] ss:$20 sps:$4 sm:$0xff]  }
 0x377   : > { %v5328_v14 = vadd.f32 %v5327_v52, %v5287_v29  ;;  %v5338_v19 = vmax.f32 %v5326_v15, 0.0  ;;  %v10606_v52 = vld [vmem:[%s14706_s3 + $0x58] ss:$20 sps:$4 sm:$0xff]   ;;  %v10628_v9 = vld [vmem:[%s14706_s3 + $0x23c] ss:$20 sps:$4 sm:$0xff]  }
 0x378   : > { %v5289_v20 = vpop.f32.mrf.mxu1  ;;  %v10634_v33 = vld [vmem:[%s14706_s3 + $0x10] ss:$20 sps:$4 sm:$0xff]   ;;  %v10633_v15 = vld [vmem:[%s14706_s3 + $0x214] ss:$20 sps:$4 sm:$0xff]  }
 0x379   : > { %v5339_v21 = vmax.f32 %v5328_v14, 0.0  ;;  %7503 = vmatpush1.bf16.msra.mxu0 %v10578_v56  ;;  %v13776_v36 = vpack.c.bf16 %v5338_v19, %v5338_v19  ;;  %v10639_v4 = vld [vmem:[%s14706_s3 + $0x628] ss:$20 sps:$4 sm:$0xff]   ;;  %v10631_v56 = vld [vmem:[%s14706_s3 + $0x210] ss:$20 sps:$4 sm:$0xff]  }
 0x37a   : > { %7504 = vmatprep.subr.bf16.mxu0 %v10586_v17  ;;  %v10640_v17 = vld [vmem:[%s14706_s3 + $0x740] ss:$20 sps:$4 sm:$0xff]  }
 0x37b   : > { %v13771_v18 = vpack.c.bf16 %v5339_v21, %v5339_v21  ;;  %v10638_v19 = vld [vmem:[%s14706_s3 + $0x1ec] ss:$20 sps:$4 sm:$0xff]   ;;  %v10636_v21 = vld [vmem:[%s14706_s3 + $0x1e8] ss:$20 sps:$4 sm:$0xff]  }
 0x37d   : > { %9984 = vmatprep.mubr.msk.bf16.mxu1 %vm7183_vm2, %v13771_v18  ;;  %9986 = vmatprep.mubr.msk.bf16.mxu0 %vm7183_vm2, %v13771_v18 }
 0x37e   : > { %7359 = vmatmul.mubr.bf16.vlgmr.msra.gmra.mxu1 %v13776_v36  ;;  %7505 = vmatpush1.bf16.msra.mxu0 %v10584_v13 }
 0x37f   : > { %7368 = vmatpush1.bf16.msra.mxu1 %v10581_v23  ;;  %7399 = vmatprep.mubr.bf16.mxu1 %v13211_v35  ;;  %v10645_v23 = vld [vmem:[%s14706_s3 + $0x718] ss:$20 sps:$4 sm:$0xff]  }
 0x380   : > { %7369 = vmatprep.subr.bf16.mxu1 %v10589_v24  ;;  %9985 = vmatprep.subr.msk.bf16.mxu0 %vm7187_vm1, %v9981_v31  ;;  %v13925_v24 = vld [vmem:[%s14707_s4] sm:$0x1f]  ;;  %v10649_v31 = vld [vmem:[%s14706_s3 + $0x5d8] ss:$20 sps:$4 sm:$0xff]  }
 0x382   : > { %7521 = vmatpush2.bf16.msra.mxu0 %v7195_v61  ;;  %v10650_v61 = vld [vmem:[%s14706_s3 + $0x6f0] ss:$20 sps:$4 sm:$0xff]  }
 0x383   : > { %7370 = vmatpush1.bf16.msra.mxu1 %v10587_v42  ;;  %10128 = vmatprep.subr.bf16.mxu0 %v10595_v30  ;;  %v10641_v42 = vld [vmem:[%s14706_s3 + $0x1c0] ss:$20 sps:$4 sm:$0xff]   ;;  %v10648_v30 = vld [vmem:[%s14706_s3 + $0x19c] ss:$20 sps:$4 sm:$0xff]  }
 0x384   : > { %7371 = vmatprep.subr.bf16.mxu1 %v10593_v32  ;;  %v7161_v32 = vrot.slane %v13925_v24, %v11939_v51 }
 0x385   : > { %7523 = vmatmul.mubr.bf16.vlgmr.msra.gmra.mxu0 %v13776_v36 }
 0x386   : > { %10129 = vmatpush3.bf16.msra.mxu0 %v10599_v28  ;;  %7563 = vmatprep.mubr.bf16.mxu0 %v13211_v35  ;;  %v10609_v35 = vld [vmem:[%s14706_s3 + $0xd8] ss:$20 sps:$4 sm:$0xff]   ;;  %v10654_v28 = vld [vmem:[%s14706_s3 + $0x5b0] ss:$20 sps:$4 sm:$0xff]  }
 0x387   : > { %7372 = vmatpush1.bf16.msra.mxu1 %v10591_v43  ;;  %10130 = vmatprep.subr.bf16.mxu0 %v10600_v53  ;;  %v7165_v43 = vrot.slane %v13925_v24, %v11948_v57  ;;  %v10646_v53 = vld [vmem:[%s14706_s3 + $0x198] ss:$20 sps:$4 sm:$0xff]  }
 0x388   : > { %7373 = vmatprep.subr.bf16.mxu1 %v10598_v0  ;;  %v10655_v0 = vld [vmem:[%s14706_s3 + $0x6c8] ss:$20 sps:$4 sm:$0xff]  }
 0x38a   : > { %10131 = vmatpush3.bf16.msra.mxu0 %v10604_v26  ;;  %v10653_v26 = vld [vmem:[%s14706_s3 + $0x174] ss:$20 sps:$4 sm:$0xff]  }
 0x38b   : > { %7374 = vmatpush1.bf16.msra.mxu1 %v10596_v37  ;;  %10132 = vmatprep.subr.bf16.mxu0 %v10605_v3 }
 0x38c   : > { %7375 = vmatprep.subr.bf16.mxu1 %v10603_v38  ;;  %v10659_v38 = vld [vmem:[%s14706_s3 + $0x588] ss:$20 sps:$4 sm:$0xff]  }
 0x38e   : > { %10133 = vmatpush3.bf16.msra.mxu0 %v10609_v35 }
 0x38f   : > { %7376 = vmatpush1.bf16.msra.mxu1 %v10601_v40  ;;  %10134 = vmatprep.subr.bf16.mxu0 %v10610_v25  ;;  %v10651_v25 = vld [vmem:[%s14706_s3 + $0x170] ss:$20 sps:$4 sm:$0xff]  }
 0x390   : > { %7377 = vmatprep.subr.bf16.mxu1 %v10608_v60  ;;  %v10660_v60 = vld [vmem:[%s14706_s3 + $0x6a0] ss:$20 sps:$4 sm:$0xff]  }
 0x392   : > { %10135 = vmatpush3.bf16.msra.mxu0 %v10614_v49 }
 0x393   : > { %7378 = vmatpush1.bf16.msra.mxu1 %v10606_v52  ;;  %10136 = vmatprep.subr.bf16.mxu0 %v10615_v55  ;;  %v10658_v52 = vld [vmem:[%s14706_s3 + $0x14c] ss:$20 sps:$4 sm:$0xff]  }
 0x394   : > { %7379 = vmatprep.subr.bf16.mxu1 %v10613_v16 }
 0x396   : > { %10137 = vmatpush3.bf16.msra.mxu0 %v10619_v11  ;;  %v10664_v11 = vld [vmem:[%s14706_s3 + $0x560] ss:$20 sps:$4 sm:$0xff]  }
 0x397   : > { %7380 = vmatpush1.bf16.msra.mxu1 %v10611_v63  ;;  %10138 = vmatprep.subr.bf16.mxu0 %v10620_v62  ;;  %v10656_v63 = vld [vmem:[%s14706_s3 + $0x148] ss:$20 sps:$4 sm:$0xff]   ;;  %v10665_v62 = vld [vmem:[%s14706_s3 + $0x678] ss:$20 sps:$4 sm:$0xff]  }
 0x398   : > { %7381 = vmatprep.subr.bf16.mxu1 %v10618_v27 }
 0x39a   : > { %10139 = vmatpush3.bf16.msra.mxu0 %v10624_v41  ;;  %v10663_v41 = vld [vmem:[%s14706_s3 + $0x624] ss:$20 sps:$4 sm:$0xff]  }
 0x39b   : > { %7382 = vmatpush1.bf16.msra.mxu1 %v10616_v2  ;;  %10140 = vmatprep.subr.bf16.mxu0 %v10625_v5  ;;  %v10669_v2 = vld [vmem:[%s14706_s3 + $0x538] ss:$20 sps:$4 sm:$0xff]   ;;  %v10661_v5 = vld [vmem:[%s14706_s3 + $0x620] ss:$20 sps:$4 sm:$0xff]  }
 0x39c   : > { %7383 = vmatprep.subr.bf16.mxu1 %v10623_v6  ;;  %v10668_v6 = vld [vmem:[%s14706_s3 + $0x5fc] ss:$20 sps:$4 sm:$0xff]  }
 0x39e   : > { %10141 = vmatpush3.bf16.msra.mxu0 %v10629_v34  ;;  %v10670_v34 = vld [vmem:[%s14706_s3 + $0x650] ss:$20 sps:$4 sm:$0xff]  }
 0x39f   : > { %7384 = vmatpush2.bf16.msra.mxu1 %v10621_v48  ;;  %10142 = vmatprep.subr.bf16.mxu0 %v10630_v7  ;;  %v10674_v48 = vld [vmem:[%s14706_s3 + $0x510] ss:$20 sps:$4 sm:$0xff]   ;;  %v10666_v7 = vld [vmem:[%s14706_s3 + $0x5f8] ss:$20 sps:$4 sm:$0xff]  }
 0x3a0   : > { %7385 = vmatprep.subr.bf16.mxu1 %v10628_v9  ;;  %v7237_v29 = vpop.f32.mrf.mxu0  ;;  %v10722_v9 = vld [vmem:[%s14708_s5 + $0xac] ss:$12 sps:$4 sm:$0xff]  }
 0x3a1   : > { %v7238_v37 = vadd.f32 %v7237_v29, %v7161_v32  ;;  %v10675_v29 = vld [vmem:[%s14706_s3 + $0x5a8] ss:$20 sps:$4 sm:$0xff]  }
 0x3a2   : > { %10143 = vmatpush3.bf16.msra.mxu0 %v10634_v33  ;;  %v7239_v14 = vpop.f32.mrf.mxu0  ;;  %v10720_v33 = vld [vmem:[%s14708_s5 + $0xa8] ss:$12 sps:$4 sm:$0xff]  }
 0x3a3   : > { %7386 = vmatpush2.bf16.msra.mxu1 %v10626_v46  ;;  %10172 = vmatprep.subr.bf16.mxu0 %v10635_v8  ;;  %v7240_v35 = vadd.f32 %v7239_v14, %v7165_v43  ;;  %v10727_v46 = vld [vmem:[%s14708_s5 + $0x94] ss:$12 sps:$4 sm:$0xff]   ;;  %v10730_v14 = vld [vmem:[%s14708_s5 + $0x78] ss:$12 sps:$4 sm:$0xff]   ;;  %v10687_v32 = vld [vmem:[%s14706_s3 + $0x508] ss:$20 sps:$4 sm:$0xff]  }
 0x3a4   : > { %7387 = vmatprep.subr.bf16.mxu1 %v10633_v15  ;;  %v7241_v20 = vpop.f32.mrf.mxu0  ;;  %v10677_v8 = vld [vmem:[%s14706_s3 + $0x5ac] ss:$20 sps:$4 sm:$0xff]   ;;  %v10725_v15 = vld [vmem:[%s14708_s5 + $0x90] ss:$12 sps:$4 sm:$0xff]   ;;  %v10692_v43 = vld [vmem:[%s14706_s3 + $0x764] ss:$20 sps:$4 sm:$0xff]  }
 0x3a5   : > { %7564 = vmatmul.mubr.bf16.vlgmr.msra.gmra.mxu0 %v13418_v58  ;;  %v10683_v20 = vld [vmem:[%s14706_s3 + $0x55c] ss:$20 sps:$4 sm:$0xff]  }
 0x3a6   : > { %10173 = vmatpush3.bf16.msra.mxu0 %v10639_v4  ;;  %7643 = vmatprep.mubr.bf16.mxu0 %v13430_v39  ;;  %v7242_v13 = vpop.f32.mrf.mxu0  ;;  %v10732_v4 = vld [vmem:[%s14708_s5 + $0x7c] ss:$12 sps:$4 sm:$0xff]  }
 0x3a7   : > { %7388 = vmatpush2.bf16.msra.mxu1 %v10631_v56  ;;  %10174 = vmatprep.subr.bf16.mxu0 %v10640_v17  ;;  %v10680_v56 = vld [vmem:[%s14706_s3 + $0x584] ss:$20 sps:$4 sm:$0xff]   ;;  %v10678_v17 = vld [vmem:[%s14706_s3 + $0x580] ss:$20 sps:$4 sm:$0xff]  }
 0x3a8   : > { %7389 = vmatprep.subr.bf16.mxu1 %v10638_v19  ;;  %v10737_v19 = vld [vmem:[%s14708_s5 + $0x64] ss:$12 sps:$4 sm:$0xff]   ;;  %v10742_v13 = vld [vmem:[%s14708_s5 + $0x4c] ss:$12 sps:$4 sm:$0xff]  }
 0x3aa   : > { %10175 = vmatpush3.bf16.msra.mxu0 %v10644_v1  ;;  %v10735_v1 = vld [vmem:[%s14708_s5 + $0x60] ss:$12 sps:$4 sm:$0xff]  }
 0x3ab   : > { %7390 = vmatpush2.bf16.msra.mxu1 %v10636_v21  ;;  %10176 = vmatprep.subr.bf16.mxu0 %v10645_v23  ;;  %v10681_v21 = vld [vmem:[%s14706_s3 + $0x558] ss:$20 sps:$4 sm:$0xff]   ;;  %v10686_v23 = vld [vmem:[%s14706_s3 + $0x534] ss:$20 sps:$4 sm:$0xff]  }
 0x3ac   : > { %7391 = vmatprep.subr.bf16.mxu1 %v10643_v22  ;;  %v10740_v22 = vld [vmem:[%s14708_s5 + $0x48] ss:$12 sps:$4 sm:$0xff]  }
 0x3ae   : > { %10177 = vmatpush3.bf16.msra.mxu0 %v10649_v31  ;;  %v10684_v31 = vld [vmem:[%s14706_s3 + $0x530] ss:$20 sps:$4 sm:$0xff]  }
 0x3af   : > { %7392 = vmatpush2.bf16.msra.mxu1 %v10641_v42  ;;  %10178 = vmatprep.subr.bf16.mxu0 %v10650_v61  ;;  %v10747_v42 = vld [vmem:[%s14708_s5 + $0x34] ss:$12 sps:$4 sm:$0xff]  }
 0x3b0   : > { %7393 = vmatprep.subr.bf16.mxu1 %v10648_v30  ;;  %v10689_v61 = vld [vmem:[%s14706_s3 + $0x50c] ss:$20 sps:$4 sm:$0xff]   ;;  %v10745_v30 = vld [vmem:[%s14708_s5 + $0x30] ss:$12 sps:$4 sm:$0xff]  }
 0x3b2   : > { %v7278_v3 = vpop.f32.mrf.mxu1  ;;  %10179 = vmatpush3.bf16.msra.mxu0 %v10654_v28  ;;  %v10751_v28 = vld [vmem:[%s14708_s5 + $0x1c] ss:$12 sps:$4 sm:$0xff]  }
 0x3b3   : > { %v13958_v40 = vadd.f32 %v7278_v3, %v7238_v37  ;;  %7394 = vmatpush2.bf16.msra.mxu1 %v10646_v53  ;;  %10180 = vmatprep.subr.bf16.mxu0 %v10655_v0  ;;  %v10749_v53 = vld [vmem:[%s14708_s5 + $0x18] ss:$12 sps:$4 sm:$0xff]   ;;  %v10690_v0 = vld [vmem:[%s14706_s3 + $0x760] ss:$20 sps:$4 sm:$0xff]   ;;  %v10695_v37 = vld [vmem:[%s14706_s3 + $0x73c] ss:$20 sps:$4 sm:$0xff]  }
 0x3b4   : > { %v7280_v49 = vpop.f32.mrf.mxu1  ;;  %7395 = vmatprep.subr.bf16.mxu1 %v10653_v26  ;;  %v10755_v26 = vld [vmem:[%s14708_s5 + $0x4] ss:$12 sps:$4 sm:$0xff]   ;;  %v10753_v3 = vld [vmem:[%s14708_s5] ss:$12 sps:$4 sm:$0xff]  }
 0x3b5   : > { %v13969_v55 = vadd.f32 %v7280_v49, %v7240_v35  ;;  %v10759_v35 = vld [vmem:[%s14708_s5 + $0x16c] ss:$12 sps:$4 sm:$0xff]  }
 0x3b6   : > { %v7282_v16 = vpop.f32.mrf.mxu1  ;;  %10181 = vmatpush3.bf16.msra.mxu0 %v10659_v38  ;;  %v10693_v38 = vld [vmem:[%s14706_s3 + $0x738] ss:$20 sps:$4 sm:$0xff]  }
 0x3b7   : > { %7396 = vmatpush2.bf16.msra.mxu1 %v10651_v25  ;;  %10182 = vmatprep.subr.bf16.mxu0 %v10660_v60  ;;  %v10698_v25 = vld [vmem:[%s14706_s3 + $0x714] ss:$20 sps:$4 sm:$0xff]   ;;  %v10696_v16 = vld [vmem:[%s14706_s3 + $0x710] ss:$20 sps:$4 sm:$0xff]  }
 0x3b8   : > { %v7283_v27 = vpop.f32.mrf.mxu1  ;;  %7397 = vmatprep.subr.bf16.mxu1 %v10658_v52  ;;  %v10757_v52 = vld [vmem:[%s14708_s5 + $0x168] ss:$12 sps:$4 sm:$0xff]  }
 0x3ba   : > { %10183 = vmatpush3.bf16.msra.mxu0 %v10664_v11 }
 0x3bb   : > { %7398 = vmatpush2.bf16.msra.mxu1 %v10656_v63  ;;  %10184 = vmatprep.subr.bf16.mxu0 %v10665_v62  ;;  %v10763_v63 = vld [vmem:[%s14708_s5 + $0x154] ss:$12 sps:$4 sm:$0xff]  }
 0x3bc   : > { %7449 = vmatprep.subr.bf16.mxu1 %v10663_v41  ;;  %v10701_v62 = vld [vmem:[%s14706_s3 + $0x6ec] ss:$20 sps:$4 sm:$0xff]   ;;  %v10761_v41 = vld [vmem:[%s14708_s5 + $0x150] ss:$12 sps:$4 sm:$0xff]  }
 0x3be   : > { %7400 = vmatmul.mubr.bf16.vlgmr.msra.gmra.mxu1 %v13418_v58  ;;  %10185 = vmatpush3.bf16.msra.mxu0 %v10669_v2  ;;  %v10673_v58 = vld [vmem:[%s14706_s3 + $0x5d4] ss:$20 sps:$4 sm:$0xff]  }
 0x3bf   : > { %7450 = vmatpush1.bf16.msra.mxu1 %v10661_v5  ;;  %7481 = vmatprep.mubr.bf16.mxu1 %v13430_v39  ;;  %v10671_v39 = vld [vmem:[%s14706_s3 + $0x5d0] ss:$20 sps:$4 sm:$0xff]   ;;  %v10699_v2 = vld [vmem:[%s14706_s3 + $0x6e8] ss:$20 sps:$4 sm:$0xff]  }
 0x3c0   : > { %7451 = vmatprep.subr.bf16.mxu1 %v10668_v6  ;;  %10186 = vmatprep.subr.bf16.mxu0 %v10670_v34  ;;  %v10704_v6 = vld [vmem:[%s14706_s3 + $0x6c4] ss:$20 sps:$4 sm:$0xff]  }
 0x3c1   : > { %v10765_v34 = vld [vmem:[%s14708_s5 + $0x138] ss:$12 sps:$4 sm:$0xff]  }
 0x3c2   : > { %10187 = vmatpush3.bf16.msra.mxu0 %v10674_v48  ;;  %v10702_v48 = vld [vmem:[%s14706_s3 + $0x6c0] ss:$20 sps:$4 sm:$0xff]  }
 0x3c3   : > { %7452 = vmatpush1.bf16.msra.mxu1 %v10666_v7  ;;  %8482 = vmatprep.subr.bf16.mxu0 %v10722_v9  ;;  %v10771_v7 = vld [vmem:[%s14708_s5 + $0x124] ss:$12 sps:$4 sm:$0xff]  }
 0x3c4   : > { %7453 = vmatprep.subr.bf16.mxu1 %v10673_v58  ;;  %v10707_v9 = vld [vmem:[%s14706_s3 + $0x69c] ss:$20 sps:$4 sm:$0xff]   ;;  %v10769_v58 = vld [vmem:[%s14708_s5 + $0x120] ss:$12 sps:$4 sm:$0xff]  }
 0x3c5   : > { %7644 = vmatmul.mubr.bf16.vlgmr.msra.gmra.mxu0 %v13617_v59 }
 0x3c6   : > { %8483 = vmatpush1.bf16.msra.mxu0 %v10720_v33  ;;  %v10705_v33 = vld [vmem:[%s14706_s3 + $0x698] ss:$20 sps:$4 sm:$0xff]  }
 0x3c7   : > { %7454 = vmatpush1.bf16.msra.mxu1 %v10671_v39  ;;  %8484 = vmatprep.subr.bf16.mxu0 %v10727_v46  ;;  %v10775_v39 = vld [vmem:[%s14708_s5 + $0x10c] ss:$12 sps:$4 sm:$0xff]   ;;  %v10710_v46 = vld [vmem:[%s14706_s3 + $0x674] ss:$20 sps:$4 sm:$0xff]  }
 0x3c8   : > { %7455 = vmatprep.subr.bf16.mxu1 %v10677_v8  ;;  %v10773_v8 = vld [vmem:[%s14708_s5 + $0x108] ss:$12 sps:$4 sm:$0xff]  }
 0x3ca   : > { %8485 = vmatpush1.bf16.msra.mxu0 %v10725_v15  ;;  %v10708_v15 = vld [vmem:[%s14706_s3 + $0x670] ss:$20 sps:$4 sm:$0xff]  }
 0x3cb   : > { %7456 = vmatpush1.bf16.msra.mxu1 %v10675_v29  ;;  %8486 = vmatprep.subr.bf16.mxu0 %v10732_v4  ;;  %v10779_v29 = vld [vmem:[%s14708_s5 + $0xf4] ss:$12 sps:$4 sm:$0xff]  }
 0x3cc   : > { %7457 = vmatprep.subr.bf16.mxu1 %v10680_v56  ;;  %v10713_v4 = vld [vmem:[%s14706_s3 + $0x64c] ss:$20 sps:$4 sm:$0xff]   ;;  %v10777_v56 = vld [vmem:[%s14708_s5 + $0xf0] ss:$12 sps:$4 sm:$0xff]  }
 0x3ce   : > { %8487 = vmatpush1.bf16.msra.mxu0 %v10730_v14  ;;  %v10711_v14 = vld [vmem:[%s14706_s3 + $0x648] ss:$20 sps:$4 sm:$0xff]  }
 0x3cf   : > { %7458 = vmatpush1.bf16.msra.mxu1 %v10678_v17  ;;  %8488 = vmatprep.subr.bf16.mxu0 %v10737_v19  ;;  %v10783_v17 = vld [vmem:[%s14708_s5 + $0xdc] ss:$12 sps:$4 sm:$0xff]  }
 0x3d0   : > { %7459 = vmatprep.subr.bf16.mxu1 %v10683_v20  ;;  %v10714_v19 = vld [vmem:[%s14706_s3 + $0x4e8] ss:$20 sps:$4 sm:$0xff]   ;;  %v10781_v20 = vld [vmem:[%s14708_s5 + $0xd8] ss:$12 sps:$4 sm:$0xff]  }
 0x3d2   : > { %8489 = vmatpush1.bf16.msra.mxu0 %v10735_v1  ;;  %v10715_v1 = vld [vmem:[%s14706_s3 + $0x3a8] ss:$20 sps:$4 sm:$0xff]  }
 0x3d3   : > { %7460 = vmatpush1.bf16.msra.mxu1 %v10681_v21  ;;  %8490 = vmatprep.subr.bf16.mxu0 %v10742_v13  ;;  %v10716_v21 = vld [vmem:[%s14706_s3 + $0x4c0] ss:$20 sps:$4 sm:$0xff]   ;;  %v10786_v13 = vld [vmem:[%s14708_s5 + $0xc4] ss:$12 sps:$4 sm:$0xff]  }
 0x3d4   : > { %7461 = vmatprep.subr.bf16.mxu1 %v10686_v23  ;;  %v10784_v23 = vld [vmem:[%s14708_s5 + $0xc0] ss:$12 sps:$4 sm:$0xff]  }
 0x3d6   : > { %8491 = vmatpush1.bf16.msra.mxu0 %v10740_v22  ;;  %v10717_v22 = vld [vmem:[%s14706_s3 + $0x380] ss:$20 sps:$4 sm:$0xff]  }
 0x3d7   : > { %7462 = vmatpush1.bf16.msra.mxu1 %v10684_v31  ;;  %8492 = vmatprep.subr.bf16.mxu0 %v10747_v42  ;;  %v10718_v31 = vld [vmem:[%s14706_s3 + $0x498] ss:$20 sps:$4 sm:$0xff]   ;;  %v10724_v42 = vld [vmem:[%s14706_s3 + $0x330] ss:$20 sps:$4 sm:$0xff]  }
 0x3d8   : > { %7463 = vmatprep.subr.bf16.mxu1 %v10689_v61  ;;  %v10728_v61 = vld [vmem:[%s14706_s3 + $0x448] ss:$20 sps:$4 sm:$0xff]  }
 0x3da   : > { %8493 = vmatpush1.bf16.msra.mxu0 %v10745_v30  ;;  %v10729_v30 = vld [vmem:[%s14706_s3 + $0x308] ss:$20 sps:$4 sm:$0xff]  }
 0x3db   : > { %7464 = vmatpush1.bf16.msra.mxu1 %v10687_v32  ;;  %8494 = vmatprep.subr.bf16.mxu0 %v10751_v28  ;;  %v10733_v32 = vld [vmem:[%s14706_s3 + $0x420] ss:$20 sps:$4 sm:$0xff]  }
 0x3dc   : > { %7465 = vmatprep.subr.bf16.mxu1 %v10692_v43  ;;  %v10734_v28 = vld [vmem:[%s14706_s3 + $0x2e0] ss:$20 sps:$4 sm:$0xff]   ;;  %v10738_v43 = vld [vmem:[%s14706_s3 + $0x3f8] ss:$20 sps:$4 sm:$0xff]  }
 0x3de   : > { %8495 = vmatpush1.bf16.msra.mxu0 %v10749_v53  ;;  %v10739_v53 = vld [vmem:[%s14706_s3 + $0x2b8] ss:$20 sps:$4 sm:$0xff]  }
 0x3df   : > { %7466 = vmatpush2.bf16.msra.mxu1 %v10690_v0  ;;  %8496 = vmatprep.subr.bf16.mxu0 %v10755_v26  ;;  %v10743_v0 = vld [vmem:[%s14706_s3 + $0x3d0] ss:$20 sps:$4 sm:$0xff]  }
 0x3e0   : > { %7467 = vmatprep.subr.bf16.mxu1 %v10695_v37  ;;  %v7319_v60 = vpop.f32.mrf.mxu0  ;;  %v10744_v26 = vld [vmem:[%s14706_s3 + $0x290] ss:$20 sps:$4 sm:$0xff]   ;;  %v10748_v37 = vld [vmem:[%s14706_s3 + $0x8a8] ss:$20 sps:$4 sm:$0xff]  }
 0x3e1   : > { %v14107_v49 = vadd.f32 %v7319_v60, %v13958_v40  ;;  %v10760_v60 = vld [vmem:[%s14706_s3 + $0x830] ss:$20 sps:$4 sm:$0xff]  }
 0x3e2   : > { %8497 = vmatpush1.bf16.msra.mxu0 %v10753_v3  ;;  %v7321_v11 = vpop.f32.mrf.mxu0  ;;  %v10752_v3 = vld [vmem:[%s14706_s3 + $0x880] ss:$20 sps:$4 sm:$0xff]  }
 0x3e3   : > { %7468 = vmatpush2.bf16.msra.mxu1 %v10693_v38  ;;  %8498 = vmatprep.subr.bf16.mxu0 %v10759_v35  ;;  %v14119_v40 = vadd.f32 %v7321_v11, %v13969_v55  ;;  %v10767_v55 = vld [vmem:[%s14708_s5 + $0x13c] ss:$12 sps:$4 sm:$0xff]   ;;  %v10772_v11 = vld [vmem:[%s14706_s3 + $0x7b8] ss:$20 sps:$4 sm:$0xff]  }
 0x3e4   : > { %7469 = vmatprep.subr.bf16.mxu1 %v10698_v25  ;;  %v7323_v27 = vpop.f32.mrf.mxu0  ;;  %v10756_v25 = vld [vmem:[%s14706_s3 + $0x858] ss:$20 sps:$4 sm:$0xff]  }
 0x3e6   : > { %8499 = vmatpush2.bf16.msra.mxu0 %v10757_v52  ;;  %v7324_v5 = vpop.f32.mrf.mxu0  ;;  %v10764_v52 = vld [vmem:[%s14706_s3 + $0x808] ss:$20 sps:$4 sm:$0xff]  }
 0x3e7   : > { %7470 = vmatpush2.bf16.msra.mxu1 %v10696_v16  ;;  %8500 = vmatprep.subr.bf16.mxu0 %v10763_v63  ;;  %v10768_v16 = vld [vmem:[%s14706_s3 + $0x7e0] ss:$20 sps:$4 sm:$0xff]   ;;  %v10776_v63 = vld [vmem:[%s14706_s3 + $0x790] ss:$20 sps:$4 sm:$0xff]  }
 0x3e8   : > { %7471 = vmatprep.subr.bf16.mxu1 %v10701_v62  ;;  %v10780_v62 = vld [vmem:[%s14706_s3 + $0x8d0] ss:$0 sps:$4 sm:$0x33]  }
 0x3e9   : > { %v7201_v27 = vsel %vm7187_vm1, %v10780_v62, 0  ;;  %v10858_v62 = vld [vmem:[%s14708_s5 + $0x348] ss:$12 sps:$4 sm:$0xff]  }
 0x3ea   : > { %8501 = vmatpush2.bf16.msra.mxu0 %v10761_v41  ;;  %v10789_v41 = vld [vmem:[%s14708_s5 + $0x22c] ss:$12 sps:$4 sm:$0xff]  }
 0x3eb   : > { %7472 = vmatpush2.bf16.msra.mxu1 %v10699_v2  ;;  %8502 = vmatprep.subr.bf16.mxu0 %v10767_v55  ;;  %v10787_v55 = vld [vmem:[%s14708_s5 + $0x228] ss:$12 sps:$4 sm:$0xff]  }
 0x3ec   : > { %7473 = vmatprep.subr.bf16.mxu1 %v10704_v6 }
 0x3ee   : > { %8503 = vmatpush2.bf16.msra.mxu0 %v10765_v34  ;;  %v10792_v34 = vld [vmem:[%s14708_s5 + $0x214] ss:$12 sps:$4 sm:$0xff]  }
 0x3ef   : > { %7474 = vmatpush2.bf16.msra.mxu1 %v10702_v48  ;;  %8504 = vmatprep.subr.bf16.mxu0 %v10771_v7 }
 0x3f0   : > { %7475 = vmatprep.subr.bf16.mxu1 %v10707_v9 }
 0x3f2   : > { %8505 = vmatpush2.bf16.msra.mxu0 %v10769_v58 }
 0x3f3   : > { %7476 = vmatpush2.bf16.msra.mxu1 %v10705_v33  ;;  %8506 = vmatprep.subr.bf16.mxu0 %v10775_v39  ;;  %v10795_v39 = vld [vmem:[%s14708_s5 + $0x1fc] ss:$12 sps:$4 sm:$0xff]  }
 0x3f4   : > { %7477 = vmatprep.subr.bf16.mxu1 %v10710_v46 }
 0x3f6   : > { %8507 = vmatpush2.bf16.msra.mxu0 %v10773_v8 }
 0x3f7   : > { %7478 = vmatpush2.bf16.msra.mxu1 %v10708_v15  ;;  %8508 = vmatprep.subr.bf16.mxu0 %v10779_v29  ;;  %v10793_v15 = vld [vmem:[%s14708_s5 + $0x1f8] ss:$12 sps:$4 sm:$0xff]  }
 0x3f8   : > { %7479 = vmatprep.subr.bf16.mxu1 %v10713_v4  ;;  %v10798_v29 = vld [vmem:[%s14708_s5 + $0x1e4] ss:$12 sps:$4 sm:$0xff]  }
 0x3fa   : > { %8509 = vmatpush2.bf16.msra.mxu0 %v10777_v56 }
 0x3fb   : > { %7480 = vmatpush2.bf16.msra.mxu1 %v10711_v14  ;;  %8510 = vmatprep.subr.bf16.mxu0 %v10783_v17  ;;  %v10796_v14 = vld [vmem:[%s14708_s5 + $0x1e0] ss:$12 sps:$4 sm:$0xff]  }
 0x3fc   : > { %10150 = vmatprep.subr.bf16.mxu1 %v10714_v19  ;;  %v10801_v17 = vld [vmem:[%s14708_s5 + $0x1cc] ss:$12 sps:$4 sm:$0xff]   ;;  %v10799_v19 = vld [vmem:[%s14708_s5 + $0x1c8] ss:$12 sps:$4 sm:$0xff]  }
 0x3fe   : > { %7482 = vmatmul.mubr.bf16.vlgmr.msra.gmra.mxu1 %v13617_v59  ;;  %8511 = vmatpush2.bf16.msra.mxu0 %v10781_v20  ;;  %v10719_v59 = vld [vmem:[%s14706_s3 + $0x358] ss:$20 sps:$4 sm:$0xff]   ;;  %v10802_v20 = vld [vmem:[%s14708_s5 + $0x1b0] ss:$12 sps:$4 sm:$0xff]  }
 0x3ff   : > { %10151 = vmatpush3.bf16.msra.mxu1 %v10715_v1  ;;  %7603 = vmatprep.mubr.bf16.mxu1 %v13266_v12  ;;  %v10723_v12 = vld [vmem:[%s14706_s3 + $0x470] ss:$20 sps:$4 sm:$0xff]   ;;  %v10807_v1 = vld [vmem:[%s14708_s5 + $0x19c] ss:$12 sps:$4 sm:$0xff]  }
 0x400   : > { %10152 = vmatprep.subr.bf16.mxu1 %v10716_v21  ;;  %8512 = vmatprep.subr.bf16.mxu0 %v10786_v13  ;;  %v10805_v21 = vld [vmem:[%s14708_s5 + $0x198] ss:$12 sps:$4 sm:$0xff]  }
 0x401   : > { %v10810_v13 = vld [vmem:[%s14708_s5 + $0x184] ss:$12 sps:$4 sm:$0xff]  }
 0x402   : > { %8513 = vmatpush2.bf16.msra.mxu0 %v10784_v23  ;;  %v10808_v23 = vld [vmem:[%s14708_s5 + $0x180] ss:$12 sps:$4 sm:$0xff]  }
 0x403   : > { %10153 = vmatpush3.bf16.msra.mxu1 %v10717_v22  ;;  %v10813_v22 = vld [vmem:[%s14708_s5 + $0x2ec] ss:$12 sps:$4 sm:$0xff]  }
 0x404   : > { %10154 = vmatprep.subr.bf16.mxu1 %v10718_v31  ;;  %v10811_v31 = vld [vmem:[%s14708_s5 + $0x2e8] ss:$12 sps:$4 sm:$0xff]  }
 0x407   : > { %10155 = vmatpush3.bf16.msra.mxu1 %v10719_v59  ;;  %v10816_v59 = vld [vmem:[%s14708_s5 + $0x2d4] ss:$12 sps:$4 sm:$0xff]  }
 0x408   : > { %10156 = vmatprep.subr.bf16.mxu1 %v10723_v12  ;;  %v10814_v12 = vld [vmem:[%s14708_s5 + $0x2d0] ss:$12 sps:$4 sm:$0xff]  }
 0x40b   : > { %10157 = vmatpush3.bf16.msra.mxu1 %v10724_v42  ;;  %v10819_v42 = vld [vmem:[%s14708_s5 + $0x2bc] ss:$12 sps:$4 sm:$0xff]  }
 0x40c   : > { %10158 = vmatprep.subr.bf16.mxu1 %v10728_v61 }
 0x40f   : > { %10159 = vmatpush3.bf16.msra.mxu1 %v10729_v30 }
 0x410   : > { %10160 = vmatprep.subr.bf16.mxu1 %v10733_v32  ;;  %v10817_v32 = vld [vmem:[%s14708_s5 + $0x2b8] ss:$12 sps:$4 sm:$0xff]  }
 0x413   : > { %10161 = vmatpush3.bf16.msra.mxu1 %v10734_v28 }
 0x414   : > { %10162 = vmatprep.subr.bf16.mxu1 %v10738_v43  ;;  %v10822_v43 = vld [vmem:[%s14708_s5 + $0x2a4] ss:$12 sps:$4 sm:$0xff]  }
 0x417   : > { %10163 = vmatpush3.bf16.msra.mxu1 %v10739_v53 }
 0x418   : > { %10164 = vmatprep.subr.bf16.mxu1 %v10743_v0  ;;  %v7849_v0 = vld [vmem:[%s14708_s5 + $0x378] sm:$0xff] }
 0x41b   : > { %10165 = vmatpush3.bf16.msra.mxu1 %v10744_v26 }
 0x41c   : > { %7651 = vmatprep.subr.bf16.mxu1 %v10974_v10 }
 0x41e   : > { %7604 = vmatmul.mubr.bf16.vlgmr.msra.gmra.mxu1 %v13479_v47 }
 0x41f   : > { %7652 = vmatpush1.bf16.msra.mxu1 %v10748_v37  ;;  %9987 = vmatprep.mubr.msk.bf16.mxu1 %vm7183_vm2, %v13771_v18  ;;  %v10820_v37 = vld [vmem:[%s14708_s5 + $0x2a0] ss:$12 sps:$4 sm:$0xff]  }
 0x420   : > { %7653 = vmatprep.subr.bf16.mxu1 %v10974_v10  ;;  %v14251_v38 = vpop.f32.mrf.mxu0 }
 0x422   : > { %v14253_v35 = vpop.f32.mrf.mxu0 }
 0x423   : > { %7654 = vmatpush1.bf16.msra.mxu1 %v10752_v3  ;;  %v10100_v3 = vcombine.high %v7849_v0, %v7849_v0 }
 0x424   : > { %7655 = vmatprep.subr.bf16.mxu1 %v10974_v10  ;;  %v7446_v47 = vpop.f32.mrf.mxu0 }
 0x425   : > { %v10856_v47 = vld [vmem:[%s14708_s5 + $0x364] ss:$12 sps:$4 sm:$0xff]   ;;  %10102 = vmatprep.subr.msk.bf16.mxu0 %vm8472_vm3, %v10100_v3  ;;  %v10841_v3 = vld [vmem:[%s14708_s5 + $0x128] ss:$12 sps:$4 sm:$0xff]  }
 0x426   : > { %v7447_v18 = vpop.f32.mrf.mxu0 }
 0x427   : > { %7656 = vmatpush1.bf16.msra.mxu1 %v10756_v25  ;;  %v10099_v25 = vcombine.low %v7849_v0, %v7849_v0  ;;  %v10825_v18 = vld [vmem:[%s14708_s5 + $0x28c] ss:$12 sps:$4 sm:$0xff]  }
 0x428   : > { %7657 = vmatprep.subr.bf16.mxu1 %v10974_v10 }
 0x42b   : > { %7658 = vmatpush1.bf16.msra.mxu1 %v10760_v60  ;;  %v8474_v60 = vsel %vm8472_vm3, %v10099_v25, 0  ;;  %v10843_v25 = vld [vmem:[%s14708_s5 + $0x110] ss:$12 sps:$4 sm:$0xff]  }
 0x42c   : > { %7659 = vmatprep.subr.bf16.mxu1 %v10974_v10 }
 0x42f   : > { %7660 = vmatpush1.bf16.msra.mxu1 %v10764_v52  ;;  %v10854_v52 = vld [vmem:[%s14708_s5 + $0x360] ss:$12 sps:$4 sm:$0xff]  }
 0x430   : > { %7661 = vmatprep.subr.bf16.mxu1 %v10974_v10 }
 0x433   : > { %7662 = vmatpush1.bf16.msra.mxu1 %v10768_v16  ;;  %v10823_v16 = vld [vmem:[%s14708_s5 + $0x288] ss:$12 sps:$4 sm:$0xff]  }
 0x434   : > { %7663 = vmatprep.subr.bf16.mxu1 %v10974_v10 }
 0x437   : > { %7664 = vmatpush1.bf16.msra.mxu1 %v10772_v11  ;;  %v10860_v11 = vld [vmem:[%s14708_s5 + $0x34c] ss:$12 sps:$4 sm:$0xff]  }
 0x438   : > { %7665 = vmatprep.subr.bf16.mxu1 %v10974_v10 }
 0x43b   : > { %7666 = vmatpush1.bf16.msra.mxu1 %v10776_v63  ;;  %v10828_v63 = vld [vmem:[%s14708_s5 + $0x274] ss:$12 sps:$4 sm:$0xff]  }
 0x43c   : > { %7681 = vmatprep.subr.bf16.mxu1 %v10974_v10 }
 0x43e   : > { %v7360_v2 = vpop.f32.mrf.mxu1 }
 0x43f   : > { %v7361_v5 = vadd.f32 %v7360_v2, %v14107_v49  ;;  %7682 = vmatpush2.bf16.msra.mxu1 %v7201_v27  ;;  %v10790_v49 = vld [vmem:[%s14708_s5 + $0x210] ss:$12 sps:$4 sm:$0xff]  }
 0x440   : > { %v7362_v6 = vpop.f32.mrf.mxu1  ;;  %8523 = vmatprep.subr.bf16.mxu1 %v10789_v41  ;;  %v10826_v27 = vld [vmem:[%s14708_s5 + $0x270] ss:$12 sps:$4 sm:$0xff]   ;;  %v10864_v41 = vld [vmem:[%s14708_s5 + $0x334] ss:$12 sps:$4 sm:$0xff]  }
 0x441   : > { %v7363_v48 = vadd.f32 %v7362_v6, %v14119_v40  ;;  %v7691_v7 = vmax.f32 %v7361_v5, 0.0  ;;  %v10831_v2 = vld [vmem:[%s14708_s5 + $0x25c] ss:$12 sps:$4 sm:$0xff]  }
 0x442   : > { %7684 = vmatmul.mubr.bf16.vlgmr.msra.gmra.mxu1 %v13776_v36  ;;  %v7364_v9 = vpop.f32.mrf.mxu1  ;;  %v10862_v5 = vld [vmem:[%s14708_s5 + $0x330] ss:$12 sps:$4 sm:$0xff]  }
 0x443   : > { %v7692_v58 = vmax.f32 %v7363_v48, 0.0  ;;  %8524 = vmatpush1.bf16.msra.mxu1 %v10787_v55  ;;  %v14306_v40 = vpack.c.bf16 %v7691_v7, %v7691_v7  ;;  %v10829_v55 = vld [vmem:[%s14708_s5 + $0x258] ss:$12 sps:$4 sm:$0xff]   ;;  %v10868_v6 = vld [vmem:[%s14708_s5 + $0x31c] ss:$12 sps:$4 sm:$0xff]  }
 0x444   : > { %v7365_v33 = vpop.f32.mrf.mxu1  ;;  %8525 = vmatprep.subr.bf16.mxu1 %v10792_v34  ;;  %v10834_v34 = vld [vmem:[%s14708_s5 + $0x244] ss:$12 sps:$4 sm:$0xff]   ;;  %v10832_v7 = vld [vmem:[%s14708_s5 + $0x240] ss:$12 sps:$4 sm:$0xff]  }
 0x445   : > { %v14302_v46 = vpack.c.bf16 %v7692_v58, %v7692_v58  ;;  %v14304_v8 = vpop.f32.mrf.mxu0  ;;  %v10866_v48 = vld [vmem:[%s14708_s5 + $0x318] ss:$12 sps:$4 sm:$0xff]   ;;  %v10835_v9 = vld [vmem:[%s14708_s5 + $0x170] ss:$12 sps:$4 sm:$0xff]  }
 0x447   : > { %8514 = vmatprep.mubr.bf16.mxu0 %v14302_v46  ;;  %v14309_v36 = vpop.f32.mrf.mxu0  ;;  %8526 = vmatpush1.bf16.msra.mxu1 %v10790_v49 }
 0x448   : > { %8515 = vmatmul.mubr.bf16.vlgmr.msra.gmra.mxu0 %v14306_v40  ;;  %8527 = vmatprep.subr.bf16.mxu1 %v10795_v39  ;;  %v10872_v39 = vld [vmem:[%s14708_s5 + $0x304] ss:$12 sps:$4 sm:$0xff]  }
 0x449   : > { %v7528_v4 = vpop.f32.mrf.mxu0  ;;  %8596 = vmatprep.mubr.bf16.mxu0 %v10974_v10  ;;  %v10804_v10 = vld [vmem:[%s14708_s5 + $0x1b4] ss:$12 sps:$4 sm:$0xff]   ;;  %8569 = vmatpush1.bf16.msra.mxu0 %v8474_v60  ;;  %v10846_v60 = vld [vmem:[%s14708_s5 + $0x38] ss:$12 sps:$4 sm:$0xff]  }
 0x44a   : > { %8570 = vmatprep.subr.bf16.mxu0 %v10856_v47  ;;  %v10844_v47 = vld [vmem:[%s14708_s5 + $0x50] ss:$12 sps:$4 sm:$0xff]  }
 0x44b   : > { %v7529_v56 = vpop.f32.mrf.mxu0  ;;  %8528 = vmatpush1.bf16.msra.mxu1 %v10793_v15 }
 0x44c   : > { %8529 = vmatprep.subr.bf16.mxu1 %v10798_v29  ;;  %v10870_v29 = vld [vmem:[%s14708_s5 + $0x300] ss:$12 sps:$4 sm:$0xff]  }
 0x44d   : > { %8571 = vmatpush1.bf16.msra.mxu0 %v10854_v52  ;;  %v10847_v52 = vld [vmem:[%s14708_s5 + $0xe0] ss:$12 sps:$4 sm:$0xff]  }
 0x44e   : > { %8572 = vmatprep.subr.bf16.mxu0 %v10860_v11 }
 0x44f   : > { %8530 = vmatpush1.bf16.msra.mxu1 %v10796_v14  ;;  %v10874_v14 = vld [vmem:[%s14708_s5 + $0x2f0] ss:$12 sps:$4 sm:$0xff]  }
 0x450   : > { %8531 = vmatprep.subr.bf16.mxu1 %v10801_v17 }
 0x451   : > { %8573 = vmatpush1.bf16.msra.mxu0 %v10858_v62 }
 0x452   : > { %8574 = vmatprep.subr.bf16.mxu0 %v10864_v41 }
 0x453   : > { %8532 = vmatpush1.bf16.msra.mxu1 %v10799_v19 }
 0x454   : > { %8533 = vmatprep.subr.bf16.mxu1 %v10804_v10 }
 0x455   : > { %8575 = vmatpush1.bf16.msra.mxu0 %v10862_v5 }
 0x456   : > { %8576 = vmatprep.subr.bf16.mxu0 %v10868_v6 }
 0x457   : > { %8534 = vmatpush1.bf16.msra.mxu1 %v10802_v20  ;;  %v7169_v20 = vrot.slane %v13925_v24, %v12546_v45 }
 0x458   : > { %8535 = vmatprep.subr.bf16.mxu1 %v10807_v1  ;;  %v7173_v1 = vrot.slane %v13925_v24, %v4318_v54  ;;  %v10836_v54 = vld [vmem:[%s14708_s5 + $0xb0] ss:$12 sps:$4 sm:$0xff]  }
 0x459   : > { %8577 = vmatpush1.bf16.msra.mxu0 %v10866_v48  ;;  %v10857_v48 = vld [vmem:[%s14708_s5 + $0x368] ss:$12 sps:$4 sm:$0xff]  }
 0x45a   : > { %8578 = vmatprep.subr.bf16.mxu0 %v10872_v39 }
 0x45b   : > { %8536 = vmatpush1.bf16.msra.mxu1 %v10805_v21 }
 0x45c   : > { %8537 = vmatprep.subr.bf16.mxu1 %v10810_v13 }
 0x45d   : > { %8579 = vmatpush1.bf16.msra.mxu0 %v10870_v29 }
 0x45e   : > { %10216 = vmatprep.subr.bf16.mxu0 %v10874_v14  ;;  %v10876_v14 = vld [vmem:[%s14708_s5 + $0x2d8] ss:$12 sps:$4 sm:$0xff]  }
 0x45f   : > { %8538 = vmatpush1.bf16.msra.mxu1 %v10808_v23 }
 0x460   : > { %8539 = vmatprep.subr.bf16.mxu1 %v10813_v22 }
 0x463   : > { %8540 = vmatpush2.bf16.msra.mxu1 %v10811_v31 }
 0x464   : > { %8541 = vmatprep.subr.bf16.mxu1 %v10816_v59 }
 0x465   : > { %v10144_v61 = vpop.f32.mrf.mxu0 }
 0x467   : > { %v10145_v30 = vpop.f32.mrf.mxu0  ;;  %8542 = vmatpush2.bf16.msra.mxu1 %v10814_v12 }
 0x468   : > { %v14364_v28 = vadd.f32 %v10145_v30, %v10144_v61  ;;  %8543 = vmatprep.subr.bf16.mxu1 %v10819_v42 }
 0x469   : > { %v10147_v53 = vpop.f32.mrf.mxu0 }
 0x46b   : > { %v10148_v26 = vpop.f32.mrf.mxu0  ;;  %8544 = vmatpush2.bf16.msra.mxu1 %v10817_v32 }
 0x46c   : > { %8545 = vmatprep.subr.bf16.mxu1 %v10822_v43 }
 0x46f   : > { %8546 = vmatpush2.bf16.msra.mxu1 %v10820_v37  ;;  %v10840_v37 = vld [vmem:[%s14708_s5 + $0x80] ss:$12 sps:$4 sm:$0xff]  }
 0x470   : > { %8547 = vmatprep.subr.bf16.mxu1 %v10825_v18  ;;  %v10845_v18 = vld [vmem:[%s14708_s5 + $0xf8] ss:$12 sps:$4 sm:$0xff]  }
 0x473   : > { %8548 = vmatpush2.bf16.msra.mxu1 %v10823_v16  ;;  %v7177_v16 = vrot.slane %v13925_v24, %v4322_v50  ;;  %v10853_v24 = vld [vmem:[%s14708_s5 + $0x380] ss:$0 sps:$4 sm:$0xff]  }
 0x474   : > { %8549 = vmatprep.subr.bf16.mxu1 %v10828_v63  ;;  %v10848_v63 = vld [vmem:[%s14708_s5 + $0x20] ss:$12 sps:$4 sm:$0xff]  }
 0x475   : > { %v7566_v41 = vadd.f32 %v14364_v28, %v7177_v16  ;;  %v8480_v28 = vsel %vm8472_vm3, %v10853_v24, 0  ;;  %v10905_v16 = vld [vmem:[%s14710_s7] sm:$0xff]  }
 0x477   : > { %8550 = vmatpush2.bf16.msra.mxu1 %v10826_v27  ;;  %v10849_v27 = vld [vmem:[%s14708_s5 + $0xc8] ss:$12 sps:$4 sm:$0xff]  }
 0x478   : > { %8551 = vmatprep.subr.bf16.mxu1 %v10831_v2 }
 0x47b   : > { %8552 = vmatpush2.bf16.msra.mxu1 %v10829_v55 }
 0x47c   : > { %8553 = vmatprep.subr.bf16.mxu1 %v10834_v34  ;;  %v10975_v34 = vmov 0.0  }
 0x47e   : > { %v7401_v58 = vpop.f32.mrf.mxu1 }
 0x47f   : > { %8554 = vmatpush2.bf16.msra.mxu1 %v10832_v7  ;;  %v7402_v21 = vadd.f32 %v7401_v58, %v7169_v20  ;;  %v10861_v7 = vld [vmem:[%s14708_s5 + $0x350] ss:$12 sps:$4 sm:$0xff]   ;;  %v10873_v58 = vld [vmem:[%s14708_s5 + $0x308] ss:$12 sps:$4 sm:$0xff]   ;;  %v10877_v20 = vld [vmem:[%s14708_s5 + $0x218] ss:$12 sps:$4 sm:$0xff]  }
 0x480   : > { %v7403_v49 = vpop.f32.mrf.mxu1  ;;  %10194 = vmatprep.subr.bf16.mxu1 %v10835_v9  ;;  %v10869_v9 = vld [vmem:[%s14708_s5 + $0x320] ss:$12 sps:$4 sm:$0xff]  }
 0x481   : > { %v7404_v13 = vadd.f32 %v7403_v49, %v7173_v1  ;;  %v7443_v23 = vadd.f32 %v14251_v38, %v7402_v21  ;;  %v10878_v1 = vld [vmem:[%s14708_s5 + $0x2c0] ss:$12 sps:$4 sm:$0xff]  }
 0x482   : > { %v7405_v33 = vpop.f32.mrf.mxu1 }
 0x483   : > { %v7445_v59 = vadd.f32 %v14253_v35, %v7404_v13  ;;  %v10837_v35 = vld [vmem:[%s14708_s5 + $0x158] ss:$12 sps:$4 sm:$0xff]  }
 0x484   : > { %v7406_v15 = vpop.f32.mrf.mxu1 }
 0x485   : > { %v10188_v4 = vpop.f32.mrf.mxu0 }
 0x487   : > { %v10189_v56 = vpop.f32.mrf.mxu0 }
 0x488   : > { %v14437_v17 = vadd.f32 %v10189_v56, %v10188_v4  ;;  %v10875_v4 = vld [vmem:[%s14708_s5 + $0x230] ss:$12 sps:$4 sm:$0xff]  }
 0x489   : > { %v10191_v19 = vpop.f32.mrf.mxu0 }
 0x48b   : > { %v10192_v10 = vpop.f32.mrf.mxu0 }
 0x4be   : > { %v7483_v22 = vpop.f32.mrf.mxu1 }
 0x4bf   : > { %v7484_v31 = vadd.f32 %v7483_v22, %v7443_v23  ;;  %v10879_v23 = vld [vmem:[%s14708_s5 + $0x200] ss:$12 sps:$4 sm:$0xff]   ;;  %v10880_v22 = vld [vmem:[%s14708_s5 + $0x2a8] ss:$12 sps:$4 sm:$0xff]  }
 0x4c0   : > { %v7485_v12 = vpop.f32.mrf.mxu1 }
 0x4c1   : > { %v7525_v42 = vadd.f32 %v14304_v8, %v7484_v31  ;;  %v7486_v61 = vadd.f32 %v7485_v12, %v7445_v59  ;;  %v10838_v8 = vld [vmem:[%s14708_s5 + $0x98] ss:$12 sps:$4 sm:$0xff]   ;;  %v10881_v31 = vld [vmem:[%s14708_s5 + $0x1e8] ss:$12 sps:$4 sm:$0xff]   ;;  %v10882_v59 = vld [vmem:[%s14708_s5 + $0x290] ss:$12 sps:$4 sm:$0xff]  }
 0x4c2   : > { %v7487_v30 = vpop.f32.mrf.mxu1  ;;  %v10883_v12 = vld [vmem:[%s14708_s5 + $0x1d0] ss:$12 sps:$4 sm:$0xff]  }
 0x4c3   : > { %v7527_v32 = vadd.f32 %v14309_v36, %v7486_v61  ;;  %v7693_v43 = vmax.f32 %v7525_v42, 0.0  ;;  %v10839_v36 = vld [vmem:[%s14708_s5 + $0x140] ss:$12 sps:$4 sm:$0xff]   ;;  %v10884_v42 = vld [vmem:[%s14708_s5 + $0x278] ss:$12 sps:$4 sm:$0xff]  }
 0x4c4   : > { %v7488_v53 = vpop.f32.mrf.mxu1  ;;  %v10885_v61 = vld [vmem:[%s14708_s5 + $0x1b8] ss:$12 sps:$4 sm:$0xff]   ;;  %v10886_v30 = vld [vmem:[%s14708_s5 + $0x260] ss:$12 sps:$4 sm:$0xff]  }
 0x4c5   : > { %v7694_v0 = vmax.f32 %v7527_v32, 0.0  ;;  %v14453_v38 = vpack.c.bf16 %v7693_v43, %v7693_v43  ;;  %v10887_v32 = vld [vmem:[%s14708_s5 + $0x1a0] ss:$12 sps:$4 sm:$0xff]   ;;  %v10888_v43 = vld [vmem:[%s14708_s5 + $0x248] ss:$12 sps:$4 sm:$0xff]  }
 0x4c6   : > { %v10889_v53 = vld [vmem:[%s14708_s5 + $0x188] ss:$12 sps:$4 sm:$0xff]  }
 0x4c7   : > { %v14448_v26 = vpack.c.bf16 %v7694_v0, %v7694_v0  ;;  %v10890_v0 = vld [vmem:[%s14710_s7 + $0x78] sm:$0xff]  }
 0x4c9   : > { %8555 = vmatprep.mubr.bf16.mxu1 %v14448_v26 }
 0x4ca   : > { %8556 = vmatmul.mubr.bf16.vlgmr.msra.gmra.mxu1 %v14453_v38 }
 0x4cb   : > { %10195 = vmatpush3.bf16.msra.mxu1 %v10836_v54  ;;  %8637 = vmatprep.mubr.bf16.mxu1 %v14302_v46  ;;  %v10842_v46 = vld [vmem:[%s14708_s5 + $0x68] ss:$12 sps:$4 sm:$0xff]  }
 0x4cc   : > { %10196 = vmatprep.subr.bf16.mxu1 %v10837_v35  ;;  %v10892_v54 = vld [vmem:[%s14710_s7 + $0x70] sm:$0xff]  }
 0x4cd   : > { %v10893_v35 = vld [vmem:[%s14710_s7 + $0x30] sm:$0xff]  }
 0x4cf   : > { %10197 = vmatpush3.bf16.msra.mxu1 %v10838_v8  ;;  %v10895_v8 = vld [vmem:[%s14710_s7 + $0x28] sm:$0xff]  }
 0x4d0   : > { %10198 = vmatprep.subr.bf16.mxu1 %v10839_v36  ;;  %v10896_v36 = vld [vmem:[%s14710_s7 + $0x60] sm:$0xff]  }
 0x4d3   : > { %10199 = vmatpush3.bf16.msra.mxu1 %v10840_v37  ;;  %v10897_v37 = vld [vmem:[%s14710_s7 + $0x20] sm:$0xff]  }
 0x4d4   : > { %10200 = vmatprep.subr.bf16.mxu1 %v10841_v3  ;;  %v10898_v3 = vld [vmem:[%s14710_s7 + $0x58] sm:$0xff]  }
 0x4d7   : > { %10201 = vmatpush3.bf16.msra.mxu1 %v10842_v46  ;;  %v10899_v46 = vld [vmem:[%s14710_s7 + $0x18] sm:$0xff]  }
 0x4d8   : > { %10202 = vmatprep.subr.bf16.mxu1 %v10843_v25  ;;  %v10900_v25 = vld [vmem:[%s14710_s7 + $0x50] sm:$0xff]  }
 0x4db   : > { %10203 = vmatpush3.bf16.msra.mxu1 %v10844_v47  ;;  %v10901_v47 = vld [vmem:[%s14710_s7 + $0x10] sm:$0xff]  }
 0x4dc   : > { %10204 = vmatprep.subr.bf16.mxu1 %v10845_v18  ;;  %v10902_v18 = vld [vmem:[%s14710_s7 + $0x48] sm:$0xff]  }
 0x4de   : > { %v10166_v11 = vpop.f32.mrf.mxu1 }
 0x4df   : > { %10205 = vmatpush3.bf16.msra.mxu1 %v10846_v60  ;;  %v10903_v60 = vld [vmem:[%s14710_s7 + $0x8] sm:$0xff]  }
 0x4e0   : > { %v10167_v62 = vpop.f32.mrf.mxu1  ;;  %10206 = vmatprep.subr.bf16.mxu1 %v10847_v52  ;;  %v10904_v52 = vld [vmem:[%s14710_s7 + $0x40] sm:$0xff]  }
 0x4e1   : > { %v10168_v2 = vadd.f32 %v10167_v62, %v10166_v11  ;;  %v10906_v11 = vld [vmem:[%s14710_s7 + $0x90] sm:$0x3f]   ;;  %v10907_v62 = vld [vmem:[%s14710_s7 + $0x88] sm:$0xff]  }
 0x4e2   : > { %v10169_v5 = vpop.f32.mrf.mxu1 }
 0x4e3   : > { %v7606_v55 = vadd.f32 %v10168_v2, %v7566_v41  ;;  %10207 = vmatpush3.bf16.msra.mxu1 %v10848_v63  ;;  %v8889_v63 = vsel %vm8887_vm6, %v10906_v11, 0  ;;  %v7851_v41 = vld [vmem:[%s14709_s6] sm:$0x7] }
 0x4e4   : > { %v10170_v50 = vpop.f32.mrf.mxu1  ;;  %10208 = vmatprep.subr.bf16.mxu1 %v10849_v27  ;;  %v10908_v27 = vld [vmem:[%s14710_s7 + $0x80] sm:$0xff]   ;;  %v8456_v2 = vrot.slane %v7851_v41, %v11939_v51 }
 0x4e5   : > { %v7646_v6 = vadd.f32 %v14437_v17, %v7606_v55 }
 0x4e7   : > { %10209 = vmatpush3.bf16.msra.mxu1 %v10850_v44 }
 0x4e8   : > { %10271 = vmatprep.subr.bf16.mxu1 %v10975_v34 }
 0x4ea   : > { %8638 = vmatmul.mubr.bf16.vlgmr.msra.gmra.mxu1 %v14306_v40  ;;  %v10865_v40 = vld [vmem:[%s14708_s5 + $0x338] ss:$12 sps:$4 sm:$0xff]  }
 0x4eb   : > { %10272 = vmatpush3.bf16.msra.mxu1 %v8480_v28  ;;  %10283 = vmatprep.mubr.msk.bf16.mxu1 %vm10976_vm4, %v10975_v34 }
 0x4ec   : > { %10273 = vmatprep.subr.bf16.mxu1 %v10975_v34 }
 0x4ef   : > { %10274 = vmatpush3.bf16.msra.mxu1 %v10857_v48 }
 0x4f0   : > { %10275 = vmatprep.subr.bf16.mxu1 %v10975_v34 }
 0x4f3   : > { %10276 = vmatpush3.bf16.msra.mxu1 %v10861_v7 }
 0x4f4   : > { %10277 = vmatprep.subr.bf16.mxu1 %v10975_v34 }
 0x4f7   : > { %10278 = vmatpush3.bf16.msra.mxu1 %v10865_v40  ;;  %v8460_v40 = vrot.slane %v7851_v41, %v11948_v57  ;;  %v8464_v57 = vrot.slane %v7851_v41, %v12546_v45 }
 0x4f8   : > { %10279 = vmatprep.subr.bf16.mxu1 %v10975_v34 }
 0x4fb   : > { %10280 = vmatpush3.bf16.msra.mxu1 %v10869_v9 }
 0x4fc   : > { %10281 = vmatprep.subr.bf16.mxu1 %v10975_v34 }
 0x4ff   : > { %10282 = vmatpush3.bf16.msra.mxu1 %v10873_v58 }
 0x500   : > { %10287 = vmatprep.subr.bf16.mxu1 %v10975_v34 }
 0x502   : > { %v7685_v49 = vpop.f32.mrf.mxu1 }
 0x503   : > { %v7686_v33 = vadd.f32 %v7685_v49, %v7646_v6 }
 0x504   : > { %v7687_v39 = vpop.f32.mrf.mxu1 }
 0x505   : > { %v7695_v15 = vmax.f32 %v7686_v33, 0.0 }
 0x506   : > { %v7688_v29 = vpop.f32.mrf.mxu1 }
 0x507   : > { %v7700_v56 = vpack.c.bf16 %v7695_v15, %v7695_v15 }
 0x508   : > { %v7689_v17 = vpop.f32.mrf.mxu1  ;;  %v14540_v19 = vpop.f32.mrf.mxu0 }
 0x509   : > { %10103 = vmatmul.mubr.msk.bf16.vlgmr.msra.gmra.mxu0 %vm8468_vm5, %v7700_v56  ;;  %10284 = vmatmul.mubr.msk.bf16.vlgmr.msra.gmra.mxu1 %vm8468_vm5, %v7700_v56  ;;  %v8517_v5 = vadd.f32 %v14540_v19, %v8456_v2 }
 0x50a   : > { %10217 = vmatpush3.bf16.msra.mxu0 %v10875_v4  ;;  %8677 = vmatprep.mubr.bf16.mxu0 %v14448_v26  ;;  %v14543_v10 = vpop.f32.mrf.mxu0  ;;  %v10891_v26 = vld [vmem:[%s14710_s7 + $0x38] sm:$0xff]  }
 0x50b   : > { %10218 = vmatprep.subr.bf16.mxu0 %v10876_v14  ;;  %10293 = vmatprep.mubr.msk.bf16.mxu1 %vm10976_vm4, %v10975_v34  ;;  %v8519_v9 = vadd.f32 %v14543_v10, %v8460_v40 }
 0x50c   : > { %v8520_v21 = vpop.f32.mrf.mxu0  ;;  %10288 = vmatpush3.bf16.msra.mxu1 %v8889_v63 }
 0x50d   : > { %10289 = vmatprep.subr.bf16.mxu1 %v10975_v34 }
 0x50e   : > { %10219 = vmatpush3.bf16.msra.mxu0 %v10877_v20  ;;  %v8521_v13 = vpop.f32.mrf.mxu0 }
 0x50f   : > { %10220 = vmatprep.subr.bf16.mxu0 %v10878_v1 }
 0x510   : > { %10290 = vmatpush3.bf16.msra.mxu1 %v10907_v62 }
 0x511   : > { %10291 = vmatprep.subr.bf16.mxu1 %v10975_v34 }
 0x512   : > { %10221 = vmatpush3.bf16.msra.mxu0 %v10879_v23 }
 0x513   : > { %10222 = vmatprep.subr.bf16.mxu0 %v10880_v22 }
 0x514   : > { %10292 = vmatpush3.bf16.msra.mxu1 %v10908_v27 }
 0x516   : > { %10223 = vmatpush3.bf16.msra.mxu0 %v10881_v31 }
 0x517   : > { %10224 = vmatprep.subr.bf16.mxu0 %v10882_v59 }
 0x51a   : > { %10225 = vmatpush3.bf16.msra.mxu0 %v10883_v12 }
 0x51b   : > { %10226 = vmatprep.subr.bf16.mxu0 %v10884_v42 }
 0x51e   : > { %10227 = vmatpush3.bf16.msra.mxu0 %v10885_v61 }
 0x51f   : > { %10228 = vmatprep.subr.bf16.mxu0 %v10886_v30 }
 0x522   : > { %10229 = vmatpush3.bf16.msra.mxu0 %v10887_v32 }
 0x523   : > { %10230 = vmatprep.subr.bf16.mxu0 %v10888_v43 }
 0x526   : > { %10231 = vmatpush3.bf16.msra.mxu0 %v10889_v53 }
 0x527   : > { %10245 = vmatprep.subr.bf16.mxu0 %v10890_v0 }
 0x529   : > { %8678 = vmatmul.mubr.bf16.vlgmr.msra.gmra.mxu0 %v14453_v38  ;;  %v10894_v38 = vld [vmem:[%s14710_s7 + $0x68] sm:$0xff]  }
 0x52a   : > { %10246 = vmatpush3.bf16.msra.mxu0 %v10891_v26 }
 0x52b   : > { %10247 = vmatprep.subr.bf16.mxu0 %v10892_v54  ;;  %v8769_v54 = vld [vmem:[%s14711_s8] sm:$0x1] }
 0x52e   : > { %10248 = vmatpush3.bf16.msra.mxu0 %v10893_v35 }
 0x52f   : > { %10249 = vmatprep.subr.bf16.mxu0 %v10894_v38 }
 0x532   : > { %10250 = vmatpush3.bf16.msra.mxu0 %v10895_v8 }
 0x533   : > { %10251 = vmatprep.subr.bf16.mxu0 %v10896_v36 }
 0x536   : > { %10252 = vmatpush3.bf16.msra.mxu0 %v10897_v37 }
 0x537   : > { %10253 = vmatprep.subr.bf16.mxu0 %v10898_v3 }
 0x53a   : > { %10254 = vmatpush3.bf16.msra.mxu0 %v10899_v46 }
 0x53b   : > { %10255 = vmatprep.subr.bf16.mxu0 %v10900_v25 }
 0x53e   : > { %10256 = vmatpush3.bf16.msra.mxu0 %v10901_v47 }
 0x53f   : > { %10257 = vmatprep.subr.bf16.mxu0 %v10902_v18 }
 0x542   : > { %10258 = vmatpush3.bf16.msra.mxu0 %v10903_v60 }
 0x543   : > { %10259 = vmatprep.subr.bf16.mxu0 %v10904_v52 }
 0x546   : > { %10260 = vmatpush3.bf16.msra.mxu0 %v10905_v16 }
 0x58a   : > { %v8557_v55 = vpop.f32.mrf.mxu1 }
 0x58b   : > { %v8558_v44 = vadd.f32 %v8557_v55, %v8517_v5 }
 0x58c   : > { %v8559_v50 = vpop.f32.mrf.mxu1 }
 0x58d   : > { %v8560_v33 = vadd.f32 %v8559_v50, %v8519_v9 }
 0x58e   : > { %v8561_v24 = vpop.f32.mrf.mxu1 }
 0x590   : > { %v8562_v6 = vpop.f32.mrf.mxu1 }
 0x5aa   : > { %v10210_v28 = vpop.f32.mrf.mxu1 }
 0x5ac   : > { %v10211_v34 = vpop.f32.mrf.mxu1 }
 0x5ad   : > { %v10212_v10 = vadd.f32 %v10211_v34, %v10210_v28 }
 0x5ae   : > { %v10213_v48 = vpop.f32.mrf.mxu1 }
 0x5af   : > { %v8640_v22 = vadd.f32 %v10212_v10, %v8464_v57 }
 0x5b0   : > { %v10214_v7 = vpop.f32.mrf.mxu1 }
 0x5c9   : > { %v8598_v58 = vpop.f32.mrf.mxu0  ;;  %v8719_v49 = vpop.f32.mrf.mxu1 }
 0x5ca   : > { %v8599_v39 = vadd.f32 %v8598_v58, %v8558_v44 }
 0x5cb   : > { %v8600_v51 = vpop.f32.mrf.mxu0  ;;  %v10285_v15 = vpop.f32.mrf.mxu1 }
 0x5cc   : > { %v8601_v29 = vadd.f32 %v8600_v51, %v8560_v33  ;;  %v8725_v4 = vmax.f32 %v8599_v39, 0.0 }
 0x5cd   : > { %v8602_v56 = vpop.f32.mrf.mxu0  ;;  %v8722_v14 = vpop.f32.mrf.mxu1 }
 0x5ce   : > { %v8726_v17 = vmax.f32 %v8601_v29, 0.0  ;;  %v8728_v21 = vpack.c.bf16 %v8725_v4, %v8725_v4 }
 0x5cf   : > { %v8603_v19 = vpop.f32.mrf.mxu0  ;;  %v10286_v20 = vpop.f32.mrf.mxu1 }
 0x5d0   : > { %v8729_v1 = vpack.c.bf16 %v8726_v17, %v8726_v17 }
 0x5d2   : > { %8923 = vmatprep.mubr.bf16.mxu0 %v8729_v1 }
 0x5d3   : > { %8924 = vmatmul.mubr.bf16.vlgmr.msra.gmra.mxu0 %v8728_v21 }
 0x5e9   : > { %v10232_v13 = vpop.f32.mrf.mxu0 }
 0x5eb   : > { %v10233_v23 = vpop.f32.mrf.mxu0 }
 0x5ec   : > { %v10234_v31 = vadd.f32 %v10233_v23, %v10232_v13 }
 0x5ed   : > { %v10235_v59 = vpop.f32.mrf.mxu0 }
 0x5ee   : > { %v8680_v12 = vadd.f32 %v10234_v31, %v8640_v22 }
 0x5ef   : > { %v10236_v42 = vpop.f32.mrf.mxu0 }
 0x5f0   : > { %v8720_v61 = vadd.f32 %v8719_v49, %v8680_v12 }
 0x5f2   : > { %v8727_v30 = vmax.f32 %v8720_v61, 0.0 }
 0x5f4   : > { %v8730_v32 = vpack.c.bf16 %v8727_v30, %v8727_v30 }
 0x5f6   : > { %10294 = vmatmul.mubr.msk.bf16.vlgmr.msra.gmra.mxu1 %vm8883_vm7, %v8730_v32 }
 0x693   : > { %v10261_v43 = vpop.f32.mrf.mxu0 }
 0x695   : > { %v10262_v53 = vpop.f32.mrf.mxu0 }
 0x696   : > { %v10263_v45 = vadd.f32 %v10262_v53, %v10261_v43 }
 0x697   : > { %v10264_v0 = vpop.f32.mrf.mxu0 }
 0x698   : > { %v8926_v35 = vadd.f32 %v10263_v45, %v8769_v54 }
 0x699   : > { %v10265_v26 = vpop.f32.mrf.mxu0 }
 0x6b6   : > { %v8965_v38 = vpop.f32.mrf.mxu1 }
 0x6b7   : > { %v8966_v8 = vadd.f32 %v8965_v38, %v8926_v35 }
 0x6b8   : > { %v10295_v36 = vpop.f32.mrf.mxu1 }
 0x6b9   : > { %8972 = vst.msk [vmem:[%s322_s16] sm:$0x1] %vm8971_vm8, %v8966_v8 }
 0x6ba   : > { %v8968_v37 = vpop.f32.mrf.mxu1 }
 0x6bb   : > { %10924 = shalt.err (!%p10921_p3)
}
 0x6bc   : > { %s10925_s28 = scalar_lea.hbm %s14662_s14, 16  ;;  %s10929_s16 = scalar_lea.hbm %s14712_s9, 32 }
 0x6bd   : > { %p10926_p4 = scmp.ne.s32.totalorder %s14662_s14, %s10925_s28  ;;  %p10930_p9 = scmp.lt.s32.totalorder %s14662_s14, %s14712_s9 }
 0x6be   : > { %p10931_p10 = scmp.lt.s32.totalorder %s10929_s16, %s10925_s28 }
 0x6bf   : > { %p10927_p7 = pnand %p10926_p4, %p11066_p5 }
 0x6c0   : > { %p10932_p11 = por %p10931_p10, %p10930_p9 }
 0x6c1   : > { %p10928_p8 = pneg %p10927_p7 }
 0x6c3   : > { %p10933_p12 = pnand %p10932_p11, %p10928_p8 }
 0x6c5   : > { %10936 = shalt.err (!%p10933_p12)
}
 0x6c6   : > { %10298 = dma.vmem_to_hbm [thread:$0]  (%p11066_p5), %s14664_s17, 16, %s14662_s14, %s8974_s13   ;;  %v10296_v3 = vpop.f32.mrf.mxu1 }
 0x6c7 PF: > { %p10304_p13 = scmp.ge.s32.totalorder %s10971_s12, 2  ;;  %s8998_s21 = sand.u32 1, %s10959_s30  }
 0x6c8   : > { %s8999_s24 = scalar_lea.sflag [#allocation3], %s8998_s21 }
 0x6c9   : > { %p10301_p0 = pnand %p10304_p13, %p11070_p6 }
 0x6cb   : > { %p10302_p1 = pneg %p10301_p0 }
 0x6cd   : > { %10954 = dma.done.wait (%p10302_p1), %s8999_s24, 16  }
 0x6ce   : > { %10956 = vsyncadd (%p10302_p1), %s8999_s24, 4294967280  ;;  %p19_p2 = scmp.ge.s32.totalorder %s11053_s15, 4   ;;  %s14715_s30 = smov %s10963_s10 }
 0x6cf   : > { %s14716_s10 = smov %s10967_s11  ;;  %s14717_s11 = smov %s11064_s18 }
 0x6d0   : > { %s14718_s12 = smov %s11053_s15  ;;  %21 = sbr.rel (!%p19_p2) target bundleno = 3 (0x3), region = 91 }
 0x6d5   :  { %9003 = vsyncpa [#allocation3], 1 }
 0x6d6   :  { %9005 = vsyncpa [#allocation3 + $0x1], 1 }

</bundles_post_ra>
